<compile_context>
chip_gen: v7x
topology: tpu7x:2x2x1
jax: 0.10.0
libtpu: 0.0.40
codegen_flags: <defaults>
</compile_context>

<pallas_src>
import functools

import jax
import jax.numpy as jnp
from jax.experimental import pallas as pl
from jax.experimental.pallas import tpu as pltpu

D_IN, D_H1, D_H2, D_OUT = 3072, 1024, 512, 256


def _encoder_kernel(x_ref, w1_ref, b1_ref, w2_ref, b2_ref, w3_ref, b3_ref, o_ref):
    """One M-tile of the fused 3-layer MLP; fp32 accumulation on the MXU."""
    x = x_ref[...]  # (TM, 3072) bf16

    h = jnp.dot(x, w1_ref[...], preferred_element_type=jnp.float32) + b1_ref[...]
    h = jnp.maximum(h.astype(jnp.bfloat16), 0)          # ReLU after bf16 downcast

    h = jnp.dot(h, w2_ref[...], preferred_element_type=jnp.float32) + b2_ref[...]
    h = jnp.maximum(h.astype(jnp.bfloat16), 0)

    h = jnp.dot(h, w3_ref[...], preferred_element_type=jnp.float32) + b3_ref[...]
    o_ref[...] = h.astype(o_ref.dtype)


def _resident_spec(shape):
    """Constant-index, single-buffered block: DMA'd once, stays VMEM-resident."""
    return pl.BlockSpec(shape, lambda i: (0, 0), pipeline_mode=pl.Buffered(1))


def encoder_pallas(x2d, params, *, tm_max=512):
    """x2d: (B, 3072) bf16. Returns (B, 256) fp32."""
    (w1, b1), (w2, b2), (w3, b3) = params
    B = x2d.shape[0]
    tm = min(tm_max, B)            # TM==B (full extent) for small batch, else <=512
    grid = (pl.cdiv(B, tm),)       # ragged last block is fine: rows are independent

    flops = 2 * B * (D_IN * D_H1 + D_H1 * D_H2 + D_H2 * D_OUT)
    bytes_accessed = (
        int(x2d.size) * x2d.dtype.itemsize
        + sum(int(a.size) * a.dtype.itemsize for wb in params for a in wb)
        + B * D_OUT * 4)

    grid_spec = pltpu.PrefetchScalarGridSpec(
        num_scalar_prefetch=0,
        grid=grid,
        in_specs=[
            pl.BlockSpec((tm, D_IN), lambda i: (i, 0)),   # activations (bf16), tiled
            _resident_spec((D_IN, D_H1)),                 # w1 (bf16)
            _resident_spec((1, D_H1)),                    # b1 (fp32)
            _resident_spec((D_H1, D_H2)),                 # w2 (bf16)
            _resident_spec((1, D_H2)),                    # b2 (fp32)
            _resident_spec((D_H2, D_OUT)),                # w3 (bf16)
            _resident_spec((1, D_OUT)),                   # b3 (fp32)
        ],
        out_specs=pl.BlockSpec((tm, D_OUT), lambda i: (i, 0)),
    )

    return pl.pallas_call(
        _encoder_kernel,
        out_shape=jax.ShapeDtypeStruct((B, D_OUT), jnp.float32),
        grid_spec=grid_spec,
        compiler_params=pltpu.CompilerParams(
            dimension_semantics=("parallel",),   # megacore sharding of the M axis
            vmem_limit_bytes=48 * 1024 * 1024,
        ),
        cost_estimate=pl.CostEstimate(
            flops=flops, transcendentals=0, bytes_accessed=bytes_accessed),
    )(x2d, w1, b1, w2, b2, w3, b3)


def init_encoder_params(key):
    """PyTorch nn.Linear-style init (U(-1/sqrt(fan_in), +)); weights stored bf16."""
    dims = [D_IN, D_H1, D_H2, D_OUT]
    params = []
    for i in range(3):
        key, wk, bk = jax.random.split(key, 3)
        fan_in, fan_out = dims[i], dims[i + 1]
        bound = 1.0 / (fan_in ** 0.5)
        w = jax.random.uniform(wk, (fan_in, fan_out),
                               minval=-bound, maxval=bound, dtype=jnp.float32)
        b = jax.random.uniform(bk, (fan_out,),
                               minval=-bound, maxval=bound, dtype=jnp.float32)
        params.append((w.astype(jnp.bfloat16), b.reshape(1, fan_out)))
    return params


@functools.partial(jax.jit, static_argnames=("tm_max",))
def encoder_forward(x, params, tm_max=512):
    """x: (B, 3, 32, 32) -> (B, 256), matching PyTorch x.view(B, -1) + MLP."""
    B = x.shape[0]
    h = x.reshape(B, -1).astype(jnp.bfloat16)   # cast fused into the reshape, no pad
    return encoder_pallas(h, params, tm_max=tm_max)


def encoder_ref(x, params):
    """Pure-JAX reference with identical bf16-weight / fp32-accum numerics."""
    h = x.reshape(x.shape[0], -1).astype(jnp.bfloat16)
    for i, (w, b) in enumerate(params):
        h = jnp.dot(h, w, preferred_element_type=jnp.float32) + b
        if i < 2:
            h = jnp.maximum(h.astype(jnp.bfloat16), 0)
    return h


if __name__ == "__main__":
    key = jax.random.PRNGKey(0)
    pkey, xkey, xkey2 = jax.random.split(key, 3)
    params = init_encoder_params(pkey)

    # Small-batch case (single full-extent M block).
    B = 2
    x = jax.random.normal(xkey, (B, 3, 32, 32), dtype=jnp.float32)
    out = jax.block_until_ready(encoder_forward(x, params))
    assert out.shape == (B, D_OUT), out.shape
    assert bool(jnp.all(jnp.isfinite(out)))
    ref = encoder_ref(x, params)
    assert bool(jnp.allclose(out, ref, rtol=2e-2, atol=2e-2)), (
        float(jnp.max(jnp.abs(out - ref))))

    # Multi-block / ragged-last-block case (exercises the M-tiled pipeline).
    B2 = 20
    x2 = jax.random.normal(xkey2, (B2, 3, 32, 32), dtype=jnp.float32)
    out2 = jax.block_until_ready(encoder_forward(x2, params, tm_max=8))
    assert out2.shape == (B2, D_OUT), out2.shape
    assert bool(jnp.all(jnp.isfinite(out2)))
    ref2 = encoder_ref(x2, params)
    assert bool(jnp.allclose(out2, ref2, rtol=2e-2, atol=2e-2)), (
        float(jnp.max(jnp.abs(out2 - ref2))))

    print("KERNEL_OK")
</pallas_src>

<mosaic_0001>
module attributes {stable_mosaic.version = 11 : i64} {
  func.func @_encoder_kernel(%arg0: i32, %arg1: memref<2x3072xbf16, #tpu.memory_space<vmem>>, %arg2: memref<3072x1024xbf16, #tpu.memory_space<vmem>>, %arg3: memref<1x1024xf32, #tpu.memory_space<vmem>>, %arg4: memref<1024x512xbf16, #tpu.memory_space<vmem>>, %arg5: memref<1x512xf32, #tpu.memory_space<vmem>>, %arg6: memref<512x256xbf16, #tpu.memory_space<vmem>>, %arg7: memref<1x256xf32, #tpu.memory_space<vmem>>, %arg8: memref<2x256xf32, #tpu.memory_space<vmem>>) attributes {dimension_semantics = [#tpu.dimension_semantics<parallel>], iteration_bounds = array<i64: 1>, scalar_prefetch = 0 : i64, scratch_operands = 0 : i64, tpu.core_type = #tpu.core_type<tc>, window_params = [{transform_indices = @transform_0, window_bounds = array<i64: 2, 3072>}, {pipeline_mode = #tpu.pipeline_mode<synchronous>, transform_indices = @transform_1, window_bounds = array<i64: 3072, 1024>}, {pipeline_mode = #tpu.pipeline_mode<synchronous>, transform_indices = @transform_2, window_bounds = array<i64: 1, 1024>}, {pipeline_mode = #tpu.pipeline_mode<synchronous>, transform_indices = @transform_3, window_bounds = array<i64: 1024, 512>}, {pipeline_mode = #tpu.pipeline_mode<synchronous>, transform_indices = @transform_4, window_bounds = array<i64: 1, 512>}, {pipeline_mode = #tpu.pipeline_mode<synchronous>, transform_indices = @transform_5, window_bounds = array<i64: 512, 256>}, {pipeline_mode = #tpu.pipeline_mode<synchronous>, transform_indices = @transform_6, window_bounds = array<i64: 1, 256>}, {transform_indices = @transform_7, window_bounds = array<i64: 2, 256>}]} {
    %c0 = arith.constant 0 : index
    %c0_0 = arith.constant 0 : index
    %0 = vector.load %arg1[%c0, %c0_0] : memref<2x3072xbf16, #tpu.memory_space<vmem>>, vector<2x3072xbf16>
    %c0_1 = arith.constant 0 : index
    %c0_2 = arith.constant 0 : index
    %1 = vector.load %arg2[%c0_1, %c0_2] : memref<3072x1024xbf16, #tpu.memory_space<vmem>>, vector<3072x1024xbf16>
    %cst = arith.constant dense<0.000000e+00> : vector<2x1024xf32>
    %2 = tpu.matmul %0, %1, %cst {dimension_numbers = #tpu.dot_dimension_numbers<[1], [0], [0], [1], [0, 0, 1, 1], [], []>} : vector<2x3072xbf16>, vector<3072x1024xbf16>, vector<2x1024xf32> -> vector<2x1024xf32>
    %c0_3 = arith.constant 0 : index
    %c0_4 = arith.constant 0 : index
    %3 = vector.load %arg3[%c0_3, %c0_4] : memref<1x1024xf32, #tpu.memory_space<vmem>>, vector<1x1024xf32>
    %4 = vector.broadcast %3 : vector<1x1024xf32> to vector<2x1024xf32>
    %5 = arith.addf %2, %4 : vector<2x1024xf32>
    %6 = arith.truncf %5 : vector<2x1024xf32> to vector<2x1024xbf16>
    %cst_5 = arith.constant 0.000000e+00 : bf16
    %7 = vector.broadcast %cst_5 : bf16 to vector<2x1024xbf16>
    %8 = arith.maximumf %6, %7 : vector<2x1024xbf16>
    %c0_6 = arith.constant 0 : index
    %c0_7 = arith.constant 0 : index
    %9 = vector.load %arg4[%c0_6, %c0_7] : memref<1024x512xbf16, #tpu.memory_space<vmem>>, vector<1024x512xbf16>
    %cst_8 = arith.constant dense<0.000000e+00> : vector<2x512xf32>
    %10 = tpu.matmul %8, %9, %cst_8 {dimension_numbers = #tpu.dot_dimension_numbers<[1], [0], [0], [1], [0, 0, 1, 1], [], []>} : vector<2x1024xbf16>, vector<1024x512xbf16>, vector<2x512xf32> -> vector<2x512xf32>
    %c0_9 = arith.constant 0 : index
    %c0_10 = arith.constant 0 : index
    %11 = vector.load %arg5[%c0_9, %c0_10] : memref<1x512xf32, #tpu.memory_space<vmem>>, vector<1x512xf32>
    %12 = vector.broadcast %11 : vector<1x512xf32> to vector<2x512xf32>
    %13 = arith.addf %10, %12 : vector<2x512xf32>
    %14 = arith.truncf %13 : vector<2x512xf32> to vector<2x512xbf16>
    %cst_11 = arith.constant 0.000000e+00 : bf16
    %15 = vector.broadcast %cst_11 : bf16 to vector<2x512xbf16>
    %16 = arith.maximumf %14, %15 : vector<2x512xbf16>
    %c0_12 = arith.constant 0 : index
    %c0_13 = arith.constant 0 : index
    %17 = vector.load %arg6[%c0_12, %c0_13] : memref<512x256xbf16, #tpu.memory_space<vmem>>, vector<512x256xbf16>
    %cst_14 = arith.constant dense<0.000000e+00> : vector<2x256xf32>
    %18 = tpu.matmul %16, %17, %cst_14 {dimension_numbers = #tpu.dot_dimension_numbers<[1], [0], [0], [1], [0, 0, 1, 1], [], []>} : vector<2x512xbf16>, vector<512x256xbf16>, vector<2x256xf32> -> vector<2x256xf32>
    %c0_15 = arith.constant 0 : index
    %c0_16 = arith.constant 0 : index
    %19 = vector.load %arg7[%c0_15, %c0_16] : memref<1x256xf32, #tpu.memory_space<vmem>>, vector<1x256xf32>
    %20 = vector.broadcast %19 : vector<1x256xf32> to vector<2x256xf32>
    %21 = arith.addf %18, %20 : vector<2x256xf32>
    %c0_17 = arith.constant 0 : index
    %c0_18 = arith.constant 0 : index
    %22 = vector.load %arg8[%c0_17, %c0_18] : memref<2x256xf32, #tpu.memory_space<vmem>>, vector<2x256xf32>
    tpu.vector_store %arg8[%c0_17, %c0_18], %21 {strides = array<i32>} : memref<2x256xf32, #tpu.memory_space<vmem>>, vector<2x256xf32>,
    return
  }
  func.func @transform_0(%arg0: i32) -> (i32, i32) {
    %c0_i32 = arith.constant 0 : i32
    %c0_i32_0 = arith.constant 0 : i32
    return %arg0, %c0_i32 : i32, i32
  }
  func.func @transform_1(%arg0: i32) -> (i32, i32) {
    %c0_i32 = arith.constant 0 : i32
    %c0_i32_0 = arith.constant 0 : i32
    %c0_i32_1 = arith.constant 0 : i32
    return %c0_i32, %c0_i32_0 : i32, i32
  }
  func.func @transform_2(%arg0: i32) -> (i32, i32) {
    %c0_i32 = arith.constant 0 : i32
    %c0_i32_0 = arith.constant 0 : i32
    %c0_i32_1 = arith.constant 0 : i32
    return %c0_i32, %c0_i32_0 : i32, i32
  }
  func.func @transform_3(%arg0: i32) -> (i32, i32) {
    %c0_i32 = arith.constant 0 : i32
    %c0_i32_0 = arith.constant 0 : i32
    %c0_i32_1 = arith.constant 0 : i32
    return %c0_i32, %c0_i32_0 : i32, i32
  }
  func.func @transform_4(%arg0: i32) -> (i32, i32) {
    %c0_i32 = arith.constant 0 : i32
    %c0_i32_0 = arith.constant 0 : i32
    %c0_i32_1 = arith.constant 0 : i32
    return %c0_i32, %c0_i32_0 : i32, i32
  }
  func.func @transform_5(%arg0: i32) -> (i32, i32) {
    %c0_i32 = arith.constant 0 : i32
    %c0_i32_0 = arith.constant 0 : i32
    %c0_i32_1 = arith.constant 0 : i32
    return %c0_i32, %c0_i32_0 : i32, i32
  }
  func.func @transform_6(%arg0: i32) -> (i32, i32) {
    %c0_i32 = arith.constant 0 : i32
    %c0_i32_0 = arith.constant 0 : i32
    %c0_i32_1 = arith.constant 0 : i32
    return %c0_i32, %c0_i32_0 : i32, i32
  }
  func.func @transform_7(%arg0: i32) -> (i32, i32) {
    %c0_i32 = arith.constant 0 : i32
    %c0_i32_0 = arith.constant 0 : i32
    return %arg0, %c0_i32 : i32, i32
  }
}

</mosaic_0001>

<bundles_post_ra>
// kernel: encoder_forward.1
= control target key start
LH: loop header
LB: loop body
LE: loop exit
PB: predicated region body
PF: predicated region fallthrough
CT: control target
= control target key end

     0   :  { %12 = vsyncpa [#allocation3], 0  ;;  %s17144_s0 = inlined_call_operand.vmem [shape: bf16[2,3072], index: 0, kind: input, shape index: {}]   ;;  %s17145_s1 = inlined_call_operand.hbm [shape: bf16[3072,1024], index: 1, kind: input, shape index: {}]   ;;  %s17146_s2 = inlined_call_operand.hbm [shape: f32[1,1024], index: 2, kind: input, shape index: {}]   ;;  %s17147_s3 = inlined_call_operand.hbm [shape: bf16[1024,512], index: 3, kind: input, shape index: {}]   ;;  %s17148_s4 = inlined_call_operand.hbm [shape: f32[1,512], index: 4, kind: input, shape index: {}]   ;;  %s17149_s5 = inlined_call_operand.hbm [shape: bf16[512,256], index: 5, kind: input, shape index: {}]   ;;  %s17150_s6 = inlined_call_operand.hbm [shape: f32[1,256], index: 6, kind: input, shape index: {}]   ;;  %s17151_s7 = inlined_call_operand.hbm [shape: f32[2,256], index: 7, kind: output, shape index: {}]  }
   0x1   :  { %13 = vsyncpa [#allocation6], 0 }
   0x2   :  { %14 = vsyncpa [#allocation9], 0 }
   0x3   :  { %15 = vsyncpa [#allocation12], 0 }
   0x4   :  { %16 = vsyncpa [#allocation4], 0  ;;  %s16662_s24 = smov [#allocation5]   ;;  %s16663_s26 = smov [#allocation8]  }
   0x5   :  { %s37_s25 = sshll.u32 %s16662_s24, 4  ;;  %s59_s27 = sshll.u32 %s16663_s26, 4  ;;  %s38_s25 = int_to_ptr.vmem [resolvable:$true] %s37_s25  ;;  %s60_s27 = int_to_ptr.vmem [resolvable:$true] %s59_s27 }
   0x6   :  { %s16498_s30 = scalar_lea.hbm %s17146_s2, 128 }
   0x7   :  { %p16499_p0 = scmp.ne.s32.totalorder %s17146_s2, %s16498_s30  ;;  %p16502_p1 = scmp.lt.u32.totalorder %s16498_s30, %s17146_s2 }
   0x9   :  { %p16504_p2 = pnand %p16502_p1, %p16499_p0 }
   0xb   :  { %16507 = shalt.err (!%p16504_p2)
}
   0xc   :  { %s16508_s12 = scalar_lea.vmem %s38_s25, 128  ;;  %p16513_p4 = scmp.lt.s32.totalorder %s38_s25, %s38_s25 }
   0xd   :  { %p16509_p3 = scmp.ne.s32.totalorder %s38_s25, %s16508_s12  ;;  %p16514_p5 = scmp.lt.s32.totalorder %s16508_s12, %s16508_s12 }
   0xf   :  { %p16515_p6 = por %p16514_p5, %p16513_p4 }
  0x11   :  { %p16516_p7 = pnand %p16515_p6, %p16509_p3 }
  0x13   :  { %16519 = shalt.err (!%p16516_p7)
}
  0x14   :  { %40 = dma.hbm_to_vmem [thread:$0]  %s17146_s2, 128, %s38_s25, [#allocation6]  }
  0x15   :  { %s16520_s17 = scalar_lea.hbm %s17148_s4, 64 }
  0x16   :  { %p16521_p8 = scmp.ne.s32.totalorder %s17148_s4, %s16520_s17  ;;  %p16524_p9 = scmp.lt.u32.totalorder %s16520_s17, %s17148_s4 }
  0x18   :  { %p16526_p10 = pnand %p16524_p9, %p16521_p8 }
  0x1a   :  { %16529 = shalt.err (!%p16526_p10)
}
  0x1b   :  { %s16530_s22 = scalar_lea.vmem %s60_s27, 64  ;;  %p16535_p12 = scmp.lt.s32.totalorder %s60_s27, %s60_s27 }
  0x1c   :  { %p16531_p11 = scmp.ne.s32.totalorder %s60_s27, %s16530_s22  ;;  %p16536_p13 = scmp.lt.s32.totalorder %s16530_s22, %s16530_s22 }
  0x1e   :  { %p16537_p0 = por %p16536_p13, %p16535_p12 }
  0x20   :  { %p16538_p1 = pnand %p16537_p0, %p16531_p11 }
  0x22   :  { %16541 = shalt.err (!%p16538_p1)
}
  0x23   :  { %62 = dma.hbm_to_vmem [thread:$0]  %s17148_s4, 64, %s60_s27, [#allocation9]  }
  0x24   :  { %s16664_s24 = smov [#allocation2]   ;;  %s16542_s29 = scalar_lea.hbm %s17145_s1, 196608 }
  0x25   :  { %s24_s25 = sshll.u32 %s16664_s24, 4  ;;  %p16543_p2 = scmp.ne.s32.totalorder %s17145_s1, %s16542_s29  ;;  %s25_s25 = int_to_ptr.vmem [resolvable:$true] %s24_s25 }
  0x26   :  { %p16546_p3 = scmp.lt.u32.totalorder %s16542_s29, %s17145_s1 }
  0x28   :  { %p16548_p4 = pnand %p16546_p3, %p16543_p2 }
  0x2a   :  { %16551 = shalt.err (!%p16548_p4)
}
  0x2b   :  { %s16552_s11 = scalar_lea.vmem %s25_s25, 196608  ;;  %p16557_p6 = scmp.lt.s32.totalorder %s25_s25, %s25_s25 }
  0x2c   :  { %p16553_p5 = scmp.ne.s32.totalorder %s25_s25, %s16552_s11  ;;  %p16558_p7 = scmp.lt.s32.totalorder %s16552_s11, %s16552_s11 }
  0x2e   :  { %p16559_p8 = por %p16558_p7, %p16557_p6 }
  0x30   :  { %p16560_p9 = pnand %p16559_p8, %p16553_p5 }
  0x32   :  { %16563 = shalt.err (!%p16560_p9)
}
  0x33   :  { %s16665_s4 = smov 512   ;;  %s16666_s27 = smov 32  }
  0x34   :  { %30 = dma.hbm_to_vmem [thread:$0]  %s17145_s1, 196608, %s25_s25, [#allocation3], %s16665_s4, %s16665_s4, %s16666_s27  }
  0x35   :  { %s16667_s14 = smov [#allocation7]   ;;  %s16564_s18 = scalar_lea.hbm %s17147_s3, 32768 }
  0x36   :  { %s46_s15 = sshll.u32 %s16667_s14, 4  ;;  %p16565_p10 = scmp.ne.s32.totalorder %s17147_s3, %s16564_s18  ;;  %s47_s15 = int_to_ptr.vmem [resolvable:$true] %s46_s15 }
  0x37   :  { %p16568_p11 = scmp.lt.u32.totalorder %s16564_s18, %s17147_s3 }
  0x39   :  { %p16570_p12 = pnand %p16568_p11, %p16565_p10 }
  0x3b   :  { %16573 = shalt.err (!%p16570_p12)
}
  0x3c   :  { %s16574_s2 = scalar_lea.vmem %s47_s15, 32768  ;;  %p16579_p0 = scmp.lt.s32.totalorder %s47_s15, %s47_s15 }
  0x3d   :  { %p16575_p13 = scmp.ne.s32.totalorder %s47_s15, %s16574_s2  ;;  %p16580_p1 = scmp.lt.s32.totalorder %s16574_s2, %s16574_s2 }
  0x3f   :  { %p16581_p2 = por %p16580_p1, %p16579_p0 }
  0x41   :  { %p16582_p3 = pnand %p16581_p2, %p16575_p13 }
  0x43   :  { %16585 = shalt.err (!%p16582_p3)
}
  0x44   :  { %s16668_s1 = smov 256   ;;  %s16669_s23 = smov 16  }
  0x45   :  { %52 = dma.hbm_to_vmem [thread:$0]  %s17147_s3, 32768, %s47_s15, [#allocation6], %s16668_s1, %s16668_s1, %s16669_s23  }
  0x46   :  { %s16670_s26 = smov [#allocation10]   ;;  %s16586_s8 = scalar_lea.hbm %s17149_s5, 8192 }
  0x47   :  { %s68_s28 = sshll.u32 %s16670_s26, 4  ;;  %p16587_p4 = scmp.ne.s32.totalorder %s17149_s5, %s16586_s8  ;;  %s69_s28 = int_to_ptr.vmem [resolvable:$true] %s68_s28 }
  0x48   :  { %p16590_p5 = scmp.lt.u32.totalorder %s16586_s8, %s17149_s5 }
  0x4a   :  { %p16592_p6 = pnand %p16590_p5, %p16587_p4 }
  0x4c   :  { %16595 = shalt.err (!%p16592_p6)
}
  0x4d   :  { %s16596_s27 = scalar_lea.vmem %s69_s28, 8192  ;;  %p16601_p8 = scmp.lt.s32.totalorder %s69_s28, %s69_s28 }
  0x4e   :  { %p16597_p7 = scmp.ne.s32.totalorder %s69_s28, %s16596_s27  ;;  %p16602_p9 = scmp.lt.s32.totalorder %s16596_s27, %s16596_s27 }
  0x50   :  { %p16603_p10 = por %p16602_p9, %p16601_p8 }
  0x52   :  { %p16604_p11 = pnand %p16603_p10, %p16597_p7 }
  0x54   :  { %16607 = shalt.err (!%p16604_p11)
}
  0x55   :  { %s16671_s3 = smov 128   ;;  %s16672_s12 = smov 8  }
  0x56   :  { %74 = dma.hbm_to_vmem [thread:$0]  %s17149_s5, 8192, %s69_s28, [#allocation9], %s16671_s3, %s16671_s3, %s16672_s12  }
  0x57   :  { %s16673_s15 = smov [#allocation11]   ;;  %s16608_s19 = scalar_lea.hbm %s17150_s6, 32 }
  0x58   :  { %s81_s16 = sshll.u32 %s16673_s15, 4  ;;  %p16609_p12 = scmp.ne.s32.totalorder %s17150_s6, %s16608_s19  ;;  %s82_s16 = int_to_ptr.vmem [resolvable:$true] %s81_s16 }
  0x59   :  { %p16612_p13 = scmp.lt.u32.totalorder %s16608_s19, %s17150_s6 }
  0x5b   :  { %p16614_p0 = pnand %p16612_p13, %p16609_p12 }
  0x5d   :  { %16617 = shalt.err (!%p16614_p0)
}
  0x5e   :  { %s16618_s1 = scalar_lea.vmem %s82_s16, 32  ;;  %p16623_p2 = scmp.lt.s32.totalorder %s82_s16, %s82_s16 }
  0x5f   :  { %p16619_p1 = scmp.ne.s32.totalorder %s82_s16, %s16618_s1  ;;  %p16624_p3 = scmp.lt.s32.totalorder %s16618_s1, %s16618_s1 }
  0x61   :  { %p16625_p4 = por %p16624_p3, %p16623_p2 }
  0x63   :  { %p16626_p5 = pnand %p16625_p4, %p16619_p1 }
  0x65   :  { %16629 = shalt.err (!%p16626_p5)
}
  0x66   :  { %84 = dma.hbm_to_vmem [thread:$0]  %s17150_s6, 32, %s82_s16, [#allocation12]  }
  0x67   :  { %16652 = dma.done.wait [#allocation3], 196608  }
  0x68   :  { %16653 = vsyncadd [#allocation3], 4294770688 }
  0x69   :  { %16654 = dma.done.wait [#allocation6], 32896  }
  0x6a   :  { %16655 = vsyncadd [#allocation6], 4294934400 }
  0x6b   :  { %16656 = dma.done.wait [#allocation9], 8256  }
  0x6c   :  { %16657 = vsyncadd [#allocation9], 4294959040 }
  0x6d   :  { %16658 = dma.done.wait [#allocation12], 32  }
  0x6e   :  { %16659 = vsyncadd [#allocation12], 4294967264  ;;  %v107_v0 = vld [vmem:[#allocation2] sm:$0xff]  ;;  %v1645_v32 = vlaneseq  ;;  %v16674_v33 = vmov 1966171168  }
  0x6f   :  { %v111_v1 = vld [vmem:[#allocation2 + $0x20] sm:$0xff]  ;;  %v1690_v34 = vunpack.c.l.s4 %v16674_v33 }
  0x70   :  { %v235_v2 = vld [vmem:[#allocation2 + $0x400] sm:$0xff]  ;;  %v13926_v3 = vcombine.high %v107_v0, %v111_v1  ;;  %v13925_v5 = vcombine.low %v107_v0, %v111_v1  ;;  %v16789_v43 = vshrl.u32 %v1645_v32, 7 }
  0x71   :  { %v239_v4 = vld [vmem:[#allocation2 + $0x420] sm:$0xff]  ;;  %v1691_v44 = vunpack.c.0.s8 %v1690_v34 }
  0x72   :  { %v115_v6 = vld [vmem:[#allocation2 + $0x40] sm:$0xff]  ;;  %v14054_v8 = vcombine.high %v235_v2, %v239_v4  ;;  %v14053_v9 = vcombine.low %v235_v2, %v239_v4  ;;  %9539 = vmatprep.subr.bf16.mxu1 %v13926_v3 }
  0x73   :  { %v119_v7 = vld [vmem:[#allocation2 + $0x60] sm:$0xff]  ;;  %9540 = vmatpush1.bf16.msra.mxu1 %v13925_v5  ;;  %v16792_v53 = vsub.s32 %v1691_v44, %v16789_v43 }
  0x74   :  { %v13934_v10 = vcombine.high %v115_v6, %v119_v7  ;;  %v243_v11 = vld [vmem:[#allocation2 + $0x440] sm:$0xff]  ;;  %9580 = vmatprep.subr.bf16.mxu0 %v14054_v8  ;;  %v13933_v18 = vcombine.low %v115_v6, %v119_v7 }
  0x75   :  { %v247_v12 = vld [vmem:[#allocation2 + $0x460] sm:$0xff]  ;;  %9581 = vmatpush1.bf16.msra.mxu0 %v14053_v9 }
  0x76   :  { %v123_v13 = vld [vmem:[#allocation2 + $0x80] sm:$0xff]  ;;  %v14062_v14 = vcombine.high %v243_v11, %v247_v12  ;;  %9541 = vmatprep.subr.bf16.mxu1 %v13934_v10  ;;  %v14061_v19 = vcombine.low %v243_v11, %v247_v12 }
  0x77   :  { %v127_v15 = vld [vmem:[#allocation2 + $0xa0] sm:$0xff]  ;;  %9542 = vmatpush1.bf16.msra.mxu1 %v13933_v18 }
  0x78   :  { %v251_v16 = vld [vmem:[#allocation2 + $0x480] sm:$0xff]  ;;  %v13942_v20 = vcombine.high %v123_v13, %v127_v15  ;;  %9582 = vmatprep.subr.bf16.mxu0 %v14062_v14  ;;  %v13941_v26 = vcombine.low %v123_v13, %v127_v15 }
  0x79   :  { %v255_v17 = vld [vmem:[#allocation2 + $0x4a0] sm:$0xff]  ;;  %9583 = vmatpush1.bf16.msra.mxu0 %v14061_v19 }
  0x7a   :  { %v14070_v21 = vcombine.high %v251_v16, %v255_v17  ;;  %v131_v22 = vld [vmem:[#allocation2 + $0xc0] sm:$0xff]  ;;  %9543 = vmatprep.subr.bf16.mxu1 %v13942_v20  ;;  %v14069_v27 = vcombine.low %v251_v16, %v255_v17 }
  0x7b   :  { %v135_v23 = vld [vmem:[#allocation2 + $0xe0] sm:$0xff]  ;;  %9544 = vmatpush1.bf16.msra.mxu1 %v13941_v26 }
  0x7c   :  { %v259_v24 = vld [vmem:[#allocation2 + $0x4c0] sm:$0xff]  ;;  %v13950_v28 = vcombine.high %v131_v22, %v135_v23  ;;  %9584 = vmatprep.subr.bf16.mxu0 %v14070_v21  ;;  %v13949_v37 = vcombine.low %v131_v22, %v135_v23 }
  0x7d   :  { %v263_v25 = vld [vmem:[#allocation2 + $0x4e0] sm:$0xff]  ;;  %9585 = vmatpush1.bf16.msra.mxu0 %v14069_v27 }
  0x7e   :  { %v14078_v29 = vcombine.high %v259_v24, %v263_v25  ;;  %v139_v30 = vld [vmem:[#allocation2 + $0x100] sm:$0xff]  ;;  %9545 = vmatprep.subr.bf16.mxu1 %v13950_v28  ;;  %v14077_v38 = vcombine.low %v259_v24, %v263_v25 }
  0x7f   :  { %v143_v31 = vld [vmem:[#allocation2 + $0x120] sm:$0xff]  ;;  %9546 = vmatpush1.bf16.msra.mxu1 %v13949_v37 }
  0x80   :  { %v267_v35 = vld [vmem:[#allocation2 + $0x500] sm:$0xff]  ;;  %v13958_v39 = vcombine.high %v139_v30, %v143_v31  ;;  %9586 = vmatprep.subr.bf16.mxu0 %v14078_v29  ;;  %v13957_v47 = vcombine.low %v139_v30, %v143_v31 }
  0x81   :  { %v271_v36 = vld [vmem:[#allocation2 + $0x520] sm:$0xff]  ;;  %9587 = vmatpush1.bf16.msra.mxu0 %v14077_v38 }
  0x82   :  { %v14086_v40 = vcombine.high %v267_v35, %v271_v36  ;;  %v147_v41 = vld [vmem:[#allocation2 + $0x140] sm:$0xff]  ;;  %9547 = vmatprep.subr.bf16.mxu1 %v13958_v39  ;;  %v14085_v48 = vcombine.low %v267_v35, %v271_v36 }
  0x83   :  { %v151_v42 = vld [vmem:[#allocation2 + $0x160] sm:$0xff]  ;;  %9548 = vmatpush1.bf16.msra.mxu1 %v13957_v47 }
  0x84   :  { %v275_v45 = vld [vmem:[#allocation2 + $0x540] sm:$0xff]  ;;  %v13966_v49 = vcombine.high %v147_v41, %v151_v42  ;;  %9588 = vmatprep.subr.bf16.mxu0 %v14086_v40  ;;  %v13965_v56 = vcombine.low %v147_v41, %v151_v42 }
  0x85   :  { %v279_v46 = vld [vmem:[#allocation2 + $0x560] sm:$0xff]  ;;  %9589 = vmatpush1.bf16.msra.mxu0 %v14085_v48 }
  0x86   :  { %v14094_v50 = vcombine.high %v275_v45, %v279_v46  ;;  %v155_v51 = vld [vmem:[#allocation2 + $0x180] sm:$0xff]  ;;  %9549 = vmatprep.subr.bf16.mxu1 %v13966_v49  ;;  %v14093_v57 = vcombine.low %v275_v45, %v279_v46 }
  0x87   :  { %v159_v52 = vld [vmem:[#allocation2 + $0x1a0] sm:$0xff]  ;;  %9550 = vmatpush1.bf16.msra.mxu1 %v13965_v56 }
  0x88   :  { %v283_v54 = vld [vmem:[#allocation2 + $0x580] sm:$0xff]  ;;  %v13974_v58 = vcombine.high %v155_v51, %v159_v52  ;;  %9590 = vmatprep.subr.bf16.mxu0 %v14094_v50  ;;  %v13973_v2 = vcombine.low %v155_v51, %v159_v52 }
  0x89   :  { %v287_v55 = vld [vmem:[#allocation2 + $0x5a0] sm:$0xff]  ;;  %9591 = vmatpush1.bf16.msra.mxu0 %v14093_v57 }
  0x8a   :  { %v16797_v59 = vld [vmem:[%s17144_s0] sm:$0xff]  ;;  %v14102_v60 = vcombine.high %v283_v54, %v287_v55  ;;  %9551 = vmatprep.subr.bf16.mxu1 %v13974_v58  ;;  %v14101_v4 = vcombine.low %v283_v54, %v287_v55 }
  0x8b   :  { %v163_v61 = vld [vmem:[#allocation2 + $0x1c0] sm:$0xff]  ;;  %v16801_v63 = vrot.slane %v16797_v59, %v16792_v53  ;;  %9552 = vmatpush1.bf16.msra.mxu1 %v13973_v2 }
  0x8c   :  { %v167_v62 = vld [vmem:[#allocation2 + $0x1e0] sm:$0xff]  ;;  %9592 = vmatprep.subr.bf16.mxu0 %v14102_v60 }
  0x8d   :  { %v291_v0 = vld [vmem:[#allocation2 + $0x5c0] sm:$0xff]  ;;  %v1703_v3 = vcombine.high %v16801_v63, %v16801_v63  ;;  %v13982_v5 = vcombine.high %v163_v61, %v167_v62  ;;  %v13981_v12 = vcombine.low %v163_v61, %v167_v62  ;;  %9593 = vmatpush1.bf16.msra.mxu0 %v14101_v4 }
  0x8e   :  { %v295_v1 = vld [vmem:[#allocation2 + $0x5e0] sm:$0xff] }
  0x8f   :  { %v14110_v6 = vcombine.high %v291_v0, %v295_v1  ;;  %v171_v7 = vld [vmem:[#allocation2 + $0x200] sm:$0xff]  ;;  %v16806_v9 = vrot.slane %v1703_v3, %v16792_v53  ;;  %9553 = vmatprep.subr.bf16.mxu1 %v13982_v5  ;;  %v14109_v14 = vcombine.low %v291_v0, %v295_v1 }
  0x90   :  { %v175_v8 = vld [vmem:[#allocation2 + $0x220] sm:$0xff]  ;;  %9554 = vmatpush1.bf16.msra.mxu1 %v13981_v12 }
  0x91   :  { %v299_v10 = vld [vmem:[#allocation2 + $0x600] sm:$0xff]  ;;  %9571 = vmatprep.mubr.bf16.mxu1 %v16806_v9  ;;  %v16811_v13 = vcombine.high %v16806_v9, %v16806_v9  ;;  %v13990_v15 = vcombine.high %v171_v7, %v175_v8  ;;  %9594 = vmatprep.subr.bf16.mxu0 %v14110_v6  ;;  %v13989_v21 = vcombine.low %v171_v7, %v175_v8 }
  0x92   :  { %v303_v11 = vld [vmem:[#allocation2 + $0x620] sm:$0xff]  ;;  %9595 = vmatpush1.bf16.msra.mxu0 %v14109_v14  ;;  %v1688_v7 = vcombine.high %v16797_v59, %v16797_v59  ;;  %v16821_v59 = vrot.slane %v16801_v63, %v16792_v53 }
  0x93   :  { %v14118_v16 = vcombine.high %v299_v10, %v303_v11  ;;  %v179_v17 = vld [vmem:[#allocation2 + $0x240] sm:$0xff]  ;;  %9612 = vmatprep.mubr.bf16.mxu0 %v16811_v13  ;;  %9555 = vmatprep.subr.bf16.mxu1 %v13990_v15  ;;  %v14117_v22 = vcombine.low %v299_v10, %v303_v11 }
  0x94   :  { %v183_v18 = vld [vmem:[#allocation2 + $0x260] sm:$0xff]  ;;  %9556 = vmatpush1.bf16.msra.mxu1 %v13989_v21 }
  0x95   :  { %v307_v19 = vld [vmem:[#allocation2 + $0x640] sm:$0xff]  ;;  %v13998_v23 = vcombine.high %v179_v17, %v183_v18  ;;  %9596 = vmatprep.subr.bf16.mxu0 %v14118_v16  ;;  %v13997_v29 = vcombine.low %v179_v17, %v183_v18  ;;  %v108_v16 = vld [vmem:[#allocation2 + $0x8] sm:$0xff]  ;;  %v16817_v18 = vrot.slane %v1688_v7, %v16792_v53 }
  0x96   :  { %v311_v20 = vld [vmem:[#allocation2 + $0x660] sm:$0xff]  ;;  %9597 = vmatpush1.bf16.msra.mxu0 %v14117_v22  ;;  %v112_v17 = vld [vmem:[#allocation2 + $0x28] sm:$0xff] }
  0x97   :  { %v14126_v24 = vcombine.high %v307_v19, %v311_v20  ;;  %v187_v25 = vld [vmem:[#allocation2 + $0x280] sm:$0xff]  ;;  %9557 = vmatprep.subr.bf16.mxu1 %v13998_v23  ;;  %v14125_v30 = vcombine.low %v307_v19, %v311_v20  ;;  %v13928_v23 = vcombine.high %v108_v16, %v112_v17 }
  0x98   :  { %v191_v26 = vld [vmem:[#allocation2 + $0x2a0] sm:$0xff]  ;;  %9558 = vmatpush1.bf16.msra.mxu1 %v13997_v29 }
  0x99   :  { %v315_v27 = vld [vmem:[#allocation2 + $0x680] sm:$0xff]  ;;  %v14006_v31 = vcombine.high %v187_v25, %v191_v26  ;;  %9598 = vmatprep.subr.bf16.mxu0 %v14126_v24  ;;  %v14005_v37 = vcombine.low %v187_v25, %v191_v26  ;;  %v116_v25 = vld [vmem:[#allocation2 + $0x48] sm:$0xff] }
  0x9a   :  { %v319_v28 = vld [vmem:[#allocation2 + $0x6a0] sm:$0xff]  ;;  %9599 = vmatpush1.bf16.msra.mxu0 %v14125_v30  ;;  %v120_v26 = vld [vmem:[#allocation2 + $0x68] sm:$0xff]  ;;  %v13927_v30 = vcombine.low %v108_v16, %v112_v17 }
  0x9b   :  { %v14134_v32 = vcombine.high %v315_v27, %v319_v28  ;;  %v195_v33 = vld [vmem:[#allocation2 + $0x2c0] sm:$0xff]  ;;  %9559 = vmatprep.subr.bf16.mxu1 %v14006_v31  ;;  %v14133_v38 = vcombine.low %v315_v27, %v319_v28  ;;  %v1704_v27 = vcombine.high %v16817_v18, %v16817_v18  ;;  %v16827_v31 = vcombine.high %v16821_v59, %v16821_v59 }
  0x9c   :  { %v199_v34 = vld [vmem:[#allocation2 + $0x2e0] sm:$0xff]  ;;  %9560 = vmatpush1.bf16.msra.mxu1 %v14005_v37  ;;  %v128_v37 = vld [vmem:[#allocation2 + $0xa8] sm:$0xff] }
  0x9d   :  { %v323_v35 = vld [vmem:[#allocation2 + $0x6c0] sm:$0xff]  ;;  %v14014_v39 = vcombine.high %v195_v33, %v199_v34  ;;  %9600 = vmatprep.subr.bf16.mxu0 %v14134_v32  ;;  %v14013_v46 = vcombine.low %v195_v33, %v199_v34  ;;  %v13936_v32 = vcombine.high %v116_v25, %v120_v26 }
  0x9e   :  { %v327_v36 = vld [vmem:[#allocation2 + $0x6e0] sm:$0xff]  ;;  %9601 = vmatpush1.bf16.msra.mxu0 %v14133_v38  ;;  %v16830_v38 = vrot.slane %v1704_v27, %v16792_v53  ;;  %v172_v27 = vld [vmem:[#allocation2 + $0x208] sm:$0xff] }
  0x9f   :  { %v14142_v40 = vcombine.high %v323_v35, %v327_v36  ;;  %v203_v41 = vld [vmem:[#allocation2 + $0x300] sm:$0xff]  ;;  %9561 = vmatprep.subr.bf16.mxu1 %v14014_v39  ;;  %v14141_v47 = vcombine.low %v323_v35, %v327_v36  ;;  %v124_v35 = vld [vmem:[#allocation2 + $0x88] sm:$0xff]  ;;  %v13935_v39 = vcombine.low %v116_v25, %v120_v26 }
  0xa0   :  { %v207_v42 = vld [vmem:[#allocation2 + $0x320] sm:$0xff]  ;;  %9562 = vmatpush1.bf16.msra.mxu1 %v14013_v46 }
  0xa1   :  { %v331_v44 = vld [vmem:[#allocation2 + $0x700] sm:$0xff]  ;;  %v14022_v48 = vcombine.high %v203_v41, %v207_v42  ;;  %9602 = vmatprep.subr.bf16.mxu0 %v14142_v40  ;;  %v14021_v55 = vcombine.low %v203_v41, %v207_v42  ;;  %v13944_v41 = vcombine.high %v124_v35, %v128_v37 }
  0xa2   :  { %v335_v45 = vld [vmem:[#allocation2 + $0x720] sm:$0xff]  ;;  %9603 = vmatpush1.bf16.msra.mxu0 %v14141_v47  ;;  %v136_v47 = vld [vmem:[#allocation2 + $0xe8] sm:$0xff] }
  0xa3   :  { %v14150_v49 = vcombine.high %v331_v44, %v335_v45  ;;  %v211_v50 = vld [vmem:[#allocation2 + $0x340] sm:$0xff]  ;;  %9563 = vmatprep.subr.bf16.mxu1 %v14022_v48  ;;  %v14149_v56 = vcombine.low %v331_v44, %v335_v45  ;;  %v132_v45 = vld [vmem:[#allocation2 + $0xc8] sm:$0xff]  ;;  %v13943_v48 = vcombine.low %v124_v35, %v128_v37 }
  0xa4   :  { %v215_v51 = vld [vmem:[#allocation2 + $0x360] sm:$0xff]  ;;  %9564 = vmatpush1.bf16.msra.mxu1 %v14021_v55  ;;  %v180_v35 = vld [vmem:[#allocation2 + $0x248] sm:$0xff] }
  0xa5   :  { %v339_v52 = vld [vmem:[#allocation2 + $0x740] sm:$0xff]  ;;  %v14030_v57 = vcombine.high %v211_v50, %v215_v51  ;;  %9604 = vmatprep.subr.bf16.mxu0 %v14150_v49  ;;  %v14029_v1 = vcombine.low %v211_v50, %v215_v51  ;;  %v13952_v50 = vcombine.high %v132_v45, %v136_v47  ;;  %v184_v37 = vld [vmem:[#allocation2 + $0x268] sm:$0xff] }
  0xa6   :  { %v343_v54 = vld [vmem:[#allocation2 + $0x760] sm:$0xff]  ;;  %9605 = vmatpush1.bf16.msra.mxu0 %v14149_v56  ;;  %v144_v56 = vld [vmem:[#allocation2 + $0x128] sm:$0xff] }
  0xa7   :  { %v14158_v58 = vcombine.high %v339_v52, %v343_v54  ;;  %v219_v60 = vld [vmem:[#allocation2 + $0x380] sm:$0xff]  ;;  %9565 = vmatprep.subr.bf16.mxu1 %v14030_v57  ;;  %v14157_v2 = vcombine.low %v339_v52, %v343_v54  ;;  %v140_v54 = vld [vmem:[#allocation2 + $0x108] sm:$0xff]  ;;  %v13951_v57 = vcombine.low %v132_v45, %v136_v47 }
  0xa8   :  { %v223_v61 = vld [vmem:[#allocation2 + $0x3a0] sm:$0xff]  ;;  %9566 = vmatpush1.bf16.msra.mxu1 %v14029_v1  ;;  %v188_v45 = vld [vmem:[#allocation2 + $0x288] sm:$0xff] }
  0xa9   :  { %v347_v62 = vld [vmem:[#allocation2 + $0x780] sm:$0xff]  ;;  %v14038_v3 = vcombine.high %v219_v60, %v223_v61  ;;  %9606 = vmatprep.subr.bf16.mxu0 %v14158_v58  ;;  %v14037_v11 = vcombine.low %v219_v60, %v223_v61  ;;  %v13960_v60 = vcombine.high %v140_v54, %v144_v56  ;;  %v192_v47 = vld [vmem:[#allocation2 + $0x2a8] sm:$0xff] }
  0xaa   :  { %v351_v0 = vld [vmem:[#allocation2 + $0x7a0] sm:$0xff]  ;;  %9607 = vmatpush1.bf16.msra.mxu0 %v14157_v2  ;;  %v152_v2 = vld [vmem:[#allocation2 + $0x168] sm:$0xff] }
  0xab   :  { %v14166_v4 = vcombine.high %v347_v62, %v351_v0  ;;  %v227_v5 = vld [vmem:[#allocation2 + $0x3c0] sm:$0xff]  ;;  %9567 = vmatprep.subr.bf16.mxu1 %v14038_v3  ;;  %v14165_v12 = vcombine.low %v347_v62, %v351_v0  ;;  %v148_v0 = vld [vmem:[#allocation2 + $0x148] sm:$0xff]  ;;  %v13959_v3 = vcombine.low %v140_v54, %v144_v56 }
  0xac   :  { %v231_v6 = vld [vmem:[#allocation2 + $0x3e0] sm:$0xff]  ;;  %9568 = vmatpush1.bf16.msra.mxu1 %v14037_v11  ;;  %v160_v11 = vld [vmem:[#allocation2 + $0x1a8] sm:$0xff] }
  0xad   :  { %v355_v8 = vld [vmem:[#allocation2 + $0x7c0] sm:$0xff]  ;;  %v14046_v14 = vcombine.high %v227_v5, %v231_v6  ;;  %9608 = vmatprep.subr.bf16.mxu0 %v14166_v4  ;;  %v14045_v21 = vcombine.low %v227_v5, %v231_v6  ;;  %v13968_v5 = vcombine.high %v148_v0, %v152_v2  ;;  %v196_v54 = vld [vmem:[#allocation2 + $0x2c8] sm:$0xff] }
  0xae   :  { %v359_v10 = vld [vmem:[#allocation2 + $0x7e0] sm:$0xff]  ;;  %9609 = vmatpush1.bf16.msra.mxu0 %v14165_v12  ;;  %v13967_v12 = vcombine.low %v148_v0, %v152_v2  ;;  %v200_v56 = vld [vmem:[#allocation2 + $0x2e8] sm:$0xff] }
  0xaf   :  { %v14174_v15 = vcombine.high %v355_v8, %v359_v10  ;;  %v363_v19 = vld [vmem:[#allocation2 + $0x800] sm:$0xff]  ;;  %9569 = vmatprep.subr.bf16.mxu1 %v14046_v14  ;;  %v14173_v22 = vcombine.low %v355_v8, %v359_v10  ;;  %v156_v8 = vld [vmem:[#allocation2 + $0x188] sm:$0xff] }
  0xb0   :  { %v367_v20 = vld [vmem:[#allocation2 + $0x820] sm:$0xff]  ;;  %9570 = vmatpush1.bf16.msra.mxu1 %v14045_v21  ;;  %v168_v21 = vld [vmem:[#allocation2 + $0x1e8] sm:$0xff] }
  0xb1   :  { %9610 = vmatprep.subr.bf16.mxu0 %v14174_v15  ;;  %v14182_v24 = vcombine.high %v363_v19, %v367_v20  ;;  %v371_v28 = vld [vmem:[#allocation2 + $0x840] sm:$0xff]  ;;  %v14181_v63 = vcombine.low %v363_v19, %v367_v20  ;;  %10031 = vmatprep.subr.bf16.mxu1 %v13928_v23  ;;  %v13976_v15 = vcombine.high %v156_v8, %v160_v11  ;;  %v164_v19 = vld [vmem:[#allocation2 + $0x1c8] sm:$0xff] }
  0xb2   :  { %v375_v29 = vld [vmem:[#allocation2 + $0x860] sm:$0xff]  ;;  %9611 = vmatpush1.bf16.msra.mxu0 %v14173_v22  ;;  %v13975_v22 = vcombine.low %v156_v8, %v160_v11  ;;  %v204_v0 = vld [vmem:[#allocation2 + $0x308] sm:$0xff] }
  0xb3   :  { %v379_v33 = vld [vmem:[#allocation2 + $0x880] sm:$0xff]  ;;  %9621 = vmatprep.subr.bf16.mxu0 %v14182_v24  ;;  %v14190_v36 = vcombine.high %v371_v28, %v375_v29  ;;  %9572 = vmatmul.mubr.bf16.vlgmr.msra.gmra.mrb[0].mxu1 %v16821_v59  ;;  %v14189_v40 = vcombine.low %v371_v28, %v375_v29  ;;  %v13984_v24 = vcombine.high %v164_v19, %v168_v21  ;;  %v176_v29 = vld [vmem:[#allocation2 + $0x228] sm:$0xff] }
  0xb4   :  { %v383_v34 = vld [vmem:[#allocation2 + $0x8a0] sm:$0xff]  ;;  %10032 = vmatpush1.bf16.msra.mxu1 %v13927_v30  ;;  %10063 = vmatprep.mubr.bf16.mxu1 %v16806_v9  ;;  %v13983_v30 = vcombine.low %v164_v19, %v168_v21  ;;  %v208_v2 = vld [vmem:[#allocation2 + $0x328] sm:$0xff] }
  0xb5   :  { %9613 = vmatmul.mubr.bf16.vlgmr.msra.gmra.mrb[0].mxu0 %v16827_v31  ;;  %10033 = vmatprep.subr.bf16.mxu1 %v13936_v32  ;;  %v387_v42 = vld [vmem:[#allocation2 + $0x8c0] sm:$0xff]  ;;  %v14198_v46 = vcombine.high %v379_v33, %v383_v34  ;;  %v14197_v49 = vcombine.low %v379_v33, %v383_v34  ;;  %v13992_v32 = vcombine.high %v172_v27, %v176_v29  ;;  %v212_v8 = vld [vmem:[#allocation2 + $0x348] sm:$0xff] }
  0xb6   :  { %9622 = vmatpush1.bf16.msra.mxu0 %v14181_v63  ;;  %v391_v44 = vld [vmem:[#allocation2 + $0x8e0] sm:$0xff]  ;;  %9653 = vmatprep.mubr.bf16.mxu0 %v16830_v38  ;;  %v216_v11 = vld [vmem:[#allocation2 + $0x368] sm:$0xff] }
  0xb7   :  { %9623 = vmatprep.subr.bf16.mxu0 %v14190_v36  ;;  %v395_v51 = vld [vmem:[#allocation2 + $0x900] sm:$0xff]  ;;  %v14206_v55 = vcombine.high %v387_v42, %v391_v44  ;;  %v14205_v58 = vcombine.low %v387_v42, %v391_v44  ;;  %v220_v19 = vld [vmem:[#allocation2 + $0x388] sm:$0xff] }
  0xb8   :  { %10034 = vmatpush1.bf16.msra.mxu1 %v13935_v39  ;;  %v399_v52 = vld [vmem:[#allocation2 + $0x920] sm:$0xff]  ;;  %v13991_v39 = vcombine.low %v172_v27, %v176_v29  ;;  %v224_v21 = vld [vmem:[#allocation2 + $0x3a8] sm:$0xff] }
  0xb9   :  { %10035 = vmatprep.subr.bf16.mxu1 %v13944_v41  ;;  %v403_v61 = vld [vmem:[#allocation2 + $0x940] sm:$0xff]  ;;  %v14214_v1 = vcombine.high %v395_v51, %v399_v52  ;;  %v14213_v4 = vcombine.low %v395_v51, %v399_v52  ;;  %v14000_v41 = vcombine.high %v180_v35, %v184_v37  ;;  %v228_v27 = vld [vmem:[#allocation2 + $0x3c8] sm:$0xff] }
  0xba   :  { %9624 = vmatpush1.bf16.msra.mxu0 %v14189_v40  ;;  %v407_v62 = vld [vmem:[#allocation2 + $0x960] sm:$0xff]  ;;  %v232_v29 = vld [vmem:[#allocation2 + $0x3e8] sm:$0xff] }
  0xbb   :  { %9625 = vmatprep.subr.bf16.mxu0 %v14198_v46  ;;  %v411_v6 = vld [vmem:[#allocation2 + $0x980] sm:$0xff]  ;;  %v14222_v10 = vcombine.high %v403_v61, %v407_v62  ;;  %v14221_v14 = vcombine.low %v403_v61, %v407_v62 }
  0xbc   :  { %10036 = vmatpush1.bf16.msra.mxu1 %v13943_v48  ;;  %v415_v7 = vld [vmem:[#allocation2 + $0x9a0] sm:$0xff]  ;;  %v13999_v48 = vcombine.low %v180_v35, %v184_v37  ;;  %v236_v35 = vld [vmem:[#allocation2 + $0x408] sm:$0xff] }
  0xbd   :  { %10037 = vmatprep.subr.bf16.mxu1 %v13952_v50  ;;  %v419_v16 = vld [vmem:[#allocation2 + $0x9c0] sm:$0xff]  ;;  %v14230_v20 = vcombine.high %v411_v6, %v415_v7  ;;  %v14229_v23 = vcombine.low %v411_v6, %v415_v7  ;;  %v14008_v50 = vcombine.high %v188_v45, %v192_v47  ;;  %v240_v37 = vld [vmem:[#allocation2 + $0x428] sm:$0xff] }
  0xbe   :  { %9626 = vmatpush1.bf16.msra.mxu0 %v14197_v49  ;;  %v423_v17 = vld [vmem:[#allocation2 + $0x9e0] sm:$0xff] }
  0xbf   :  { %9627 = vmatprep.subr.bf16.mxu0 %v14206_v55  ;;  %v427_v25 = vld [vmem:[#allocation2 + $0xa00] sm:$0xff]  ;;  %v14238_v28 = vcombine.high %v419_v16, %v423_v17  ;;  %v14237_v63 = vcombine.low %v419_v16, %v423_v17 }
  0xc0   :  { %10038 = vmatpush1.bf16.msra.mxu1 %v13951_v57  ;;  %v431_v26 = vld [vmem:[#allocation2 + $0xa20] sm:$0xff]  ;;  %v14007_v57 = vcombine.low %v188_v45, %v192_v47  ;;  %v248_v47 = vld [vmem:[#allocation2 + $0x468] sm:$0xff] }
  0xc1   :  { %10039 = vmatprep.subr.bf16.mxu1 %v13960_v60  ;;  %v435_v33 = vld [vmem:[#allocation2 + $0xa40] sm:$0xff]  ;;  %v14246_v36 = vcombine.high %v427_v25, %v431_v26  ;;  %v14245_v40 = vcombine.low %v427_v25, %v431_v26  ;;  %v14016_v60 = vcombine.high %v196_v54, %v200_v56 }
  0xc2   :  { %9628 = vmatpush1.bf16.msra.mxu0 %v14205_v58  ;;  %v439_v34 = vld [vmem:[#allocation2 + $0xa60] sm:$0xff] }
  0xc3   :  { %9629 = vmatprep.subr.bf16.mxu0 %v14214_v1  ;;  %v443_v42 = vld [vmem:[#allocation2 + $0xa80] sm:$0xff]  ;;  %v14254_v46 = vcombine.high %v435_v33, %v439_v34  ;;  %v14253_v49 = vcombine.low %v435_v33, %v439_v34 }
  0xc4   :  { %10040 = vmatpush1.bf16.msra.mxu1 %v13959_v3  ;;  %v447_v44 = vld [vmem:[#allocation2 + $0xaa0] sm:$0xff]  ;;  %v14015_v3 = vcombine.low %v196_v54, %v200_v56 }
  0xc5   :  { %10041 = vmatprep.subr.bf16.mxu1 %v13968_v5  ;;  %v451_v51 = vld [vmem:[#allocation2 + $0xac0] sm:$0xff]  ;;  %v14262_v55 = vcombine.high %v443_v42, %v447_v44  ;;  %v14261_v58 = vcombine.low %v443_v42, %v447_v44  ;;  %v14024_v5 = vcombine.high %v204_v0, %v208_v2 }
  0xc6   :  { %9630 = vmatpush1.bf16.msra.mxu0 %v14213_v4  ;;  %v455_v52 = vld [vmem:[#allocation2 + $0xae0] sm:$0xff] }
  0xc7   :  { %9631 = vmatprep.subr.bf16.mxu0 %v14222_v10  ;;  %v459_v61 = vld [vmem:[#allocation2 + $0xb00] sm:$0xff]  ;;  %v14270_v1 = vcombine.high %v451_v51, %v455_v52  ;;  %v14269_v4 = vcombine.low %v451_v51, %v455_v52 }
  0xc8   :  { %10042 = vmatpush1.bf16.msra.mxu1 %v13967_v12  ;;  %v463_v62 = vld [vmem:[#allocation2 + $0xb20] sm:$0xff]  ;;  %v14023_v12 = vcombine.low %v204_v0, %v208_v2 }
  0xc9   :  { %10043 = vmatprep.subr.bf16.mxu1 %v13976_v15  ;;  %v467_v6 = vld [vmem:[#allocation2 + $0xb40] sm:$0xff]  ;;  %v14278_v10 = vcombine.high %v459_v61, %v463_v62  ;;  %v14032_v15 = vcombine.high %v212_v8, %v216_v11 }
  0xca   :  { %9632 = vmatpush1.bf16.msra.mxu0 %v14221_v14  ;;  %v471_v7 = vld [vmem:[#allocation2 + $0xb60] sm:$0xff]  ;;  %v14277_v14 = vcombine.low %v459_v61, %v463_v62 }
  0xcb   :  { %9633 = vmatprep.subr.bf16.mxu0 %v14230_v20  ;;  %v475_v16 = vld [vmem:[#allocation2 + $0xb80] sm:$0xff]  ;;  %v14286_v20 = vcombine.high %v467_v6, %v471_v7 }
  0xcc   :  { %10044 = vmatpush1.bf16.msra.mxu1 %v13975_v22  ;;  %v479_v17 = vld [vmem:[#allocation2 + $0xba0] sm:$0xff]  ;;  %v14031_v22 = vcombine.low %v212_v8, %v216_v11 }
  0xcd   :  { %10045 = vmatprep.subr.bf16.mxu1 %v13984_v24  ;;  %v14040_v24 = vcombine.high %v220_v19, %v224_v21  ;;  %v483_v25 = vld [vmem:[#allocation2 + $0xbc0] sm:$0xff] }
  0xce   :  { %9634 = vmatpush1.bf16.msra.mxu0 %v14229_v23  ;;  %v14285_v23 = vcombine.low %v467_v6, %v471_v7  ;;  %v487_v26 = vld [vmem:[#allocation2 + $0xbe0] sm:$0xff] }
  0xcf   :  { %9635 = vmatprep.subr.bf16.mxu0 %v14238_v28  ;;  %v14294_v28 = vcombine.high %v475_v16, %v479_v17  ;;  %v491_v33 = vld [vmem:[#allocation2 + $0xc00] sm:$0xff] }
  0xd0   :  { %10046 = vmatpush1.bf16.msra.mxu1 %v13983_v30  ;;  %v14039_v30 = vcombine.low %v220_v19, %v224_v21  ;;  %v495_v34 = vld [vmem:[#allocation2 + $0xc20] sm:$0xff] }
  0xd1   :  { %10047 = vmatprep.subr.bf16.mxu1 %v13992_v32  ;;  %v14048_v32 = vcombine.high %v228_v27, %v232_v29  ;;  %v499_v42 = vld [vmem:[#allocation2 + $0xc40] sm:$0xff]  ;;  %v14310_v45 = vcombine.high %v491_v33, %v495_v34 }
  0xd2   :  { %9636 = vmatpush1.bf16.msra.mxu0 %v14237_v63  ;;  %v14293_v63 = vcombine.low %v475_v16, %v479_v17  ;;  %v503_v44 = vld [vmem:[#allocation2 + $0xc60] sm:$0xff] }
  0xd3   :  { %9637 = vmatprep.subr.bf16.mxu0 %v14246_v36  ;;  %v14302_v36 = vcombine.high %v483_v25, %v487_v26  ;;  %v507_v52 = vld [vmem:[#allocation2 + $0xc80] sm:$0xff]  ;;  %v14318_v56 = vcombine.high %v499_v42, %v503_v44 }
  0xd4   :  { %10048 = vmatpush1.bf16.msra.mxu1 %v13991_v39  ;;  %v14047_v39 = vcombine.low %v228_v27, %v232_v29  ;;  %v511_v54 = vld [vmem:[#allocation2 + $0xca0] sm:$0xff] }
  0xd5   :  { %10049 = vmatprep.subr.bf16.mxu1 %v14000_v41  ;;  %v14056_v41 = vcombine.high %v236_v35, %v240_v37  ;;  %v515_v62 = vld [vmem:[#allocation2 + $0xcc0] sm:$0xff]  ;;  %v14326_v2 = vcombine.high %v507_v52, %v511_v54 }
  0xd6   :  { %9638 = vmatpush1.bf16.msra.mxu0 %v14245_v40  ;;  %v14301_v40 = vcombine.low %v483_v25, %v487_v26  ;;  %v519_v0 = vld [vmem:[#allocation2 + $0xce0] sm:$0xff] }
  0xd7   :  { %9639 = vmatprep.subr.bf16.mxu0 %v14254_v46  ;;  %v244_v46 = vld [vmem:[#allocation2 + $0x448] sm:$0xff]  ;;  %v523_v7 = vld [vmem:[#allocation2 + $0xd00] sm:$0xff]  ;;  %v14334_v11 = vcombine.high %v515_v62, %v519_v0 }
  0xd8   :  { %10050 = vmatpush1.bf16.msra.mxu1 %v13999_v48  ;;  %v14055_v48 = vcombine.low %v236_v35, %v240_v37  ;;  %v14064_v51 = vcombine.high %v244_v46, %v248_v47  ;;  %v527_v8 = vld [vmem:[#allocation2 + $0xd20] sm:$0xff]  ;;  %v292_v37 = vld [vmem:[#allocation2 + $0x5c8] sm:$0xff] }
  0xd9   :  { %10051 = vmatprep.subr.bf16.mxu1 %v14008_v50  ;;  %v14309_v50 = vcombine.low %v491_v33, %v495_v34  ;;  %v531_v17 = vld [vmem:[#allocation2 + $0xd40] sm:$0xff]  ;;  %v14342_v21 = vcombine.high %v523_v7, %v527_v8 }
  0xda   :  { %9640 = vmatpush1.bf16.msra.mxu0 %v14253_v49  ;;  %v16838_v49 = vrot.slane %v16817_v18, %v16792_v53  ;;  %v14063_v18 = vcombine.low %v244_v46, %v248_v47  ;;  %v535_v19 = vld [vmem:[#allocation2 + $0xd60] sm:$0xff]  ;;  %v300_v46 = vld [vmem:[#allocation2 + $0x608] sm:$0xff] }
  0xdb   :  { %9641 = vmatprep.subr.bf16.mxu0 %v14262_v55  ;;  %v252_v55 = vld [vmem:[#allocation2 + $0x488] sm:$0xff]  ;;  %v539_v26 = vld [vmem:[#allocation2 + $0xd80] sm:$0xff]  ;;  %v14350_v29 = vcombine.high %v531_v17, %v535_v19 }
  0xdc   :  { %10052 = vmatpush1.bf16.msra.mxu1 %v14007_v57  ;;  %v256_v57 = vld [vmem:[#allocation2 + $0x4a8] sm:$0xff]  ;;  %v543_v27 = vld [vmem:[#allocation2 + $0xda0] sm:$0xff] }
  0xdd   :  { %10053 = vmatprep.subr.bf16.mxu1 %v14016_v60  ;;  %v14317_v60 = vcombine.low %v499_v42, %v503_v44  ;;  %v14072_v61 = vcombine.high %v252_v55, %v256_v57  ;;  %v547_v34 = vld [vmem:[#allocation2 + $0xdc0] sm:$0xff] }
  0xde   :  { %9642 = vmatpush1.bf16.msra.mxu0 %v14261_v58  ;;  %v16842_v58 = vcombine.high %v16830_v38, %v16830_v38  ;;  %v551_v35 = vld [vmem:[#allocation2 + $0xde0] sm:$0xff] }
  0xdf   :  { %9643 = vmatprep.subr.bf16.mxu0 %v14270_v1  ;;  %v260_v1 = vld [vmem:[#allocation2 + $0x4c8] sm:$0xff]  ;;  %v555_v44 = vld [vmem:[#allocation2 + $0xe00] sm:$0xff]  ;;  %v14366_v47 = vcombine.high %v547_v34, %v551_v35 }
  0xe0   :  { %10054 = vmatpush1.bf16.msra.mxu1 %v14015_v3  ;;  %v264_v3 = vld [vmem:[#allocation2 + $0x4e8] sm:$0xff] }
  0xe1   :  { %10055 = vmatprep.subr.bf16.mxu1 %v14024_v5  ;;  %v14325_v5 = vcombine.low %v507_v52, %v511_v54  ;;  %v14080_v6 = vcombine.high %v260_v1, %v264_v3  ;;  %v563_v54 = vld [vmem:[#allocation2 + $0xe40] sm:$0xff] }
  0xe2   :  { %9644 = vmatpush1.bf16.msra.mxu0 %v14269_v4  ;;  %v14071_v4 = vcombine.low %v252_v55, %v256_v57  ;;  %v567_v55 = vld [vmem:[#allocation2 + $0xe60] sm:$0xff] }
  0xe3   :  { %9645 = vmatprep.subr.bf16.mxu0 %v14278_v10  ;;  %v268_v10 = vld [vmem:[#allocation2 + $0x508] sm:$0xff] }
  0xe4   :  { %10056 = vmatpush1.bf16.msra.mxu1 %v14023_v12  ;;  %v272_v12 = vld [vmem:[#allocation2 + $0x528] sm:$0xff] }
  0xe5   :  { %10057 = vmatprep.subr.bf16.mxu1 %v14032_v15  ;;  %v14333_v15 = vcombine.low %v515_v62, %v519_v0  ;;  %v14088_v16 = vcombine.high %v268_v10, %v272_v12  ;;  %v571_v0 = vld [vmem:[#allocation2 + $0xe80] sm:$0xff] }
  0xe6   :  { %9646 = vmatpush1.bf16.msra.mxu0 %v14277_v14  ;;  %v14079_v14 = vcombine.low %v260_v1, %v264_v3  ;;  %v575_v1 = vld [vmem:[#allocation2 + $0xea0] sm:$0xff]  ;;  %v14382_v3 = vcombine.high %v563_v54, %v567_v55 }
  0xe7   :  { %9647 = vmatprep.subr.bf16.mxu0 %v14286_v20  ;;  %v276_v20 = vld [vmem:[#allocation2 + $0x548] sm:$0xff] }
  0xe8   :  { %10058 = vmatpush1.bf16.msra.mxu1 %v14031_v22  ;;  %v280_v22 = vld [vmem:[#allocation2 + $0x568] sm:$0xff] }
  0xe9   :  { %10059 = vmatprep.subr.bf16.mxu1 %v14040_v24  ;;  %v14341_v24 = vcombine.low %v523_v7, %v527_v8  ;;  %v14096_v25 = vcombine.high %v276_v20, %v280_v22  ;;  %v579_v8 = vld [vmem:[#allocation2 + $0xec0] sm:$0xff] }
  0xea   :  { %9648 = vmatpush1.bf16.msra.mxu0 %v14285_v23  ;;  %v14087_v23 = vcombine.low %v268_v10, %v272_v12  ;;  %v583_v10 = vld [vmem:[#allocation2 + $0xee0] sm:$0xff]  ;;  %v14390_v12 = vcombine.high %v571_v0, %v575_v1 }
  0xeb   :  { %9649 = vmatprep.subr.bf16.mxu0 %v14294_v28  ;;  %v284_v28 = vld [vmem:[#allocation2 + $0x588] sm:$0xff] }
  0xec   :  { %10060 = vmatpush1.bf16.msra.mxu1 %v14039_v30  ;;  %v288_v30 = vld [vmem:[#allocation2 + $0x5a8] sm:$0xff] }
  0xed   :  { %10061 = vmatprep.subr.bf16.mxu1 %v14048_v32  ;;  %v14349_v32 = vcombine.low %v531_v17, %v535_v19  ;;  %v14104_v33 = vcombine.high %v284_v28, %v288_v30  ;;  %v587_v19 = vld [vmem:[#allocation2 + $0xf00] sm:$0xff] }
  0xee   :  { %9650 = vmatpush1.bf16.msra.mxu0 %v14293_v63  ;;  %v14095_v63 = vcombine.low %v276_v20, %v280_v22  ;;  %v591_v20 = vld [vmem:[#allocation2 + $0xf20] sm:$0xff]  ;;  %v14398_v22 = vcombine.high %v579_v8, %v583_v10 }
  0xef   :  { %9651 = vmatprep.subr.bf16.mxu0 %v14302_v36  ;;  %v14358_v36 = vcombine.high %v539_v26, %v543_v27 }
  0xf0   :  { %10062 = vmatpush1.bf16.msra.mxu1 %v14047_v39  ;;  %v296_v39 = vld [vmem:[#allocation2 + $0x5e8] sm:$0xff] }
  0xf1   :  { %10072 = vmatprep.subr.bf16.mxu1 %v14056_v41  ;;  %v14357_v41 = vcombine.low %v539_v26, %v543_v27  ;;  %v14112_v42 = vcombine.high %v292_v37, %v296_v39  ;;  %v595_v27 = vld [vmem:[#allocation2 + $0xf40] sm:$0xff] }
  0xf2   :  { %9652 = vmatpush1.bf16.msra.mxu0 %v14301_v40  ;;  %v14103_v40 = vcombine.low %v284_v28, %v288_v30  ;;  %v599_v28 = vld [vmem:[#allocation2 + $0xf60] sm:$0xff]  ;;  %v14406_v30 = vcombine.high %v587_v19, %v591_v20 }
  0xf3   :  { %9662 = vmatprep.subr.bf16.mxu0 %v14310_v45  ;;  %10064 = vmatmul.mubr.bf16.vlgmr.msra.gmra.mrb[4].mxu1 %v16821_v59  ;;  %v559_v45 = vld [vmem:[#allocation2 + $0xe20] sm:$0xff] }
  0xf4   :  { %10073 = vmatpush1.bf16.msra.mxu1 %v14055_v48  ;;  %10104 = vmatprep.mubr.bf16.mxu1 %v16811_v13  ;;  %v304_v48 = vld [vmem:[#allocation2 + $0x628] sm:$0xff]  ;;  %v14374_v57 = vcombine.high %v555_v44, %v559_v45 }
  0xf5   :  { %9654 = vmatmul.mubr.bf16.vlgmr.msra.gmra.mrb[0].mxu0 %v16838_v49  ;;  %10074 = vmatprep.subr.bf16.mxu1 %v14064_v51  ;;  %v14365_v51 = vcombine.low %v547_v34, %v551_v35  ;;  %v14120_v52 = vcombine.high %v300_v46, %v304_v48  ;;  %v603_v35 = vld [vmem:[#allocation2 + $0xf80] sm:$0xff] }
  0xf6   :  { %9663 = vmatpush1.bf16.msra.mxu0 %v14309_v50  ;;  %9694 = vmatprep.mubr.bf16.mxu0 %v16842_v58  ;;  %v14111_v50 = vcombine.low %v292_v37, %v296_v39  ;;  %v348_v37 = vld [vmem:[#allocation2 + $0x788] sm:$0xff]  ;;  %v14414_v39 = vcombine.high %v595_v27, %v599_v28 }
  0xf7   :  { %9664 = vmatprep.subr.bf16.mxu0 %v14318_v56  ;;  %v308_v56 = vld [vmem:[#allocation2 + $0x648] sm:$0xff] }
  0xf8   :  { %10075 = vmatpush1.bf16.msra.mxu1 %v14063_v18  ;;  %v312_v18 = vld [vmem:[#allocation2 + $0x668] sm:$0xff] }
  0xf9   :  { %10076 = vmatprep.subr.bf16.mxu1 %v14072_v61  ;;  %v14373_v61 = vcombine.low %v555_v44, %v559_v45  ;;  %v14128_v62 = vcombine.high %v308_v56, %v312_v18  ;;  %v611_v45 = vld [vmem:[#allocation2 + $0xfc0] sm:$0xff] }
  0xfa   :  { %9665 = vmatpush1.bf16.msra.mxu0 %v14317_v60  ;;  %v14119_v60 = vcombine.low %v300_v46, %v304_v48  ;;  %v615_v46 = vld [vmem:[#allocation2 + $0xfe0] sm:$0xff]  ;;  %v360_v48 = vld [vmem:[#allocation2 + $0x7e8] sm:$0xff] }
  0xfb   :  { %9666 = vmatprep.subr.bf16.mxu0 %v14326_v2  ;;  %v316_v2 = vld [vmem:[#allocation2 + $0x688] sm:$0xff] }
  0xfc   :  { %10077 = vmatpush1.bf16.msra.mxu1 %v14071_v4  ;;  %v320_v4 = vld [vmem:[#allocation2 + $0x6a8] sm:$0xff] }
  0xfd   :  { %10078 = vmatprep.subr.bf16.mxu1 %v14080_v6  ;;  %v14381_v6 = vcombine.low %v563_v54, %v567_v55  ;;  %v14136_v7 = vcombine.high %v316_v2, %v320_v4 }
  0xfe   :  { %9667 = vmatpush1.bf16.msra.mxu0 %v14325_v5  ;;  %v14127_v5 = vcombine.low %v308_v56, %v312_v18  ;;  %v619_v56 = vld [vmem:[#allocation2 + $0x1000] sm:$0xff]  ;;  %v364_v18 = vld [vmem:[#allocation2 + $0x808] sm:$0xff] }
  0xff   :  { %9668 = vmatprep.subr.bf16.mxu0 %v14334_v11  ;;  %v324_v11 = vld [vmem:[#allocation2 + $0x6c8] sm:$0xff] }
 0x100   :  { %10079 = vmatpush1.bf16.msra.mxu1 %v14079_v14  ;;  %v328_v14 = vld [vmem:[#allocation2 + $0x6e8] sm:$0xff] }
 0x101   :  { %10080 = vmatprep.subr.bf16.mxu1 %v14088_v16  ;;  %v14389_v16 = vcombine.low %v571_v0, %v575_v1  ;;  %v14144_v17 = vcombine.high %v324_v11, %v328_v14  ;;  %v14429_v1 = vcombine.low %v611_v45, %v615_v46 }
 0x102   :  { %9669 = vmatpush1.bf16.msra.mxu0 %v14333_v15  ;;  %v14135_v15 = vcombine.low %v316_v2, %v320_v4  ;;  %v631_v4 = vld [vmem:[#allocation2 + $0x1060] sm:$0xff] }
 0x103   :  { %9670 = vmatprep.subr.bf16.mxu0 %v14342_v21  ;;  %v332_v21 = vld [vmem:[#allocation2 + $0x708] sm:$0xff] }
 0x104   :  { %10081 = vmatpush1.bf16.msra.mxu1 %v14087_v23  ;;  %v336_v23 = vld [vmem:[#allocation2 + $0x728] sm:$0xff] }
 0x105   :  { %10082 = vmatprep.subr.bf16.mxu1 %v14096_v25  ;;  %v14397_v25 = vcombine.low %v579_v8, %v583_v10  ;;  %v14152_v26 = vcombine.high %v332_v21, %v336_v23 }
 0x106   :  { %9671 = vmatpush1.bf16.msra.mxu0 %v14341_v24  ;;  %v14143_v24 = vcombine.low %v324_v11, %v328_v14  ;;  %v16861_v11 = vcombine.high %v16838_v49, %v16838_v49 }
 0x107   :  { %9672 = vmatprep.subr.bf16.mxu0 %v14350_v29  ;;  %v340_v29 = vld [vmem:[#allocation2 + $0x748] sm:$0xff] }
 0x108   :  { %10083 = vmatpush1.bf16.msra.mxu1 %v14095_v63  ;;  %v344_v63 = vld [vmem:[#allocation2 + $0x768] sm:$0xff] }
 0x109   :  { %10084 = vmatprep.subr.bf16.mxu1 %v14104_v33  ;;  %v14405_v33 = vcombine.low %v587_v19, %v591_v20  ;;  %v14160_v34 = vcombine.high %v340_v29, %v344_v63  ;;  %v384_v20 = vld [vmem:[#allocation2 + $0x8a8] sm:$0xff] }
 0x10a   :  { %9673 = vmatpush1.bf16.msra.mxu0 %v14349_v32  ;;  %v14151_v32 = vcombine.low %v332_v21, %v336_v23 }
 0x10b   :  { %9674 = vmatprep.subr.bf16.mxu0 %v14358_v36  ;;  %v607_v36 = vld [vmem:[#allocation2 + $0xfa0] sm:$0xff] }
 0x10c   :  { %10085 = vmatpush1.bf16.msra.mxu1 %v14103_v40  ;;  %v352_v40 = vld [vmem:[#allocation2 + $0x7a8] sm:$0xff]  ;;  %v14421_v54 = vcombine.low %v603_v35, %v607_v36 }
 0x10d   :  { %10086 = vmatprep.subr.bf16.mxu1 %v14112_v42  ;;  %v14413_v42 = vcombine.low %v595_v27, %v599_v28  ;;  %v14168_v44 = vcombine.high %v348_v37, %v352_v40  ;;  %v388_v27 = vld [vmem:[#allocation2 + $0x8c8] sm:$0xff] }
 0x10e   :  { %9675 = vmatpush1.bf16.msra.mxu0 %v14357_v41  ;;  %v14159_v41 = vcombine.low %v340_v29, %v344_v63  ;;  %v392_v29 = vld [vmem:[#allocation2 + $0x8e8] sm:$0xff] }
 0x10f   :  { %9676 = vmatprep.subr.bf16.mxu0 %v14366_v47  ;;  %v356_v47 = vld [vmem:[#allocation2 + $0x7c8] sm:$0xff] }
 0x110   :  { %10087 = vmatpush1.bf16.msra.mxu1 %v14111_v50  ;;  %v14422_v50 = vcombine.high %v603_v35, %v607_v36  ;;  %v14176_v55 = vcombine.high %v356_v47, %v360_v48  ;;  %v14175_v0 = vcombine.low %v356_v47, %v360_v48  ;;  %v396_v35 = vld [vmem:[#allocation2 + $0x908] sm:$0xff] }
 0x111   :  { %10088 = vmatprep.subr.bf16.mxu1 %v14120_v52  ;;  %v14167_v52 = vcombine.low %v348_v37, %v352_v40  ;;  %v400_v37 = vld [vmem:[#allocation2 + $0x928] sm:$0xff] }
 0x112   :  { %9677 = vmatpush1.bf16.msra.mxu0 %v14365_v51  ;;  %v16851_v51 = vld [vmem:[%s17144_s0 + $0x8] sm:$0xff]  ;;  %v14215_v48 = vcombine.low %v396_v35, %v400_v37 }
 0x113   :  { %9678 = vmatprep.subr.bf16.mxu0 %v14374_v57  ;;  %v623_v57 = vld [vmem:[#allocation2 + $0x1020] sm:$0xff]  ;;  %v408_v47 = vld [vmem:[#allocation2 + $0x968] sm:$0xff] }
 0x114   :  { %10089 = vmatpush1.bf16.msra.mxu1 %v14119_v60  ;;  %v14430_v60 = vcombine.high %v611_v45, %v615_v46  ;;  %v404_v45 = vld [vmem:[#allocation2 + $0x948] sm:$0xff] }
 0x115   :  { %10090 = vmatprep.subr.bf16.mxu1 %v14128_v62  ;;  %v16855_v62 = vrot.slane %v16851_v51, %v16792_v53 }
 0x116   :  { %9679 = vmatpush1.bf16.msra.mxu0 %v14373_v61  ;;  %v368_v61 = vld [vmem:[#allocation2 + $0x828] sm:$0xff] }
 0x117   :  { %9680 = vmatprep.subr.bf16.mxu0 %v14382_v3  ;;  %v14184_v2 = vcombine.high %v364_v18, %v368_v61  ;;  %v627_v3 = vld [vmem:[#allocation2 + $0x1040] sm:$0xff]  ;;  %v1752_v8 = vcombine.high %v16855_v62, %v16855_v62  ;;  %v14183_v10 = vcombine.low %v364_v18, %v368_v61  ;;  %v416_v18 = vld [vmem:[#allocation2 + $0x9a8] sm:$0xff] }
 0x118   :  { %10091 = vmatpush1.bf16.msra.mxu1 %v14127_v5  ;;  %v372_v5 = vld [vmem:[#allocation2 + $0x848] sm:$0xff]  ;;  %v14446_v19 = vcombine.high %v627_v3, %v631_v4  ;;  %v14445_v23 = vcombine.low %v627_v3, %v631_v4 }
 0x119   :  { %10092 = vmatprep.subr.bf16.mxu1 %v14136_v7  ;;  %v376_v7 = vld [vmem:[#allocation2 + $0x868] sm:$0xff]  ;;  %v16864_v21 = vrot.slane %v1752_v8, %v16792_v53 }
 0x11a   :  { %9681 = vmatpush1.bf16.msra.mxu0 %v14381_v6  ;;  %v14438_v6 = vcombine.high %v619_v56, %v623_v57  ;;  %v14192_v14 = vcombine.high %v372_v5, %v376_v7  ;;  %v420_v3 = vld [vmem:[#allocation2 + $0x9c8] sm:$0xff] }
 0x11b   :  { %9682 = vmatprep.subr.bf16.mxu0 %v14390_v12  ;;  %v14437_v12 = vcombine.low %v619_v56, %v623_v57  ;;  %v412_v56 = vld [vmem:[#allocation2 + $0x988] sm:$0xff] }
 0x11c   :  { %10093 = vmatpush1.bf16.msra.mxu1 %v14135_v15  ;;  %v635_v15 = vld [vmem:[#allocation2 + $0x1080] sm:$0xff] }
 0x11d   :  { %10094 = vmatprep.subr.bf16.mxu1 %v14144_v17  ;;  %v380_v17 = vld [vmem:[#allocation2 + $0x888] sm:$0xff] }
 0x11e   :  { %9683 = vmatpush1.bf16.msra.mxu0 %v14389_v16  ;;  %v639_v16 = vld [vmem:[#allocation2 + $0x10a0] sm:$0xff] }
 0x11f   :  { %9684 = vmatprep.subr.bf16.mxu0 %v14398_v22  ;;  %v14191_v22 = vcombine.low %v372_v5, %v376_v7  ;;  %v14454_v28 = vcombine.high %v635_v15, %v639_v16  ;;  %v14453_v63 = vcombine.low %v635_v15, %v639_v16  ;;  %v424_v5 = vld [vmem:[#allocation2 + $0x9e8] sm:$0xff] }
 0x120   :  { %10095 = vmatpush1.bf16.msra.mxu1 %v14143_v24  ;;  %v14200_v24 = vcombine.high %v380_v17, %v384_v20  ;;  %v14240_v8 = vcombine.high %v420_v3, %v424_v5  ;;  %v432_v16 = vld [vmem:[#allocation2 + $0xa28] sm:$0xff] }
 0x121   :  { %10096 = vmatprep.subr.bf16.mxu1 %v14152_v26  ;;  %v647_v26 = vld [vmem:[#allocation2 + $0x10e0] sm:$0xff] }
 0x122   :  { %9685 = vmatpush1.bf16.msra.mxu0 %v14397_v25  ;;  %v643_v25 = vld [vmem:[#allocation2 + $0x10c0] sm:$0xff] }
 0x123   :  { %9686 = vmatprep.subr.bf16.mxu0 %v14406_v30  ;;  %v14199_v30 = vcombine.low %v380_v17, %v384_v20  ;;  %v14462_v36 = vcombine.high %v643_v25, %v647_v26  ;;  %v14461_v40 = vcombine.low %v643_v25, %v647_v26  ;;  %v14239_v17 = vcombine.low %v420_v3, %v424_v5  ;;  %v440_v26 = vld [vmem:[#allocation2 + $0xa68] sm:$0xff] }
 0x124   :  { %10097 = vmatpush1.bf16.msra.mxu1 %v14151_v32  ;;  %v14208_v32 = vcombine.high %v388_v27, %v392_v29 }
 0x125   :  { %10098 = vmatprep.subr.bf16.mxu1 %v14160_v34  ;;  %v655_v34 = vld [vmem:[#allocation2 + $0x1120] sm:$0xff] }
 0x126   :  { %9687 = vmatpush1.bf16.msra.mxu0 %v14405_v33  ;;  %v651_v33 = vld [vmem:[#allocation2 + $0x1100] sm:$0xff] }
 0x127   :  { %9688 = vmatprep.subr.bf16.mxu0 %v14414_v39  ;;  %v14207_v39 = vcombine.low %v388_v27, %v392_v29  ;;  %v14470_v46 = vcombine.high %v651_v33, %v655_v34 }
 0x128   :  { %10099 = vmatpush1.bf16.msra.mxu1 %v14159_v41  ;;  %v14216_v41 = vcombine.high %v396_v35, %v400_v37 }
 0x129   :  { %10100 = vmatprep.subr.bf16.mxu1 %v14168_v44  ;;  %v663_v44 = vld [vmem:[#allocation2 + $0x1160] sm:$0xff] }
 0x12a   :  { %9689 = vmatpush1.bf16.msra.mxu0 %v14413_v42  ;;  %v659_v42 = vld [vmem:[#allocation2 + $0x1140] sm:$0xff] }
 0x12b   :  { %9690 = vmatprep.subr.bf16.mxu0 %v14422_v50  ;;  %v14469_v50 = vcombine.low %v651_v33, %v655_v34  ;;  %v14478_v57 = vcombine.high %v659_v42, %v663_v44  ;;  %v14477_v61 = vcombine.low %v659_v42, %v663_v44  ;;  %v699_v33 = vld [vmem:[#allocation2 + $0x1280] sm:$0xff] }
 0x12c   :  { %10101 = vmatpush1.bf16.msra.mxu1 %v14167_v52  ;;  %v14224_v52 = vcombine.high %v404_v45, %v408_v47  ;;  %v703_v34 = vld [vmem:[#allocation2 + $0x12a0] sm:$0xff] }
 0x12d   :  { %10102 = vmatprep.subr.bf16.mxu1 %v14176_v55  ;;  %v671_v55 = vld [vmem:[#allocation2 + $0x11a0] sm:$0xff] }
 0x12e   :  { %9691 = vmatpush1.bf16.msra.mxu0 %v14421_v54  ;;  %v667_v54 = vld [vmem:[#allocation2 + $0x1180] sm:$0xff] }
 0x12f   :  { %9692 = vmatprep.subr.bf16.mxu0 %v14430_v60  ;;  %v14223_v60 = vcombine.low %v404_v45, %v408_v47  ;;  %v14486_v4 = vcombine.high %v667_v54, %v671_v55  ;;  %v14485_v7 = vcombine.low %v667_v54, %v671_v55  ;;  %v707_v42 = vld [vmem:[#allocation2 + $0x12c0] sm:$0xff] }
 0x130   :  { %10103 = vmatpush1.bf16.msra.mxu1 %v14175_v0  ;;  %v14232_v0 = vcombine.high %v412_v56, %v416_v18  ;;  %v711_v44 = vld [vmem:[#allocation2 + $0x12e0] sm:$0xff] }
 0x131   :  { %10113 = vmatprep.subr.bf16.mxu1 %v14184_v2  ;;  %v679_v2 = vld [vmem:[#allocation2 + $0x11e0] sm:$0xff] }
 0x132   :  { %9693 = vmatpush1.bf16.msra.mxu0 %v14429_v1  ;;  %v675_v1 = vld [vmem:[#allocation2 + $0x11c0] sm:$0xff] }
 0x133   :  { %9703 = vmatprep.subr.bf16.mxu0 %v14438_v6  ;;  %10105 = vmatmul.mubr.bf16.vlgmr.msra.gmra.mrb[4].mxu1 %v16827_v31  ;;  %v14231_v6 = vcombine.low %v412_v56, %v416_v18  ;;  %v14494_v15 = vcombine.high %v675_v1, %v679_v2  ;;  %v715_v54 = vld [vmem:[#allocation2 + $0x1300] sm:$0xff] }
 0x134   :  { %10114 = vmatpush1.bf16.msra.mxu1 %v14183_v10  ;;  %10145 = vmatprep.mubr.bf16.mxu1 %v16830_v38  ;;  %v683_v10 = vld [vmem:[#allocation2 + $0x1200] sm:$0xff] }
 0x135   :  { %9695 = vmatmul.mubr.bf16.vlgmr.msra.gmra.mrb[0].mxu0 %v16861_v11  ;;  %10115 = vmatprep.subr.bf16.mxu1 %v14192_v14  ;;  %v428_v14 = vld [vmem:[#allocation2 + $0xa08] sm:$0xff]  ;;  %v719_v55 = vld [vmem:[#allocation2 + $0x1320] sm:$0xff] }
 0x136   :  { %9704 = vmatpush1.bf16.msra.mxu0 %v14437_v12  ;;  %9735 = vmatprep.mubr.bf16.mxu0 %v16864_v21  ;;  %v687_v12 = vld [vmem:[#allocation2 + $0x1220] sm:$0xff]  ;;  %v14248_v20 = vcombine.high %v428_v14, %v432_v16  ;;  %v14247_v27 = vcombine.low %v428_v14, %v432_v16 }
 0x137   :  { %9705 = vmatprep.subr.bf16.mxu0 %v14446_v19  ;;  %v14493_v19 = vcombine.low %v675_v1, %v679_v2  ;;  %v14502_v25 = vcombine.high %v683_v10, %v687_v12  ;;  %v723_v1 = vld [vmem:[#allocation2 + $0x1340] sm:$0xff] }
 0x138   :  { %10116 = vmatpush1.bf16.msra.mxu1 %v14191_v22  ;;  %v691_v22 = vld [vmem:[#allocation2 + $0x1240] sm:$0xff] }
 0x139   :  { %10117 = vmatprep.subr.bf16.mxu1 %v14200_v24  ;;  %v436_v24 = vld [vmem:[#allocation2 + $0xa48] sm:$0xff]  ;;  %v727_v2 = vld [vmem:[#allocation2 + $0x1360] sm:$0xff] }
 0x13a   :  { %9706 = vmatpush1.bf16.msra.mxu0 %v14445_v23  ;;  %v695_v23 = vld [vmem:[#allocation2 + $0x1260] sm:$0xff]  ;;  %v14256_v29 = vcombine.high %v436_v24, %v440_v26  ;;  %v14255_v35 = vcombine.low %v436_v24, %v440_v26 }
 0x13b   :  { %9707 = vmatprep.subr.bf16.mxu0 %v14454_v28  ;;  %v14501_v28 = vcombine.low %v683_v10, %v687_v12  ;;  %v731_v10 = vld [vmem:[#allocation2 + $0x1380] sm:$0xff] }
 0x13c   :  { %10118 = vmatpush1.bf16.msra.mxu1 %v14199_v30  ;;  %v14510_v30 = vcombine.high %v691_v22, %v695_v23  ;;  %v735_v12 = vld [vmem:[#allocation2 + $0x13a0] sm:$0xff] }
 0x13d   :  { %10119 = vmatprep.subr.bf16.mxu1 %v14208_v32  ;;  %v448_v32 = vld [vmem:[#allocation2 + $0xaa8] sm:$0xff] }
 0x13e   :  { %9708 = vmatpush1.bf16.msra.mxu0 %v14453_v63  ;;  %v444_v63 = vld [vmem:[#allocation2 + $0xa88] sm:$0xff] }
 0x13f   :  { %9709 = vmatprep.subr.bf16.mxu0 %v14462_v36  ;;  %v14509_v36 = vcombine.low %v691_v22, %v695_v23  ;;  %v14264_v37 = vcombine.high %v444_v63, %v448_v32  ;;  %v14263_v45 = vcombine.low %v444_v63, %v448_v32  ;;  %v739_v22 = vld [vmem:[#allocation2 + $0x13c0] sm:$0xff] }
 0x140   :  { %10120 = vmatpush1.bf16.msra.mxu1 %v14207_v39  ;;  %v14518_v39 = vcombine.high %v699_v33, %v703_v34  ;;  %v743_v23 = vld [vmem:[#allocation2 + $0x13e0] sm:$0xff] }
 0x141   :  { %10121 = vmatprep.subr.bf16.mxu1 %v14216_v41  ;;  %v456_v41 = vld [vmem:[#allocation2 + $0xae8] sm:$0xff]  ;;  %v751_v63 = vld [vmem:[#allocation2 + $0x1420] sm:$0xff] }
 0x142   :  { %9710 = vmatpush1.bf16.msra.mxu0 %v14461_v40  ;;  %v452_v40 = vld [vmem:[#allocation2 + $0xac8] sm:$0xff] }
 0x143   :  { %9711 = vmatprep.subr.bf16.mxu0 %v14470_v46  ;;  %v14517_v46 = vcombine.low %v699_v33, %v703_v34  ;;  %v14272_v47 = vcombine.high %v452_v40, %v456_v41  ;;  %v14271_v56 = vcombine.low %v452_v40, %v456_v41  ;;  %v14557_v33 = vcombine.low %v739_v22, %v743_v23  ;;  %v759_v40 = vld [vmem:[#allocation2 + $0x1460] sm:$0xff] }
 0x144   :  { %10122 = vmatpush1.bf16.msra.mxu1 %v14215_v48  ;;  %v14526_v48 = vcombine.high %v707_v42, %v711_v44 }
 0x145   :  { %10123 = vmatprep.subr.bf16.mxu1 %v14224_v52  ;;  %v464_v52 = vld [vmem:[#allocation2 + $0xb28] sm:$0xff] }
 0x146   :  { %9712 = vmatpush1.bf16.msra.mxu0 %v14469_v50  ;;  %v460_v50 = vld [vmem:[#allocation2 + $0xb08] sm:$0xff] }
 0x147   :  { %9713 = vmatprep.subr.bf16.mxu0 %v14478_v57  ;;  %v14525_v57 = vcombine.low %v707_v42, %v711_v44  ;;  %v14280_v18 = vcombine.high %v460_v50, %v464_v52  ;;  %v14279_v3 = vcombine.low %v460_v50, %v464_v52  ;;  %v16872_v42 = vrot.slane %v16855_v62, %v16792_v53  ;;  %v763_v52 = vld [vmem:[#allocation2 + $0x1480] sm:$0xff] }
 0x148   :  { %10124 = vmatpush1.bf16.msra.mxu1 %v14223_v60  ;;  %v14534_v60 = vcombine.high %v715_v54, %v719_v55  ;;  %v16876_v50 = vcombine.high %v16864_v21, %v16864_v21 }
 0x149   :  { %10125 = vmatprep.subr.bf16.mxu1 %v14232_v0  ;;  %v472_v0 = vld [vmem:[#allocation2 + $0xb68] sm:$0xff] }
 0x14a   :  { %9714 = vmatpush1.bf16.msra.mxu0 %v14477_v61  ;;  %v468_v61 = vld [vmem:[#allocation2 + $0xb48] sm:$0xff] }
 0x14b   :  { %9715 = vmatprep.subr.bf16.mxu0 %v14486_v4  ;;  %v14533_v4 = vcombine.low %v715_v54, %v719_v55  ;;  %v14288_v5 = vcombine.high %v468_v61, %v472_v0  ;;  %v14287_v14 = vcombine.low %v468_v61, %v472_v0  ;;  %v767_v54 = vld [vmem:[#allocation2 + $0x14a0] sm:$0xff] }
 0x14c   :  { %10126 = vmatpush1.bf16.msra.mxu1 %v14231_v6  ;;  %v14542_v6 = vcombine.high %v723_v1, %v727_v2  ;;  %v771_v61 = vld [vmem:[#allocation2 + $0x14c0] sm:$0xff] }
 0x14d   :  { %10127 = vmatprep.subr.bf16.mxu1 %v14240_v8  ;;  %v480_v8 = vld [vmem:[#allocation2 + $0xba8] sm:$0xff]  ;;  %v775_v0 = vld [vmem:[#allocation2 + $0x14e0] sm:$0xff] }
 0x14e   :  { %9716 = vmatpush1.bf16.msra.mxu0 %v14485_v7  ;;  %v476_v7 = vld [vmem:[#allocation2 + $0xb88] sm:$0xff] }
 0x14f   :  { %9717 = vmatprep.subr.bf16.mxu0 %v14494_v15  ;;  %v14541_v15 = vcombine.low %v723_v1, %v727_v2  ;;  %v14296_v16 = vcombine.high %v476_v7, %v480_v8  ;;  %v14295_v24 = vcombine.low %v476_v7, %v480_v8  ;;  %v14581_v2 = vcombine.low %v763_v52, %v767_v54  ;;  %v779_v7 = vld [vmem:[#allocation2 + $0x1500] sm:$0xff] }
 0x150   :  { %10128 = vmatpush1.bf16.msra.mxu1 %v14239_v17  ;;  %v14550_v17 = vcombine.high %v731_v10, %v735_v12  ;;  %v783_v8 = vld [vmem:[#allocation2 + $0x1520] sm:$0xff] }
 0x151   :  { %10129 = vmatprep.subr.bf16.mxu1 %v14248_v20  ;;  %v488_v20 = vld [vmem:[#allocation2 + $0xbe8] sm:$0xff] }
 0x152   :  { %9718 = vmatpush1.bf16.msra.mxu0 %v14493_v19  ;;  %v484_v19 = vld [vmem:[#allocation2 + $0xbc8] sm:$0xff] }
 0x153   :  { %9719 = vmatprep.subr.bf16.mxu0 %v14502_v25  ;;  %v14549_v25 = vcombine.low %v731_v10, %v735_v12  ;;  %v14304_v26 = vcombine.high %v484_v19, %v488_v20  ;;  %v14303_v32 = vcombine.low %v484_v19, %v488_v20  ;;  %v14589_v12 = vcombine.low %v771_v61, %v775_v0  ;;  %v787_v19 = vld [vmem:[#allocation2 + $0x1540] sm:$0xff] }
 0x154   :  { %10130 = vmatpush1.bf16.msra.mxu1 %v14247_v27  ;;  %v14558_v27 = vcombine.high %v739_v22, %v743_v23  ;;  %v791_v20 = vld [vmem:[#allocation2 + $0x1560] sm:$0xff]  ;;  %v14597_v23 = vcombine.low %v779_v7, %v783_v8 }
 0x155   :  { %10131 = vmatprep.subr.bf16.mxu1 %v14256_v29  ;;  %v496_v29 = vld [vmem:[#allocation2 + $0xc28] sm:$0xff] }
 0x156   :  { %9720 = vmatpush1.bf16.msra.mxu0 %v14501_v28  ;;  %v492_v28 = vld [vmem:[#allocation2 + $0xc08] sm:$0xff] }
 0x157   :  { %9721 = vmatprep.subr.bf16.mxu0 %v14510_v30  ;;  %v747_v30 = vld [vmem:[#allocation2 + $0x1400] sm:$0xff]  ;;  %v14312_v34 = vcombine.high %v492_v28, %v496_v29  ;;  %v14311_v41 = vcombine.low %v492_v28, %v496_v29 }
 0x158   :  { %10132 = vmatpush1.bf16.msra.mxu1 %v14255_v35  ;;  %v14566_v35 = vcombine.high %v747_v30, %v751_v63  ;;  %v14565_v44 = vcombine.low %v747_v30, %v751_v63  ;;  %v795_v28 = vld [vmem:[#allocation2 + $0x1580] sm:$0xff]  ;;  %v14605_v63 = vcombine.low %v787_v19, %v791_v20 }
 0x159   :  { %10133 = vmatprep.subr.bf16.mxu1 %v14264_v37  ;;  %v504_v37 = vld [vmem:[#allocation2 + $0xc68] sm:$0xff]  ;;  %v799_v29 = vld [vmem:[#allocation2 + $0x15a0] sm:$0xff] }
 0x15a   :  { %9722 = vmatpush1.bf16.msra.mxu0 %v14509_v36  ;;  %v500_v36 = vld [vmem:[#allocation2 + $0xc48] sm:$0xff] }
 0x15b   :  { %9723 = vmatprep.subr.bf16.mxu0 %v14518_v39  ;;  %v755_v39 = vld [vmem:[#allocation2 + $0x1440] sm:$0xff]  ;;  %v14319_v62 = vcombine.low %v500_v36, %v504_v37 }
 0x15c   :  { %10134 = vmatpush1.bf16.msra.mxu1 %v14263_v45  ;;  %v14320_v45 = vcombine.high %v500_v36, %v504_v37  ;;  %v14573_v55 = vcombine.low %v755_v39, %v759_v40  ;;  %v552_v36 = vld [vmem:[#allocation2 + $0xde8] sm:$0xff] }
 0x15d   :  { %10135 = vmatprep.subr.bf16.mxu1 %v14272_v47  ;;  %v508_v47 = vld [vmem:[#allocation2 + $0xc88] sm:$0xff] }
 0x15e   :  { %9724 = vmatpush1.bf16.msra.mxu0 %v14517_v46  ;;  %v14574_v46 = vcombine.high %v755_v39, %v759_v40  ;;  %v803_v39 = vld [vmem:[#allocation2 + $0x15c0] sm:$0xff] }
 0x15f   :  { %9725 = vmatprep.subr.bf16.mxu0 %v14526_v48  ;;  %v512_v48 = vld [vmem:[#allocation2 + $0xca8] sm:$0xff]  ;;  %v807_v40 = vld [vmem:[#allocation2 + $0x15e0] sm:$0xff] }
 0x160   :  { %10136 = vmatpush1.bf16.msra.mxu1 %v14271_v56  ;;  %v14328_v56 = vcombine.high %v508_v47, %v512_v48  ;;  %v14327_v1 = vcombine.low %v508_v47, %v512_v48  ;;  %v14622_v48 = vcombine.high %v803_v39, %v807_v40 }
 0x161   :  { %10137 = vmatprep.subr.bf16.mxu1 %v14280_v18  ;;  %v516_v18 = vld [vmem:[#allocation2 + $0xcc8] sm:$0xff] }
 0x162   :  { %9726 = vmatpush1.bf16.msra.mxu0 %v14525_v57  ;;  %v14582_v57 = vcombine.high %v763_v52, %v767_v54  ;;  %v556_v52 = vld [vmem:[#allocation2 + $0xe08] sm:$0xff] }
 0x163   :  { %9727 = vmatprep.subr.bf16.mxu0 %v14534_v60  ;;  %v520_v60 = vld [vmem:[#allocation2 + $0xce8] sm:$0xff] }
 0x164   :  { %10138 = vmatpush1.bf16.msra.mxu1 %v14279_v3  ;;  %v14336_v3 = vcombine.high %v516_v18, %v520_v60  ;;  %v14335_v10 = vcombine.low %v516_v18, %v520_v60  ;;  %v560_v54 = vld [vmem:[#allocation2 + $0xe28] sm:$0xff] }
 0x165   :  { %10139 = vmatprep.subr.bf16.mxu1 %v14288_v5  ;;  %v524_v5 = vld [vmem:[#allocation2 + $0xd08] sm:$0xff]  ;;  %v14376_v18 = vcombine.high %v556_v52, %v560_v54 }
 0x166   :  { %9728 = vmatpush1.bf16.msra.mxu0 %v14533_v4  ;;  %v14590_v4 = vcombine.high %v771_v61, %v775_v0  ;;  %v564_v61 = vld [vmem:[#allocation2 + $0xe48] sm:$0xff] }
 0x167   :  { %9729 = vmatprep.subr.bf16.mxu0 %v14542_v6  ;;  %v528_v6 = vld [vmem:[#allocation2 + $0xd28] sm:$0xff] }
 0x168   :  { %10140 = vmatpush1.bf16.msra.mxu1 %v14287_v14  ;;  %v14344_v14 = vcombine.high %v524_v5, %v528_v6  ;;  %v14343_v22 = vcombine.low %v524_v5, %v528_v6  ;;  %v568_v0 = vld [vmem:[#allocation2 + $0xe68] sm:$0xff] }
 0x169   :  { %10141 = vmatprep.subr.bf16.mxu1 %v14296_v16  ;;  %v532_v16 = vld [vmem:[#allocation2 + $0xd48] sm:$0xff]  ;;  %v14384_v5 = vcombine.high %v564_v61, %v568_v0 }
 0x16a   :  { %9730 = vmatpush1.bf16.msra.mxu0 %v14541_v15  ;;  %v14598_v15 = vcombine.high %v779_v7, %v783_v8  ;;  %v572_v7 = vld [vmem:[#allocation2 + $0xe88] sm:$0xff] }
 0x16b   :  { %9731 = vmatprep.subr.bf16.mxu0 %v14550_v17  ;;  %v536_v17 = vld [vmem:[#allocation2 + $0xd68] sm:$0xff] }
 0x16c   :  { %10142 = vmatpush1.bf16.msra.mxu1 %v14295_v24  ;;  %v14352_v24 = vcombine.high %v532_v16, %v536_v17  ;;  %v14351_v30 = vcombine.low %v532_v16, %v536_v17  ;;  %v576_v8 = vld [vmem:[#allocation2 + $0xea8] sm:$0xff] }
 0x16d   :  { %10143 = vmatprep.subr.bf16.mxu1 %v14304_v26  ;;  %v540_v26 = vld [vmem:[#allocation2 + $0xd88] sm:$0xff]  ;;  %v14392_v16 = vcombine.high %v572_v7, %v576_v8 }
 0x16e   :  { %9732 = vmatpush1.bf16.msra.mxu0 %v14549_v25  ;;  %v14606_v25 = vcombine.high %v787_v19, %v791_v20  ;;  %v580_v19 = vld [vmem:[#allocation2 + $0xec8] sm:$0xff] }
 0x16f   :  { %9733 = vmatprep.subr.bf16.mxu0 %v14558_v27  ;;  %v544_v27 = vld [vmem:[#allocation2 + $0xda8] sm:$0xff] }
 0x170   :  { %10144 = vmatpush1.bf16.msra.mxu1 %v14303_v32  ;;  %v14360_v32 = vcombine.high %v540_v26, %v544_v27  ;;  %v584_v20 = vld [vmem:[#allocation2 + $0xee8] sm:$0xff] }
 0x171   :  { %10154 = vmatprep.subr.bf16.mxu1 %v14312_v34  ;;  %v14614_v34 = vcombine.high %v795_v28, %v799_v29 }
 0x172   :  { %9734 = vmatpush1.bf16.msra.mxu0 %v14557_v33 }
 0x173   :  { %9744 = vmatprep.subr.bf16.mxu0 %v14566_v35  ;;  %10146 = vmatmul.mubr.bf16.vlgmr.msra.gmra.mrb[4].mxu1 %v16838_v49  ;;  %v548_v35 = vld [vmem:[#allocation2 + $0xdc8] sm:$0xff] }
 0x174   :  { %10155 = vmatpush1.bf16.msra.mxu1 %v14311_v41  ;;  %10186 = vmatprep.mubr.bf16.mxu1 %v16842_v58  ;;  %v14368_v47 = vcombine.high %v548_v35, %v552_v36 }
 0x175   :  { %9736 = vmatmul.mubr.bf16.vlgmr.msra.gmra.mrb[0].mxu0 %v16872_v42  ;;  %10156 = vmatprep.subr.bf16.mxu1 %v14320_v45 }
 0x176   :  { %9745 = vmatpush1.bf16.msra.mxu0 %v14565_v44  ;;  %9776 = vmatprep.mubr.bf16.mxu0 %v16876_v50  ;;  %v14359_v44 = vcombine.low %v540_v26, %v544_v27  ;;  %v14400_v26 = vcombine.high %v580_v19, %v584_v20 }
 0x177   :  { %9746 = vmatprep.subr.bf16.mxu0 %v14574_v46  ;;  %v14613_v46 = vcombine.low %v795_v28, %v799_v29  ;;  %v588_v28 = vld [vmem:[#allocation2 + $0xf08] sm:$0xff] }
 0x178   :  { %10157 = vmatpush1.bf16.msra.mxu1 %v14319_v62  ;;  %v811_v62 = vld [vmem:[#allocation2 + $0x1600] sm:$0xff]  ;;  %v592_v29 = vld [vmem:[#allocation2 + $0xf28] sm:$0xff] }
 0x179   :  { %10158 = vmatprep.subr.bf16.mxu1 %v14328_v56  ;;  %v14367_v56 = vcombine.low %v548_v35, %v552_v36  ;;  %v14408_v35 = vcombine.high %v588_v28, %v592_v29 }
 0x17a   :  { %9747 = vmatpush1.bf16.msra.mxu0 %v14573_v55  ;;  %v815_v55 = vld [vmem:[#allocation2 + $0x1620] sm:$0xff] }
 0x17b   :  { %9748 = vmatprep.subr.bf16.mxu0 %v14582_v57  ;;  %v14621_v57 = vcombine.low %v803_v39, %v807_v40  ;;  %v14630_v60 = vcombine.high %v811_v62, %v815_v55  ;;  %v596_v39 = vld [vmem:[#allocation2 + $0xf48] sm:$0xff] }
 0x17c   :  { %10159 = vmatpush1.bf16.msra.mxu1 %v14327_v1  ;;  %v819_v1 = vld [vmem:[#allocation2 + $0x1640] sm:$0xff]  ;;  %v600_v40 = vld [vmem:[#allocation2 + $0xf68] sm:$0xff] }
 0x17d   :  { %10160 = vmatprep.subr.bf16.mxu1 %v14336_v3  ;;  %v14375_v3 = vcombine.low %v556_v52, %v560_v54  ;;  %v604_v52 = vld [vmem:[#allocation2 + $0xf88] sm:$0xff] }
 0x17e   :  { %9749 = vmatpush1.bf16.msra.mxu0 %v14581_v2  ;;  %v823_v2 = vld [vmem:[#allocation2 + $0x1660] sm:$0xff]  ;;  %v608_v54 = vld [vmem:[#allocation2 + $0xfa8] sm:$0xff] }
 0x17f   :  { %9750 = vmatprep.subr.bf16.mxu0 %v14590_v4  ;;  %v14629_v4 = vcombine.low %v811_v62, %v815_v55  ;;  %v14638_v6 = vcombine.high %v819_v1, %v823_v2  ;;  %v859_v62 = vld [vmem:[#allocation2 + $0x1780] sm:$0xff] }
 0x180   :  { %10161 = vmatpush1.bf16.msra.mxu1 %v14335_v10  ;;  %v827_v10 = vld [vmem:[#allocation2 + $0x1680] sm:$0xff] }
 0x181   :  { %10162 = vmatprep.subr.bf16.mxu1 %v14344_v14  ;;  %v14383_v14 = vcombine.low %v564_v61, %v568_v0  ;;  %v863_v55 = vld [vmem:[#allocation2 + $0x17a0] sm:$0xff]  ;;  %v612_v61 = vld [vmem:[#allocation2 + $0xfc8] sm:$0xff] }
 0x182   :  { %9751 = vmatpush1.bf16.msra.mxu0 %v14589_v12  ;;  %v831_v12 = vld [vmem:[#allocation2 + $0x16a0] sm:$0xff]  ;;  %v616_v0 = vld [vmem:[#allocation2 + $0xfe8] sm:$0xff] }
 0x183   :  { %9752 = vmatprep.subr.bf16.mxu0 %v14598_v15  ;;  %v14637_v15 = vcombine.low %v819_v1, %v823_v2  ;;  %v14646_v17 = vcombine.high %v827_v10, %v831_v12  ;;  %v1737_v1 = vcombine.high %v16851_v51, %v16851_v51  ;;  %v867_v2 = vld [vmem:[#allocation2 + $0x17c0] sm:$0xff] }
 0x184   :  { %10163 = vmatpush1.bf16.msra.mxu1 %v14343_v22  ;;  %v835_v22 = vld [vmem:[#allocation2 + $0x16c0] sm:$0xff] }
 0x185   :  { %10164 = vmatprep.subr.bf16.mxu1 %v14352_v24  ;;  %v14391_v24 = vcombine.low %v572_v7, %v576_v8  ;;  %v620_v8 = vld [vmem:[#allocation2 + $0x1008] sm:$0xff] }
 0x186   :  { %9753 = vmatpush1.bf16.msra.mxu0 %v14597_v23  ;;  %v16882_v33 = vpop.f32.mrb[0].mxu1  ;;  %v839_v23 = vld [vmem:[#allocation2 + $0x16e0] sm:$0xff] }
 0x187   :  { %9754 = vmatprep.subr.bf16.mxu0 %v14606_v25  ;;  %v16884_v37 = vpop.f32.mrb[1].mxu1  ;;  %v14645_v25 = vcombine.low %v827_v10, %v831_v12  ;;  %v14654_v27 = vcombine.high %v835_v22, %v839_v23  ;;  %v624_v10 = vld [vmem:[#allocation2 + $0x1028] sm:$0xff]  ;;  %v16889_v12 = vrot.slane %v1737_v1, %v16792_v53 }
 0x188   :  { %v9577_v41 = vpop.f32.mrb[2].mxu1  ;;  %10165 = vmatpush1.bf16.msra.mxu1 %v14351_v30  ;;  %v843_v30 = vld [vmem:[#allocation2 + $0x1700] sm:$0xff] }
 0x189   :  { %v9578_v45 = vpop.f32.mrb[3].mxu1  ;;  %10166 = vmatprep.subr.bf16.mxu1 %v14360_v32  ;;  %v14399_v32 = vcombine.low %v580_v19, %v584_v20  ;;  %v851_v41 = vld [vmem:[#allocation2 + $0x1740] sm:$0xff]  ;;  %v628_v20 = vld [vmem:[#allocation2 + $0x1048] sm:$0xff] }
 0x18a   :  { %9755 = vmatpush1.bf16.msra.mxu0 %v14605_v63  ;;  %v847_v63 = vld [vmem:[#allocation2 + $0x1720] sm:$0xff]  ;;  %v14407_v45 = vcombine.low %v588_v28, %v592_v29 }
 0x18b   :  { %9756 = vmatprep.subr.bf16.mxu0 %v14614_v34  ;;  %v14653_v34 = vcombine.low %v835_v22, %v839_v23  ;;  %v14662_v36 = vcombine.high %v843_v30, %v847_v63  ;;  %v632_v22 = vld [vmem:[#allocation2 + $0x1068] sm:$0xff]  ;;  %v1753_v23 = vcombine.high %v16889_v12, %v16889_v12 }
 0x18c   :  { %10167 = vmatpush1.bf16.msra.mxu1 %v14359_v44  ;;  %v855_v44 = vld [vmem:[#allocation2 + $0x1760] sm:$0xff]  ;;  %v14448_v29 = vcombine.high %v628_v20, %v632_v22 }
 0x18d   :  { %10168 = vmatprep.subr.bf16.mxu1 %v14368_v47  ;;  %v14416_v47 = vcombine.high %v596_v39, %v600_v40 }
 0x18e   :  { %9757 = vmatpush1.bf16.msra.mxu0 %v14613_v46  ;;  %v14661_v46 = vcombine.low %v843_v30, %v847_v63  ;;  %v636_v63 = vld [vmem:[#allocation2 + $0x1088] sm:$0xff] }
 0x18f   :  { %9758 = vmatprep.subr.bf16.mxu0 %v14622_v48  ;;  %v14670_v48 = vcombine.high %v851_v41, %v855_v44 }
 0x190   :  { %10169 = vmatpush1.bf16.msra.mxu1 %v14367_v56  ;;  %v14415_v56 = vcombine.low %v596_v39, %v600_v40  ;;  %v14447_v39 = vcombine.low %v628_v20, %v632_v22 }
 0x191   :  { %10170 = vmatprep.subr.bf16.mxu1 %v14376_v18  ;;  %v14424_v18 = vcombine.high %v604_v52, %v608_v54 }
 0x192   :  { %9759 = vmatpush1.bf16.msra.mxu0 %v14621_v57  ;;  %v14669_v57 = vcombine.low %v851_v41, %v855_v44 }
 0x193   :  { %9760 = vmatprep.subr.bf16.mxu0 %v14630_v60  ;;  %v14678_v60 = vcombine.high %v859_v62, %v863_v55 }
 0x194   :  { %10171 = vmatpush1.bf16.msra.mxu1 %v14375_v3  ;;  %v871_v3 = vld [vmem:[#allocation2 + $0x17e0] sm:$0xff] }
 0x195   :  { %10172 = vmatprep.subr.bf16.mxu1 %v14384_v5  ;;  %v14677_v5 = vcombine.low %v859_v62, %v863_v55  ;;  %v14686_v7 = vcombine.high %v867_v2, %v871_v3  ;;  %v14685_v51 = vcombine.low %v867_v2, %v871_v3  ;;  %v660_v3 = vld [vmem:[#allocation2 + $0x1148] sm:$0xff] }
 0x196   :  { %9761 = vmatpush1.bf16.msra.mxu0 %v14629_v4  ;;  %v14423_v4 = vcombine.low %v604_v52, %v608_v54 }
 0x197   :  { %9762 = vmatprep.subr.bf16.mxu0 %v14638_v6  ;;  %v14432_v6 = vcombine.high %v612_v61, %v616_v0 }
 0x198   :  { %10173 = vmatpush1.bf16.msra.mxu1 %v14383_v14  ;;  %v875_v14 = vld [vmem:[#allocation2 + $0x1800] sm:$0xff] }
 0x199   :  { %10174 = vmatprep.subr.bf16.mxu1 %v14392_v16  ;;  %v14431_v16 = vcombine.low %v612_v61, %v616_v0 }
 0x19a   :  { %9763 = vmatpush1.bf16.msra.mxu0 %v14637_v15  ;;  %v879_v15 = vld [vmem:[#allocation2 + $0x1820] sm:$0xff] }
 0x19b   :  { %9764 = vmatprep.subr.bf16.mxu0 %v14646_v17  ;;  %v14440_v17 = vcombine.high %v620_v8, %v624_v10  ;;  %v14694_v19 = vcombine.high %v875_v14, %v879_v15  ;;  %v14693_v28 = vcombine.low %v875_v14, %v879_v15  ;;  %v668_v15 = vld [vmem:[#allocation2 + $0x1188] sm:$0xff] }
 0x19c   :  { %10175 = vmatpush1.bf16.msra.mxu1 %v14391_v24  ;;  %v883_v24 = vld [vmem:[#allocation2 + $0x1840] sm:$0xff] }
 0x19d   :  { %10176 = vmatprep.subr.bf16.mxu1 %v14400_v26  ;;  %v14439_v26 = vcombine.low %v620_v8, %v624_v10 }
 0x19e   :  { %9765 = vmatpush1.bf16.msra.mxu0 %v14645_v25  ;;  %v887_v25 = vld [vmem:[#allocation2 + $0x1860] sm:$0xff] }
 0x19f   :  { %9766 = vmatprep.subr.bf16.mxu0 %v14654_v27  ;;  %v16895_v27 = vcombine.high %v16872_v42, %v16872_v42  ;;  %v14702_v30 = vcombine.high %v883_v24, %v887_v25  ;;  %v14701_v40 = vcombine.low %v883_v24, %v887_v25  ;;  %v676_v24 = vld [vmem:[#allocation2 + $0x11c8] sm:$0xff] }
 0x1a0   :  { %10177 = vmatpush1.bf16.msra.mxu1 %v14399_v32  ;;  %v640_v32 = vld [vmem:[#allocation2 + $0x10a8] sm:$0xff] }
 0x1a1   :  { %10178 = vmatprep.subr.bf16.mxu1 %v14408_v35  ;;  %v891_v35 = vld [vmem:[#allocation2 + $0x1880] sm:$0xff]  ;;  %v14456_v41 = vcombine.high %v636_v63, %v640_v32  ;;  %v14455_v52 = vcombine.low %v636_v63, %v640_v32  ;;  %v680_v25 = vld [vmem:[#allocation2 + $0x11e8] sm:$0xff] }
 0x1a2   :  { %9767 = vmatpush1.bf16.msra.mxu0 %v14653_v34  ;;  %v16898_v34 = vrot.slane %v1753_v23, %v16792_v53  ;;  %v14496_v63 = vcombine.high %v676_v24, %v680_v25 }
 0x1a3   :  { %9768 = vmatprep.subr.bf16.mxu0 %v14662_v36  ;;  %v895_v36 = vld [vmem:[#allocation2 + $0x18a0] sm:$0xff] }
 0x1a4   :  { %10179 = vmatpush1.bf16.msra.mxu1 %v14407_v45  ;;  %v14710_v44 = vcombine.high %v891_v35, %v895_v36  ;;  %v644_v45 = vld [vmem:[#allocation2 + $0x10c8] sm:$0xff]  ;;  %v14709_v54 = vcombine.low %v891_v35, %v895_v36 }
 0x1a5   :  { %10180 = vmatprep.subr.bf16.mxu1 %v14416_v47  ;;  %v899_v47 = vld [vmem:[#allocation2 + $0x18c0] sm:$0xff]  ;;  %v684_v35 = vld [vmem:[#allocation2 + $0x1208] sm:$0xff] }
 0x1a6   :  { %9769 = vmatpush1.bf16.msra.mxu0 %v14661_v46  ;;  %v648_v46 = vld [vmem:[#allocation2 + $0x10e8] sm:$0xff] }
 0x1a7   :  { %9770 = vmatprep.subr.bf16.mxu0 %v14670_v48  ;;  %v903_v48 = vld [vmem:[#allocation2 + $0x18e0] sm:$0xff]  ;;  %v14464_v62 = vcombine.high %v644_v45, %v648_v46  ;;  %v14463_v61 = vcombine.low %v644_v45, %v648_v46  ;;  %v688_v36 = vld [vmem:[#allocation2 + $0x1228] sm:$0xff] }
 0x1a8   :  { %10181 = vmatpush1.bf16.msra.mxu1 %v14415_v56  ;;  %v14718_v55 = vcombine.high %v899_v47, %v903_v48  ;;  %v652_v56 = vld [vmem:[#allocation2 + $0x1108] sm:$0xff]  ;;  %v14717_v0 = vcombine.low %v899_v47, %v903_v48  ;;  %v14504_v45 = vcombine.high %v684_v35, %v688_v36 }
 0x1a9   :  { %10182 = vmatprep.subr.bf16.mxu1 %v14424_v18  ;;  %v907_v18 = vld [vmem:[#allocation2 + $0x1900] sm:$0xff]  ;;  %v692_v47 = vld [vmem:[#allocation2 + $0x1248] sm:$0xff] }
 0x1aa   :  { %9771 = vmatpush1.bf16.msra.mxu0 %v14669_v57  ;;  %v656_v57 = vld [vmem:[#allocation2 + $0x1128] sm:$0xff] }
 0x1ab   :  { %9772 = vmatprep.subr.bf16.mxu0 %v14678_v60  ;;  %v911_v60 = vld [vmem:[#allocation2 + $0x1920] sm:$0xff]  ;;  %v14472_v1 = vcombine.high %v652_v56, %v656_v57  ;;  %v696_v48 = vld [vmem:[#allocation2 + $0x1268] sm:$0xff] }
 0x1ac   :  { %10183 = vmatpush1.bf16.msra.mxu1 %v14423_v4  ;;  %v14726_v2 = vcombine.high %v907_v18, %v911_v60  ;;  %v664_v4 = vld [vmem:[#allocation2 + $0x1168] sm:$0xff]  ;;  %v14725_v8 = vcombine.low %v907_v18, %v911_v60 }
 0x1ad   :  { %10184 = vmatprep.subr.bf16.mxu1 %v14432_v6  ;;  %v919_v6 = vld [vmem:[#allocation2 + $0x1960] sm:$0xff]  ;;  %v14480_v10 = vcombine.high %v660_v3, %v664_v4  ;;  %v700_v18 = vld [vmem:[#allocation2 + $0x1288] sm:$0xff] }
 0x1ae   :  { %9773 = vmatpush1.bf16.msra.mxu0 %v14677_v5  ;;  %v915_v5 = vld [vmem:[#allocation2 + $0x1940] sm:$0xff]  ;;  %v704_v60 = vld [vmem:[#allocation2 + $0x12a8] sm:$0xff] }
 0x1af   :  { %9774 = vmatprep.subr.bf16.mxu0 %v14686_v7  ;;  %v14471_v7 = vcombine.low %v652_v56, %v656_v57  ;;  %v14734_v14 = vcombine.high %v915_v5, %v919_v6  ;;  %v14733_v20 = vcombine.low %v915_v5, %v919_v6  ;;  %v14512_v56 = vcombine.high %v692_v47, %v696_v48  ;;  %v708_v5 = vld [vmem:[#allocation2 + $0x12c8] sm:$0xff] }
 0x1b0   :  { %10185 = vmatpush1.bf16.msra.mxu1 %v14431_v16  ;;  %v672_v16 = vld [vmem:[#allocation2 + $0x11a8] sm:$0xff] }
 0x1b1   :  { %10195 = vmatprep.subr.bf16.mxu1 %v14440_v17  ;;  %v927_v17 = vld [vmem:[#allocation2 + $0x19a0] sm:$0xff]  ;;  %v14488_v22 = vcombine.high %v668_v15, %v672_v16  ;;  %v712_v6 = vld [vmem:[#allocation2 + $0x12e8] sm:$0xff] }
 0x1b2   :  { %9775 = vmatpush1.bf16.msra.mxu0 %v14685_v51  ;;  %v923_v51 = vld [vmem:[#allocation2 + $0x1980] sm:$0xff] }
 0x1b3   :  { %9785 = vmatprep.subr.bf16.mxu0 %v14694_v19  ;;  %10187 = vmatmul.mubr.bf16.vlgmr.msra.gmra.mrb[4].mxu1 %v16861_v11  ;;  %v14479_v19 = vcombine.low %v660_v3, %v664_v4  ;;  %v14742_v23 = vcombine.high %v923_v51, %v927_v17  ;;  %v14520_v3 = vcombine.high %v700_v18, %v704_v60 }
 0x1b4   :  { %10196 = vmatpush1.bf16.msra.mxu1 %v14439_v26  ;;  %10227 = vmatprep.mubr.bf16.mxu1 %v16864_v21  ;;  %v931_v26 = vld [vmem:[#allocation2 + $0x19c0] sm:$0xff] }
 0x1b5   :  { %9777 = vmatmul.mubr.bf16.vlgmr.msra.gmra.mrb[0].mxu0 %v16895_v27  ;;  %10197 = vmatprep.subr.bf16.mxu1 %v14448_v29  ;;  %v14487_v29 = vcombine.low %v668_v15, %v672_v16  ;;  %v14528_v15 = vcombine.high %v708_v5, %v712_v6 }
 0x1b6   :  { %9786 = vmatpush1.bf16.msra.mxu0 %v14693_v28  ;;  %9817 = vmatprep.mubr.bf16.mxu0 %v16898_v34  ;;  %v935_v28 = vld [vmem:[#allocation2 + $0x19e0] sm:$0xff] }
 0x1b7   :  { %9787 = vmatprep.subr.bf16.mxu0 %v14702_v30  ;;  %v14741_v30 = vcombine.low %v923_v51, %v927_v17  ;;  %v14750_v32 = vcombine.high %v931_v26, %v935_v28  ;;  %v716_v51 = vld [vmem:[#allocation2 + $0x1308] sm:$0xff] }
 0x1b8   :  { %10198 = vmatpush1.bf16.msra.mxu1 %v14447_v39  ;;  %v939_v39 = vld [vmem:[#allocation2 + $0x1a00] sm:$0xff]  ;;  %v720_v17 = vld [vmem:[#allocation2 + $0x1328] sm:$0xff] }
 0x1b9   :  { %10199 = vmatprep.subr.bf16.mxu1 %v14456_v41  ;;  %v14495_v41 = vcombine.low %v676_v24, %v680_v25  ;;  %v14536_v24 = vcombine.high %v716_v51, %v720_v17 }
 0x1ba   :  { %9788 = vmatpush1.bf16.msra.mxu0 %v14701_v40  ;;  %v943_v40 = vld [vmem:[#allocation2 + $0x1a20] sm:$0xff] }
 0x1bb   :  { %9789 = vmatprep.subr.bf16.mxu0 %v14710_v44  ;;  %v14749_v44 = vcombine.low %v931_v26, %v935_v28  ;;  %v14758_v46 = vcombine.high %v939_v39, %v943_v40  ;;  %v724_v26 = vld [vmem:[#allocation2 + $0x1348] sm:$0xff] }
 0x1bc   :  { %10200 = vmatpush1.bf16.msra.mxu1 %v14455_v52  ;;  %v947_v52 = vld [vmem:[#allocation2 + $0x1a40] sm:$0xff]  ;;  %v728_v28 = vld [vmem:[#allocation2 + $0x1368] sm:$0xff] }
 0x1bd   :  { %10201 = vmatprep.subr.bf16.mxu1 %v14464_v62  ;;  %v14503_v62 = vcombine.low %v684_v35, %v688_v36  ;;  %v14544_v35 = vcombine.high %v724_v26, %v728_v28 }
 0x1be   :  { %9790 = vmatpush1.bf16.msra.mxu0 %v14709_v54  ;;  %v951_v54 = vld [vmem:[#allocation2 + $0x1a60] sm:$0xff] }
 0x1bf   :  { %9791 = vmatprep.subr.bf16.mxu0 %v14718_v55  ;;  %v14757_v55 = vcombine.low %v939_v39, %v943_v40  ;;  %v14766_v57 = vcombine.high %v947_v52, %v951_v54  ;;  %v732_v39 = vld [vmem:[#allocation2 + $0x1388] sm:$0xff] }
 0x1c0   :  { %10202 = vmatpush1.bf16.msra.mxu1 %v14463_v61  ;;  %v955_v61 = vld [vmem:[#allocation2 + $0x1a80] sm:$0xff]  ;;  %v736_v40 = vld [vmem:[#allocation2 + $0x13a8] sm:$0xff] }
 0x1c1   :  { %10203 = vmatprep.subr.bf16.mxu1 %v14472_v1  ;;  %v14511_v1 = vcombine.low %v692_v47, %v696_v48  ;;  %v14552_v47 = vcombine.high %v732_v39, %v736_v40 }
 0x1c2   :  { %9792 = vmatpush1.bf16.msra.mxu0 %v14717_v0  ;;  %v959_v0 = vld [vmem:[#allocation2 + $0x1aa0] sm:$0xff] }
 0x1c3   :  { %9793 = vmatprep.subr.bf16.mxu0 %v14726_v2  ;;  %v14765_v2 = vcombine.low %v947_v52, %v951_v54  ;;  %v14774_v4 = vcombine.high %v955_v61, %v959_v0  ;;  %v740_v52 = vld [vmem:[#allocation2 + $0x13c8] sm:$0xff] }
 0x1c4   :  { %10204 = vmatpush1.bf16.msra.mxu1 %v14471_v7  ;;  %v963_v7 = vld [vmem:[#allocation2 + $0x1ac0] sm:$0xff]  ;;  %v744_v54 = vld [vmem:[#allocation2 + $0x13e8] sm:$0xff] }
 0x1c5   :  { %10205 = vmatprep.subr.bf16.mxu1 %v14480_v10  ;;  %v14519_v10 = vcombine.low %v700_v18, %v704_v60  ;;  %v14560_v18 = vcombine.high %v740_v52, %v744_v54 }
 0x1c6   :  { %9794 = vmatpush1.bf16.msra.mxu0 %v14725_v8  ;;  %v967_v8 = vld [vmem:[#allocation2 + $0x1ae0] sm:$0xff] }
 0x1c7   :  { %9795 = vmatprep.subr.bf16.mxu0 %v14734_v14  ;;  %v14773_v14 = vcombine.low %v955_v61, %v959_v0  ;;  %v14782_v16 = vcombine.high %v963_v7, %v967_v8  ;;  %v748_v61 = vld [vmem:[#allocation2 + $0x1408] sm:$0xff] }
 0x1c8   :  { %10206 = vmatpush1.bf16.msra.mxu1 %v14479_v19  ;;  %v971_v19 = vld [vmem:[#allocation2 + $0x1b00] sm:$0xff]  ;;  %v752_v0 = vld [vmem:[#allocation2 + $0x1428] sm:$0xff] }
 0x1c9   :  { %10207 = vmatprep.subr.bf16.mxu1 %v14488_v22  ;;  %v14527_v22 = vcombine.low %v708_v5, %v712_v6  ;;  %v14568_v5 = vcombine.high %v748_v61, %v752_v0 }
 0x1ca   :  { %9796 = vmatpush1.bf16.msra.mxu0 %v14733_v20  ;;  %v975_v20 = vld [vmem:[#allocation2 + $0x1b20] sm:$0xff] }
 0x1cb   :  { %9797 = vmatprep.subr.bf16.mxu0 %v14742_v23  ;;  %v14781_v23 = vcombine.low %v963_v7, %v967_v8  ;;  %v14790_v25 = vcombine.high %v971_v19, %v975_v20  ;;  %v756_v7 = vld [vmem:[#allocation2 + $0x1448] sm:$0xff] }
 0x1cc   :  { %10208 = vmatpush1.bf16.msra.mxu1 %v14487_v29  ;;  %v979_v29 = vld [vmem:[#allocation2 + $0x1b40] sm:$0xff]  ;;  %v760_v8 = vld [vmem:[#allocation2 + $0x1468] sm:$0xff] }
 0x1cd   :  { %10209 = vmatprep.subr.bf16.mxu1 %v14496_v63  ;;  %v14535_v63 = vcombine.low %v716_v51, %v720_v17  ;;  %v14576_v17 = vcombine.high %v756_v7, %v760_v8 }
 0x1ce   :  { %9798 = vmatpush1.bf16.msra.mxu0 %v14741_v30  ;;  %v983_v30 = vld [vmem:[#allocation2 + $0x1b60] sm:$0xff] }
 0x1cf   :  { %9799 = vmatprep.subr.bf16.mxu0 %v14750_v32  ;;  %v14789_v32 = vcombine.low %v971_v19, %v975_v20  ;;  %v14798_v36 = vcombine.high %v979_v29, %v983_v30  ;;  %v764_v20 = vld [vmem:[#allocation2 + $0x1488] sm:$0xff] }
 0x1d0   :  { %10210 = vmatpush1.bf16.msra.mxu1 %v14495_v41  ;;  %v987_v41 = vld [vmem:[#allocation2 + $0x1b80] sm:$0xff] }
 0x1d1   :  { %10211 = vmatprep.subr.bf16.mxu1 %v14504_v45  ;;  %v14543_v45 = vcombine.low %v724_v26, %v728_v28 }
 0x1d2   :  { %9800 = vmatpush1.bf16.msra.mxu0 %v14749_v44  ;;  %v991_v44 = vld [vmem:[#allocation2 + $0x1ba0] sm:$0xff] }
 0x1d3   :  { %9801 = vmatprep.subr.bf16.mxu0 %v14758_v46  ;;  %v14797_v46 = vcombine.low %v979_v29, %v983_v30  ;;  %v14806_v48 = vcombine.high %v987_v41, %v991_v44  ;;  %v772_v30 = vld [vmem:[#allocation2 + $0x14c8] sm:$0xff] }
 0x1d4   :  { %10212 = vmatpush1.bf16.msra.mxu1 %v14503_v62  ;;  %v995_v62 = vld [vmem:[#allocation2 + $0x1bc0] sm:$0xff] }
 0x1d5   :  { %10213 = vmatprep.subr.bf16.mxu1 %v14512_v56  ;;  %v14551_v56 = vcombine.low %v732_v39, %v736_v40 }
 0x1d6   :  { %9802 = vmatpush1.bf16.msra.mxu0 %v14757_v55  ;;  %v999_v55 = vld [vmem:[#allocation2 + $0x1be0] sm:$0xff] }
 0x1d7   :  { %9803 = vmatprep.subr.bf16.mxu0 %v14766_v57  ;;  %v14805_v57 = vcombine.low %v987_v41, %v991_v44  ;;  %v14814_v60 = vcombine.high %v995_v62, %v999_v55  ;;  %v780_v44 = vld [vmem:[#allocation2 + $0x1508] sm:$0xff] }
 0x1d8   :  { %10214 = vmatpush1.bf16.msra.mxu1 %v14511_v1  ;;  %v1003_v1 = vld [vmem:[#allocation2 + $0x1c00] sm:$0xff] }
 0x1d9   :  { %10215 = vmatprep.subr.bf16.mxu1 %v14520_v3  ;;  %v14559_v3 = vcombine.low %v740_v52, %v744_v54 }
 0x1da   :  { %9804 = vmatpush1.bf16.msra.mxu0 %v14765_v2  ;;  %v1007_v2 = vld [vmem:[#allocation2 + $0x1c20] sm:$0xff] }
 0x1db   :  { %9805 = vmatprep.subr.bf16.mxu0 %v14774_v4  ;;  %v14813_v4 = vcombine.low %v995_v62, %v999_v55  ;;  %v14822_v6 = vcombine.high %v1003_v1, %v1007_v2  ;;  %v14821_v51 = vcombine.low %v1003_v1, %v1007_v2  ;;  %v788_v55 = vld [vmem:[#allocation2 + $0x1548] sm:$0xff] }
 0x1dc   :  { %10216 = vmatpush1.bf16.msra.mxu1 %v14519_v10  ;;  %v1011_v10 = vld [vmem:[#allocation2 + $0x1c40] sm:$0xff]  ;;  %v796_v2 = vld [vmem:[#allocation2 + $0x1588] sm:$0xff] }
 0x1dd   :  { %10217 = vmatprep.subr.bf16.mxu1 %v14528_v15  ;;  %v14567_v15 = vcombine.low %v748_v61, %v752_v0 }
 0x1de   :  { %9806 = vmatpush1.bf16.msra.mxu0 %v14773_v14  ;;  %v1015_v14 = vld [vmem:[#allocation2 + $0x1c60] sm:$0xff] }
 0x1df   :  { %9807 = vmatprep.subr.bf16.mxu0 %v14782_v16  ;;  %v16906_v16 = vrot.slane %v16889_v12, %v16792_v53  ;;  %v14830_v19 = vcombine.high %v1011_v10, %v1015_v14  ;;  %v14575_v12 = vcombine.low %v756_v7, %v760_v8  ;;  %v14829_v26 = vcombine.low %v1011_v10, %v1015_v14  ;;  %v804_v14 = vld [vmem:[#allocation2 + $0x15c8] sm:$0xff] }
 0x1e0   :  { %10218 = vmatpush1.bf16.msra.mxu1 %v14527_v22  ;;  %v768_v22 = vld [vmem:[#allocation2 + $0x14a8] sm:$0xff] }
 0x1e1   :  { %10219 = vmatprep.subr.bf16.mxu1 %v14536_v24  ;;  %v1019_v24 = vld [vmem:[#allocation2 + $0x1c80] sm:$0xff]  ;;  %v14584_v28 = vcombine.high %v764_v20, %v768_v22 }
 0x1e2   :  { %9808 = vmatpush1.bf16.msra.mxu0 %v14781_v23  ;;  %v16910_v23 = vcombine.high %v16898_v34, %v16898_v34 }
 0x1e3   :  { %9809 = vmatprep.subr.bf16.mxu0 %v14790_v25  ;;  %v1023_v25 = vld [vmem:[#allocation2 + $0x1ca0] sm:$0xff] }
 0x1e4   :  { %10220 = vmatpush1.bf16.msra.mxu1 %v14535_v63  ;;  %v14838_v29 = vcombine.high %v1019_v24, %v1023_v25  ;;  %v776_v63 = vld [vmem:[#allocation2 + $0x14e8] sm:$0xff]  ;;  %v14837_v39 = vcombine.low %v1019_v24, %v1023_v25 }
 0x1e5   :  { %10221 = vmatprep.subr.bf16.mxu1 %v14544_v35  ;;  %v1031_v35 = vld [vmem:[#allocation2 + $0x1ce0] sm:$0xff]  ;;  %v14592_v40 = vcombine.high %v772_v30, %v776_v63  ;;  %v812_v25 = vld [vmem:[#allocation2 + $0x1608] sm:$0xff] }
 0x1e6   :  { %9810 = vmatpush1.bf16.msra.mxu0 %v14789_v32  ;;  %v1027_v32 = vld [vmem:[#allocation2 + $0x1cc0] sm:$0xff] }
 0x1e7   :  { %9811 = vmatprep.subr.bf16.mxu0 %v14798_v36  ;;  %v14583_v36 = vcombine.low %v764_v20, %v768_v22  ;;  %v14846_v41 = vcombine.high %v1027_v32, %v1031_v35  ;;  %v14845_v52 = vcombine.low %v1027_v32, %v1031_v35  ;;  %v820_v35 = vld [vmem:[#allocation2 + $0x1648] sm:$0xff] }
 0x1e8   :  { %10222 = vmatpush1.bf16.msra.mxu1 %v14543_v45  ;;  %v784_v45 = vld [vmem:[#allocation2 + $0x1528] sm:$0xff] }
 0x1e9   :  { %10223 = vmatprep.subr.bf16.mxu1 %v14552_v47  ;;  %v1039_v47 = vld [vmem:[#allocation2 + $0x1d20] sm:$0xff]  ;;  %v14600_v54 = vcombine.high %v780_v44, %v784_v45 }
 0x1ea   :  { %9812 = vmatpush1.bf16.msra.mxu0 %v14797_v46  ;;  %v1035_v46 = vld [vmem:[#allocation2 + $0x1d00] sm:$0xff] }
 0x1eb   :  { %9813 = vmatprep.subr.bf16.mxu0 %v14806_v48  ;;  %v14591_v48 = vcombine.low %v772_v30, %v776_v63  ;;  %v14854_v62 = vcombine.high %v1035_v46, %v1039_v47  ;;  %v14853_v61 = vcombine.low %v1035_v46, %v1039_v47  ;;  %v828_v47 = vld [vmem:[#allocation2 + $0x1688] sm:$0xff] }
 0x1ec   :  { %10224 = vmatpush1.bf16.msra.mxu1 %v14551_v56  ;;  %v792_v56 = vld [vmem:[#allocation2 + $0x1568] sm:$0xff] }
 0x1ed   :  { %10225 = vmatprep.subr.bf16.mxu1 %v14560_v18  ;;  %v1047_v18 = vld [vmem:[#allocation2 + $0x1d60] sm:$0xff]  ;;  %v14608_v0 = vcombine.high %v788_v55, %v792_v56 }
 0x1ee   :  { %9814 = vmatpush1.bf16.msra.mxu0 %v14805_v57  ;;  %v1043_v57 = vld [vmem:[#allocation2 + $0x1d40] sm:$0xff] }
 0x1ef   :  { %9815 = vmatprep.subr.bf16.mxu0 %v14814_v60  ;;  %v14599_v60 = vcombine.low %v780_v44, %v784_v45  ;;  %v14862_v1 = vcombine.high %v1043_v57, %v1047_v18  ;;  %v14861_v7 = vcombine.low %v1043_v57, %v1047_v18  ;;  %v836_v18 = vld [vmem:[#allocation2 + $0x16c8] sm:$0xff] }
 0x1f0   :  { %10226 = vmatpush1.bf16.msra.mxu1 %v14559_v3  ;;  %v800_v3 = vld [vmem:[#allocation2 + $0x15a8] sm:$0xff] }
 0x1f1   :  { %10236 = vmatprep.subr.bf16.mxu1 %v14568_v5  ;;  %v1055_v5 = vld [vmem:[#allocation2 + $0x1da0] sm:$0xff]  ;;  %v14616_v8 = vcombine.high %v796_v2, %v800_v3 }
 0x1f2   :  { %9816 = vmatpush1.bf16.msra.mxu0 %v14813_v4  ;;  %v1051_v4 = vld [vmem:[#allocation2 + $0x1d80] sm:$0xff] }
 0x1f3   :  { %9826 = vmatprep.subr.bf16.mxu0 %v14822_v6  ;;  %10228 = vmatmul.mubr.bf16.vlgmr.msra.gmra.mrb[4].mxu1 %v16872_v42  ;;  %v14607_v6 = vcombine.low %v788_v55, %v792_v56  ;;  %v14870_v10 = vcombine.high %v1051_v4, %v1055_v5  ;;  %v14869_v20 = vcombine.low %v1051_v4, %v1055_v5  ;;  %v844_v5 = vld [vmem:[#allocation2 + $0x1708] sm:$0xff] }
 0x1f4   :  { %10237 = vmatpush1.bf16.msra.mxu1 %v14567_v15  ;;  %10268 = vmatprep.mubr.bf16.mxu1 %v16876_v50  ;;  %v808_v15 = vld [vmem:[#allocation2 + $0x15e8] sm:$0xff] }
 0x1f5   :  { %9818 = vmatmul.mubr.bf16.vlgmr.msra.gmra.mrb[0].mxu0 %v16906_v16  ;;  %10238 = vmatprep.subr.bf16.mxu1 %v14576_v17  ;;  %v1063_v17 = vld [vmem:[#allocation2 + $0x1de0] sm:$0xff]  ;;  %v14624_v22 = vcombine.high %v804_v14, %v808_v15 }
 0x1f6   :  { %9827 = vmatpush1.bf16.msra.mxu0 %v14821_v51  ;;  %9858 = vmatprep.mubr.bf16.mxu0 %v16910_v23  ;;  %v1059_v51 = vld [vmem:[#allocation2 + $0x1dc0] sm:$0xff] }
 0x1f7   :  { %9828 = vmatprep.subr.bf16.mxu0 %v14830_v19  ;;  %v14615_v19 = vcombine.low %v796_v2, %v800_v3  ;;  %v14878_v24 = vcombine.high %v1059_v51, %v1063_v17  ;;  %v14877_v30 = vcombine.low %v1059_v51, %v1063_v17  ;;  %v852_v17 = vld [vmem:[#allocation2 + $0x1748] sm:$0xff] }
 0x1f8   :  { %10239 = vmatpush1.bf16.msra.mxu1 %v14575_v12  ;;  %v816_v12 = vld [vmem:[#allocation2 + $0x1628] sm:$0xff] }
 0x1f9   :  { %10240 = vmatprep.subr.bf16.mxu1 %v14584_v28  ;;  %v1071_v28 = vld [vmem:[#allocation2 + $0x1e20] sm:$0xff]  ;;  %v14632_v63 = vcombine.high %v812_v25, %v816_v12 }
 0x1fa   :  { %9829 = vmatpush1.bf16.msra.mxu0 %v14829_v26  ;;  %v1067_v26 = vld [vmem:[#allocation2 + $0x1e00] sm:$0xff] }
 0x1fb   :  { %9830 = vmatprep.subr.bf16.mxu0 %v14838_v29  ;;  %v14623_v29 = vcombine.low %v804_v14, %v808_v15  ;;  %v14886_v32 = vcombine.high %v1067_v26, %v1071_v28  ;;  %v14885_v44 = vcombine.low %v1067_v26, %v1071_v28  ;;  %v860_v28 = vld [vmem:[#allocation2 + $0x1788] sm:$0xff] }
 0x1fc   :  { %10241 = vmatpush1.bf16.msra.mxu1 %v14583_v36  ;;  %v824_v36 = vld [vmem:[#allocation2 + $0x1668] sm:$0xff] }
 0x1fd   :  { %10242 = vmatprep.subr.bf16.mxu1 %v14592_v40  ;;  %v1079_v40 = vld [vmem:[#allocation2 + $0x1e60] sm:$0xff]  ;;  %v14640_v45 = vcombine.high %v820_v35, %v824_v36 }
 0x1fe   :  { %9831 = vmatpush1.bf16.msra.mxu0 %v14837_v39  ;;  %v1075_v39 = vld [vmem:[#allocation2 + $0x1e40] sm:$0xff] }
 0x1ff   :  { %9832 = vmatprep.subr.bf16.mxu0 %v14846_v41  ;;  %v14631_v41 = vcombine.low %v812_v25, %v816_v12  ;;  %v14894_v46 = vcombine.high %v1075_v39, %v1079_v40  ;;  %v14893_v55 = vcombine.low %v1075_v39, %v1079_v40  ;;  %v868_v40 = vld [vmem:[#allocation2 + $0x17c8] sm:$0xff] }
 0x200   :  { %10243 = vmatpush1.bf16.msra.mxu1 %v14591_v48  ;;  %v832_v48 = vld [vmem:[#allocation2 + $0x16a8] sm:$0xff] }
 0x201   :  { %10244 = vmatprep.subr.bf16.mxu1 %v14600_v54  ;;  %v1087_v54 = vld [vmem:[#allocation2 + $0x1ea0] sm:$0xff]  ;;  %v14648_v56 = vcombine.high %v828_v47, %v832_v48 }
 0x202   :  { %9833 = vmatpush1.bf16.msra.mxu0 %v14845_v52  ;;  %v1083_v52 = vld [vmem:[#allocation2 + $0x1e80] sm:$0xff] }
 0x203   :  { %9834 = vmatprep.subr.bf16.mxu0 %v14854_v62  ;;  %v14639_v62 = vcombine.low %v820_v35, %v824_v36  ;;  %v14902_v57 = vcombine.high %v1083_v52, %v1087_v54  ;;  %v14901_v2 = vcombine.low %v1083_v52, %v1087_v54 }
 0x204   :  { %10245 = vmatpush1.bf16.msra.mxu1 %v14599_v60  ;;  %v840_v60 = vld [vmem:[#allocation2 + $0x16e8] sm:$0xff] }
 0x205   :  { %10246 = vmatprep.subr.bf16.mxu1 %v14608_v0  ;;  %v1095_v0 = vld [vmem:[#allocation2 + $0x1ee0] sm:$0xff]  ;;  %v14656_v3 = vcombine.high %v836_v18, %v840_v60 }
 0x206   :  { %9835 = vmatpush1.bf16.msra.mxu0 %v14853_v61  ;;  %v1091_v61 = vld [vmem:[#allocation2 + $0x1ec0] sm:$0xff] }
 0x207   :  { %9836 = vmatprep.subr.bf16.mxu0 %v14862_v1  ;;  %v14647_v1 = vcombine.low %v828_v47, %v832_v48  ;;  %v14910_v4 = vcombine.high %v1091_v61, %v1095_v0  ;;  %v14909_v14 = vcombine.low %v1091_v61, %v1095_v0 }
 0x208   :  { %10247 = vmatpush1.bf16.msra.mxu1 %v14607_v6  ;;  %v848_v6 = vld [vmem:[#allocation2 + $0x1728] sm:$0xff] }
 0x209   :  { %10248 = vmatprep.subr.bf16.mxu1 %v14616_v8  ;;  %v1103_v8 = vld [vmem:[#allocation2 + $0x1f20] sm:$0xff]  ;;  %v14664_v15 = vcombine.high %v844_v5, %v848_v6 }
 0x20a   :  { %9837 = vmatpush1.bf16.msra.mxu0 %v14861_v7  ;;  %v1099_v7 = vld [vmem:[#allocation2 + $0x1f00] sm:$0xff] }
 0x20b   :  { %9838 = vmatprep.subr.bf16.mxu0 %v14870_v10  ;;  %v14655_v10 = vcombine.low %v836_v18, %v840_v60  ;;  %v14918_v51 = vcombine.high %v1099_v7, %v1103_v8  ;;  %v14917_v25 = vcombine.low %v1099_v7, %v1103_v8  ;;  %v1135_v18 = vld [vmem:[#allocation2 + $0x2020] sm:$0xff]  ;;  %v16929_v8 = vcombine.high %v16906_v16, %v16906_v16 }
 0x20c   :  { %10249 = vmatpush1.bf16.msra.mxu1 %v14615_v19  ;;  %v856_v19 = vld [vmem:[#allocation2 + $0x1768] sm:$0xff] }
 0x20d   :  { %10250 = vmatprep.subr.bf16.mxu1 %v14624_v22  ;;  %v1111_v22 = vld [vmem:[#allocation2 + $0x1f60] sm:$0xff]  ;;  %v14672_v12 = vcombine.high %v852_v17, %v856_v19 }
 0x20e   :  { %9839 = vmatpush1.bf16.msra.mxu0 %v14869_v20  ;;  %v1107_v20 = vld [vmem:[#allocation2 + $0x1f40] sm:$0xff] }
 0x20f   :  { %9840 = vmatprep.subr.bf16.mxu0 %v14878_v24  ;;  %v14663_v24 = vcombine.low %v844_v5, %v848_v6  ;;  %v14926_v26 = vcombine.high %v1107_v20, %v1111_v22  ;;  %v14925_v35 = vcombine.low %v1107_v20, %v1111_v22  ;;  %v1139_v5 = vld [vmem:[#allocation2 + $0x2040] sm:$0xff] }
 0x210   :  { %10251 = vmatpush1.bf16.msra.mxu1 %v14623_v29  ;;  %v864_v29 = vld [vmem:[#allocation2 + $0x17a8] sm:$0xff]  ;;  %v1143_v6 = vld [vmem:[#allocation2 + $0x2060] sm:$0xff] }
 0x211   :  { %10252 = vmatprep.subr.bf16.mxu1 %v14632_v63  ;;  %v1119_v63 = vld [vmem:[#allocation2 + $0x1fa0] sm:$0xff]  ;;  %v14680_v36 = vcombine.high %v860_v28, %v864_v29  ;;  %v14679_v47 = vcombine.low %v860_v28, %v864_v29  ;;  %v900_v28 = vld [vmem:[#allocation2 + $0x18c8] sm:$0xff] }
 0x212   :  { %9841 = vmatpush1.bf16.msra.mxu0 %v14877_v30  ;;  %v1115_v30 = vld [vmem:[#allocation2 + $0x1f80] sm:$0xff]  ;;  %v904_v29 = vld [vmem:[#allocation2 + $0x18e8] sm:$0xff] }
 0x213   :  { %9842 = vmatprep.subr.bf16.mxu0 %v14886_v32  ;;  %v14671_v32 = vcombine.low %v852_v17, %v856_v19  ;;  %v14934_v39 = vcombine.high %v1115_v30, %v1119_v63  ;;  %v14933_v48 = vcombine.low %v1115_v30, %v1119_v63  ;;  %v896_v17 = vld [vmem:[#allocation2 + $0x18a8] sm:$0xff]  ;;  %v1147_v20 = vld [vmem:[#allocation2 + $0x2080] sm:$0xff] }
 0x214   :  { %10253 = vmatpush1.bf16.msra.mxu1 %v14631_v41  ;;  %v872_v41 = vld [vmem:[#allocation2 + $0x17e8] sm:$0xff]  ;;  %v1151_v22 = vld [vmem:[#allocation2 + $0x20a0] sm:$0xff] }
 0x215   :  { %10254 = vmatprep.subr.bf16.mxu1 %v14640_v45  ;;  %v1127_v45 = vld [vmem:[#allocation2 + $0x1fe0] sm:$0xff]  ;;  %v14688_v52 = vcombine.high %v868_v40, %v872_v41  ;;  %v14687_v60 = vcombine.low %v868_v40, %v872_v41  ;;  %v908_v40 = vld [vmem:[#allocation2 + $0x1908] sm:$0xff] }
 0x216   :  { %9843 = vmatpush1.bf16.msra.mxu0 %v14885_v44  ;;  %v1123_v44 = vld [vmem:[#allocation2 + $0x1fc0] sm:$0xff]  ;;  %v912_v41 = vld [vmem:[#allocation2 + $0x1928] sm:$0xff] }
 0x217   :  { %9844 = vmatprep.subr.bf16.mxu0 %v14894_v46  ;;  %v16919_v46 = vld [vmem:[%s17144_s0 + $0x10] sm:$0xff]  ;;  %v14942_v54 = vcombine.high %v1123_v44, %v1127_v45  ;;  %v14941_v61 = vcombine.low %v1123_v44, %v1127_v45  ;;  %v1155_v30 = vld [vmem:[#allocation2 + $0x20c0] sm:$0xff]  ;;  %s16676_s0 = smov [#allocation13]  }
 0x218   :  { %10255 = vmatpush1.bf16.msra.mxu1 %v14639_v62  ;;  %v876_v62 = vld [vmem:[#allocation2 + $0x1808] sm:$0xff]  ;;  %v1159_v63 = vld [vmem:[#allocation2 + $0x20e0] sm:$0xff]  ;;  %s13913_s30 = sshll.u32 %s16676_s0, 4  ;;  %s13914_s30 = int_to_ptr.vmem [resolvable:$true] %s13913_s30 }
 0x219   :  { %10256 = vmatprep.subr.bf16.mxu1 %v14648_v56  ;;  %v16923_v56 = vrot.slane %v16919_v46, %v16792_v53  ;;  %v1163_v44 = vld [vmem:[#allocation2 + $0x2100] sm:$0xff]  ;;  %s16630_s8 = scalar_lea.vmem %s13914_s30, 64  ;;  %p16635_p7 = scmp.lt.s32.totalorder %s13914_s30, %s13914_s30 }
 0x21a   :  { %9845 = vmatpush1.bf16.msra.mxu0 %v14893_v55  ;;  %v880_v55 = vld [vmem:[#allocation2 + $0x1828] sm:$0xff]  ;;  %v1167_v45 = vld [vmem:[#allocation2 + $0x2120] sm:$0xff]  ;;  %p16631_p6 = scmp.ne.s32.totalorder %s13914_s30, %s16630_s8  ;;  %p16636_p8 = scmp.lt.s32.totalorder %s16630_s8, %s16630_s8 }
 0x21b   :  { %9846 = vmatprep.subr.bf16.mxu0 %v14902_v57  ;;  %v1131_v57 = vld [vmem:[#allocation2 + $0x2000] sm:$0xff]  ;;  %v14696_v0 = vcombine.high %v876_v62, %v880_v55  ;;  %v14695_v7 = vcombine.low %v876_v62, %v880_v55  ;;  %v916_v62 = vld [vmem:[#allocation2 + $0x1948] sm:$0xff] }
 0x21c   :  { %10257 = vmatpush1.bf16.msra.mxu1 %v14647_v1  ;;  %v14950_v1 = vcombine.high %v1131_v57, %v1135_v18  ;;  %v920_v55 = vld [vmem:[#allocation2 + $0x1968] sm:$0xff]  ;;  %p16637_p9 = por %p16636_p8, %p16635_p7 }
 0x21d   :  { %10258 = vmatprep.subr.bf16.mxu1 %v14656_v3  ;;  %v888_v3 = vld [vmem:[#allocation2 + $0x1868] sm:$0xff] }
 0x21e   :  { %9847 = vmatpush1.bf16.msra.mxu0 %v14901_v2  ;;  %v884_v2 = vld [vmem:[#allocation2 + $0x1848] sm:$0xff]  ;;  %p16638_p10 = pnand %p16637_p9, %p16631_p6 }
 0x21f   :  { %9848 = vmatprep.subr.bf16.mxu0 %v14910_v4  ;;  %v1801_v4 = vcombine.high %v16923_v56, %v16923_v56 }
 0x220   :  { %10259 = vmatpush1.bf16.msra.mxu1 %v14655_v10  ;;  %v14949_v10 = vcombine.low %v1131_v57, %v1135_v18  ;;  %v1171_v57 = vld [vmem:[#allocation2 + $0x2140] sm:$0xff] }
 0x221   :  { %10260 = vmatprep.subr.bf16.mxu1 %v14664_v15  ;;  %v14958_v15 = vcombine.high %v1139_v5, %v1143_v6  ;;  %v16932_v19 = vrot.slane %v1801_v4, %v16792_v53  ;;  %v1175_v18 = vld [vmem:[#allocation2 + $0x2160] sm:$0xff] }
 0x222   :  { %9849 = vmatpush1.bf16.msra.mxu0 %v14909_v14  ;;  %v14704_v14 = vcombine.high %v884_v2, %v888_v3  ;;  %v1179_v4 = vld [vmem:[#allocation2 + $0x2180] sm:$0xff] }
 0x223   :  { %9850 = vmatprep.subr.bf16.mxu0 %v14918_v51  ;;  %v892_v51 = vld [vmem:[#allocation2 + $0x1888] sm:$0xff] }
 0x224   :  { %10261 = vmatpush1.bf16.msra.mxu1 %v14663_v24  ;;  %v14703_v24 = vcombine.low %v884_v2, %v888_v3  ;;  %v924_v2 = vld [vmem:[#allocation2 + $0x1988] sm:$0xff] }
 0x225   :  { %10262 = vmatprep.subr.bf16.mxu1 %v14672_v12  ;;  %v14712_v12 = vcombine.high %v892_v51, %v896_v17  ;;  %v928_v3 = vld [vmem:[#allocation2 + $0x19a8] sm:$0xff] }
 0x226   :  { %9851 = vmatpush1.bf16.msra.mxu0 %v14917_v25  ;;  %v14957_v25 = vcombine.low %v1139_v5, %v1143_v6  ;;  %v1183_v5 = vld [vmem:[#allocation2 + $0x21a0] sm:$0xff]  ;;  %v14735_v6 = vcombine.low %v916_v62, %v920_v55 }
 0x227   :  { %9852 = vmatprep.subr.bf16.mxu0 %v14926_v26  ;;  %v14966_v26 = vcombine.high %v1147_v20, %v1151_v22 }
 0x228   :  { %10263 = vmatpush1.bf16.msra.mxu1 %v14671_v32  ;;  %v14711_v32 = vcombine.low %v892_v51, %v896_v17  ;;  %v936_v51 = vld [vmem:[#allocation2 + $0x19e8] sm:$0xff]  ;;  %v1187_v17 = vld [vmem:[#allocation2 + $0x21c0] sm:$0xff] }
 0x229   :  { %10264 = vmatprep.subr.bf16.mxu1 %v14680_v36  ;;  %v14720_v36 = vcombine.high %v900_v28, %v904_v29 }
 0x22a   :  { %9853 = vmatpush1.bf16.msra.mxu0 %v14925_v35  ;;  %v14965_v35 = vcombine.low %v1147_v20, %v1151_v22  ;;  %v1191_v20 = vld [vmem:[#allocation2 + $0x21e0] sm:$0xff]  ;;  %v14743_v22 = vcombine.low %v924_v2, %v928_v3 }
 0x22b   :  { %9854 = vmatprep.subr.bf16.mxu0 %v14934_v39  ;;  %v14974_v39 = vcombine.high %v1155_v30, %v1159_v63 }
 0x22c   :  { %10265 = vmatpush1.bf16.msra.mxu1 %v14679_v47  ;;  %v14719_v47 = vcombine.low %v900_v28, %v904_v29  ;;  %v944_v28 = vld [vmem:[#allocation2 + $0x1a28] sm:$0xff]  ;;  %v1195_v29 = vld [vmem:[#allocation2 + $0x2200] sm:$0xff] }
 0x22d   :  { %10266 = vmatprep.subr.bf16.mxu1 %v14688_v52  ;;  %v14728_v52 = vcombine.high %v908_v40, %v912_v41 }
 0x22e   :  { %9855 = vmatpush1.bf16.msra.mxu0 %v14933_v48  ;;  %v14973_v48 = vcombine.low %v1155_v30, %v1159_v63  ;;  %v1199_v30 = vld [vmem:[#allocation2 + $0x2220] sm:$0xff] }
 0x22f   :  { %9856 = vmatprep.subr.bf16.mxu0 %v14942_v54  ;;  %v14982_v54 = vcombine.high %v1163_v44, %v1167_v45 }
 0x230   :  { %10267 = vmatpush1.bf16.msra.mxu1 %v14687_v60  ;;  %v14727_v60 = vcombine.low %v908_v40, %v912_v41  ;;  %v952_v40 = vld [vmem:[#allocation2 + $0x1a68] sm:$0xff]  ;;  %v1203_v41 = vld [vmem:[#allocation2 + $0x2240] sm:$0xff] }
 0x231   :  { %10277 = vmatprep.subr.bf16.mxu1 %v14696_v0  ;;  %v14736_v0 = vcombine.high %v916_v62, %v920_v55  ;;  %v960_v62 = vld [vmem:[#allocation2 + $0x1aa8] sm:$0xff]  ;;  %v1211_v55 = vld [vmem:[#allocation2 + $0x2280] sm:$0xff] }
 0x232   :  { %9857 = vmatpush1.bf16.msra.mxu0 %v14941_v61  ;;  %v14981_v61 = vcombine.low %v1163_v44, %v1167_v45  ;;  %v1207_v44 = vld [vmem:[#allocation2 + $0x2260] sm:$0xff] }
 0x233   :  { %9867 = vmatprep.subr.bf16.mxu0 %v14950_v1  ;;  %10269 = vmatmul.mubr.bf16.vlgmr.msra.gmra.mrb[4].mxu1 %v16895_v27  ;;  %v14990_v1 = vcombine.high %v1171_v57, %v1175_v18 }
 0x234   :  { %10278 = vmatpush1.bf16.msra.mxu1 %v14695_v7  ;;  %10309 = vmatprep.mubr.bf16.mxu1 %v16898_v34  ;;  %v14989_v7 = vcombine.low %v1171_v57, %v1175_v18  ;;  %v1215_v57 = vld [vmem:[#allocation2 + $0x22a0] sm:$0xff] }
 0x235   :  { %9859 = vmatmul.mubr.bf16.vlgmr.msra.gmra.mrb[0].mxu0 %v16929_v8  ;;  %10279 = vmatprep.subr.bf16.mxu1 %v14704_v14  ;;  %v14998_v14 = vcombine.high %v1179_v4, %v1183_v5 }
 0x236   :  { %9868 = vmatpush1.bf16.msra.mxu0 %v14949_v10  ;;  %9899 = vmatprep.mubr.bf16.mxu0 %v16932_v19  ;;  %v14744_v10 = vcombine.high %v924_v2, %v928_v3  ;;  %v968_v2 = vld [vmem:[#allocation2 + $0x1ae8] sm:$0xff]  ;;  %v1219_v3 = vld [vmem:[#allocation2 + $0x22c0] sm:$0xff] }
 0x237   :  { %9869 = vmatprep.subr.bf16.mxu0 %v14958_v15  ;;  %v932_v15 = vld [vmem:[#allocation2 + $0x19c8] sm:$0xff] }
 0x238   :  { %10280 = vmatpush1.bf16.msra.mxu1 %v14703_v24  ;;  %v14997_v24 = vcombine.low %v1179_v4, %v1183_v5  ;;  %v14751_v63 = vcombine.low %v932_v15, %v936_v51  ;;  %v1223_v4 = vld [vmem:[#allocation2 + $0x22e0] sm:$0xff] }
 0x239   :  { %10281 = vmatprep.subr.bf16.mxu1 %v14712_v12  ;;  %v15006_v12 = vcombine.high %v1187_v17, %v1191_v20 }
 0x23a   :  { %9870 = vmatpush1.bf16.msra.mxu0 %v14957_v25  ;;  %v14752_v25 = vcombine.high %v932_v15, %v936_v51  ;;  %v976_v15 = vld [vmem:[#allocation2 + $0x1b28] sm:$0xff]  ;;  %v1227_v51 = vld [vmem:[#allocation2 + $0x2300] sm:$0xff] }
 0x23b   :  { %9871 = vmatprep.subr.bf16.mxu0 %v14966_v26  ;;  %v940_v26 = vld [vmem:[#allocation2 + $0x1a08] sm:$0xff] }
 0x23c   :  { %10282 = vmatpush1.bf16.msra.mxu1 %v14711_v32  ;;  %v15005_v32 = vcombine.low %v1187_v17, %v1191_v20  ;;  %v14759_v45 = vcombine.low %v940_v26, %v944_v28  ;;  %v1231_v17 = vld [vmem:[#allocation2 + $0x2320] sm:$0xff] }
 0x23d   :  { %10283 = vmatprep.subr.bf16.mxu1 %v14720_v36  ;;  %v15014_v36 = vcombine.high %v1195_v29, %v1199_v30 }
 0x23e   :  { %9872 = vmatpush1.bf16.msra.mxu0 %v14965_v35  ;;  %v14760_v35 = vcombine.high %v940_v26, %v944_v28  ;;  %v984_v26 = vld [vmem:[#allocation2 + $0x1b68] sm:$0xff]  ;;  %v1235_v28 = vld [vmem:[#allocation2 + $0x2340] sm:$0xff] }
 0x23f   :  { %9873 = vmatprep.subr.bf16.mxu0 %v14974_v39  ;;  %v948_v39 = vld [vmem:[#allocation2 + $0x1a48] sm:$0xff] }
 0x240   :  { %10284 = vmatpush1.bf16.msra.mxu1 %v14719_v47  ;;  %v15013_v47 = vcombine.low %v1195_v29, %v1199_v30  ;;  %v14767_v18 = vcombine.low %v948_v39, %v952_v40  ;;  %v1239_v29 = vld [vmem:[#allocation2 + $0x2360] sm:$0xff] }
 0x241   :  { %10285 = vmatprep.subr.bf16.mxu1 %v14728_v52  ;;  %v15022_v52 = vcombine.high %v1203_v41, %v1207_v44 }
 0x242   :  { %9874 = vmatpush1.bf16.msra.mxu0 %v14973_v48  ;;  %v14768_v48 = vcombine.high %v948_v39, %v952_v40  ;;  %v992_v39 = vld [vmem:[#allocation2 + $0x1ba8] sm:$0xff]  ;;  %v1243_v40 = vld [vmem:[#allocation2 + $0x2380] sm:$0xff] }
 0x243   :  { %9875 = vmatprep.subr.bf16.mxu0 %v14982_v54  ;;  %v956_v54 = vld [vmem:[#allocation2 + $0x1a88] sm:$0xff] }
 0x244   :  { %10286 = vmatpush1.bf16.msra.mxu1 %v14727_v60  ;;  %v15021_v60 = vcombine.low %v1203_v41, %v1207_v44  ;;  %v14775_v5 = vcombine.low %v956_v54, %v960_v62  ;;  %v1247_v41 = vld [vmem:[#allocation2 + $0x23a0] sm:$0xff] }
 0x245   :  { %10287 = vmatprep.subr.bf16.mxu1 %v14736_v0  ;;  %v15030_v0 = vcombine.high %v1211_v55, %v1215_v57 }
 0x246   :  { %9876 = vmatpush1.bf16.msra.mxu0 %v14981_v61  ;;  %v14776_v61 = vcombine.high %v956_v54, %v960_v62  ;;  %v1000_v54 = vld [vmem:[#allocation2 + $0x1be8] sm:$0xff]  ;;  %v1251_v62 = vld [vmem:[#allocation2 + $0x23c0] sm:$0xff] }
 0x247   :  { %9877 = vmatprep.subr.bf16.mxu0 %v14990_v1  ;;  %v964_v1 = vld [vmem:[#allocation2 + $0x1ac8] sm:$0xff] }
 0x248   :  { %10288 = vmatpush1.bf16.msra.mxu1 %v14735_v6  ;;  %v15029_v6 = vcombine.low %v1211_v55, %v1215_v57  ;;  %v14783_v20 = vcombine.low %v964_v1, %v968_v2  ;;  %v1255_v55 = vld [vmem:[#allocation2 + $0x23e0] sm:$0xff] }
 0x249   :  { %10289 = vmatprep.subr.bf16.mxu1 %v14744_v10  ;;  %v15038_v10 = vcombine.high %v1219_v3, %v1223_v4 }
 0x24a   :  { %9878 = vmatpush1.bf16.msra.mxu0 %v14989_v7  ;;  %v14784_v7 = vcombine.high %v964_v1, %v968_v2  ;;  %v1008_v1 = vld [vmem:[#allocation2 + $0x1c28] sm:$0xff]  ;;  %v1259_v2 = vld [vmem:[#allocation2 + $0x2400] sm:$0xff] }
 0x24b   :  { %9879 = vmatprep.subr.bf16.mxu0 %v14998_v14  ;;  %v972_v14 = vld [vmem:[#allocation2 + $0x1b08] sm:$0xff] }
 0x24c   :  { %10290 = vmatpush1.bf16.msra.mxu1 %v14743_v22  ;;  %v15037_v22 = vcombine.low %v1219_v3, %v1223_v4  ;;  %v14791_v30 = vcombine.low %v972_v14, %v976_v15  ;;  %v1263_v3 = vld [vmem:[#allocation2 + $0x2420] sm:$0xff] }
 0x24d   :  { %10291 = vmatprep.subr.bf16.mxu1 %v14752_v25  ;;  %v15046_v25 = vcombine.high %v1227_v51, %v1231_v17 }
 0x24e   :  { %9880 = vmatpush1.bf16.msra.mxu0 %v14997_v24  ;;  %v14792_v24 = vcombine.high %v972_v14, %v976_v15  ;;  %v1016_v14 = vld [vmem:[#allocation2 + $0x1c68] sm:$0xff]  ;;  %v1267_v15 = vld [vmem:[#allocation2 + $0x2440] sm:$0xff] }
 0x24f   :  { %9881 = vmatprep.subr.bf16.mxu0 %v15006_v12  ;;  %v980_v12 = vld [vmem:[#allocation2 + $0x1b48] sm:$0xff] }
 0x250   :  { %10292 = vmatpush1.bf16.msra.mxu1 %v14751_v63  ;;  %v15045_v63 = vcombine.low %v1227_v51, %v1231_v17  ;;  %v14799_v44 = vcombine.low %v980_v12, %v984_v26  ;;  %v1271_v51 = vld [vmem:[#allocation2 + $0x2460] sm:$0xff] }
 0x251   :  { %10293 = vmatprep.subr.bf16.mxu1 %v14760_v35  ;;  %v15054_v35 = vcombine.high %v1235_v28, %v1239_v29 }
 0x252   :  { %9882 = vmatpush1.bf16.msra.mxu0 %v15005_v32  ;;  %v14800_v32 = vcombine.high %v980_v12, %v984_v26  ;;  %v1020_v12 = vld [vmem:[#allocation2 + $0x1c88] sm:$0xff] }
 0x253   :  { %9883 = vmatprep.subr.bf16.mxu0 %v15014_v36  ;;  %v988_v36 = vld [vmem:[#allocation2 + $0x1b88] sm:$0xff] }
 0x254   :  { %10294 = vmatpush1.bf16.msra.mxu1 %v14759_v45  ;;  %v15053_v45 = vcombine.low %v1235_v28, %v1239_v29  ;;  %v14807_v57 = vcombine.low %v988_v36, %v992_v39  ;;  %v1024_v26 = vld [vmem:[#allocation2 + $0x1ca8] sm:$0xff]  ;;  %v16944_v28 = vcombine.high %v16932_v19, %v16932_v19  ;;  %v1275_v29 = vld [vmem:[#allocation2 + $0x2480] sm:$0xff] }
 0x255   :  { %10295 = vmatprep.subr.bf16.mxu1 %v14768_v48  ;;  %v15062_v48 = vcombine.high %v1243_v40, %v1247_v41 }
 0x256   :  { %9884 = vmatpush1.bf16.msra.mxu0 %v15013_v47  ;;  %v14808_v47 = vcombine.high %v988_v36, %v992_v39  ;;  %v1028_v36 = vld [vmem:[#allocation2 + $0x1cc8] sm:$0xff] }
 0x257   :  { %9885 = vmatprep.subr.bf16.mxu0 %v15022_v52  ;;  %v996_v52 = vld [vmem:[#allocation2 + $0x1bc8] sm:$0xff] }
 0x258   :  { %10296 = vmatpush1.bf16.msra.mxu1 %v14767_v18  ;;  %v15061_v18 = vcombine.low %v1243_v40, %v1247_v41  ;;  %v14815_v4 = vcombine.low %v996_v52, %v1000_v54  ;;  %v1032_v39 = vld [vmem:[#allocation2 + $0x1ce8] sm:$0xff]  ;;  %v1283_v40 = vld [vmem:[#allocation2 + $0x24c0] sm:$0xff] }
 0x259   :  { %10297 = vmatprep.subr.bf16.mxu1 %v14776_v61  ;;  %v15070_v61 = vcombine.high %v1251_v62, %v1255_v55  ;;  %v1287_v41 = vld [vmem:[#allocation2 + $0x24e0] sm:$0xff] }
 0x25a   :  { %9886 = vmatpush1.bf16.msra.mxu0 %v15021_v60  ;;  %v14816_v60 = vcombine.high %v996_v52, %v1000_v54  ;;  %v1036_v52 = vld [vmem:[#allocation2 + $0x1d08] sm:$0xff] }
 0x25b   :  { %9887 = vmatprep.subr.bf16.mxu0 %v15030_v0  ;;  %v1004_v0 = vld [vmem:[#allocation2 + $0x1c08] sm:$0xff] }
 0x25c   :  { %10298 = vmatpush1.bf16.msra.mxu1 %v14775_v5  ;;  %v15069_v5 = vcombine.low %v1251_v62, %v1255_v55  ;;  %v14823_v17 = vcombine.low %v1004_v0, %v1008_v1  ;;  %v1040_v54 = vld [vmem:[#allocation2 + $0x1d28] sm:$0xff]  ;;  %v1291_v62 = vld [vmem:[#allocation2 + $0x2500] sm:$0xff] }
 0x25d   :  { %10299 = vmatprep.subr.bf16.mxu1 %v14784_v7  ;;  %v15078_v7 = vcombine.high %v1259_v2, %v1263_v3  ;;  %v1295_v55 = vld [vmem:[#allocation2 + $0x2520] sm:$0xff] }
 0x25e   :  { %9888 = vmatpush1.bf16.msra.mxu0 %v15029_v6  ;;  %v14824_v6 = vcombine.high %v1004_v0, %v1008_v1  ;;  %v1044_v0 = vld [vmem:[#allocation2 + $0x1d48] sm:$0xff] }
 0x25f   :  { %9889 = vmatprep.subr.bf16.mxu0 %v15038_v10  ;;  %v1012_v10 = vld [vmem:[#allocation2 + $0x1c48] sm:$0xff] }
 0x260   :  { %10300 = vmatpush1.bf16.msra.mxu1 %v14783_v20  ;;  %v16940_v20 = vrot.slane %v16923_v56, %v16792_v53  ;;  %v14831_v56 = vcombine.low %v1012_v10, %v1016_v14  ;;  %v1048_v1 = vld [vmem:[#allocation2 + $0x1d68] sm:$0xff] }
 0x261   :  { %10301 = vmatprep.subr.bf16.mxu1 %v14792_v24  ;;  %v14832_v24 = vcombine.high %v1012_v10, %v1016_v14  ;;  %v1052_v10 = vld [vmem:[#allocation2 + $0x1d88] sm:$0xff] }
 0x262   :  { %9890 = vmatpush1.bf16.msra.mxu0 %v15037_v22  ;;  %v15077_v22 = vcombine.low %v1259_v2, %v1263_v3  ;;  %v1299_v2 = vld [vmem:[#allocation2 + $0x2540] sm:$0xff]  ;;  %v1056_v14 = vld [vmem:[#allocation2 + $0x1da8] sm:$0xff] }
 0x263   :  { %9891 = vmatprep.subr.bf16.mxu0 %v15046_v25  ;;  %v15086_v25 = vcombine.high %v1267_v15, %v1271_v51  ;;  %v1303_v3 = vld [vmem:[#allocation2 + $0x2560] sm:$0xff] }
 0x264   :  { %10302 = vmatpush1.bf16.msra.mxu1 %v14791_v30  ;;  %v1279_v30 = vld [vmem:[#allocation2 + $0x24a0] sm:$0xff] }
 0x265   :  { %10303 = vmatprep.subr.bf16.mxu1 %v14800_v32  ;;  %v14840_v32 = vcombine.high %v1020_v12, %v1024_v26 }
 0x266   :  { %9892 = vmatpush1.bf16.msra.mxu0 %v15045_v63  ;;  %v15085_v63 = vcombine.low %v1267_v15, %v1271_v51  ;;  %v1307_v15 = vld [vmem:[#allocation2 + $0x2580] sm:$0xff] }
 0x267   :  { %9893 = vmatprep.subr.bf16.mxu0 %v15054_v35  ;;  %v15094_v35 = vcombine.high %v1275_v29, %v1279_v30  ;;  %v1311_v51 = vld [vmem:[#allocation2 + $0x25a0] sm:$0xff] }
 0x268   :  { %10304 = vmatpush1.bf16.msra.mxu1 %v14799_v44  ;;  %v14839_v44 = vcombine.low %v1020_v12, %v1024_v26  ;;  %v1060_v12 = vld [vmem:[#allocation2 + $0x1dc8] sm:$0xff] }
 0x269   :  { %10305 = vmatprep.subr.bf16.mxu1 %v14808_v47  ;;  %v14848_v47 = vcombine.high %v1028_v36, %v1032_v39  ;;  %v1064_v26 = vld [vmem:[#allocation2 + $0x1de8] sm:$0xff] }
 0x26a   :  { %9894 = vmatpush1.bf16.msra.mxu0 %v15053_v45  ;;  %v15093_v45 = vcombine.low %v1275_v29, %v1279_v30  ;;  %v1315_v29 = vld [vmem:[#allocation2 + $0x25c0] sm:$0xff] }
 0x26b   :  { %9895 = vmatprep.subr.bf16.mxu0 %v15062_v48  ;;  %v15102_v48 = vcombine.high %v1283_v40, %v1287_v41  ;;  %v1319_v30 = vld [vmem:[#allocation2 + $0x25e0] sm:$0xff] }
 0x26c   :  { %10306 = vmatpush1.bf16.msra.mxu1 %v14807_v57  ;;  %v14847_v57 = vcombine.low %v1028_v36, %v1032_v39  ;;  %v1068_v36 = vld [vmem:[#allocation2 + $0x1e08] sm:$0xff] }
 0x26d   :  { %10307 = vmatprep.subr.bf16.mxu1 %v14816_v60  ;;  %v14856_v60 = vcombine.high %v1036_v52, %v1040_v54  ;;  %v1072_v39 = vld [vmem:[#allocation2 + $0x1e28] sm:$0xff] }
 0x26e   :  { %9896 = vmatpush1.bf16.msra.mxu0 %v15061_v18  ;;  %v15101_v18 = vcombine.low %v1283_v40, %v1287_v41  ;;  %v1323_v40 = vld [vmem:[#allocation2 + $0x2600] sm:$0xff] }
 0x26f   :  { %9897 = vmatprep.subr.bf16.mxu0 %v15070_v61  ;;  %v15110_v61 = vcombine.high %v1291_v62, %v1295_v55  ;;  %v1327_v41 = vld [vmem:[#allocation2 + $0x2620] sm:$0xff] }
 0x270   :  { %10308 = vmatpush1.bf16.msra.mxu1 %v14815_v4  ;;  %v14855_v4 = vcombine.low %v1036_v52, %v1040_v54  ;;  %v1076_v52 = vld [vmem:[#allocation2 + $0x1e48] sm:$0xff] }
 0x271   :  { %10318 = vmatprep.subr.bf16.mxu1 %v14824_v6  ;;  %v14864_v6 = vcombine.high %v1044_v0, %v1048_v1  ;;  %v1080_v54 = vld [vmem:[#allocation2 + $0x1e68] sm:$0xff] }
 0x272   :  { %9898 = vmatpush1.bf16.msra.mxu0 %v15069_v5  ;;  %v15109_v5 = vcombine.low %v1291_v62, %v1295_v55  ;;  %v1331_v62 = vld [vmem:[#allocation2 + $0x2640] sm:$0xff] }
 0x273   :  { %9908 = vmatprep.subr.bf16.mxu0 %v15078_v7  ;;  %10310 = vmatmul.mubr.bf16.vlgmr.msra.gmra.mrb[4].mxu1 %v16906_v16  ;;  %v15118_v7 = vcombine.high %v1299_v2, %v1303_v3  ;;  %v1335_v55 = vld [vmem:[#allocation2 + $0x2660] sm:$0xff] }
 0x274   :  { %10319 = vmatpush1.bf16.msra.mxu1 %v14823_v17  ;;  %10350 = vmatprep.mubr.bf16.mxu1 %v16910_v23  ;;  %v14863_v17 = vcombine.low %v1044_v0, %v1048_v1  ;;  %v1084_v0 = vld [vmem:[#allocation2 + $0x1e88] sm:$0xff] }
 0x275   :  { %9900 = vmatmul.mubr.bf16.vlgmr.msra.gmra.mrb[0].mxu0 %v16940_v20  ;;  %10320 = vmatprep.subr.bf16.mxu1 %v14832_v24  ;;  %v14872_v24 = vcombine.high %v1052_v10, %v1056_v14  ;;  %v1088_v1 = vld [vmem:[#allocation2 + $0x1ea8] sm:$0xff] }
 0x276   :  { %9909 = vmatpush1.bf16.msra.mxu0 %v15077_v22  ;;  %9940 = vmatprep.mubr.bf16.mxu0 %v16944_v28  ;;  %v15117_v22 = vcombine.low %v1299_v2, %v1303_v3  ;;  %v1339_v2 = vld [vmem:[#allocation2 + $0x2680] sm:$0xff] }
 0x277   :  { %9910 = vmatprep.subr.bf16.mxu0 %v15086_v25  ;;  %v15126_v25 = vcombine.high %v1307_v15, %v1311_v51  ;;  %v1343_v3 = vld [vmem:[#allocation2 + $0x26a0] sm:$0xff] }
 0x278   :  { %10321 = vmatpush1.bf16.msra.mxu1 %v14831_v56  ;;  %v14871_v56 = vcombine.low %v1052_v10, %v1056_v14  ;;  %v1092_v10 = vld [vmem:[#allocation2 + $0x1ec8] sm:$0xff] }
 0x279   :  { %10322 = vmatprep.subr.bf16.mxu1 %v14840_v32  ;;  %v14880_v32 = vcombine.high %v1060_v12, %v1064_v26  ;;  %v1096_v14 = vld [vmem:[#allocation2 + $0x1ee8] sm:$0xff] }
 0x27a   :  { %9911 = vmatpush1.bf16.msra.mxu0 %v15085_v63  ;;  %v15125_v63 = vcombine.low %v1307_v15, %v1311_v51  ;;  %v1347_v15 = vld [vmem:[#allocation2 + $0x26c0] sm:$0xff] }
 0x27b   :  { %9912 = vmatprep.subr.bf16.mxu0 %v15094_v35  ;;  %v15134_v35 = vcombine.high %v1315_v29, %v1319_v30  ;;  %v1351_v51 = vld [vmem:[#allocation2 + $0x26e0] sm:$0xff] }
 0x27c   :  { %10323 = vmatpush1.bf16.msra.mxu1 %v14839_v44  ;;  %v14879_v44 = vcombine.low %v1060_v12, %v1064_v26  ;;  %v1100_v12 = vld [vmem:[#allocation2 + $0x1f08] sm:$0xff] }
 0x27d   :  { %10324 = vmatprep.subr.bf16.mxu1 %v14848_v47  ;;  %v14888_v47 = vcombine.high %v1068_v36, %v1072_v39  ;;  %v1104_v26 = vld [vmem:[#allocation2 + $0x1f28] sm:$0xff] }
 0x27e   :  { %9913 = vmatpush1.bf16.msra.mxu0 %v15093_v45  ;;  %v15133_v45 = vcombine.low %v1315_v29, %v1319_v30  ;;  %v1355_v29 = vld [vmem:[#allocation2 + $0x2700] sm:$0xff] }
 0x27f   :  { %9914 = vmatprep.subr.bf16.mxu0 %v15102_v48  ;;  %v15142_v48 = vcombine.high %v1323_v40, %v1327_v41  ;;  %v1359_v30 = vld [vmem:[#allocation2 + $0x2720] sm:$0xff] }
 0x280   :  { %10325 = vmatpush1.bf16.msra.mxu1 %v14847_v57  ;;  %v14887_v57 = vcombine.low %v1068_v36, %v1072_v39  ;;  %v1108_v36 = vld [vmem:[#allocation2 + $0x1f48] sm:$0xff] }
 0x281   :  { %10326 = vmatprep.subr.bf16.mxu1 %v14856_v60  ;;  %v14896_v60 = vcombine.high %v1076_v52, %v1080_v54  ;;  %v1112_v39 = vld [vmem:[#allocation2 + $0x1f68] sm:$0xff] }
 0x282   :  { %9915 = vmatpush1.bf16.msra.mxu0 %v15101_v18  ;;  %v15141_v18 = vcombine.low %v1323_v40, %v1327_v41  ;;  %v1363_v40 = vld [vmem:[#allocation2 + $0x2740] sm:$0xff] }
 0x283   :  { %9916 = vmatprep.subr.bf16.mxu0 %v15110_v61  ;;  %v15150_v61 = vcombine.high %v1331_v62, %v1335_v55  ;;  %v1367_v41 = vld [vmem:[#allocation2 + $0x2760] sm:$0xff] }
 0x284   :  { %10327 = vmatpush1.bf16.msra.mxu1 %v14855_v4  ;;  %v14895_v4 = vcombine.low %v1076_v52, %v1080_v54  ;;  %v1116_v52 = vld [vmem:[#allocation2 + $0x1f88] sm:$0xff] }
 0x285   :  { %10328 = vmatprep.subr.bf16.mxu1 %v14864_v6  ;;  %v14904_v6 = vcombine.high %v1084_v0, %v1088_v1  ;;  %v1120_v54 = vld [vmem:[#allocation2 + $0x1fa8] sm:$0xff] }
 0x286   :  { %9917 = vmatpush1.bf16.msra.mxu0 %v15109_v5  ;;  %v15149_v5 = vcombine.low %v1331_v62, %v1335_v55  ;;  %v1371_v62 = vld [vmem:[#allocation2 + $0x2780] sm:$0xff] }
 0x287   :  { %9918 = vmatprep.subr.bf16.mxu0 %v15118_v7  ;;  %v15158_v7 = vcombine.high %v1339_v2, %v1343_v3  ;;  %v1375_v55 = vld [vmem:[#allocation2 + $0x27a0] sm:$0xff] }
 0x288   :  { %10329 = vmatpush1.bf16.msra.mxu1 %v14863_v17  ;;  %v14903_v17 = vcombine.low %v1084_v0, %v1088_v1  ;;  %v1124_v0 = vld [vmem:[#allocation2 + $0x1fc8] sm:$0xff] }
 0x289   :  { %10330 = vmatprep.subr.bf16.mxu1 %v14872_v24  ;;  %v14912_v24 = vcombine.high %v1092_v10, %v1096_v14  ;;  %v1128_v1 = vld [vmem:[#allocation2 + $0x1fe8] sm:$0xff] }
 0x28a   :  { %9919 = vmatpush1.bf16.msra.mxu0 %v15117_v22  ;;  %v15157_v22 = vcombine.low %v1339_v2, %v1343_v3  ;;  %v1786_v2 = vcombine.high %v16919_v46, %v16919_v46  ;;  %v1379_v3 = vld [vmem:[#allocation2 + $0x27c0] sm:$0xff] }
 0x28b   :  { %9920 = vmatprep.subr.bf16.mxu0 %v15126_v25  ;;  %v15166_v25 = vcombine.high %v1347_v15, %v1351_v51 }
 0x28c   :  { %10331 = vmatpush1.bf16.msra.mxu1 %v14871_v56  ;;  %v14911_v56 = vcombine.low %v1092_v10, %v1096_v14  ;;  %v1132_v14 = vld [vmem:[#allocation2 + $0x2008] sm:$0xff] }
 0x28d   :  { %10332 = vmatprep.subr.bf16.mxu1 %v14880_v32  ;;  %v14920_v32 = vcombine.high %v1100_v12, %v1104_v26 }
 0x28e   :  { %9921 = vmatpush1.bf16.msra.mxu0 %v15125_v63  ;;  %v15165_v63 = vcombine.low %v1347_v15, %v1351_v51  ;;  %v1136_v15 = vld [vmem:[#allocation2 + $0x2028] sm:$0xff]  ;;  %v16953_v51 = vrot.slane %v1786_v2, %v16792_v53 }
 0x28f   :  { %9922 = vmatprep.subr.bf16.mxu0 %v15134_v35  ;;  %v15174_v35 = vcombine.high %v1355_v29, %v1359_v30 }
 0x290   :  { %10333 = vmatpush1.bf16.msra.mxu1 %v14879_v44  ;;  %v14919_v44 = vcombine.low %v1100_v12, %v1104_v26  ;;  %v1140_v26 = vld [vmem:[#allocation2 + $0x2048] sm:$0xff] }
 0x291   :  { %10334 = vmatprep.subr.bf16.mxu1 %v14888_v47  ;;  %v14928_v47 = vcombine.high %v1108_v36, %v1112_v39 }
 0x292   :  { %9923 = vmatpush1.bf16.msra.mxu0 %v15133_v45  ;;  %v15173_v45 = vcombine.low %v1355_v29, %v1359_v30  ;;  %v1144_v29 = vld [vmem:[#allocation2 + $0x2068] sm:$0xff]  ;;  %v1802_v30 = vcombine.high %v16953_v51, %v16953_v51 }
 0x293   :  { %9924 = vmatprep.subr.bf16.mxu0 %v15142_v48  ;;  %v15182_v48 = vcombine.high %v1363_v40, %v1367_v41 }
 0x294   :  { %10335 = vmatpush1.bf16.msra.mxu1 %v14887_v57  ;;  %v14927_v57 = vcombine.low %v1108_v36, %v1112_v39  ;;  %v14960_v39 = vcombine.high %v1140_v26, %v1144_v29 }
 0x295   :  { %10336 = vmatprep.subr.bf16.mxu1 %v14896_v60  ;;  %v14936_v60 = vcombine.high %v1116_v52, %v1120_v54 }
 0x296   :  { %9925 = vmatpush1.bf16.msra.mxu0 %v15141_v18  ;;  %v15181_v18 = vcombine.low %v1363_v40, %v1367_v41  ;;  %v1148_v41 = vld [vmem:[#allocation2 + $0x2088] sm:$0xff] }
 0x297   :  { %9926 = vmatprep.subr.bf16.mxu0 %v15150_v61  ;;  %v15190_v61 = vcombine.high %v1371_v62, %v1375_v55 }
 0x298   :  { %10337 = vmatpush1.bf16.msra.mxu1 %v14895_v4  ;;  %v1383_v4 = vld [vmem:[#allocation2 + $0x27e0] sm:$0xff] }
 0x299   :  { %10338 = vmatprep.subr.bf16.mxu1 %v14904_v6  ;;  %v15189_v6 = vcombine.low %v1371_v62, %v1375_v55  ;;  %v15198_v10 = vcombine.high %v1379_v3, %v1383_v4  ;;  %v15197_v46 = vcombine.low %v1379_v3, %v1383_v4  ;;  %v1164_v4 = vld [vmem:[#allocation2 + $0x2108] sm:$0xff] }
 0x29a   :  { %9927 = vmatpush1.bf16.msra.mxu0 %v15149_v5  ;;  %v14935_v5 = vcombine.low %v1116_v52, %v1120_v54  ;;  %v14959_v52 = vcombine.low %v1140_v26, %v1144_v29 }
 0x29b   :  { %9928 = vmatprep.subr.bf16.mxu0 %v15158_v7  ;;  %v14944_v7 = vcombine.high %v1124_v0, %v1128_v1 }
 0x29c   :  { %10339 = vmatpush1.bf16.msra.mxu1 %v14903_v17  ;;  %v1387_v17 = vld [vmem:[#allocation2 + $0x2800] sm:$0xff] }
 0x29d   :  { %10340 = vmatprep.subr.bf16.mxu1 %v14912_v24  ;;  %v14943_v24 = vcombine.low %v1124_v0, %v1128_v1 }
 0x29e   :  { %9929 = vmatpush1.bf16.msra.mxu0 %v15157_v22  ;;  %v1391_v22 = vld [vmem:[#allocation2 + $0x2820] sm:$0xff] }
 0x29f   :  { %9930 = vmatprep.subr.bf16.mxu0 %v15166_v25  ;;  %v14952_v25 = vcombine.high %v1132_v14, %v1136_v15  ;;  %v15206_v12 = vcombine.high %v1387_v17, %v1391_v22  ;;  %v15205_v36 = vcombine.low %v1387_v17, %v1391_v22  ;;  %v1172_v22 = vld [vmem:[#allocation2 + $0x2148] sm:$0xff] }
 0x2a0   :  { %10341 = vmatpush1.bf16.msra.mxu1 %v14911_v56  ;;  %v1395_v56 = vld [vmem:[#allocation2 + $0x2840] sm:$0xff] }
 0x2a1   :  { %10342 = vmatprep.subr.bf16.mxu1 %v14920_v32  ;;  %v14951_v32 = vcombine.low %v1132_v14, %v1136_v15 }
 0x2a2   :  { %9931 = vmatpush1.bf16.msra.mxu0 %v15165_v63  ;;  %v1399_v63 = vld [vmem:[#allocation2 + $0x2860] sm:$0xff] }
 0x2a3   :  { %9932 = vmatprep.subr.bf16.mxu0 %v15174_v35  ;;  %v16959_v35 = vcombine.high %v16940_v20, %v16940_v20  ;;  %v15214_v40 = vcombine.high %v1395_v56, %v1399_v63  ;;  %v15213_v54 = vcombine.low %v1395_v56, %v1399_v63  ;;  %v1180_v56 = vld [vmem:[#allocation2 + $0x2188] sm:$0xff] }
 0x2a4   :  { %10343 = vmatpush1.bf16.msra.mxu1 %v14919_v44  ;;  %v1152_v44 = vld [vmem:[#allocation2 + $0x20a8] sm:$0xff] }
 0x2a5   :  { %10344 = vmatprep.subr.bf16.mxu1 %v14928_v47  ;;  %v1403_v47 = vld [vmem:[#allocation2 + $0x2880] sm:$0xff]  ;;  %v14968_v62 = vcombine.high %v1148_v41, %v1152_v44  ;;  %v14967_v0 = vcombine.low %v1148_v41, %v1152_v44  ;;  %v1184_v63 = vld [vmem:[#allocation2 + $0x21a8] sm:$0xff] }
 0x2a6   :  { %9933 = vmatpush1.bf16.msra.mxu0 %v15173_v45  ;;  %v16962_v45 = vrot.slane %v1802_v30, %v16792_v53  ;;  %v15000_v41 = vcombine.high %v1180_v56, %v1184_v63 }
 0x2a7   :  { %9934 = vmatprep.subr.bf16.mxu0 %v15182_v48  ;;  %v1407_v48 = vld [vmem:[#allocation2 + $0x28a0] sm:$0xff] }
 0x2a8   :  { %10345 = vmatpush1.bf16.msra.mxu1 %v14927_v57  ;;  %v15222_v55 = vcombine.high %v1403_v47, %v1407_v48  ;;  %v1156_v57 = vld [vmem:[#allocation2 + $0x20c8] sm:$0xff]  ;;  %v15221_v1 = vcombine.low %v1403_v47, %v1407_v48 }
 0x2a9   :  { %10346 = vmatprep.subr.bf16.mxu1 %v14936_v60  ;;  %v1411_v60 = vld [vmem:[#allocation2 + $0x28c0] sm:$0xff]  ;;  %v1188_v47 = vld [vmem:[#allocation2 + $0x21c8] sm:$0xff] }
 0x2aa   :  { %9935 = vmatpush1.bf16.msra.mxu0 %v15181_v18  ;;  %v1160_v18 = vld [vmem:[#allocation2 + $0x20e8] sm:$0xff] }
 0x2ab   :  { %9936 = vmatprep.subr.bf16.mxu0 %v15190_v61  ;;  %v1415_v61 = vld [vmem:[#allocation2 + $0x28e0] sm:$0xff]  ;;  %v14976_v2 = vcombine.high %v1156_v57, %v1160_v18  ;;  %v1192_v48 = vld [vmem:[#allocation2 + $0x21e8] sm:$0xff] }
 0x2ac   :  { %10347 = vmatpush1.bf16.msra.mxu1 %v14935_v5  ;;  %v15230_v3 = vcombine.high %v1411_v60, %v1415_v61  ;;  %v1168_v5 = vld [vmem:[#allocation2 + $0x2128] sm:$0xff]  ;;  %v15229_v14 = vcombine.low %v1411_v60, %v1415_v61 }
 0x2ad   :  { %10348 = vmatprep.subr.bf16.mxu1 %v14944_v7  ;;  %v1423_v7 = vld [vmem:[#allocation2 + $0x2920] sm:$0xff]  ;;  %v14984_v15 = vcombine.high %v1164_v4, %v1168_v5  ;;  %v1196_v60 = vld [vmem:[#allocation2 + $0x2208] sm:$0xff] }
 0x2ae   :  { %9937 = vmatpush1.bf16.msra.mxu0 %v15189_v6  ;;  %v1419_v6 = vld [vmem:[#allocation2 + $0x2900] sm:$0xff]  ;;  %v1200_v61 = vld [vmem:[#allocation2 + $0x2228] sm:$0xff] }
 0x2af   :  { %9938 = vmatprep.subr.bf16.mxu0 %v15198_v10  ;;  %v14975_v10 = vcombine.low %v1156_v57, %v1160_v18  ;;  %v15238_v17 = vcombine.high %v1419_v6, %v1423_v7  ;;  %v15237_v26 = vcombine.low %v1419_v6, %v1423_v7  ;;  %v15008_v57 = vcombine.high %v1188_v47, %v1192_v48  ;;  %v1204_v6 = vld [vmem:[#allocation2 + $0x2248] sm:$0xff] }
 0x2b0   :  { %10349 = vmatpush1.bf16.msra.mxu1 %v14943_v24  ;;  %v1176_v24 = vld [vmem:[#allocation2 + $0x2168] sm:$0xff] }
 0x2b1   :  { %10359 = vmatprep.subr.bf16.mxu1 %v14952_v25  ;;  %v1431_v25 = vld [vmem:[#allocation2 + $0x2960] sm:$0xff]  ;;  %v14992_v29 = vcombine.high %v1172_v22, %v1176_v24  ;;  %v1208_v7 = vld [vmem:[#allocation2 + $0x2268] sm:$0xff] }
 0x2b2   :  { %9939 = vmatpush1.bf16.msra.mxu0 %v15197_v46  ;;  %v1427_v46 = vld [vmem:[#allocation2 + $0x2940] sm:$0xff] }
 0x2b3   :  { %9949 = vmatprep.subr.bf16.mxu0 %v15206_v12  ;;  %10351 = vmatmul.mubr.bf16.vlgmr.msra.gmra.mrb[4].mxu1 %v16929_v8  ;;  %v14983_v12 = vcombine.low %v1164_v4, %v1168_v5  ;;  %v15246_v30 = vcombine.high %v1427_v46, %v1431_v25  ;;  %v15016_v4 = vcombine.high %v1196_v60, %v1200_v61 }
 0x2b4   :  { %10360 = vmatpush1.bf16.msra.mxu1 %v14951_v32  ;;  %10391 = vmatprep.mubr.bf16.mxu1 %v16932_v19  ;;  %v1435_v32 = vld [vmem:[#allocation2 + $0x2980] sm:$0xff] }
 0x2b5   :  { %9941 = vmatmul.mubr.bf16.vlgmr.msra.gmra.mrb[0].mxu0 %v16959_v35  ;;  %10361 = vmatprep.subr.bf16.mxu1 %v14960_v39  ;;  %v14991_v39 = vcombine.low %v1172_v22, %v1176_v24  ;;  %v15024_v22 = vcombine.high %v1204_v6, %v1208_v7 }
 0x2b6   :  { %9950 = vmatpush1.bf16.msra.mxu0 %v15205_v36  ;;  %9981 = vmatprep.mubr.bf16.mxu0 %v16962_v45  ;;  %v1439_v36 = vld [vmem:[#allocation2 + $0x29a0] sm:$0xff] }
 0x2b7   :  { %9951 = vmatprep.subr.bf16.mxu0 %v15214_v40  ;;  %v15245_v40 = vcombine.low %v1427_v46, %v1431_v25  ;;  %v15254_v44 = vcombine.high %v1435_v32, %v1439_v36  ;;  %v1212_v46 = vld [vmem:[#allocation2 + $0x2288] sm:$0xff] }
 0x2b8   :  { %10362 = vmatpush1.bf16.msra.mxu1 %v14959_v52  ;;  %v1443_v52 = vld [vmem:[#allocation2 + $0x29c0] sm:$0xff]  ;;  %v1216_v25 = vld [vmem:[#allocation2 + $0x22a8] sm:$0xff] }
 0x2b9   :  { %10363 = vmatprep.subr.bf16.mxu1 %v14968_v62  ;;  %v14999_v62 = vcombine.low %v1180_v56, %v1184_v63  ;;  %v15032_v56 = vcombine.high %v1212_v46, %v1216_v25 }
 0x2ba   :  { %9952 = vmatpush1.bf16.msra.mxu0 %v15213_v54  ;;  %v1447_v54 = vld [vmem:[#allocation2 + $0x29e0] sm:$0xff] }
 0x2bb   :  { %9953 = vmatprep.subr.bf16.mxu0 %v15222_v55  ;;  %v15253_v55 = vcombine.low %v1435_v32, %v1439_v36  ;;  %v15262_v18 = vcombine.high %v1443_v52, %v1447_v54  ;;  %v1220_v32 = vld [vmem:[#allocation2 + $0x22c8] sm:$0xff] }
 0x2bc   :  { %10364 = vmatpush1.bf16.msra.mxu1 %v14967_v0  ;;  %v1451_v0 = vld [vmem:[#allocation2 + $0x2a00] sm:$0xff]  ;;  %v1224_v36 = vld [vmem:[#allocation2 + $0x22e8] sm:$0xff] }
 0x2bd   :  { %10365 = vmatprep.subr.bf16.mxu1 %v14976_v2  ;;  %v15007_v2 = vcombine.low %v1188_v47, %v1192_v48  ;;  %v15040_v47 = vcombine.high %v1220_v32, %v1224_v36 }
 0x2be   :  { %9954 = vmatpush1.bf16.msra.mxu0 %v15221_v1  ;;  %v1455_v1 = vld [vmem:[#allocation2 + $0x2a20] sm:$0xff] }
 0x2bf   :  { %9955 = vmatprep.subr.bf16.mxu0 %v15230_v3  ;;  %v15261_v3 = vcombine.low %v1443_v52, %v1447_v54  ;;  %v15270_v5 = vcombine.high %v1451_v0, %v1455_v1  ;;  %v1228_v52 = vld [vmem:[#allocation2 + $0x2308] sm:$0xff] }
 0x2c0   :  { %10366 = vmatpush1.bf16.msra.mxu1 %v14975_v10  ;;  %v1459_v10 = vld [vmem:[#allocation2 + $0x2a40] sm:$0xff]  ;;  %v1232_v54 = vld [vmem:[#allocation2 + $0x2328] sm:$0xff] }
 0x2c1   :  { %10367 = vmatprep.subr.bf16.mxu1 %v14984_v15  ;;  %v15015_v15 = vcombine.low %v1196_v60, %v1200_v61  ;;  %v15048_v60 = vcombine.high %v1228_v52, %v1232_v54 }
 0x2c2   :  { %9956 = vmatpush1.bf16.msra.mxu0 %v15229_v14  ;;  %v1463_v14 = vld [vmem:[#allocation2 + $0x2a60] sm:$0xff] }
 0x2c3   :  { %9957 = vmatprep.subr.bf16.mxu0 %v15238_v17  ;;  %v15269_v17 = vcombine.low %v1451_v0, %v1455_v1  ;;  %v15278_v24 = vcombine.high %v1459_v10, %v1463_v14  ;;  %v1236_v0 = vld [vmem:[#allocation2 + $0x2348] sm:$0xff] }
 0x2c4   :  { %10368 = vmatpush1.bf16.msra.mxu1 %v14983_v12  ;;  %v1467_v12 = vld [vmem:[#allocation2 + $0x2a80] sm:$0xff]  ;;  %v1240_v1 = vld [vmem:[#allocation2 + $0x2368] sm:$0xff] }
 0x2c5   :  { %10369 = vmatprep.subr.bf16.mxu1 %v14992_v29  ;;  %v15023_v29 = vcombine.low %v1204_v6, %v1208_v7  ;;  %v15056_v6 = vcombine.high %v1236_v0, %v1240_v1 }
 0x2c6   :  { %9958 = vmatpush1.bf16.msra.mxu0 %v15237_v26  ;;  %v1471_v26 = vld [vmem:[#allocation2 + $0x2aa0] sm:$0xff] }
 0x2c7   :  { %9959 = vmatprep.subr.bf16.mxu0 %v15246_v30  ;;  %v15277_v30 = vcombine.low %v1459_v10, %v1463_v14  ;;  %v15286_v63 = vcombine.high %v1467_v12, %v1471_v26  ;;  %v1244_v10 = vld [vmem:[#allocation2 + $0x2388] sm:$0xff] }
 0x2c8   :  { %10370 = vmatpush1.bf16.msra.mxu1 %v14991_v39  ;;  %v1475_v39 = vld [vmem:[#allocation2 + $0x2ac0] sm:$0xff]  ;;  %v1248_v14 = vld [vmem:[#allocation2 + $0x23a8] sm:$0xff] }
 0x2c9   :  { %10371 = vmatprep.subr.bf16.mxu1 %v15000_v41  ;;  %v15031_v41 = vcombine.low %v1212_v46, %v1216_v25  ;;  %v15064_v46 = vcombine.high %v1244_v10, %v1248_v14 }
 0x2ca   :  { %9960 = vmatpush1.bf16.msra.mxu0 %v15245_v40  ;;  %v1479_v40 = vld [vmem:[#allocation2 + $0x2ae0] sm:$0xff] }
 0x2cb   :  { %9961 = vmatprep.subr.bf16.mxu0 %v15254_v44  ;;  %v15285_v44 = vcombine.low %v1467_v12, %v1471_v26  ;;  %v15294_v48 = vcombine.high %v1475_v39, %v1479_v40  ;;  %v1252_v12 = vld [vmem:[#allocation2 + $0x23c8] sm:$0xff] }
 0x2cc   :  { %10372 = vmatpush1.bf16.msra.mxu1 %v14999_v62  ;;  %v1483_v62 = vld [vmem:[#allocation2 + $0x2b00] sm:$0xff]  ;;  %v1256_v26 = vld [vmem:[#allocation2 + $0x23e8] sm:$0xff] }
 0x2cd   :  { %10373 = vmatprep.subr.bf16.mxu1 %v15008_v57  ;;  %v15039_v57 = vcombine.low %v1220_v32, %v1224_v36  ;;  %v15072_v32 = vcombine.high %v1252_v12, %v1256_v26 }
 0x2ce   :  { %9962 = vmatpush1.bf16.msra.mxu0 %v15253_v55  ;;  %v1487_v55 = vld [vmem:[#allocation2 + $0x2b20] sm:$0xff] }
 0x2cf   :  { %9963 = vmatprep.subr.bf16.mxu0 %v15262_v18  ;;  %v15293_v18 = vcombine.low %v1475_v39, %v1479_v40  ;;  %v15302_v61 = vcombine.high %v1483_v62, %v1487_v55  ;;  %v1260_v39 = vld [vmem:[#allocation2 + $0x2408] sm:$0xff] }
 0x2d0   :  { %10374 = vmatpush1.bf16.msra.mxu1 %v15007_v2  ;;  %v1491_v2 = vld [vmem:[#allocation2 + $0x2b40] sm:$0xff]  ;;  %v1264_v40 = vld [vmem:[#allocation2 + $0x2428] sm:$0xff] }
 0x2d1   :  { %10375 = vmatprep.subr.bf16.mxu1 %v15016_v4  ;;  %v15047_v4 = vcombine.low %v1228_v52, %v1232_v54  ;;  %v15080_v52 = vcombine.high %v1260_v39, %v1264_v40 }
 0x2d2   :  { %9964 = vmatpush1.bf16.msra.mxu0 %v15261_v3  ;;  %v1495_v3 = vld [vmem:[#allocation2 + $0x2b60] sm:$0xff] }
 0x2d3   :  { %9965 = vmatprep.subr.bf16.mxu0 %v15270_v5  ;;  %v15301_v5 = vcombine.low %v1483_v62, %v1487_v55  ;;  %v15310_v7 = vcombine.high %v1491_v2, %v1495_v3  ;;  %v1268_v62 = vld [vmem:[#allocation2 + $0x2448] sm:$0xff] }
 0x2d4   :  { %10376 = vmatpush1.bf16.msra.mxu1 %v15015_v15  ;;  %v1499_v15 = vld [vmem:[#allocation2 + $0x2b80] sm:$0xff]  ;;  %v1272_v55 = vld [vmem:[#allocation2 + $0x2468] sm:$0xff] }
 0x2d5   :  { %10377 = vmatprep.subr.bf16.mxu1 %v15024_v22  ;;  %v15055_v22 = vcombine.low %v1236_v0, %v1240_v1  ;;  %v15088_v1 = vcombine.high %v1268_v62, %v1272_v55 }
 0x2d6   :  { %9966 = vmatpush1.bf16.msra.mxu0 %v15269_v17  ;;  %v1503_v17 = vld [vmem:[#allocation2 + $0x2ba0] sm:$0xff] }
 0x2d7   :  { %9967 = vmatprep.subr.bf16.mxu0 %v15278_v24  ;;  %v15309_v24 = vcombine.low %v1491_v2, %v1495_v3  ;;  %v15318_v25 = vcombine.high %v1499_v15, %v1503_v17  ;;  %v1276_v3 = vld [vmem:[#allocation2 + $0x2488] sm:$0xff] }
 0x2d8   :  { %10378 = vmatpush1.bf16.msra.mxu1 %v15023_v29  ;;  %v1507_v29 = vld [vmem:[#allocation2 + $0x2bc0] sm:$0xff] }
 0x2d9   :  { %10379 = vmatprep.subr.bf16.mxu1 %v15032_v56  ;;  %v15063_v56 = vcombine.low %v1244_v10, %v1248_v14 }
 0x2da   :  { %9968 = vmatpush1.bf16.msra.mxu0 %v15277_v30  ;;  %v1511_v30 = vld [vmem:[#allocation2 + $0x2be0] sm:$0xff] }
 0x2db   :  { %9969 = vmatprep.subr.bf16.mxu0 %v15286_v63  ;;  %v15317_v63 = vcombine.low %v1499_v15, %v1503_v17  ;;  %v15326_v36 = vcombine.high %v1507_v29, %v1511_v30  ;;  %v1284_v15 = vld [vmem:[#allocation2 + $0x24c8] sm:$0xff] }
 0x2dc   :  { %10380 = vmatpush1.bf16.msra.mxu1 %v15031_v41  ;;  %v1515_v41 = vld [vmem:[#allocation2 + $0x2c00] sm:$0xff]  ;;  %v1288_v17 = vld [vmem:[#allocation2 + $0x24e8] sm:$0xff] }
 0x2dd   :  { %10381 = vmatprep.subr.bf16.mxu1 %v15040_v47  ;;  %v15071_v47 = vcombine.low %v1252_v12, %v1256_v26  ;;  %v15104_v12 = vcombine.high %v1284_v15, %v1288_v17 }
 0x2de   :  { %9970 = vmatpush1.bf16.msra.mxu0 %v15285_v44  ;;  %v1519_v44 = vld [vmem:[#allocation2 + $0x2c20] sm:$0xff] }
 0x2df   :  { %9971 = vmatprep.subr.bf16.mxu0 %v15294_v48  ;;  %v15325_v48 = vcombine.low %v1507_v29, %v1511_v30  ;;  %v15334_v54 = vcombine.high %v1515_v41, %v1519_v44  ;;  %v15333_v0 = vcombine.low %v1515_v41, %v1519_v44  ;;  %v1292_v29 = vld [vmem:[#allocation2 + $0x2508] sm:$0xff] }
 0x2e0   :  { %10382 = vmatpush1.bf16.msra.mxu1 %v15039_v57  ;;  %v1523_v57 = vld [vmem:[#allocation2 + $0x2c40] sm:$0xff]  ;;  %v1296_v30 = vld [vmem:[#allocation2 + $0x2528] sm:$0xff] }
 0x2e1   :  { %10383 = vmatprep.subr.bf16.mxu1 %v15048_v60  ;;  %v15079_v60 = vcombine.low %v1260_v39, %v1264_v40  ;;  %v15112_v39 = vcombine.high %v1292_v29, %v1296_v30  ;;  %v1300_v41 = vld [vmem:[#allocation2 + $0x2548] sm:$0xff] }
 0x2e2   :  { %9972 = vmatpush1.bf16.msra.mxu0 %v15293_v18  ;;  %v1527_v18 = vld [vmem:[#allocation2 + $0x2c60] sm:$0xff]  ;;  %v1304_v44 = vld [vmem:[#allocation2 + $0x2568] sm:$0xff] }
 0x2e3   :  { %9973 = vmatprep.subr.bf16.mxu0 %v15302_v61  ;;  %v16970_v61 = vrot.slane %v16953_v51, %v16792_v53  ;;  %v15342_v2 = vcombine.high %v1523_v57, %v1527_v18  ;;  %v15087_v53 = vcombine.low %v1268_v62, %v1272_v55  ;;  %v15341_v51 = vcombine.low %v1523_v57, %v1527_v18  ;;  %v1308_v57 = vld [vmem:[#allocation2 + $0x2588] sm:$0xff] }
 0x2e4   :  { %10384 = vmatpush1.bf16.msra.mxu1 %v15047_v4  ;;  %v1280_v4 = vld [vmem:[#allocation2 + $0x24a8] sm:$0xff]  ;;  %v15120_v62 = vcombine.high %v1300_v41, %v1304_v44 }
 0x2e5   :  { %10385 = vmatprep.subr.bf16.mxu1 %v15056_v6  ;;  %v1531_v6 = vld [vmem:[#allocation2 + $0x2c80] sm:$0xff]  ;;  %v15096_v10 = vcombine.high %v1276_v3, %v1280_v4  ;;  %v1312_v18 = vld [vmem:[#allocation2 + $0x25a8] sm:$0xff] }
 0x2e6   :  { %9974 = vmatpush1.bf16.msra.mxu0 %v15301_v5  ;;  %v16974_v5 = vcombine.high %v16962_v45, %v16962_v45 }
 0x2e7   :  { %9975 = vmatprep.subr.bf16.mxu0 %v15310_v7  ;;  %v1535_v7 = vld [vmem:[#allocation2 + $0x2ca0] sm:$0xff] }
 0x2e8   :  { %10386 = vmatpush1.bf16.msra.mxu1 %v15055_v22  ;;  %v15350_v14 = vcombine.high %v1531_v6, %v1535_v7  ;;  %v1539_v22 = vld [vmem:[#allocation2 + $0x2cc0] sm:$0xff] }
 0x2e9   :  { %10387 = vmatprep.subr.bf16.mxu1 %v15064_v46  ;;  %v15095_v46 = vcombine.low %v1276_v3, %v1280_v4  ;;  %v15128_v3 = vcombine.high %v1308_v57, %v1312_v18 }
 0x2ea   :  { %9976 = vmatpush1.bf16.msra.mxu0 %v15309_v24  ;;  %v1543_v24 = vld [vmem:[#allocation2 + $0x2ce0] sm:$0xff] }
 0x2eb   :  { %9977 = vmatprep.subr.bf16.mxu0 %v15318_v25  ;;  %v15349_v25 = vcombine.low %v1531_v6, %v1535_v7  ;;  %v15358_v26 = vcombine.high %v1539_v22, %v1543_v24  ;;  %v1316_v6 = vld [vmem:[#allocation2 + $0x25c8] sm:$0xff] }
 0x2ec   :  { %10388 = vmatpush1.bf16.msra.mxu1 %v15063_v56  ;;  %v1547_v56 = vld [vmem:[#allocation2 + $0x2d00] sm:$0xff]  ;;  %v1320_v7 = vld [vmem:[#allocation2 + $0x25e8] sm:$0xff] }
 0x2ed   :  { %10389 = vmatprep.subr.bf16.mxu1 %v15072_v32  ;;  %v15103_v32 = vcombine.low %v1284_v15, %v1288_v17  ;;  %v15136_v15 = vcombine.high %v1316_v6, %v1320_v7 }
 0x2ee   :  { %9978 = vmatpush1.bf16.msra.mxu0 %v15317_v63  ;;  %v1551_v63 = vld [vmem:[#allocation2 + $0x2d20] sm:$0xff] }
 0x2ef   :  { %9979 = vmatprep.subr.bf16.mxu0 %v15326_v36  ;;  %v15357_v36 = vcombine.low %v1539_v22, %v1543_v24  ;;  %v15366_v40 = vcombine.high %v1547_v56, %v1551_v63  ;;  %v1324_v22 = vld [vmem:[#allocation2 + $0x2608] sm:$0xff] }
 0x2f0   :  { %10390 = vmatpush1.bf16.msra.mxu1 %v15071_v47  ;;  %v1555_v47 = vld [vmem:[#allocation2 + $0x2d40] sm:$0xff]  ;;  %v1328_v24 = vld [vmem:[#allocation2 + $0x2628] sm:$0xff] }
 0x2f1   :  { %10400 = vmatprep.subr.bf16.mxu1 %v15080_v52  ;;  %v15111_v52 = vcombine.low %v1292_v29, %v1296_v30  ;;  %v15144_v29 = vcombine.high %v1324_v22, %v1328_v24 }
 0x2f2   :  { %9980 = vmatpush1.bf16.msra.mxu0 %v15325_v48  ;;  %v1559_v48 = vld [vmem:[#allocation2 + $0x2d60] sm:$0xff] }
 0x2f3   :  { %9990 = vmatprep.subr.bf16.mxu0 %v15334_v54  ;;  %10392 = vmatmul.mubr.bf16.vlgmr.msra.gmra.mrb[4].mxu1 %v16940_v20  ;;  %v15365_v54 = vcombine.low %v1547_v56, %v1551_v63  ;;  %v15374_v55 = vcombine.high %v1555_v47, %v1559_v48  ;;  %v1332_v56 = vld [vmem:[#allocation2 + $0x2648] sm:$0xff] }
 0x2f4   :  { %10401 = vmatpush1.bf16.msra.mxu1 %v15079_v60  ;;  %10432 = vmatprep.mubr.bf16.mxu1 %v16944_v28  ;;  %v1563_v60 = vld [vmem:[#allocation2 + $0x2d80] sm:$0xff]  ;;  %v1336_v63 = vld [vmem:[#allocation2 + $0x2668] sm:$0xff] }
 0x2f5   :  { %9982 = vmatmul.mubr.bf16.vlgmr.msra.gmra.mrb[0].mxu0 %v16970_v61  ;;  %10402 = vmatprep.subr.bf16.mxu1 %v15088_v1  ;;  %v15119_v1 = vcombine.low %v1300_v41, %v1304_v44  ;;  %v15152_v41 = vcombine.high %v1332_v56, %v1336_v63 }
 0x2f6   :  { %9991 = vmatpush1.bf16.msra.mxu0 %v15333_v0  ;;  %10022 = vmatprep.mubr.bf16.mxu0 %v16974_v5  ;;  %v1567_v0 = vld [vmem:[#allocation2 + $0x2da0] sm:$0xff] }
 0x2f7   :  { %9992 = vmatprep.subr.bf16.mxu0 %v15342_v2  ;;  %v15373_v2 = vcombine.low %v1555_v47, %v1559_v48  ;;  %v15382_v4 = vcombine.high %v1563_v60, %v1567_v0  ;;  %v1340_v47 = vld [vmem:[#allocation2 + $0x2688] sm:$0xff] }
 0x2f8   :  { %10403 = vmatpush1.bf16.msra.mxu1 %v15087_v53  ;;  %v1571_v53 = vld [vmem:[#allocation2 + $0x2dc0] sm:$0xff]  ;;  %v1344_v48 = vld [vmem:[#allocation2 + $0x26a8] sm:$0xff] }
 0x2f9   :  { %10404 = vmatprep.subr.bf16.mxu1 %v15096_v10  ;;  %v15127_v10 = vcombine.low %v1308_v57, %v1312_v18  ;;  %v15160_v57 = vcombine.high %v1340_v47, %v1344_v48 }
 0x2fa   :  { %9993 = vmatpush1.bf16.msra.mxu0 %v15341_v51  ;;  %v1575_v51 = vld [vmem:[#allocation2 + $0x2de0] sm:$0xff] }
 0x2fb   :  { %9994 = vmatprep.subr.bf16.mxu0 %v15350_v14  ;;  %v15381_v14 = vcombine.low %v1563_v60, %v1567_v0  ;;  %v15390_v17 = vcombine.high %v1571_v53, %v1575_v51  ;;  %v1348_v60 = vld [vmem:[#allocation2 + $0x26c8] sm:$0xff] }
 0x2fc   :  { %10405 = vmatpush1.bf16.msra.mxu1 %v15095_v46  ;;  %v1579_v46 = vld [vmem:[#allocation2 + $0x2e00] sm:$0xff]  ;;  %v1352_v0 = vld [vmem:[#allocation2 + $0x26e8] sm:$0xff] }
 0x2fd   :  { %10406 = vmatprep.subr.bf16.mxu1 %v15104_v12  ;;  %v15135_v12 = vcombine.low %v1316_v6, %v1320_v7  ;;  %v15168_v6 = vcombine.high %v1348_v60, %v1352_v0 }
 0x2fe   :  { %9995 = vmatpush1.bf16.msra.mxu0 %v15349_v25  ;;  %v1583_v25 = vld [vmem:[#allocation2 + $0x2e20] sm:$0xff] }
 0x2ff   :  { %9996 = vmatprep.subr.bf16.mxu0 %v15358_v26  ;;  %v15389_v26 = vcombine.low %v1571_v53, %v1575_v51  ;;  %v15398_v30 = vcombine.high %v1579_v46, %v1583_v25  ;;  %v1356_v53 = vld [vmem:[#allocation2 + $0x2708] sm:$0xff] }
 0x300   :  { %10407 = vmatpush1.bf16.msra.mxu1 %v15103_v32  ;;  %v1587_v32 = vld [vmem:[#allocation2 + $0x2e40] sm:$0xff]  ;;  %v1360_v51 = vld [vmem:[#allocation2 + $0x2728] sm:$0xff] }
 0x301   :  { %10408 = vmatprep.subr.bf16.mxu1 %v15112_v39  ;;  %v15143_v39 = vcombine.low %v1324_v22, %v1328_v24  ;;  %v15176_v22 = vcombine.high %v1356_v53, %v1360_v51 }
 0x302   :  { %9997 = vmatpush1.bf16.msra.mxu0 %v15357_v36  ;;  %v1591_v36 = vld [vmem:[#allocation2 + $0x2e60] sm:$0xff] }
 0x303   :  { %9998 = vmatprep.subr.bf16.mxu0 %v15366_v40  ;;  %v15397_v40 = vcombine.low %v1579_v46, %v1583_v25  ;;  %v15406_v44 = vcombine.high %v1587_v32, %v1591_v36  ;;  %v1364_v46 = vld [vmem:[#allocation2 + $0x2748] sm:$0xff] }
 0x304   :  { %10409 = vmatpush1.bf16.msra.mxu1 %v15111_v52  ;;  %v1595_v52 = vld [vmem:[#allocation2 + $0x2e80] sm:$0xff]  ;;  %v1368_v25 = vld [vmem:[#allocation2 + $0x2768] sm:$0xff] }
 0x305   :  { %10410 = vmatprep.subr.bf16.mxu1 %v15120_v62  ;;  %v15151_v62 = vcombine.low %v1332_v56, %v1336_v63  ;;  %v15184_v56 = vcombine.high %v1364_v46, %v1368_v25 }
 0x306   :  { %9999 = vmatpush1.bf16.msra.mxu0 %v15365_v54  ;;  %v1599_v54 = vld [vmem:[#allocation2 + $0x2ea0] sm:$0xff] }
 0x307   :  { %10000 = vmatprep.subr.bf16.mxu0 %v15374_v55  ;;  %v15405_v55 = vcombine.low %v1587_v32, %v1591_v36  ;;  %v15414_v18 = vcombine.high %v1595_v52, %v1599_v54  ;;  %v1372_v32 = vld [vmem:[#allocation2 + $0x2788] sm:$0xff] }
 0x308   :  { %10411 = vmatpush1.bf16.msra.mxu1 %v15119_v1  ;;  %v1603_v1 = vld [vmem:[#allocation2 + $0x2ec0] sm:$0xff]  ;;  %v1376_v36 = vld [vmem:[#allocation2 + $0x27a8] sm:$0xff] }
 0x309   :  { %10412 = vmatprep.subr.bf16.mxu1 %v15128_v3  ;;  %v15159_v3 = vcombine.low %v1340_v47, %v1344_v48  ;;  %v15192_v47 = vcombine.high %v1372_v32, %v1376_v36 }
 0x30a   :  { %10001 = vmatpush1.bf16.msra.mxu0 %v15373_v2  ;;  %v1607_v2 = vld [vmem:[#allocation2 + $0x2ee0] sm:$0xff] }
 0x30b   :  { %10002 = vmatprep.subr.bf16.mxu0 %v15382_v4  ;;  %v15413_v4 = vcombine.low %v1595_v52, %v1599_v54  ;;  %v15422_v7 = vcombine.high %v1603_v1, %v1607_v2  ;;  %v1380_v52 = vld [vmem:[#allocation2 + $0x27c8] sm:$0xff] }
 0x30c   :  { %10413 = vmatpush1.bf16.msra.mxu1 %v15127_v10  ;;  %v1611_v10 = vld [vmem:[#allocation2 + $0x2f00] sm:$0xff]  ;;  %v1384_v54 = vld [vmem:[#allocation2 + $0x27e8] sm:$0xff] }
 0x30d   :  { %10414 = vmatprep.subr.bf16.mxu1 %v15136_v15  ;;  %v15167_v15 = vcombine.low %v1348_v60, %v1352_v0  ;;  %v15200_v60 = vcombine.high %v1380_v52, %v1384_v54 }
 0x30e   :  { %10003 = vmatpush1.bf16.msra.mxu0 %v15381_v14  ;;  %v1615_v14 = vld [vmem:[#allocation2 + $0x2f20] sm:$0xff] }
 0x30f   :  { %10004 = vmatprep.subr.bf16.mxu0 %v15390_v17  ;;  %v15421_v17 = vcombine.low %v1603_v1, %v1607_v2  ;;  %v15430_v24 = vcombine.high %v1611_v10, %v1615_v14  ;;  %v1388_v1 = vld [vmem:[#allocation2 + $0x2808] sm:$0xff] }
 0x310   :  { %10415 = vmatpush1.bf16.msra.mxu1 %v15135_v12  ;;  %v1619_v12 = vld [vmem:[#allocation2 + $0x2f40] sm:$0xff]  ;;  %v1392_v2 = vld [vmem:[#allocation2 + $0x2828] sm:$0xff] }
 0x311   :  { %10416 = vmatprep.subr.bf16.mxu1 %v15144_v29  ;;  %v15175_v29 = vcombine.low %v1356_v53, %v1360_v51  ;;  %v15208_v53 = vcombine.high %v1388_v1, %v1392_v2 }
 0x312   :  { %10005 = vmatpush1.bf16.msra.mxu0 %v15389_v26  ;;  %v1623_v26 = vld [vmem:[#allocation2 + $0x2f60] sm:$0xff] }
 0x313   :  { %10006 = vmatprep.subr.bf16.mxu0 %v15398_v30  ;;  %v15429_v30 = vcombine.low %v1611_v10, %v1615_v14  ;;  %v15438_v63 = vcombine.high %v1619_v12, %v1623_v26  ;;  %v1396_v10 = vld [vmem:[#allocation2 + $0x2848] sm:$0xff] }
 0x314   :  { %10417 = vmatpush1.bf16.msra.mxu1 %v15143_v39  ;;  %v1627_v39 = vld [vmem:[#allocation2 + $0x2f80] sm:$0xff]  ;;  %v1400_v14 = vld [vmem:[#allocation2 + $0x2868] sm:$0xff] }
 0x315   :  { %10418 = vmatprep.subr.bf16.mxu1 %v15152_v41  ;;  %v15183_v41 = vcombine.low %v1364_v46, %v1368_v25  ;;  %v15216_v25 = vcombine.high %v1396_v10, %v1400_v14 }
 0x316   :  { %10007 = vmatpush1.bf16.msra.mxu0 %v15397_v40  ;;  %v1631_v40 = vld [vmem:[#allocation2 + $0x2fa0] sm:$0xff] }
 0x317   :  { %10008 = vmatprep.subr.bf16.mxu0 %v15406_v44  ;;  %v15437_v44 = vcombine.low %v1619_v12, %v1623_v26  ;;  %v15446_v48 = vcombine.high %v1627_v39, %v1631_v40  ;;  %v1404_v26 = vld [vmem:[#allocation2 + $0x2888] sm:$0xff] }
 0x318   :  { %10419 = vmatpush1.bf16.msra.mxu1 %v15151_v62  ;;  %v1635_v62 = vld [vmem:[#allocation2 + $0x2fc0] sm:$0xff] }
 0x319   :  { %10420 = vmatprep.subr.bf16.mxu1 %v15160_v57  ;;  %v15191_v57 = vcombine.low %v1372_v32, %v1376_v36 }
 0x31a   :  { %10009 = vmatpush1.bf16.msra.mxu0 %v15405_v55  ;;  %v1639_v55 = vld [vmem:[#allocation2 + $0x2fe0] sm:$0xff] }
 0x31b   :  { %10010 = vmatprep.subr.bf16.mxu0 %v15414_v18  ;;  %v15445_v18 = vcombine.low %v1627_v39, %v1631_v40  ;;  %v15454_v0 = vcombine.high %v1635_v62, %v1639_v55  ;;  %v1412_v40 = vld [vmem:[#allocation2 + $0x28c8] sm:$0xff] }
 0x31c   :  { %10421 = vmatpush1.bf16.msra.mxu1 %v15159_v3  ;;  %v109_v3 = vld [vmem:[#allocation2 + $0x10] sm:$0xff] }
 0x31d   :  { %10422 = vmatprep.subr.bf16.mxu1 %v15168_v6  ;;  %v15199_v6 = vcombine.low %v1380_v52, %v1384_v54 }
 0x31e   :  { %10011 = vmatpush1.bf16.msra.mxu0 %v15413_v4  ;;  %v113_v4 = vld [vmem:[#allocation2 + $0x30] sm:$0xff] }
 0x31f   :  { %10012 = vmatprep.subr.bf16.mxu0 %v15422_v7  ;;  %v15453_v7 = vcombine.low %v1635_v62, %v1639_v55  ;;  %v13930_v51 = vcombine.high %v109_v3, %v113_v4  ;;  %v13929_v46 = vcombine.low %v109_v3, %v113_v4  ;;  %v1420_v55 = vld [vmem:[#allocation2 + $0x2908] sm:$0xff] }
 0x320   :  { %10423 = vmatpush1.bf16.msra.mxu1 %v15167_v15  ;;  %v117_v15 = vld [vmem:[#allocation2 + $0x50] sm:$0xff]  ;;  %v1428_v4 = vld [vmem:[#allocation2 + $0x2948] sm:$0xff] }
 0x321   :  { %10424 = vmatprep.subr.bf16.mxu1 %v15176_v22  ;;  %v16982_v22 = vcombine.high %v16970_v61, %v16970_v61 }
 0x322   :  { %10013 = vmatpush1.bf16.msra.mxu0 %v15421_v17  ;;  %v121_v17 = vld [vmem:[#allocation2 + $0x70] sm:$0xff] }
 0x323   :  { %10014 = vmatprep.subr.bf16.mxu0 %v15430_v24  ;;  %v15207_v24 = vcombine.low %v1388_v1, %v1392_v2  ;;  %v13938_v12 = vcombine.high %v117_v15, %v121_v17  ;;  %v13937_v32 = vcombine.low %v117_v15, %v121_v17  ;;  %v1436_v17 = vld [vmem:[#allocation2 + $0x2988] sm:$0xff] }
 0x324   :  { %10425 = vmatpush1.bf16.msra.mxu1 %v15175_v29  ;;  %v1408_v29 = vld [vmem:[#allocation2 + $0x28a8] sm:$0xff] }
 0x325   :  { %10426 = vmatprep.subr.bf16.mxu1 %v15184_v56  ;;  %v129_v56 = vld [vmem:[#allocation2 + $0xb0] sm:$0xff]  ;;  %v15224_v36 = vcombine.high %v1404_v26, %v1408_v29 }
 0x326   :  { %10015 = vmatpush1.bf16.msra.mxu0 %v15429_v30  ;;  %v125_v30 = vld [vmem:[#allocation2 + $0x90] sm:$0xff] }
 0x327   :  { %10016 = vmatprep.subr.bf16.mxu0 %v15438_v63  ;;  %v15215_v63 = vcombine.low %v1396_v10, %v1400_v14  ;;  %v13946_v39 = vcombine.high %v125_v30, %v129_v56  ;;  %v13945_v52 = vcombine.low %v125_v30, %v129_v56  ;;  %v1444_v56 = vld [vmem:[#allocation2 + $0x29c8] sm:$0xff] }
 0x328   :  { %10427 = vmatpush1.bf16.msra.mxu1 %v15183_v41  ;;  %v1416_v41 = vld [vmem:[#allocation2 + $0x28e8] sm:$0xff] }
 0x329   :  { %10428 = vmatprep.subr.bf16.mxu1 %v15192_v47  ;;  %v137_v47 = vld [vmem:[#allocation2 + $0xf0] sm:$0xff]  ;;  %v15232_v54 = vcombine.high %v1412_v40, %v1416_v41 }
 0x32a   :  { %10017 = vmatpush1.bf16.msra.mxu0 %v15437_v44  ;;  %v133_v44 = vld [vmem:[#allocation2 + $0xd0] sm:$0xff] }
 0x32b   :  { %10018 = vmatprep.subr.bf16.mxu0 %v15446_v48  ;;  %v15223_v48 = vcombine.low %v1404_v26, %v1408_v29  ;;  %v13954_v62 = vcombine.high %v133_v44, %v137_v47  ;;  %v13953_v1 = vcombine.low %v133_v44, %v137_v47  ;;  %v1452_v47 = vld [vmem:[#allocation2 + $0x2a08] sm:$0xff] }
 0x32c   :  { %10429 = vmatpush1.bf16.msra.mxu1 %v15191_v57  ;;  %v1424_v57 = vld [vmem:[#allocation2 + $0x2928] sm:$0xff] }
 0x32d   :  { %10430 = vmatprep.subr.bf16.mxu1 %v15200_v60  ;;  %v145_v60 = vld [vmem:[#allocation2 + $0x130] sm:$0xff]  ;;  %v15240_v2 = vcombine.high %v1420_v55, %v1424_v57 }
 0x32e   :  { %10019 = vmatpush1.bf16.msra.mxu0 %v15445_v18  ;;  %v141_v18 = vld [vmem:[#allocation2 + $0x110] sm:$0xff] }
 0x32f   :  { %10020 = vmatprep.subr.bf16.mxu0 %v15454_v0  ;;  %v15231_v0 = vcombine.low %v1412_v40, %v1416_v41  ;;  %v13962_v3 = vcombine.high %v141_v18, %v145_v60  ;;  %v13961_v10 = vcombine.low %v141_v18, %v145_v60  ;;  %v1460_v60 = vld [vmem:[#allocation2 + $0x2a48] sm:$0xff] }
 0x330   :  { %10431 = vmatpush1.bf16.msra.mxu1 %v15199_v6  ;;  %v1432_v6 = vld [vmem:[#allocation2 + $0x2968] sm:$0xff] }
 0x331   :  { %10441 = vmatprep.subr.bf16.mxu1 %v15208_v53  ;;  %v153_v53 = vld [vmem:[#allocation2 + $0x170] sm:$0xff]  ;;  %v15248_v14 = vcombine.high %v1428_v4, %v1432_v6 }
 0x332   :  { %10021 = vmatpush1.bf16.msra.mxu0 %v15453_v7  ;;  %v149_v7 = vld [vmem:[#allocation2 + $0x150] sm:$0xff] }
 0x333   :  { %10523 = vmatprep.subr.bf16.mxu0 %v13930_v51  ;;  %10433 = vmatmul.mubr.bf16.vlgmr.msra.gmra.mrb[4].mxu1 %v16959_v35  ;;  %v15239_v51 = vcombine.low %v1420_v55, %v1424_v57  ;;  %v13970_v15 = vcombine.high %v149_v7, %v153_v53  ;;  %v13969_v26 = vcombine.low %v149_v7, %v153_v53  ;;  %v1468_v53 = vld [vmem:[#allocation2 + $0x2a88] sm:$0xff] }
 0x334   :  { %10442 = vmatpush1.bf16.msra.mxu1 %v15207_v24  ;;  %10473 = vmatprep.mubr.bf16.mxu1 %v16962_v45  ;;  %v1440_v24 = vld [vmem:[#allocation2 + $0x29a8] sm:$0xff] }
 0x335   :  { %10023 = vmatmul.mubr.bf16.vlgmr.msra.gmra.mrb[0].mxu0 %v16982_v22  ;;  %10443 = vmatprep.subr.bf16.mxu1 %v15216_v25  ;;  %v161_v25 = vld [vmem:[#allocation2 + $0x1b0] sm:$0xff]  ;;  %v15256_v29 = vcombine.high %v1436_v17, %v1440_v24 }
 0x336   :  { %10524 = vmatpush1.bf16.msra.mxu0 %v13929_v46  ;;  %10555 = vmatprep.mubr.bf16.mxu0 %v16806_v9  ;;  %v157_v46 = vld [vmem:[#allocation2 + $0x190] sm:$0xff] }
 0x337   :  { %10525 = vmatprep.subr.bf16.mxu0 %v13938_v12  ;;  %v15247_v12 = vcombine.low %v1428_v4, %v1432_v6  ;;  %v13978_v30 = vcombine.high %v157_v46, %v161_v25  ;;  %v13977_v40 = vcombine.low %v157_v46, %v161_v25  ;;  %v1476_v25 = vld [vmem:[#allocation2 + $0x2ac8] sm:$0xff] }
 0x338   :  { %10444 = vmatpush1.bf16.msra.mxu1 %v15215_v63  ;;  %v1448_v63 = vld [vmem:[#allocation2 + $0x29e8] sm:$0xff] }
 0x339   :  { %10445 = vmatprep.subr.bf16.mxu1 %v15224_v36  ;;  %v169_v36 = vld [vmem:[#allocation2 + $0x1f0] sm:$0xff]  ;;  %v15264_v41 = vcombine.high %v1444_v56, %v1448_v63 }
 0x33a   :  { %10526 = vmatpush1.bf16.msra.mxu0 %v13937_v32  ;;  %v165_v32 = vld [vmem:[#allocation2 + $0x1d0] sm:$0xff] }
 0x33b   :  { %10527 = vmatprep.subr.bf16.mxu0 %v13946_v39  ;;  %v15255_v39 = vcombine.low %v1436_v17, %v1440_v24  ;;  %v13986_v44 = vcombine.high %v165_v32, %v169_v36  ;;  %v13985_v55 = vcombine.low %v165_v32, %v169_v36  ;;  %v1484_v36 = vld [vmem:[#allocation2 + $0x2b08] sm:$0xff] }
 0x33c   :  { %10446 = vmatpush1.bf16.msra.mxu1 %v15223_v48  ;;  %v1456_v48 = vld [vmem:[#allocation2 + $0x2a28] sm:$0xff] }
 0x33d   :  { %10447 = vmatprep.subr.bf16.mxu1 %v15232_v54  ;;  %v177_v54 = vld [vmem:[#allocation2 + $0x230] sm:$0xff]  ;;  %v15272_v57 = vcombine.high %v1452_v47, %v1456_v48 }
 0x33e   :  { %10528 = vmatpush1.bf16.msra.mxu0 %v13945_v52  ;;  %v173_v52 = vld [vmem:[#allocation2 + $0x210] sm:$0xff] }
 0x33f   :  { %10529 = vmatprep.subr.bf16.mxu0 %v13954_v62  ;;  %v15263_v62 = vcombine.low %v1444_v56, %v1448_v63  ;;  %v13994_v18 = vcombine.high %v173_v52, %v177_v54  ;;  %v13993_v4 = vcombine.low %v173_v52, %v177_v54  ;;  %v1492_v54 = vld [vmem:[#allocation2 + $0x2b48] sm:$0xff] }
 0x340   :  { %10448 = vmatpush1.bf16.msra.mxu1 %v15231_v0  ;;  %v1464_v0 = vld [vmem:[#allocation2 + $0x2a68] sm:$0xff] }
 0x341   :  { %10449 = vmatprep.subr.bf16.mxu1 %v15240_v2  ;;  %v185_v2 = vld [vmem:[#allocation2 + $0x270] sm:$0xff]  ;;  %v15280_v6 = vcombine.high %v1460_v60, %v1464_v0 }
 0x342   :  { %10530 = vmatpush1.bf16.msra.mxu0 %v13953_v1  ;;  %v181_v1 = vld [vmem:[#allocation2 + $0x250] sm:$0xff] }
 0x343   :  { %10531 = vmatprep.subr.bf16.mxu0 %v13962_v3  ;;  %v15271_v3 = vcombine.low %v1452_v47, %v1456_v48  ;;  %v14002_v7 = vcombine.high %v181_v1, %v185_v2  ;;  %v14001_v17 = vcombine.low %v181_v1, %v185_v2  ;;  %v1500_v2 = vld [vmem:[#allocation2 + $0x2b88] sm:$0xff] }
 0x344   :  { %10450 = vmatpush1.bf16.msra.mxu1 %v15239_v51  ;;  %v1472_v51 = vld [vmem:[#allocation2 + $0x2aa8] sm:$0xff] }
 0x345   :  { %10451 = vmatprep.subr.bf16.mxu1 %v15248_v14  ;;  %v193_v14 = vld [vmem:[#allocation2 + $0x2b0] sm:$0xff]  ;;  %v15288_v24 = vcombine.high %v1468_v53, %v1472_v51 }
 0x346   :  { %10532 = vmatpush1.bf16.msra.mxu0 %v13961_v10  ;;  %v189_v10 = vld [vmem:[#allocation2 + $0x290] sm:$0xff] }
 0x347   :  { %10533 = vmatprep.subr.bf16.mxu0 %v13970_v15  ;;  %v15279_v15 = vcombine.low %v1460_v60, %v1464_v0  ;;  %v14010_v46 = vcombine.high %v189_v10, %v193_v14  ;;  %v14009_v56 = vcombine.low %v189_v10, %v193_v14  ;;  %v1508_v14 = vld [vmem:[#allocation2 + $0x2bc8] sm:$0xff] }
 0x348   :  { %10452 = vmatpush1.bf16.msra.mxu1 %v15247_v12  ;;  %v1480_v12 = vld [vmem:[#allocation2 + $0x2ae8] sm:$0xff] }
 0x349   :  { %10453 = vmatprep.subr.bf16.mxu1 %v15256_v29  ;;  %v201_v29 = vld [vmem:[#allocation2 + $0x2f0] sm:$0xff]  ;;  %v15296_v63 = vcombine.high %v1476_v25, %v1480_v12 }
 0x34a   :  { %10534 = vmatpush1.bf16.msra.mxu0 %v13969_v26  ;;  %v197_v26 = vld [vmem:[#allocation2 + $0x2d0] sm:$0xff] }
 0x34b   :  { %10535 = vmatprep.subr.bf16.mxu0 %v13978_v30  ;;  %v15287_v30 = vcombine.low %v1468_v53, %v1472_v51  ;;  %v14018_v32 = vcombine.high %v197_v26, %v201_v29  ;;  %v14017_v47 = vcombine.low %v197_v26, %v201_v29  ;;  %v1516_v29 = vld [vmem:[#allocation2 + $0x2c08] sm:$0xff] }
 0x34c   :  { %10454 = vmatpush1.bf16.msra.mxu1 %v15255_v39  ;;  %v1488_v39 = vld [vmem:[#allocation2 + $0x2b28] sm:$0xff] }
 0x34d   :  { %10455 = vmatprep.subr.bf16.mxu1 %v15264_v41  ;;  %v209_v41 = vld [vmem:[#allocation2 + $0x330] sm:$0xff]  ;;  %v15304_v48 = vcombine.high %v1484_v36, %v1488_v39 }
 0x34e   :  { %10536 = vmatpush1.bf16.msra.mxu0 %v13977_v40  ;;  %v205_v40 = vld [vmem:[#allocation2 + $0x310] sm:$0xff] }
 0x34f   :  { %10537 = vmatprep.subr.bf16.mxu0 %v13986_v44  ;;  %v15295_v44 = vcombine.low %v1476_v25, %v1480_v12  ;;  %v14026_v52 = vcombine.high %v205_v40, %v209_v41  ;;  %v14025_v60 = vcombine.low %v205_v40, %v209_v41  ;;  %v1524_v41 = vld [vmem:[#allocation2 + $0x2c48] sm:$0xff] }
 0x350   :  { %10456 = vmatpush1.bf16.msra.mxu1 %v15263_v62  ;;  %v1496_v62 = vld [vmem:[#allocation2 + $0x2b68] sm:$0xff] }
 0x351   :  { %10457 = vmatprep.subr.bf16.mxu1 %v15272_v57  ;;  %v217_v57 = vld [vmem:[#allocation2 + $0x370] sm:$0xff]  ;;  %v15312_v0 = vcombine.high %v1492_v54, %v1496_v62 }
 0x352   :  { %10538 = vmatpush1.bf16.msra.mxu0 %v13985_v55  ;;  %v213_v55 = vld [vmem:[#allocation2 + $0x350] sm:$0xff] }
 0x353   :  { %10539 = vmatprep.subr.bf16.mxu0 %v13994_v18  ;;  %v15303_v18 = vcombine.low %v1484_v36, %v1488_v39  ;;  %v14034_v1 = vcombine.high %v213_v55, %v217_v57  ;;  %v14033_v53 = vcombine.low %v213_v55, %v217_v57  ;;  %v1532_v57 = vld [vmem:[#allocation2 + $0x2c88] sm:$0xff] }
 0x354   :  { %10458 = vmatpush1.bf16.msra.mxu1 %v15271_v3  ;;  %v1504_v3 = vld [vmem:[#allocation2 + $0x2ba8] sm:$0xff] }
 0x355   :  { %10459 = vmatprep.subr.bf16.mxu1 %v15280_v6  ;;  %v225_v6 = vld [vmem:[#allocation2 + $0x3b0] sm:$0xff]  ;;  %v15320_v51 = vcombine.high %v1500_v2, %v1504_v3 }
 0x356   :  { %10540 = vmatpush1.bf16.msra.mxu0 %v13993_v4  ;;  %v221_v4 = vld [vmem:[#allocation2 + $0x390] sm:$0xff] }
 0x357   :  { %10541 = vmatprep.subr.bf16.mxu0 %v14002_v7  ;;  %v15311_v7 = vcombine.low %v1492_v54, %v1496_v62  ;;  %v14042_v10 = vcombine.high %v221_v4, %v225_v6  ;;  %v14041_v25 = vcombine.low %v221_v4, %v225_v6  ;;  %v1540_v6 = vld [vmem:[#allocation2 + $0x2cc8] sm:$0xff] }
 0x358   :  { %10460 = vmatpush1.bf16.msra.mxu1 %v15279_v15  ;;  %v1512_v15 = vld [vmem:[#allocation2 + $0x2be8] sm:$0xff] }
 0x359   :  { %10461 = vmatprep.subr.bf16.mxu1 %v15288_v24  ;;  %v233_v24 = vld [vmem:[#allocation2 + $0x3f0] sm:$0xff]  ;;  %v15328_v12 = vcombine.high %v1508_v14, %v1512_v15 }
 0x35a   :  { %10542 = vmatpush1.bf16.msra.mxu0 %v14001_v17  ;;  %v229_v17 = vld [vmem:[#allocation2 + $0x3d0] sm:$0xff] }
 0x35b   :  { %10543 = vmatprep.subr.bf16.mxu0 %v14010_v46  ;;  %v15319_v46 = vcombine.low %v1500_v2, %v1504_v3  ;;  %v14050_v26 = vcombine.high %v229_v17, %v233_v24  ;;  %v14049_v36 = vcombine.low %v229_v17, %v233_v24  ;;  %v1548_v24 = vld [vmem:[#allocation2 + $0x2d08] sm:$0xff] }
 0x35c   :  { %10462 = vmatpush1.bf16.msra.mxu1 %v15287_v30  ;;  %v1520_v30 = vld [vmem:[#allocation2 + $0x2c28] sm:$0xff] }
 0x35d   :  { %10463 = vmatprep.subr.bf16.mxu1 %v15296_v63  ;;  %v241_v63 = vld [vmem:[#allocation2 + $0x430] sm:$0xff]  ;;  %v15336_v39 = vcombine.high %v1516_v29, %v1520_v30 }
 0x35e   :  { %10544 = vmatpush1.bf16.msra.mxu0 %v14009_v56  ;;  %v237_v56 = vld [vmem:[#allocation2 + $0x410] sm:$0xff] }
 0x35f   :  { %10545 = vmatprep.subr.bf16.mxu0 %v14018_v32  ;;  %v15327_v32 = vcombine.low %v1508_v14, %v1512_v15  ;;  %v14058_v40 = vcombine.high %v237_v56, %v241_v63  ;;  %v14057_v54 = vcombine.low %v237_v56, %v241_v63  ;;  %v1556_v63 = vld [vmem:[#allocation2 + $0x2d48] sm:$0xff] }
 0x360   :  { %10464 = vmatpush1.bf16.msra.mxu1 %v15295_v44  ;;  %v1528_v44 = vld [vmem:[#allocation2 + $0x2c68] sm:$0xff] }
 0x361   :  { %10465 = vmatprep.subr.bf16.mxu1 %v15304_v48  ;;  %v249_v48 = vld [vmem:[#allocation2 + $0x470] sm:$0xff]  ;;  %v15344_v62 = vcombine.high %v1524_v41, %v1528_v44 }
 0x362   :  { %10546 = vmatpush1.bf16.msra.mxu0 %v14017_v47  ;;  %v245_v47 = vld [vmem:[#allocation2 + $0x450] sm:$0xff] }
 0x363   :  { %10547 = vmatprep.subr.bf16.mxu0 %v14026_v52  ;;  %v15335_v52 = vcombine.low %v1516_v29, %v1520_v30  ;;  %v14066_v55 = vcombine.high %v245_v47, %v249_v48  ;;  %v14065_v2 = vcombine.low %v245_v47, %v249_v48  ;;  %v1564_v48 = vld [vmem:[#allocation2 + $0x2d88] sm:$0xff] }
 0x364   :  { %10466 = vmatpush1.bf16.msra.mxu1 %v15303_v18  ;;  %v1536_v18 = vld [vmem:[#allocation2 + $0x2ca8] sm:$0xff] }
 0x365   :  { %10467 = vmatprep.subr.bf16.mxu1 %v15312_v0  ;;  %v257_v0 = vld [vmem:[#allocation2 + $0x4b0] sm:$0xff]  ;;  %v15352_v3 = vcombine.high %v1532_v57, %v1536_v18 }
 0x366   :  { %10548 = vmatpush1.bf16.msra.mxu0 %v14025_v60  ;;  %v253_v60 = vld [vmem:[#allocation2 + $0x490] sm:$0xff] }
 0x367   :  { %10549 = vmatprep.subr.bf16.mxu0 %v14034_v1  ;;  %v15343_v1 = vcombine.low %v1524_v41, %v1528_v44  ;;  %v14074_v4 = vcombine.high %v253_v60, %v257_v0  ;;  %v14073_v14 = vcombine.low %v253_v60, %v257_v0  ;;  %v1572_v0 = vld [vmem:[#allocation2 + $0x2dc8] sm:$0xff] }
 0x368   :  { %10468 = vmatpush1.bf16.msra.mxu1 %v15311_v7  ;;  %v1544_v7 = vld [vmem:[#allocation2 + $0x2ce8] sm:$0xff] }
 0x369   :  { %10469 = vmatprep.subr.bf16.mxu1 %v15320_v51  ;;  %v265_v51 = vld [vmem:[#allocation2 + $0x4f0] sm:$0xff]  ;;  %v15360_v15 = vcombine.high %v1540_v6, %v1544_v7 }
 0x36a   :  { %10550 = vmatpush1.bf16.msra.mxu0 %v14033_v53  ;;  %v261_v53 = vld [vmem:[#allocation2 + $0x4d0] sm:$0xff] }
 0x36b   :  { %10551 = vmatprep.subr.bf16.mxu0 %v14042_v10  ;;  %v15351_v10 = vcombine.low %v1532_v57, %v1536_v18  ;;  %v14082_v17 = vcombine.high %v261_v53, %v265_v51  ;;  %v14081_v29 = vcombine.low %v261_v53, %v265_v51  ;;  %v1580_v51 = vld [vmem:[#allocation2 + $0x2e08] sm:$0xff] }
 0x36c   :  { %10470 = vmatpush1.bf16.msra.mxu1 %v15319_v46  ;;  %v1552_v46 = vld [vmem:[#allocation2 + $0x2d28] sm:$0xff] }
 0x36d   :  { %10471 = vmatprep.subr.bf16.mxu1 %v15328_v12  ;;  %v273_v12 = vld [vmem:[#allocation2 + $0x530] sm:$0xff]  ;;  %v15368_v30 = vcombine.high %v1548_v24, %v1552_v46 }
 0x36e   :  { %10552 = vmatpush1.bf16.msra.mxu0 %v14041_v25  ;;  %v269_v25 = vld [vmem:[#allocation2 + $0x510] sm:$0xff] }
 0x36f   :  { %10553 = vmatprep.subr.bf16.mxu0 %v14050_v26  ;;  %v15359_v26 = vcombine.low %v1540_v6, %v1544_v7  ;;  %v14090_v56 = vcombine.high %v269_v25, %v273_v12  ;;  %v14089_v41 = vcombine.low %v269_v25, %v273_v12  ;;  %v1588_v12 = vld [vmem:[#allocation2 + $0x2e48] sm:$0xff] }
 0x370   :  { %10472 = vmatpush1.bf16.msra.mxu1 %v15327_v32  ;;  %v1560_v32 = vld [vmem:[#allocation2 + $0x2d68] sm:$0xff] }
 0x371   :  { %10482 = vmatprep.subr.bf16.mxu1 %v15336_v39  ;;  %v281_v39 = vld [vmem:[#allocation2 + $0x570] sm:$0xff]  ;;  %v15376_v44 = vcombine.high %v1556_v63, %v1560_v32 }
 0x372   :  { %10554 = vmatpush1.bf16.msra.mxu0 %v14049_v36  ;;  %v277_v36 = vld [vmem:[#allocation2 + $0x550] sm:$0xff] }
 0x373   :  { %10564 = vmatprep.subr.bf16.mxu0 %v14058_v40  ;;  %10474 = vmatmul.mubr.bf16.vlgmr.msra.gmra.mrb[4].mxu1 %v16970_v61  ;;  %v15367_v40 = vcombine.low %v1548_v24, %v1552_v46  ;;  %v14098_v47 = vcombine.high %v277_v36, %v281_v39  ;;  %v14097_v57 = vcombine.low %v277_v36, %v281_v39  ;;  %v1596_v39 = vld [vmem:[#allocation2 + $0x2e88] sm:$0xff] }
 0x374   :  { %10483 = vmatpush1.bf16.msra.mxu1 %v15335_v52  ;;  %10514 = vmatprep.mubr.bf16.mxu1 %v16974_v5  ;;  %v1568_v52 = vld [vmem:[#allocation2 + $0x2da8] sm:$0xff] }
 0x375   :  { %10556 = vmatmul.mubr.bf16.vlgmr.msra.gmra.mrb[4].mxu0 %v16821_v59  ;;  %10484 = vmatprep.subr.bf16.mxu1 %v15344_v62  ;;  %v289_v62 = vld [vmem:[#allocation2 + $0x5b0] sm:$0xff]  ;;  %v15384_v18 = vcombine.high %v1564_v48, %v1568_v52 }
 0x376   :  { %10565 = vmatpush1.bf16.msra.mxu0 %v14057_v54  ;;  %10596 = vmatprep.mubr.bf16.mxu0 %v16811_v13  ;;  %v285_v54 = vld [vmem:[#allocation2 + $0x590] sm:$0xff] }
 0x377   :  { %10566 = vmatprep.subr.bf16.mxu0 %v14066_v55  ;;  %v15375_v55 = vcombine.low %v1556_v63, %v1560_v32  ;;  %v14106_v60 = vcombine.high %v285_v54, %v289_v62  ;;  %v14105_v6 = vcombine.low %v285_v54, %v289_v62  ;;  %v1604_v62 = vld [vmem:[#allocation2 + $0x2ec8] sm:$0xff] }
 0x378   :  { %10485 = vmatpush1.bf16.msra.mxu1 %v15343_v1  ;;  %v1576_v1 = vld [vmem:[#allocation2 + $0x2de8] sm:$0xff] }
 0x379   :  { %10486 = vmatprep.subr.bf16.mxu1 %v15352_v3  ;;  %v297_v3 = vld [vmem:[#allocation2 + $0x5f0] sm:$0xff]  ;;  %v15392_v7 = vcombine.high %v1572_v0, %v1576_v1 }
 0x37a   :  { %10567 = vmatpush1.bf16.msra.mxu0 %v14065_v2  ;;  %v293_v2 = vld [vmem:[#allocation2 + $0x5d0] sm:$0xff] }
 0x37b   :  { %10568 = vmatprep.subr.bf16.mxu0 %v14074_v4  ;;  %v15383_v4 = vcombine.low %v1564_v48, %v1568_v52  ;;  %v14114_v53 = vcombine.high %v293_v2, %v297_v3  ;;  %v14113_v24 = vcombine.low %v293_v2, %v297_v3  ;;  %v1612_v3 = vld [vmem:[#allocation2 + $0x2f08] sm:$0xff] }
 0x37c   :  { %10487 = vmatpush1.bf16.msra.mxu1 %v15351_v10  ;;  %v1584_v10 = vld [vmem:[#allocation2 + $0x2e28] sm:$0xff] }
 0x37d   :  { %10488 = vmatprep.subr.bf16.mxu1 %v15360_v15  ;;  %v305_v15 = vld [vmem:[#allocation2 + $0x630] sm:$0xff]  ;;  %v15400_v46 = vcombine.high %v1580_v51, %v1584_v10 }
 0x37e   :  { %10569 = vmatpush1.bf16.msra.mxu0 %v14073_v14  ;;  %v301_v14 = vld [vmem:[#allocation2 + $0x610] sm:$0xff] }
 0x37f   :  { %10570 = vmatprep.subr.bf16.mxu0 %v14082_v17  ;;  %v15391_v17 = vcombine.low %v1572_v0, %v1576_v1  ;;  %v14122_v25 = vcombine.high %v301_v14, %v305_v15  ;;  %v14121_v63 = vcombine.low %v301_v14, %v305_v15  ;;  %v1620_v15 = vld [vmem:[#allocation2 + $0x2f48] sm:$0xff] }
 0x380   :  { %10489 = vmatpush1.bf16.msra.mxu1 %v15359_v26  ;;  %v1592_v26 = vld [vmem:[#allocation2 + $0x2e68] sm:$0xff] }
 0x381   :  { %10490 = vmatprep.subr.bf16.mxu1 %v15368_v30  ;;  %v313_v30 = vld [vmem:[#allocation2 + $0x670] sm:$0xff]  ;;  %v15408_v32 = vcombine.high %v1588_v12, %v1592_v26 }
 0x382   :  { %10571 = vmatpush1.bf16.msra.mxu0 %v14081_v29  ;;  %v309_v29 = vld [vmem:[#allocation2 + $0x650] sm:$0xff] }
 0x383   :  { %10572 = vmatprep.subr.bf16.mxu0 %v14090_v56  ;;  %v15399_v56 = vcombine.low %v1580_v51, %v1584_v10  ;;  %v14130_v36 = vcombine.high %v309_v29, %v313_v30  ;;  %v14129_v48 = vcombine.low %v309_v29, %v313_v30  ;;  %v1628_v30 = vld [vmem:[#allocation2 + $0x2f88] sm:$0xff] }
 0x384   :  { %10491 = vmatpush1.bf16.msra.mxu1 %v15367_v40  ;;  %v1600_v40 = vld [vmem:[#allocation2 + $0x2ea8] sm:$0xff] }
 0x385   :  { %10492 = vmatprep.subr.bf16.mxu1 %v15376_v44  ;;  %v321_v44 = vld [vmem:[#allocation2 + $0x6b0] sm:$0xff]  ;;  %v15416_v52 = vcombine.high %v1596_v39, %v1600_v40 }
 0x386   :  { %10573 = vmatpush1.bf16.msra.mxu0 %v14089_v41  ;;  %v317_v41 = vld [vmem:[#allocation2 + $0x690] sm:$0xff] }
 0x387   :  { %10574 = vmatprep.subr.bf16.mxu0 %v14098_v47  ;;  %v15407_v47 = vcombine.low %v1588_v12, %v1592_v26  ;;  %v14138_v54 = vcombine.high %v317_v41, %v321_v44  ;;  %v14137_v0 = vcombine.low %v317_v41, %v321_v44  ;;  %v1636_v44 = vld [vmem:[#allocation2 + $0x2fc8] sm:$0xff] }
 0x388   :  { %10493 = vmatpush1.bf16.msra.mxu1 %v15375_v55  ;;  %v1608_v55 = vld [vmem:[#allocation2 + $0x2ee8] sm:$0xff] }
 0x389   :  { %10494 = vmatprep.subr.bf16.mxu1 %v15384_v18  ;;  %v329_v18 = vld [vmem:[#allocation2 + $0x6f0] sm:$0xff]  ;;  %v15424_v1 = vcombine.high %v1604_v62, %v1608_v55 }
 0x38a   :  { %10575 = vmatpush1.bf16.msra.mxu0 %v14097_v57  ;;  %v325_v57 = vld [vmem:[#allocation2 + $0x6d0] sm:$0xff] }
 0x38b   :  { %10576 = vmatprep.subr.bf16.mxu0 %v14106_v60  ;;  %v15415_v60 = vcombine.low %v1596_v39, %v1600_v40  ;;  %v14146_v2 = vcombine.high %v325_v57, %v329_v18  ;;  %v14145_v51 = vcombine.low %v325_v57, %v329_v18  ;;  %v110_v18 = vld [vmem:[#allocation2 + $0x18] sm:$0xff] }
 0x38c   :  { %10495 = vmatpush1.bf16.msra.mxu1 %v15383_v4  ;;  %v1616_v4 = vld [vmem:[#allocation2 + $0x2f28] sm:$0xff] }
 0x38d   :  { %10496 = vmatprep.subr.bf16.mxu1 %v15392_v7  ;;  %v337_v7 = vld [vmem:[#allocation2 + $0x730] sm:$0xff]  ;;  %v15432_v10 = vcombine.high %v1612_v3, %v1616_v4 }
 0x38e   :  { %10577 = vmatpush1.bf16.msra.mxu0 %v14105_v6  ;;  %v333_v6 = vld [vmem:[#allocation2 + $0x710] sm:$0xff] }
 0x38f   :  { %10578 = vmatprep.subr.bf16.mxu0 %v14114_v53  ;;  %v15423_v53 = vcombine.low %v1604_v62, %v1608_v55  ;;  %v14154_v14 = vcombine.high %v333_v6, %v337_v7  ;;  %v14153_v12 = vcombine.low %v333_v6, %v337_v7  ;;  %v118_v7 = vld [vmem:[#allocation2 + $0x58] sm:$0xff] }
 0x390   :  { %10497 = vmatpush1.bf16.msra.mxu1 %v15391_v17  ;;  %v1624_v17 = vld [vmem:[#allocation2 + $0x2f68] sm:$0xff] }
 0x391   :  { %10498 = vmatprep.subr.bf16.mxu1 %v15400_v46  ;;  %v345_v46 = vld [vmem:[#allocation2 + $0x770] sm:$0xff]  ;;  %v15440_v26 = vcombine.high %v1620_v15, %v1624_v17 }
 0x392   :  { %10579 = vmatpush1.bf16.msra.mxu0 %v14113_v24  ;;  %v341_v24 = vld [vmem:[#allocation2 + $0x750] sm:$0xff] }
 0x393   :  { %10580 = vmatprep.subr.bf16.mxu0 %v14122_v25  ;;  %v15431_v25 = vcombine.low %v1612_v3, %v1616_v4  ;;  %v14162_v29 = vcombine.high %v341_v24, %v345_v46  ;;  %v14161_v39 = vcombine.low %v341_v24, %v345_v46  ;;  %v126_v46 = vld [vmem:[#allocation2 + $0x98] sm:$0xff] }
 0x394   :  { %10499 = vmatpush1.bf16.msra.mxu1 %v15399_v56  ;;  %v1632_v56 = vld [vmem:[#allocation2 + $0x2fa8] sm:$0xff] }
 0x395   :  { %10500 = vmatprep.subr.bf16.mxu1 %v15408_v32  ;;  %v353_v32 = vld [vmem:[#allocation2 + $0x7b0] sm:$0xff]  ;;  %v15448_v40 = vcombine.high %v1628_v30, %v1632_v56 }
 0x396   :  { %10581 = vmatpush1.bf16.msra.mxu0 %v14121_v63  ;;  %v349_v63 = vld [vmem:[#allocation2 + $0x790] sm:$0xff] }
 0x397   :  { %10582 = vmatprep.subr.bf16.mxu0 %v14130_v36  ;;  %v15439_v36 = vcombine.low %v1620_v15, %v1624_v17  ;;  %v14170_v41 = vcombine.high %v349_v63, %v353_v32  ;;  %v14169_v62 = vcombine.low %v349_v63, %v353_v32  ;;  %v134_v32 = vld [vmem:[#allocation2 + $0xd8] sm:$0xff] }
 0x398   :  { %10501 = vmatpush1.bf16.msra.mxu1 %v15407_v47  ;;  %v1640_v47 = vld [vmem:[#allocation2 + $0x2fe8] sm:$0xff] }
 0x399   :  { %10502 = vmatprep.subr.bf16.mxu1 %v15416_v52  ;;  %v361_v52 = vld [vmem:[#allocation2 + $0x7f0] sm:$0xff]  ;;  %v15456_v55 = vcombine.high %v1636_v44, %v1640_v47 }
 0x39a   :  { %10583 = vmatpush1.bf16.msra.mxu0 %v14129_v48  ;;  %v357_v48 = vld [vmem:[#allocation2 + $0x7d0] sm:$0xff] }
 0x39b   :  { %10584 = vmatprep.subr.bf16.mxu0 %v14138_v54  ;;  %v15447_v54 = vcombine.low %v1628_v30, %v1632_v56  ;;  %v14178_v57 = vcombine.high %v357_v48, %v361_v52  ;;  %v14177_v3 = vcombine.low %v357_v48, %v361_v52  ;;  %v142_v52 = vld [vmem:[#allocation2 + $0x118] sm:$0xff] }
 0x39c   :  { %10503 = vmatpush1.bf16.msra.mxu1 %v15415_v60  ;;  %v114_v60 = vld [vmem:[#allocation2 + $0x38] sm:$0xff] }
 0x39d   :  { %10504 = vmatprep.subr.bf16.mxu1 %v15424_v1  ;;  %v369_v1 = vld [vmem:[#allocation2 + $0x830] sm:$0xff]  ;;  %v13932_v4 = vcombine.high %v110_v18, %v114_v60 }
 0x39e   :  { %10585 = vmatpush1.bf16.msra.mxu0 %v14137_v0  ;;  %v365_v0 = vld [vmem:[#allocation2 + $0x810] sm:$0xff] }
 0x39f   :  { %10586 = vmatprep.subr.bf16.mxu0 %v14146_v2  ;;  %v15455_v2 = vcombine.low %v1636_v44, %v1640_v47  ;;  %v14186_v6 = vcombine.high %v365_v0, %v369_v1  ;;  %v14185_v15 = vcombine.low %v365_v0, %v369_v1  ;;  %v150_v0 = vld [vmem:[#allocation2 + $0x158] sm:$0xff] }
 0x3a0   :  { %10505 = vmatpush1.bf16.msra.mxu1 %v15423_v53  ;;  %v122_v53 = vld [vmem:[#allocation2 + $0x78] sm:$0xff] }
 0x3a1   :  { %10506 = vmatprep.subr.bf16.mxu1 %v15432_v10  ;;  %v377_v10 = vld [vmem:[#allocation2 + $0x870] sm:$0xff]  ;;  %v13940_v17 = vcombine.high %v118_v7, %v122_v53  ;;  %v154_v1 = vld [vmem:[#allocation2 + $0x178] sm:$0xff] }
 0x3a2   :  { %10587 = vmatpush1.bf16.msra.mxu0 %v14145_v51  ;;  %v373_v51 = vld [vmem:[#allocation2 + $0x850] sm:$0xff] }
 0x3a3   :  { %10588 = vmatprep.subr.bf16.mxu0 %v14154_v14  ;;  %v13931_v14 = vcombine.low %v110_v18, %v114_v60  ;;  %v14194_v24 = vcombine.high %v373_v51, %v377_v10  ;;  %v14193_v30 = vcombine.low %v373_v51, %v377_v10  ;;  %v158_v51 = vld [vmem:[#allocation2 + $0x198] sm:$0xff] }
 0x3a4   :  { %10507 = vmatpush1.bf16.msra.mxu1 %v15431_v25  ;;  %v130_v25 = vld [vmem:[#allocation2 + $0xb8] sm:$0xff] }
 0x3a5   :  { %10508 = vmatprep.subr.bf16.mxu1 %v15440_v26  ;;  %v385_v26 = vld [vmem:[#allocation2 + $0x8b0] sm:$0xff]  ;;  %v13948_v56 = vcombine.high %v126_v46, %v130_v25  ;;  %v162_v10 = vld [vmem:[#allocation2 + $0x1b8] sm:$0xff] }
 0x3a6   :  { %10589 = vmatpush1.bf16.msra.mxu0 %v14153_v12  ;;  %v381_v12 = vld [vmem:[#allocation2 + $0x890] sm:$0xff] }
 0x3a7   :  { %10590 = vmatprep.subr.bf16.mxu0 %v14162_v29  ;;  %v13939_v29 = vcombine.low %v118_v7, %v122_v53  ;;  %v14202_v63 = vcombine.high %v381_v12, %v385_v26  ;;  %v14201_v44 = vcombine.low %v381_v12, %v385_v26  ;;  %v13972_v7 = vcombine.high %v150_v0, %v154_v1  ;;  %v166_v12 = vld [vmem:[#allocation2 + $0x1d8] sm:$0xff] }
 0x3a8   :  { %10509 = vmatpush1.bf16.msra.mxu1 %v15439_v36  ;;  %v138_v36 = vld [vmem:[#allocation2 + $0xf8] sm:$0xff] }
 0x3a9   :  { %10510 = vmatprep.subr.bf16.mxu1 %v15448_v40  ;;  %v393_v40 = vld [vmem:[#allocation2 + $0x8f0] sm:$0xff]  ;;  %v13956_v47 = vcombine.high %v134_v32, %v138_v36  ;;  %v170_v26 = vld [vmem:[#allocation2 + $0x1f8] sm:$0xff] }
 0x3aa   :  { %10591 = vmatpush1.bf16.msra.mxu0 %v14161_v39  ;;  %v389_v39 = vld [vmem:[#allocation2 + $0x8d0] sm:$0xff] }
 0x3ab   :  { %10592 = vmatprep.subr.bf16.mxu0 %v14170_v41  ;;  %v13947_v41 = vcombine.low %v126_v46, %v130_v25  ;;  %v14210_v48 = vcombine.high %v389_v39, %v393_v40  ;;  %v14209_v18 = vcombine.low %v389_v39, %v393_v40  ;;  %v13980_v46 = vcombine.high %v158_v51, %v162_v10  ;;  %v174_v39 = vld [vmem:[#allocation2 + $0x218] sm:$0xff] }
 0x3ac   :  { %10511 = vmatpush1.bf16.msra.mxu1 %v15447_v54  ;;  %v146_v54 = vld [vmem:[#allocation2 + $0x138] sm:$0xff] }
 0x3ad   :  { %10512 = vmatprep.subr.bf16.mxu1 %v15456_v55  ;;  %v401_v55 = vld [vmem:[#allocation2 + $0x930] sm:$0xff]  ;;  %v13964_v60 = vcombine.high %v142_v52, %v146_v54  ;;  %v178_v40 = vld [vmem:[#allocation2 + $0x238] sm:$0xff] }
 0x3ae   :  { %10593 = vmatpush1.bf16.msra.mxu0 %v14169_v62  ;;  %v397_v62 = vld [vmem:[#allocation2 + $0x910] sm:$0xff] }
 0x3af   :  { %10594 = vmatprep.subr.bf16.mxu0 %v14178_v57  ;;  %v13955_v57 = vcombine.low %v134_v32, %v138_v36  ;;  %v13988_v32 = vcombine.high %v166_v12, %v170_v26 }
 0x3b0   :  { %10513 = vmatpush1.bf16.msra.mxu1 %v15455_v2  ;;  %v405_v2 = vld [vmem:[#allocation2 + $0x950] sm:$0xff] }
 0x3b1   :  { %11015 = vmatprep.subr.bf16.mxu1 %v13932_v4  ;;  %v13963_v4 = vcombine.low %v142_v52, %v146_v54  ;;  %v13996_v52 = vcombine.high %v174_v39, %v178_v40 }
 0x3b2   :  { %10595 = vmatpush1.bf16.msra.mxu0 %v14177_v3  ;;  %v409_v3 = vld [vmem:[#allocation2 + $0x970] sm:$0xff] }
 0x3b3   :  { %10605 = vmatprep.subr.bf16.mxu0 %v14186_v6  ;;  %10515 = vmatmul.mubr.bf16.vlgmr.msra.gmra.mrb[4].mxu1 %v16982_v22  ;;  %v14217_v6 = vcombine.low %v397_v62, %v401_v55  ;;  %v14226_v53 = vcombine.high %v405_v2, %v409_v3 }
 0x3b4   :  { %11016 = vmatpush1.bf16.msra.mxu1 %v13931_v14  ;;  %11047 = vmatprep.mubr.bf16.mxu1 %v16806_v9  ;;  %v14218_v9 = vcombine.high %v397_v62, %v401_v55  ;;  %v413_v14 = vld [vmem:[#allocation2 + $0x990] sm:$0xff]  ;;  %v182_v62 = vld [vmem:[#allocation2 + $0x258] sm:$0xff] }
 0x3b5   :  { %10597 = vmatmul.mubr.bf16.vlgmr.msra.gmra.mrb[4].mxu0 %v16827_v31  ;;  %11017 = vmatprep.subr.bf16.mxu1 %v13940_v17  ;;  %v13971_v17 = vcombine.low %v150_v0, %v154_v1  ;;  %v186_v55 = vld [vmem:[#allocation2 + $0x278] sm:$0xff] }
 0x3b6   :  { %10606 = vmatpush1.bf16.msra.mxu0 %v14185_v15  ;;  %10637 = vmatprep.mubr.bf16.mxu0 %v16830_v38  ;;  %v417_v15 = vld [vmem:[#allocation2 + $0x9b0] sm:$0xff]  ;;  %v14004_v0 = vcombine.high %v182_v62, %v186_v55 }
 0x3b7   :  { %10607 = vmatprep.subr.bf16.mxu0 %v14194_v24  ;;  %v14225_v24 = vcombine.low %v405_v2, %v409_v3  ;;  %v14234_v25 = vcombine.high %v413_v14, %v417_v15  ;;  %v190_v2 = vld [vmem:[#allocation2 + $0x298] sm:$0xff] }
 0x3b8   :  { %11018 = vmatpush1.bf16.msra.mxu1 %v13939_v29  ;;  %v421_v29 = vld [vmem:[#allocation2 + $0x9d0] sm:$0xff]  ;;  %v194_v3 = vld [vmem:[#allocation2 + $0x2b8] sm:$0xff] }
 0x3b9   :  { %11019 = vmatprep.subr.bf16.mxu1 %v13948_v56  ;;  %v13979_v56 = vcombine.low %v158_v51, %v162_v10  ;;  %v14012_v51 = vcombine.high %v190_v2, %v194_v3 }
 0x3ba   :  { %10608 = vmatpush1.bf16.msra.mxu0 %v14193_v30  ;;  %v425_v30 = vld [vmem:[#allocation2 + $0x9f0] sm:$0xff] }
 0x3bb   :  { %10609 = vmatprep.subr.bf16.mxu0 %v14202_v63  ;;  %v14233_v63 = vcombine.low %v413_v14, %v417_v15  ;;  %v14242_v36 = vcombine.high %v421_v29, %v425_v30  ;;  %v198_v14 = vld [vmem:[#allocation2 + $0x2d8] sm:$0xff] }
 0x3bc   :  { %11020 = vmatpush1.bf16.msra.mxu1 %v13947_v41  ;;  %v429_v41 = vld [vmem:[#allocation2 + $0xa10] sm:$0xff]  ;;  %v202_v15 = vld [vmem:[#allocation2 + $0x2f8] sm:$0xff] }
 0x3bd   :  { %11021 = vmatprep.subr.bf16.mxu1 %v13956_v47  ;;  %v13987_v47 = vcombine.low %v166_v12, %v170_v26  ;;  %v14020_v12 = vcombine.high %v198_v14, %v202_v15 }
 0x3be   :  { %10610 = vmatpush1.bf16.msra.mxu0 %v14201_v44  ;;  %v433_v44 = vld [vmem:[#allocation2 + $0xa30] sm:$0xff] }
 0x3bf   :  { %10611 = vmatprep.subr.bf16.mxu0 %v14210_v48  ;;  %v14241_v48 = vcombine.low %v421_v29, %v425_v30  ;;  %v14250_v54 = vcombine.high %v429_v41, %v433_v44  ;;  %v206_v29 = vld [vmem:[#allocation2 + $0x318] sm:$0xff] }
 0x3c0   :  { %11022 = vmatpush1.bf16.msra.mxu1 %v13955_v57  ;;  %v437_v57 = vld [vmem:[#allocation2 + $0xa50] sm:$0xff]  ;;  %v210_v30 = vld [vmem:[#allocation2 + $0x338] sm:$0xff] }
 0x3c1   :  { %11023 = vmatprep.subr.bf16.mxu1 %v13964_v60  ;;  %v13995_v60 = vcombine.low %v174_v39, %v178_v40  ;;  %v14028_v39 = vcombine.high %v206_v29, %v210_v30 }
 0x3c2   :  { %10612 = vmatpush1.bf16.msra.mxu0 %v14209_v18  ;;  %v441_v18 = vld [vmem:[#allocation2 + $0xa70] sm:$0xff] }
 0x3c3   :  { %10613 = vmatprep.subr.bf16.mxu0 %v14218_v9  ;;  %v14249_v9 = vcombine.low %v429_v41, %v433_v44  ;;  %v14258_v1 = vcombine.high %v437_v57, %v441_v18  ;;  %v214_v41 = vld [vmem:[#allocation2 + $0x358] sm:$0xff] }
 0x3c4   :  { %11024 = vmatpush1.bf16.msra.mxu1 %v13963_v4  ;;  %v445_v4 = vld [vmem:[#allocation2 + $0xa90] sm:$0xff]  ;;  %v218_v44 = vld [vmem:[#allocation2 + $0x378] sm:$0xff] }
 0x3c5   :  { %11025 = vmatprep.subr.bf16.mxu1 %v13972_v7  ;;  %v14003_v7 = vcombine.low %v182_v62, %v186_v55  ;;  %v14036_v62 = vcombine.high %v214_v41, %v218_v44 }
 0x3c6   :  { %10614 = vmatpush1.bf16.msra.mxu0 %v14217_v6  ;;  %v449_v6 = vld [vmem:[#allocation2 + $0xab0] sm:$0xff] }
 0x3c7   :  { %10615 = vmatprep.subr.bf16.mxu0 %v14226_v53  ;;  %v14257_v53 = vcombine.low %v437_v57, %v441_v18  ;;  %v14266_v10 = vcombine.high %v445_v4, %v449_v6  ;;  %v222_v57 = vld [vmem:[#allocation2 + $0x398] sm:$0xff] }
 0x3c8   :  { %11026 = vmatpush1.bf16.msra.mxu1 %v13971_v17  ;;  %v453_v17 = vld [vmem:[#allocation2 + $0xad0] sm:$0xff]  ;;  %v226_v18 = vld [vmem:[#allocation2 + $0x3b8] sm:$0xff] }
 0x3c9   :  { %11027 = vmatprep.subr.bf16.mxu1 %v13980_v46  ;;  %v14011_v46 = vcombine.low %v190_v2, %v194_v3  ;;  %v14044_v2 = vcombine.high %v222_v57, %v226_v18 }
 0x3ca   :  { %10616 = vmatpush1.bf16.msra.mxu0 %v14225_v24  ;;  %v457_v24 = vld [vmem:[#allocation2 + $0xaf0] sm:$0xff] }
 0x3cb   :  { %10617 = vmatprep.subr.bf16.mxu0 %v14234_v25  ;;  %v14265_v25 = vcombine.low %v445_v4, %v449_v6  ;;  %v14274_v26 = vcombine.high %v453_v17, %v457_v24  ;;  %v230_v4 = vld [vmem:[#allocation2 + $0x3d8] sm:$0xff] }
 0x3cc   :  { %11028 = vmatpush1.bf16.msra.mxu1 %v13979_v56  ;;  %v461_v56 = vld [vmem:[#allocation2 + $0xb10] sm:$0xff]  ;;  %v234_v6 = vld [vmem:[#allocation2 + $0x3f8] sm:$0xff] }
 0x3cd   :  { %11029 = vmatprep.subr.bf16.mxu1 %v13988_v32  ;;  %v14019_v32 = vcombine.low %v198_v14, %v202_v15  ;;  %v14052_v14 = vcombine.high %v230_v4, %v234_v6 }
 0x3ce   :  { %10618 = vmatpush1.bf16.msra.mxu0 %v14233_v63  ;;  %v465_v63 = vld [vmem:[#allocation2 + $0xb30] sm:$0xff] }
 0x3cf   :  { %10619 = vmatprep.subr.bf16.mxu0 %v14242_v36  ;;  %v14273_v36 = vcombine.low %v453_v17, %v457_v24  ;;  %v14282_v40 = vcombine.high %v461_v56, %v465_v63  ;;  %v238_v17 = vld [vmem:[#allocation2 + $0x418] sm:$0xff] }
 0x3d0   :  { %11030 = vmatpush1.bf16.msra.mxu1 %v13987_v47  ;;  %v469_v47 = vld [vmem:[#allocation2 + $0xb50] sm:$0xff]  ;;  %v242_v24 = vld [vmem:[#allocation2 + $0x438] sm:$0xff] }
 0x3d1   :  { %11031 = vmatprep.subr.bf16.mxu1 %v13996_v52  ;;  %v14027_v52 = vcombine.low %v206_v29, %v210_v30  ;;  %v14060_v29 = vcombine.high %v238_v17, %v242_v24 }
 0x3d2   :  { %10620 = vmatpush1.bf16.msra.mxu0 %v14241_v48  ;;  %v473_v48 = vld [vmem:[#allocation2 + $0xb70] sm:$0xff] }
 0x3d3   :  { %10621 = vmatprep.subr.bf16.mxu0 %v14250_v54  ;;  %v14281_v54 = vcombine.low %v461_v56, %v465_v63  ;;  %v14290_v55 = vcombine.high %v469_v47, %v473_v48  ;;  %v246_v56 = vld [vmem:[#allocation2 + $0x458] sm:$0xff] }
 0x3d4   :  { %11032 = vmatpush1.bf16.msra.mxu1 %v13995_v60  ;;  %v477_v60 = vld [vmem:[#allocation2 + $0xb90] sm:$0xff]  ;;  %v250_v63 = vld [vmem:[#allocation2 + $0x478] sm:$0xff] }
 0x3d5   :  { %11033 = vmatprep.subr.bf16.mxu1 %v14004_v0  ;;  %v14035_v0 = vcombine.low %v214_v41, %v218_v44  ;;  %v14068_v41 = vcombine.high %v246_v56, %v250_v63 }
 0x3d6   :  { %10622 = vmatpush1.bf16.msra.mxu0 %v14249_v9  ;;  %v481_v9 = vld [vmem:[#allocation2 + $0xbb0] sm:$0xff] }
 0x3d7   :  { %10623 = vmatprep.subr.bf16.mxu0 %v14258_v1  ;;  %v14289_v1 = vcombine.low %v469_v47, %v473_v48  ;;  %v14298_v3 = vcombine.high %v477_v60, %v481_v9  ;;  %v254_v47 = vld [vmem:[#allocation2 + $0x498] sm:$0xff] }
 0x3d8   :  { %11034 = vmatpush1.bf16.msra.mxu1 %v14003_v7  ;;  %v485_v7 = vld [vmem:[#allocation2 + $0xbd0] sm:$0xff]  ;;  %v258_v48 = vld [vmem:[#allocation2 + $0x4b8] sm:$0xff] }
 0x3d9   :  { %11035 = vmatprep.subr.bf16.mxu1 %v14012_v51  ;;  %v14043_v51 = vcombine.low %v222_v57, %v226_v18  ;;  %v14076_v57 = vcombine.high %v254_v47, %v258_v48 }
 0x3da   :  { %10624 = vmatpush1.bf16.msra.mxu0 %v14257_v53  ;;  %v489_v53 = vld [vmem:[#allocation2 + $0xbf0] sm:$0xff] }
 0x3db   :  { %10625 = vmatprep.subr.bf16.mxu0 %v14266_v10  ;;  %v14297_v10 = vcombine.low %v477_v60, %v481_v9  ;;  %v14306_v15 = vcombine.high %v485_v7, %v489_v53  ;;  %v262_v60 = vld [vmem:[#allocation2 + $0x4d8] sm:$0xff] }
 0x3dc   :  { %11036 = vmatpush1.bf16.msra.mxu1 %v14011_v46  ;;  %v493_v46 = vld [vmem:[#allocation2 + $0xc10] sm:$0xff]  ;;  %v266_v9 = vld [vmem:[#allocation2 + $0x4f8] sm:$0xff] }
 0x3dd   :  { %11037 = vmatprep.subr.bf16.mxu1 %v14020_v12  ;;  %v14051_v12 = vcombine.low %v230_v4, %v234_v6  ;;  %v270_v6 = vld [vmem:[#allocation2 + $0x518] sm:$0xff] }
 0x3de   :  { %10626 = vmatpush1.bf16.msra.mxu0 %v14265_v25  ;;  %v497_v25 = vld [vmem:[#allocation2 + $0xc30] sm:$0xff] }
 0x3df   :  { %10627 = vmatprep.subr.bf16.mxu0 %v14274_v26  ;;  %v14305_v26 = vcombine.low %v485_v7, %v489_v53  ;;  %v14314_v30 = vcombine.high %v493_v46, %v497_v25  ;;  %v274_v7 = vld [vmem:[#allocation2 + $0x538] sm:$0xff]  ;;  %v525_v53 = vld [vmem:[#allocation2 + $0xd10] sm:$0xff] }
 0x3e0   :  { %11038 = vmatpush1.bf16.msra.mxu1 %v14019_v32  ;;  %v501_v32 = vld [vmem:[#allocation2 + $0xc50] sm:$0xff] }
 0x3e1   :  { %11039 = vmatprep.subr.bf16.mxu1 %v14028_v39  ;;  %v14059_v39 = vcombine.low %v238_v17, %v242_v24  ;;  %v278_v24 = vld [vmem:[#allocation2 + $0x558] sm:$0xff] }
 0x3e2   :  { %10628 = vmatpush1.bf16.msra.mxu0 %v14273_v36  ;;  %v505_v36 = vld [vmem:[#allocation2 + $0xc70] sm:$0xff] }
 0x3e3   :  { %10629 = vmatprep.subr.bf16.mxu0 %v14282_v40  ;;  %v14313_v40 = vcombine.low %v493_v46, %v497_v25  ;;  %v14322_v44 = vcombine.high %v501_v32, %v505_v36  ;;  %v282_v46 = vld [vmem:[#allocation2 + $0x578] sm:$0xff]  ;;  %v1643_v25 = vld [vmem:[#allocation5] sm:$0xff] }
 0x3e4   :  { %11040 = vmatpush1.bf16.msra.mxu1 %v14027_v52  ;;  %v509_v52 = vld [vmem:[#allocation2 + $0xc90] sm:$0xff] }
 0x3e5   :  { %11041 = vmatprep.subr.bf16.mxu1 %v14036_v62  ;;  %v14067_v62 = vcombine.low %v246_v56, %v250_v63  ;;  %v14100_v63 = vcombine.high %v278_v24, %v282_v46 }
 0x3e6   :  { %10630 = vmatpush1.bf16.msra.mxu0 %v14281_v54  ;;  %v513_v54 = vld [vmem:[#allocation2 + $0xcb0] sm:$0xff] }
 0x3e7   :  { %10631 = vmatprep.subr.bf16.mxu0 %v14290_v55  ;;  %v14321_v55 = vcombine.low %v501_v32, %v505_v36  ;;  %v14330_v18 = vcombine.high %v509_v52, %v513_v54 }
 0x3e8   :  { %11042 = vmatpush1.bf16.msra.mxu1 %v14035_v0  ;;  %v517_v0 = vld [vmem:[#allocation2 + $0xcd0] sm:$0xff] }
 0x3e9   :  { %11043 = vmatprep.subr.bf16.mxu1 %v14044_v2  ;;  %v14329_v2 = vcombine.low %v509_v52, %v513_v54 }
 0x3ea   :  { %10632 = vmatpush1.bf16.msra.mxu0 %v14289_v1  ;;  %v521_v1 = vld [vmem:[#allocation2 + $0xcf0] sm:$0xff] }
 0x3eb   :  { %10633 = vmatprep.subr.bf16.mxu0 %v14298_v3  ;;  %v14084_v3 = vcombine.high %v262_v60, %v266_v9  ;;  %v14338_v4 = vcombine.high %v517_v0, %v521_v1 }
 0x3ec   :  { %11044 = vmatpush1.bf16.msra.mxu1 %v14043_v51  ;;  %v529_v51 = vld [vmem:[#allocation2 + $0xd30] sm:$0xff] }
 0x3ed   :  { %11045 = vmatprep.subr.bf16.mxu1 %v14052_v14  ;;  %v14337_v14 = vcombine.low %v517_v0, %v521_v1  ;;  %v14346_v17 = vcombine.high %v525_v53, %v529_v51  ;;  %v14345_v56 = vcombine.low %v525_v53, %v529_v51  ;;  %v549_v0 = vld [vmem:[#allocation2 + $0xdd0] sm:$0xff] }
 0x3ee   :  { %10634 = vmatpush1.bf16.msra.mxu0 %v14297_v10  ;;  %v14083_v10 = vcombine.low %v262_v60, %v266_v9  ;;  %v553_v1 = vld [vmem:[#allocation2 + $0xdf0] sm:$0xff] }
 0x3ef   :  { %10635 = vmatprep.subr.bf16.mxu0 %v14306_v15  ;;  %v14092_v15 = vcombine.high %v270_v6, %v274_v7  ;;  %v14370_v51 = vcombine.high %v549_v0, %v553_v1 }
 0x3f0   :  { %11046 = vmatpush1.bf16.msra.mxu1 %v14051_v12  ;;  %v17004_v12 = vsub.s32 1, %v16789_v43 }
 0x3f1   :  { %11056 = vmatprep.subr.bf16.mxu1 %v14060_v29  ;;  %v537_v29 = vld [vmem:[#allocation2 + $0xd70] sm:$0xff] }
 0x3f2   :  { %10636 = vmatpush1.bf16.msra.mxu0 %v14305_v26  ;;  %v533_v26 = vld [vmem:[#allocation2 + $0xd50] sm:$0xff] }
 0x3f3   :  { %10646 = vmatprep.subr.bf16.mxu0 %v14314_v30  ;;  %11048 = vmatmul.mubr.bf16.vlgmr.msra.gmra.mrb[8].mxu1 %v16821_v59  ;;  %v14075_v59 = vcombine.low %v254_v47, %v258_v48  ;;  %v14091_v30 = vcombine.low %v270_v6, %v274_v7  ;;  %v14354_v36 = vcombine.high %v533_v26, %v537_v29  ;;  %v545_v47 = vld [vmem:[#allocation2 + $0xdb0] sm:$0xff] }
 0x3f4   :  { %11057 = vmatpush1.bf16.msra.mxu1 %v14059_v39  ;;  %11088 = vmatprep.mubr.bf16.mxu1 %v16811_v13  ;;  %v17001_v13 = vsub.s32 0, %v16789_v43  ;;  %v286_v39 = vld [vmem:[#allocation2 + $0x598] sm:$0xff]  ;;  %v14099_v48 = vcombine.low %v278_v24, %v282_v46  ;;  %v14353_v52 = vcombine.low %v533_v26, %v537_v29  ;;  %v14369_v24 = vcombine.low %v549_v0, %v553_v1 }
 0x3f5   :  { %10638 = vmatmul.mubr.bf16.vlgmr.msra.gmra.mrb[4].mxu0 %v16838_v49  ;;  %11058 = vmatprep.subr.bf16.mxu1 %v14068_v41  ;;  %v1652_v41 = vrot.slane %v1643_v25, %v17004_v12  ;;  %v310_v26 = vld [vmem:[#allocation2 + $0x658] sm:$0xff] }
 0x3f6   :  { %10647 = vmatpush1.bf16.msra.mxu0 %v14313_v40  ;;  %10678 = vmatprep.mubr.bf16.mxu0 %v16842_v58  ;;  %v1648_v32 = vrot.slane %v1643_v25, %v17001_v13  ;;  %v290_v40 = vld [vmem:[#allocation2 + $0x5b8] sm:$0xff] }
 0x3f7   :  { %10648 = vmatprep.subr.bf16.mxu0 %v14322_v44  ;;  %v541_v44 = vld [vmem:[#allocation2 + $0xd90] sm:$0xff]  ;;  %v14108_v54 = vcombine.high %v286_v39, %v290_v40  ;;  %v9576_v60 = vadd.f32 %v16884_v37, %v1652_v41  ;;  %v306_v37 = vld [vmem:[#allocation2 + $0x638] sm:$0xff] }
 0x3f8   :  { %11059 = vmatpush1.bf16.msra.mxu1 %v14067_v62  ;;  %v9574_v62 = vadd.f32 %v16882_v33, %v1648_v32  ;;  %v14361_v7 = vcombine.low %v541_v44, %v545_v47  ;;  %v314_v29 = vld [vmem:[#allocation2 + $0x678] sm:$0xff] }
 0x3f9   :  { %11060 = vmatprep.subr.bf16.mxu1 %v14076_v57  ;;  %v294_v57 = vld [vmem:[#allocation2 + $0x5d8] sm:$0xff] }
 0x3fa   :  { %10649 = vmatpush1.bf16.msra.mxu0 %v14321_v55  ;;  %v14362_v55 = vcombine.high %v541_v44, %v545_v47  ;;  %v322_v41 = vld [vmem:[#allocation2 + $0x6b8] sm:$0xff]  ;;  %v573_v44 = vld [vmem:[#allocation2 + $0xe90] sm:$0xff] }
 0x3fb   :  { %10650 = vmatprep.subr.bf16.mxu0 %v14330_v18  ;;  %v298_v18 = vld [vmem:[#allocation2 + $0x5f8] sm:$0xff]  ;;  %v577_v47 = vld [vmem:[#allocation2 + $0xeb0] sm:$0xff] }
 0x3fc   :  { %11061 = vmatpush1.bf16.msra.mxu1 %v14075_v59  ;;  %v14116_v33 = vcombine.high %v294_v57, %v298_v18  ;;  %v14393_v0 = vcombine.low %v573_v44, %v577_v47 }
 0x3fd   :  { %11062 = vmatprep.subr.bf16.mxu1 %v14084_v3  ;;  %v14107_v3 = vcombine.low %v286_v39, %v290_v40  ;;  %v318_v40 = vld [vmem:[#allocation2 + $0x698] sm:$0xff] }
 0x3fe   :  { %10651 = vmatpush1.bf16.msra.mxu0 %v14329_v2 }
 0x3ff   :  { %10652 = vmatprep.subr.bf16.mxu0 %v14338_v4 }
 0x400   :  { %11063 = vmatpush1.bf16.msra.mxu1 %v14083_v10  ;;  %v302_v10 = vld [vmem:[#allocation2 + $0x618] sm:$0xff] }
 0x401   :  { %11064 = vmatprep.subr.bf16.mxu1 %v14092_v15  ;;  %v561_v15 = vld [vmem:[#allocation2 + $0xe30] sm:$0xff]  ;;  %v14124_v46 = vcombine.high %v302_v10, %v306_v37 }
 0x402   :  { %10653 = vmatpush1.bf16.msra.mxu0 %v14337_v14  ;;  %v557_v14 = vld [vmem:[#allocation2 + $0xe10] sm:$0xff] }
 0x403   :  { %10654 = vmatprep.subr.bf16.mxu0 %v14346_v17  ;;  %v14115_v17 = vcombine.low %v294_v57, %v298_v18  ;;  %v14378_v25 = vcombine.high %v557_v14, %v561_v15  ;;  %v14377_v32 = vcombine.low %v557_v14, %v561_v15  ;;  %v330_v57 = vld [vmem:[#allocation2 + $0x6f8] sm:$0xff]  ;;  %v581_v18 = vld [vmem:[#allocation2 + $0xed0] sm:$0xff] }
 0x404   :  { %11065 = vmatpush1.bf16.msra.mxu1 %v14091_v30  ;;  %v565_v30 = vld [vmem:[#allocation2 + $0xe50] sm:$0xff]  ;;  %v342_v14 = vld [vmem:[#allocation2 + $0x758] sm:$0xff] }
 0x405   :  { %11066 = vmatprep.subr.bf16.mxu1 %v14100_v63  ;;  %v14123_v63 = vcombine.low %v302_v10, %v306_v37  ;;  %v346_v15 = vld [vmem:[#allocation2 + $0x778] sm:$0xff] }
 0x406   :  { %10655 = vmatpush1.bf16.msra.mxu0 %v14345_v56  ;;  %v569_v56 = vld [vmem:[#allocation2 + $0xe70] sm:$0xff] }
 0x407   :  { %10656 = vmatprep.subr.bf16.mxu0 %v14354_v36  ;;  %v14132_v36 = vcombine.high %v310_v26, %v314_v29  ;;  %v14386_v39 = vcombine.high %v565_v30, %v569_v56 }
 0x408   :  { %v10024_v9 = vpop.f32.mrb[0].mxu0  ;;  %11067 = vmatpush1.bf16.msra.mxu1 %v14099_v48  ;;  %v14131_v48 = vcombine.low %v310_v26, %v314_v29  ;;  %v14164_v26 = vcombine.high %v342_v14, %v346_v15 }
 0x409   :  { %v17010_v59 = vadd.f32 %v10024_v9, %v9574_v62  ;;  %v10026_v2 = vpop.f32.mrb[1].mxu0  ;;  %11068 = vmatprep.subr.bf16.mxu1 %v14108_v54  ;;  %v14140_v54 = vcombine.high %v318_v40, %v322_v41  ;;  %v14394_v62 = vcombine.high %v573_v44, %v577_v47  ;;  %v14139_v9 = vcombine.low %v318_v40, %v322_v41  ;;  %v358_v44 = vld [vmem:[#allocation2 + $0x7d8] sm:$0xff] }
 0x40a   :  { %v17012_v4 = vadd.f32 %v10026_v2, %v9576_v60  ;;  %v10028_v6 = vpop.f32.mrb[2].mxu0  ;;  %10657 = vmatpush1.bf16.msra.mxu0 %v14353_v52  ;;  %v14385_v52 = vcombine.low %v565_v30, %v569_v56  ;;  %v585_v60 = vld [vmem:[#allocation2 + $0xef0] sm:$0xff]  ;;  %v350_v30 = vld [vmem:[#allocation2 + $0x798] sm:$0xff] }
 0x40b   :  { %v10029_v53 = vpop.f32.mrb[3].mxu0  ;;  %10658 = vmatprep.subr.bf16.mxu0 %v14362_v55  ;;  %v326_v55 = vld [vmem:[#allocation2 + $0x6d8] sm:$0xff]  ;;  %v14402_v2 = vcombine.high %v581_v18, %v585_v60 }
 0x40c   :  { %11069 = vmatpush1.bf16.msra.mxu1 %v14107_v3  ;;  %v14148_v1 = vcombine.high %v326_v55, %v330_v57  ;;  %v334_v3 = vld [vmem:[#allocation2 + $0x718] sm:$0xff]  ;;  %v14147_v53 = vcombine.low %v326_v55, %v330_v57 }
 0x40d   :  { %11070 = vmatprep.subr.bf16.mxu1 %v14116_v33  ;;  %v338_v6 = vld [vmem:[#allocation2 + $0x738] sm:$0xff]  ;;  %v593_v33 = vld [vmem:[#allocation2 + $0xf30] sm:$0xff] }
 0x40e   :  { %10659 = vmatpush1.bf16.msra.mxu0 %v14361_v7  ;;  %v589_v7 = vld [vmem:[#allocation2 + $0xf10] sm:$0xff]  ;;  %v14156_v10 = vcombine.high %v334_v3, %v338_v6  ;;  %v354_v56 = vld [vmem:[#allocation2 + $0x7b8] sm:$0xff] }
 0x40f   :  { %10660 = vmatprep.subr.bf16.mxu0 %v14370_v51  ;;  %v14401_v51 = vcombine.low %v581_v18, %v585_v60  ;;  %v14410_v37 = vcombine.high %v589_v7, %v593_v33  ;;  %v14172_v40 = vcombine.high %v350_v30, %v354_v56  ;;  %v362_v47 = vld [vmem:[#allocation2 + $0x7f8] sm:$0xff] }
 0x410   :  { %11071 = vmatpush1.bf16.msra.mxu1 %v14115_v17  ;;  %v597_v17 = vld [vmem:[#allocation2 + $0xf50] sm:$0xff]  ;;  %v14180_v55 = vcombine.high %v358_v44, %v362_v47  ;;  %v366_v18 = vld [vmem:[#allocation2 + $0x818] sm:$0xff] }
 0x411   :  { %11072 = vmatprep.subr.bf16.mxu1 %v14124_v46  ;;  %v14155_v46 = vcombine.low %v334_v3, %v338_v6  ;;  %v370_v60 = vld [vmem:[#allocation2 + $0x838] sm:$0xff] }
 0x412   :  { %10661 = vmatpush1.bf16.msra.mxu0 %v14369_v24  ;;  %v601_v24 = vld [vmem:[#allocation2 + $0xf70] sm:$0xff]  ;;  %v14188_v3 = vcombine.high %v366_v18, %v370_v60 }
 0x413   :  { %10662 = vmatprep.subr.bf16.mxu0 %v14378_v25  ;;  %v14409_v25 = vcombine.low %v589_v7, %v593_v33  ;;  %v14418_v29 = vcombine.high %v597_v17, %v601_v24  ;;  %v374_v7 = vld [vmem:[#allocation2 + $0x858] sm:$0xff] }
 0x414   :  { %11073 = vmatpush1.bf16.msra.mxu1 %v14123_v63  ;;  %v605_v63 = vld [vmem:[#allocation2 + $0xf90] sm:$0xff]  ;;  %v378_v33 = vld [vmem:[#allocation2 + $0x878] sm:$0xff] }
 0x415   :  { %11074 = vmatprep.subr.bf16.mxu1 %v14132_v36  ;;  %v14163_v36 = vcombine.low %v342_v14, %v346_v15  ;;  %v14196_v14 = vcombine.high %v374_v7, %v378_v33 }
 0x416   :  { %10663 = vmatpush1.bf16.msra.mxu0 %v14377_v32  ;;  %v609_v32 = vld [vmem:[#allocation2 + $0xfb0] sm:$0xff] }
 0x417   :  { %10664 = vmatprep.subr.bf16.mxu0 %v14386_v39  ;;  %v14417_v39 = vcombine.low %v597_v17, %v601_v24  ;;  %v14426_v41 = vcombine.high %v605_v63, %v609_v32  ;;  %v382_v17 = vld [vmem:[#allocation2 + $0x898] sm:$0xff] }
 0x418   :  { %11075 = vmatpush1.bf16.msra.mxu1 %v14131_v48  ;;  %v613_v48 = vld [vmem:[#allocation2 + $0xfd0] sm:$0xff]  ;;  %v386_v24 = vld [vmem:[#allocation2 + $0x8b8] sm:$0xff] }
 0x419   :  { %11076 = vmatprep.subr.bf16.mxu1 %v14140_v54  ;;  %v14171_v54 = vcombine.low %v350_v30, %v354_v56  ;;  %v14204_v30 = vcombine.high %v382_v17, %v386_v24 }
 0x41a   :  { %10665 = vmatpush1.bf16.msra.mxu0 %v14385_v52  ;;  %v617_v52 = vld [vmem:[#allocation2 + $0xff0] sm:$0xff] }
 0x41b   :  { %10666 = vmatprep.subr.bf16.mxu0 %v14394_v62  ;;  %v14425_v62 = vcombine.low %v605_v63, %v609_v32  ;;  %v14434_v57 = vcombine.high %v613_v48, %v617_v52  ;;  %v390_v63 = vld [vmem:[#allocation2 + $0x8d8] sm:$0xff] }
 0x41c   :  { %11077 = vmatpush1.bf16.msra.mxu1 %v14139_v9  ;;  %v621_v9 = vld [vmem:[#allocation2 + $0x1010] sm:$0xff]  ;;  %v394_v32 = vld [vmem:[#allocation2 + $0x8f8] sm:$0xff] }
 0x41d   :  { %11078 = vmatprep.subr.bf16.mxu1 %v14148_v1  ;;  %v14179_v1 = vcombine.low %v358_v44, %v362_v47  ;;  %v398_v47 = vld [vmem:[#allocation2 + $0x918] sm:$0xff] }
 0x41e   :  { %10667 = vmatpush1.bf16.msra.mxu0 %v14393_v0  ;;  %v625_v0 = vld [vmem:[#allocation2 + $0x1030] sm:$0xff] }
 0x41f   :  { %10668 = vmatprep.subr.bf16.mxu0 %v14402_v2  ;;  %v14433_v2 = vcombine.low %v613_v48, %v617_v52  ;;  %v14442_v6 = vcombine.high %v621_v9, %v625_v0  ;;  %v402_v48 = vld [vmem:[#allocation2 + $0x938] sm:$0xff]  ;;  %v653_v52 = vld [vmem:[#allocation2 + $0x1110] sm:$0xff] }
 0x420   :  { %11079 = vmatpush1.bf16.msra.mxu1 %v14147_v53  ;;  %v629_v53 = vld [vmem:[#allocation2 + $0x1050] sm:$0xff] }
 0x421   :  { %11080 = vmatprep.subr.bf16.mxu1 %v14156_v10  ;;  %v14187_v10 = vcombine.low %v366_v18, %v370_v60  ;;  %v406_v18 = vld [vmem:[#allocation2 + $0x958] sm:$0xff] }
 0x422   :  { %10669 = vmatpush1.bf16.msra.mxu0 %v14401_v51  ;;  %v633_v51 = vld [vmem:[#allocation2 + $0x1070] sm:$0xff]  ;;  %v410_v60 = vld [vmem:[#allocation2 + $0x978] sm:$0xff] }
 0x423   :  { %10670 = vmatprep.subr.bf16.mxu0 %v14410_v37  ;;  %v14441_v37 = vcombine.low %v621_v9, %v625_v0  ;;  %v14450_v15 = vcombine.high %v629_v53, %v633_v51  ;;  %v661_v9 = vld [vmem:[#allocation2 + $0x1150] sm:$0xff] }
 0x424   :  { %11081 = vmatpush1.bf16.msra.mxu1 %v14155_v46  ;;  %v637_v46 = vld [vmem:[#allocation2 + $0x1090] sm:$0xff] }
 0x425   :  { %11082 = vmatprep.subr.bf16.mxu1 %v14164_v26  ;;  %v14195_v26 = vcombine.low %v374_v7, %v378_v33  ;;  %v665_v0 = vld [vmem:[#allocation2 + $0x1170] sm:$0xff]  ;;  %v414_v7 = vld [vmem:[#allocation2 + $0x998] sm:$0xff] }
 0x426   :  { %10671 = vmatpush1.bf16.msra.mxu0 %v14409_v25  ;;  %v641_v25 = vld [vmem:[#allocation2 + $0x10b0] sm:$0xff]  ;;  %v418_v33 = vld [vmem:[#allocation2 + $0x9b8] sm:$0xff] }
 0x427   :  { %10672 = vmatprep.subr.bf16.mxu0 %v14418_v29  ;;  %v14449_v29 = vcombine.low %v629_v53, %v633_v51  ;;  %v14458_v56 = vcombine.high %v637_v46, %v641_v25  ;;  %v669_v53 = vld [vmem:[#allocation2 + $0x1190] sm:$0xff] }
 0x428   :  { %11083 = vmatpush1.bf16.msra.mxu1 %v14163_v36  ;;  %v645_v36 = vld [vmem:[#allocation2 + $0x10d0] sm:$0xff] }
 0x429   :  { %11084 = vmatprep.subr.bf16.mxu1 %v14172_v40  ;;  %v14457_v40 = vcombine.low %v637_v46, %v641_v25  ;;  %v673_v51 = vld [vmem:[#allocation2 + $0x11b0] sm:$0xff] }
 0x42a   :  { %10673 = vmatpush1.bf16.msra.mxu0 %v14417_v39  ;;  %v649_v39 = vld [vmem:[#allocation2 + $0x10f0] sm:$0xff] }
 0x42b   :  { %10674 = vmatprep.subr.bf16.mxu0 %v14426_v41  ;;  %v14212_v41 = vcombine.high %v390_v63, %v394_v32  ;;  %v14466_v44 = vcombine.high %v645_v36, %v649_v39  ;;  %v677_v46 = vld [vmem:[#allocation2 + $0x11d0] sm:$0xff] }
 0x42c   :  { %11085 = vmatpush1.bf16.msra.mxu1 %v14171_v54  ;;  %v657_v54 = vld [vmem:[#allocation2 + $0x1130] sm:$0xff] }
 0x42d   :  { %11086 = vmatprep.subr.bf16.mxu1 %v14180_v55  ;;  %v14465_v55 = vcombine.low %v645_v36, %v649_v39  ;;  %v681_v25 = vld [vmem:[#allocation2 + $0x11f0] sm:$0xff] }
 0x42e   :  { %10675 = vmatpush1.bf16.msra.mxu0 %v14425_v62  ;;  %v14211_v62 = vcombine.low %v390_v63, %v394_v32  ;;  %v430_v63 = vld [vmem:[#allocation2 + $0xa18] sm:$0xff]  ;;  %v685_v36 = vld [vmem:[#allocation2 + $0x1210] sm:$0xff] }
 0x42f   :  { %10676 = vmatprep.subr.bf16.mxu0 %v14434_v57  ;;  %v14220_v57 = vcombine.high %v398_v47, %v402_v48  ;;  %v434_v32 = vld [vmem:[#allocation2 + $0xa38] sm:$0xff]  ;;  %v689_v39 = vld [vmem:[#allocation2 + $0x1230] sm:$0xff] }
 0x430   :  { %11087 = vmatpush1.bf16.msra.mxu1 %v14179_v1  ;;  %v14219_v1 = vcombine.low %v398_v47, %v402_v48  ;;  %v438_v47 = vld [vmem:[#allocation2 + $0xa58] sm:$0xff] }
 0x431   :  { %11097 = vmatprep.subr.bf16.mxu1 %v14188_v3  ;;  %v14228_v3 = vcombine.high %v406_v18, %v410_v60  ;;  %v442_v48 = vld [vmem:[#allocation2 + $0xa78] sm:$0xff] }
 0x432   :  { %10677 = vmatpush1.bf16.msra.mxu0 %v14433_v2  ;;  %v14473_v2 = vcombine.low %v653_v52, %v657_v54 }
 0x433   :  { %10687 = vmatprep.subr.bf16.mxu0 %v14442_v6  ;;  %11089 = vmatmul.mubr.bf16.vlgmr.msra.gmra.mrb[8].mxu1 %v16827_v31  ;;  %v14203_v31 = vcombine.low %v382_v17, %v386_v24  ;;  %v14482_v6 = vcombine.high %v661_v9, %v665_v0  ;;  %v422_v17 = vld [vmem:[#allocation2 + $0x9d8] sm:$0xff] }
 0x434   :  { %11098 = vmatpush1.bf16.msra.mxu1 %v14187_v10  ;;  %11129 = vmatprep.mubr.bf16.mxu1 %v16830_v38  ;;  %v14474_v38 = vcombine.high %v653_v52, %v657_v54  ;;  %v14227_v10 = vcombine.low %v406_v18, %v410_v60  ;;  %v426_v24 = vld [vmem:[#allocation2 + $0x9f8] sm:$0xff]  ;;  %v693_v52 = vld [vmem:[#allocation2 + $0x1250] sm:$0xff] }
 0x435   :  { %10679 = vmatmul.mubr.bf16.vlgmr.msra.gmra.mrb[4].mxu0 %v16861_v11  ;;  %11099 = vmatprep.subr.bf16.mxu1 %v14196_v14  ;;  %v14236_v14 = vcombine.high %v414_v7, %v418_v33  ;;  %v697_v54 = vld [vmem:[#allocation2 + $0x1270] sm:$0xff]  ;;  %v446_v18 = vld [vmem:[#allocation2 + $0xa98] sm:$0xff] }
 0x436   :  { %10688 = vmatpush1.bf16.msra.mxu0 %v14441_v37  ;;  %10719 = vmatprep.mubr.bf16.mxu0 %v16864_v21  ;;  %v14481_v37 = vcombine.low %v661_v9, %v665_v0  ;;  %v450_v60 = vld [vmem:[#allocation2 + $0xab8] sm:$0xff]  ;;  %v701_v9 = vld [vmem:[#allocation2 + $0x1290] sm:$0xff] }
 0x437   :  { %10689 = vmatprep.subr.bf16.mxu0 %v14450_v15  ;;  %v14490_v15 = vcombine.high %v669_v53, %v673_v51  ;;  %v705_v0 = vld [vmem:[#allocation2 + $0x12b0] sm:$0xff] }
 0x438   :  { %11100 = vmatpush1.bf16.msra.mxu1 %v14195_v26  ;;  %v14235_v26 = vcombine.low %v414_v7, %v418_v33  ;;  %v454_v7 = vld [vmem:[#allocation2 + $0xad8] sm:$0xff] }
 0x439   :  { %11101 = vmatprep.subr.bf16.mxu1 %v14204_v30  ;;  %v14244_v30 = vcombine.high %v422_v17, %v426_v24  ;;  %v458_v33 = vld [vmem:[#allocation2 + $0xaf8] sm:$0xff] }
 0x43a   :  { %10690 = vmatpush1.bf16.msra.mxu0 %v14449_v29  ;;  %v14489_v29 = vcombine.low %v669_v53, %v673_v51  ;;  %v709_v53 = vld [vmem:[#allocation2 + $0x12d0] sm:$0xff] }
 0x43b   :  { %10691 = vmatprep.subr.bf16.mxu0 %v14458_v56  ;;  %v14498_v56 = vcombine.high %v677_v46, %v681_v25  ;;  %v713_v51 = vld [vmem:[#allocation2 + $0x12f0] sm:$0xff] }
 0x43c   :  { %11102 = vmatpush1.bf16.msra.mxu1 %v14203_v31  ;;  %v14243_v31 = vcombine.low %v422_v17, %v426_v24  ;;  %v462_v17 = vld [vmem:[#allocation2 + $0xb18] sm:$0xff] }
 0x43d   :  { %11103 = vmatprep.subr.bf16.mxu1 %v14212_v41  ;;  %v14252_v41 = vcombine.high %v430_v63, %v434_v32  ;;  %v466_v24 = vld [vmem:[#allocation2 + $0xb38] sm:$0xff] }
 0x43e   :  { %10692 = vmatpush1.bf16.msra.mxu0 %v14457_v40  ;;  %v14497_v40 = vcombine.low %v677_v46, %v681_v25  ;;  %v717_v46 = vld [vmem:[#allocation2 + $0x1310] sm:$0xff] }
 0x43f   :  { %10693 = vmatprep.subr.bf16.mxu0 %v14466_v44  ;;  %v14506_v44 = vcombine.high %v685_v36, %v689_v39  ;;  %v721_v25 = vld [vmem:[#allocation2 + $0x1330] sm:$0xff] }
 0x440   :  { %11104 = vmatpush1.bf16.msra.mxu1 %v14211_v62  ;;  %v14251_v62 = vcombine.low %v430_v63, %v434_v32  ;;  %v470_v63 = vld [vmem:[#allocation2 + $0xb58] sm:$0xff] }
 0x441   :  { %11105 = vmatprep.subr.bf16.mxu1 %v14220_v57  ;;  %v14260_v57 = vcombine.high %v438_v47, %v442_v48  ;;  %v474_v32 = vld [vmem:[#allocation2 + $0xb78] sm:$0xff] }
 0x442   :  { %10694 = vmatpush1.bf16.msra.mxu0 %v14465_v55  ;;  %v14505_v55 = vcombine.low %v685_v36, %v689_v39  ;;  %v725_v36 = vld [vmem:[#allocation2 + $0x1350] sm:$0xff] }
 0x443   :  { %10695 = vmatprep.subr.bf16.mxu0 %v14474_v38  ;;  %v14514_v38 = vcombine.high %v693_v52, %v697_v54  ;;  %v729_v39 = vld [vmem:[#allocation2 + $0x1370] sm:$0xff] }
 0x444   :  { %11106 = vmatpush1.bf16.msra.mxu1 %v14219_v1  ;;  %v14259_v1 = vcombine.low %v438_v47, %v442_v48  ;;  %v478_v47 = vld [vmem:[#allocation2 + $0xb98] sm:$0xff] }
 0x445   :  { %11107 = vmatprep.subr.bf16.mxu1 %v14228_v3  ;;  %v14268_v3 = vcombine.high %v446_v18, %v450_v60  ;;  %v482_v48 = vld [vmem:[#allocation2 + $0xbb8] sm:$0xff] }
 0x446   :  { %10696 = vmatpush1.bf16.msra.mxu0 %v14473_v2  ;;  %v14513_v2 = vcombine.low %v693_v52, %v697_v54  ;;  %v733_v52 = vld [vmem:[#allocation2 + $0x1390] sm:$0xff] }
 0x447   :  { %10697 = vmatprep.subr.bf16.mxu0 %v14482_v6  ;;  %v14522_v6 = vcombine.high %v701_v9, %v705_v0  ;;  %v737_v54 = vld [vmem:[#allocation2 + $0x13b0] sm:$0xff] }
 0x448   :  { %11108 = vmatpush1.bf16.msra.mxu1 %v14227_v10  ;;  %v14267_v10 = vcombine.low %v446_v18, %v450_v60  ;;  %v486_v18 = vld [vmem:[#allocation2 + $0xbd8] sm:$0xff] }
 0x449   :  { %11109 = vmatprep.subr.bf16.mxu1 %v14236_v14  ;;  %v14276_v14 = vcombine.high %v454_v7, %v458_v33  ;;  %v490_v60 = vld [vmem:[#allocation2 + $0xbf8] sm:$0xff] }
 0x44a   :  { %10698 = vmatpush1.bf16.msra.mxu0 %v14481_v37  ;;  %v14521_v37 = vcombine.low %v701_v9, %v705_v0  ;;  %v741_v9 = vld [vmem:[#allocation2 + $0x13d0] sm:$0xff] }
 0x44b   :  { %10699 = vmatprep.subr.bf16.mxu0 %v14490_v15  ;;  %v14530_v15 = vcombine.high %v709_v53, %v713_v51  ;;  %v745_v0 = vld [vmem:[#allocation2 + $0x13f0] sm:$0xff] }
 0x44c   :  { %11110 = vmatpush1.bf16.msra.mxu1 %v14235_v26  ;;  %v14275_v26 = vcombine.low %v454_v7, %v458_v33  ;;  %v494_v7 = vld [vmem:[#allocation2 + $0xc18] sm:$0xff] }
 0x44d   :  { %11111 = vmatprep.subr.bf16.mxu1 %v14244_v30  ;;  %v14284_v30 = vcombine.high %v462_v17, %v466_v24  ;;  %v498_v33 = vld [vmem:[#allocation2 + $0xc38] sm:$0xff] }
 0x44e   :  { %10700 = vmatpush1.bf16.msra.mxu0 %v14489_v29  ;;  %v14529_v29 = vcombine.low %v709_v53, %v713_v51  ;;  %v749_v53 = vld [vmem:[#allocation2 + $0x1410] sm:$0xff] }
 0x44f   :  { %10701 = vmatprep.subr.bf16.mxu0 %v14498_v56  ;;  %v14538_v56 = vcombine.high %v717_v46, %v721_v25  ;;  %v753_v51 = vld [vmem:[#allocation2 + $0x1430] sm:$0xff] }
 0x450   :  { %11112 = vmatpush1.bf16.msra.mxu1 %v14243_v31  ;;  %v14283_v31 = vcombine.low %v462_v17, %v466_v24  ;;  %v502_v17 = vld [vmem:[#allocation2 + $0xc58] sm:$0xff] }
 0x451   :  { %11113 = vmatprep.subr.bf16.mxu1 %v14252_v41  ;;  %v14292_v41 = vcombine.high %v470_v63, %v474_v32  ;;  %v506_v24 = vld [vmem:[#allocation2 + $0xc78] sm:$0xff] }
 0x452   :  { %10702 = vmatpush1.bf16.msra.mxu0 %v14497_v40  ;;  %v14537_v40 = vcombine.low %v717_v46, %v721_v25  ;;  %v757_v46 = vld [vmem:[#allocation2 + $0x1450] sm:$0xff] }
 0x453   :  { %10703 = vmatprep.subr.bf16.mxu0 %v14506_v44  ;;  %v14546_v44 = vcombine.high %v725_v36, %v729_v39  ;;  %v761_v25 = vld [vmem:[#allocation2 + $0x1470] sm:$0xff] }
 0x454   :  { %11114 = vmatpush1.bf16.msra.mxu1 %v14251_v62  ;;  %v14291_v62 = vcombine.low %v470_v63, %v474_v32  ;;  %v510_v63 = vld [vmem:[#allocation2 + $0xc98] sm:$0xff] }
 0x455   :  { %11115 = vmatprep.subr.bf16.mxu1 %v14260_v57  ;;  %v14300_v57 = vcombine.high %v478_v47, %v482_v48  ;;  %v514_v32 = vld [vmem:[#allocation2 + $0xcb8] sm:$0xff] }
 0x456   :  { %10704 = vmatpush1.bf16.msra.mxu0 %v14505_v55  ;;  %v14545_v55 = vcombine.low %v725_v36, %v729_v39  ;;  %v765_v36 = vld [vmem:[#allocation2 + $0x1490] sm:$0xff] }
 0x457   :  { %10705 = vmatprep.subr.bf16.mxu0 %v14514_v38  ;;  %v14554_v38 = vcombine.high %v733_v52, %v737_v54  ;;  %v769_v39 = vld [vmem:[#allocation2 + $0x14b0] sm:$0xff] }
 0x458   :  { %11116 = vmatpush1.bf16.msra.mxu1 %v14259_v1  ;;  %v14299_v1 = vcombine.low %v478_v47, %v482_v48  ;;  %v518_v47 = vld [vmem:[#allocation2 + $0xcd8] sm:$0xff] }
 0x459   :  { %11117 = vmatprep.subr.bf16.mxu1 %v14268_v3  ;;  %v14308_v3 = vcombine.high %v486_v18, %v490_v60  ;;  %v522_v48 = vld [vmem:[#allocation2 + $0xcf8] sm:$0xff] }
 0x45a   :  { %10706 = vmatpush1.bf16.msra.mxu0 %v14513_v2  ;;  %v14553_v2 = vcombine.low %v733_v52, %v737_v54  ;;  %v773_v52 = vld [vmem:[#allocation2 + $0x14d0] sm:$0xff] }
 0x45b   :  { %10707 = vmatprep.subr.bf16.mxu0 %v14522_v6  ;;  %v14562_v6 = vcombine.high %v741_v9, %v745_v0  ;;  %v777_v54 = vld [vmem:[#allocation2 + $0x14f0] sm:$0xff] }
 0x45c   :  { %11118 = vmatpush1.bf16.msra.mxu1 %v14267_v10  ;;  %v14307_v10 = vcombine.low %v486_v18, %v490_v60  ;;  %v530_v18 = vld [vmem:[#allocation2 + $0xd38] sm:$0xff]  ;;  %v781_v60 = vld [vmem:[#allocation2 + $0x1510] sm:$0xff] }
 0x45d   :  { %11119 = vmatprep.subr.bf16.mxu1 %v14276_v14  ;;  %v14316_v14 = vcombine.high %v494_v7, %v498_v33 }
 0x45e   :  { %10708 = vmatpush1.bf16.msra.mxu0 %v14521_v37  ;;  %v14561_v37 = vcombine.low %v741_v9, %v745_v0  ;;  %v785_v9 = vld [vmem:[#allocation2 + $0x1530] sm:$0xff]  ;;  %v14339_v0 = vcombine.low %v518_v47, %v522_v48 }
 0x45f   :  { %10709 = vmatprep.subr.bf16.mxu0 %v14530_v15  ;;  %v14570_v15 = vcombine.high %v749_v53, %v753_v51 }
 0x460   :  { %11120 = vmatpush1.bf16.msra.mxu1 %v14275_v26  ;;  %v14315_v26 = vcombine.low %v494_v7, %v498_v33  ;;  %v789_v7 = vld [vmem:[#allocation2 + $0x1550] sm:$0xff] }
 0x461   :  { %11121 = vmatprep.subr.bf16.mxu1 %v14284_v30  ;;  %v14324_v30 = vcombine.high %v502_v17, %v506_v24  ;;  %v793_v33 = vld [vmem:[#allocation2 + $0x1570] sm:$0xff] }
 0x462   :  { %10710 = vmatpush1.bf16.msra.mxu0 %v14529_v29  ;;  %v14569_v29 = vcombine.low %v749_v53, %v753_v51  ;;  %v14601_v51 = vcombine.low %v781_v60, %v785_v9 }
 0x463   :  { %10711 = vmatprep.subr.bf16.mxu0 %v14538_v56  ;;  %v14578_v56 = vcombine.high %v757_v46, %v761_v25 }
 0x464   :  { %11122 = vmatpush1.bf16.msra.mxu1 %v14283_v31  ;;  %v14323_v31 = vcombine.low %v502_v17, %v506_v24  ;;  %v797_v17 = vld [vmem:[#allocation2 + $0x1590] sm:$0xff] }
 0x465   :  { %11123 = vmatprep.subr.bf16.mxu1 %v14292_v41  ;;  %v14332_v41 = vcombine.high %v510_v63, %v514_v32  ;;  %v801_v24 = vld [vmem:[#allocation2 + $0x15b0] sm:$0xff] }
 0x466   :  { %10712 = vmatpush1.bf16.msra.mxu0 %v14537_v40  ;;  %v14577_v40 = vcombine.low %v757_v46, %v761_v25  ;;  %v14609_v25 = vcombine.low %v789_v7, %v793_v33 }
 0x467   :  { %10713 = vmatprep.subr.bf16.mxu0 %v14546_v44  ;;  %v14586_v44 = vcombine.high %v765_v36, %v769_v39 }
 0x468   :  { %11124 = vmatpush1.bf16.msra.mxu1 %v14291_v62  ;;  %v14585_v62 = vcombine.low %v765_v36, %v769_v39  ;;  %v805_v36 = vld [vmem:[#allocation2 + $0x15d0] sm:$0xff] }
 0x469   :  { %11125 = vmatprep.subr.bf16.mxu1 %v14300_v57  ;;  %v14594_v57 = vcombine.high %v773_v52, %v777_v54  ;;  %v809_v39 = vld [vmem:[#allocation2 + $0x15f0] sm:$0xff] }
 0x46a   :  { %10714 = vmatpush1.bf16.msra.mxu0 %v14545_v55  ;;  %v14340_v55 = vcombine.high %v518_v47, %v522_v48  ;;  %v14626_v48 = vcombine.high %v805_v36, %v809_v39 }
 0x46b   :  { %10715 = vmatprep.subr.bf16.mxu0 %v14554_v38  ;;  %v526_v38 = vld [vmem:[#allocation2 + $0xd18] sm:$0xff] }
 0x46c   :  { %11126 = vmatpush1.bf16.msra.mxu1 %v14299_v1  ;;  %v14593_v1 = vcombine.low %v773_v52, %v777_v54  ;;  %v14347_v53 = vcombine.low %v526_v38, %v530_v18  ;;  %v558_v52 = vld [vmem:[#allocation2 + $0xe18] sm:$0xff] }
 0x46d   :  { %11127 = vmatprep.subr.bf16.mxu1 %v14308_v3  ;;  %v534_v3 = vld [vmem:[#allocation2 + $0xd58] sm:$0xff] }
 0x46e   :  { %10716 = vmatpush1.bf16.msra.mxu0 %v14553_v2  ;;  %v14348_v2 = vcombine.high %v526_v38, %v530_v18  ;;  %v562_v54 = vld [vmem:[#allocation2 + $0xe38] sm:$0xff] }
 0x46f   :  { %10717 = vmatprep.subr.bf16.mxu0 %v14562_v6  ;;  %v538_v6 = vld [vmem:[#allocation2 + $0xd78] sm:$0xff]  ;;  %v14380_v38 = vcombine.high %v558_v52, %v562_v54 }
 0x470   :  { %11128 = vmatpush1.bf16.msra.mxu1 %v14307_v10  ;;  %v14356_v10 = vcombine.high %v534_v3, %v538_v6  ;;  %v14355_v46 = vcombine.low %v534_v3, %v538_v6 }
 0x471   :  { %11138 = vmatprep.subr.bf16.mxu1 %v14316_v14  ;;  %v542_v14 = vld [vmem:[#allocation2 + $0xd98] sm:$0xff] }
 0x472   :  { %10718 = vmatpush1.bf16.msra.mxu0 %v14561_v37  ;;  %v14610_v37 = vcombine.high %v789_v7, %v793_v33  ;;  %v574_v7 = vld [vmem:[#allocation2 + $0xe98] sm:$0xff] }
 0x473   :  { %10728 = vmatprep.subr.bf16.mxu0 %v14570_v15  ;;  %11130 = vmatmul.mubr.bf16.vlgmr.msra.gmra.mrb[8].mxu1 %v16838_v49  ;;  %v14331_v49 = vcombine.low %v510_v63, %v514_v32  ;;  %v546_v15 = vld [vmem:[#allocation2 + $0xdb8] sm:$0xff] }
 0x474   :  { %11139 = vmatpush1.bf16.msra.mxu1 %v14315_v26  ;;  %11170 = vmatprep.mubr.bf16.mxu1 %v16842_v58  ;;  %v14602_v58 = vcombine.high %v781_v60, %v785_v9  ;;  %v14364_v26 = vcombine.high %v542_v14, %v546_v15  ;;  %v554_v63 = vld [vmem:[#allocation2 + $0xdf8] sm:$0xff] }
 0x475   :  { %10720 = vmatmul.mubr.bf16.vlgmr.msra.gmra.mrb[4].mxu0 %v16872_v42  ;;  %11140 = vmatprep.subr.bf16.mxu1 %v14324_v30  ;;  %v14618_v30 = vcombine.high %v797_v17, %v801_v24  ;;  %v566_v60 = vld [vmem:[#allocation2 + $0xe58] sm:$0xff] }
 0x476   :  { %10729 = vmatpush1.bf16.msra.mxu0 %v14569_v29  ;;  %10760 = vmatprep.mubr.bf16.mxu0 %v16876_v50  ;;  %v570_v9 = vld [vmem:[#allocation2 + $0xe78] sm:$0xff] }
 0x477   :  { %10730 = vmatprep.subr.bf16.mxu0 %v14578_v56  ;;  %v550_v56 = vld [vmem:[#allocation2 + $0xdd8] sm:$0xff]  ;;  %v14388_v3 = vcombine.high %v566_v60, %v570_v9 }
 0x478   :  { %11141 = vmatpush1.bf16.msra.mxu1 %v14323_v31  ;;  %v14372_v47 = vcombine.high %v550_v56, %v554_v63  ;;  %v578_v33 = vld [vmem:[#allocation2 + $0xeb8] sm:$0xff] }
 0x479   :  { %11142 = vmatprep.subr.bf16.mxu1 %v14332_v41 }
 0x47a   :  { %10731 = vmatpush1.bf16.msra.mxu0 %v14577_v40  ;;  %v14363_v40 = vcombine.low %v542_v14, %v546_v15  ;;  %v14396_v14 = vcombine.high %v574_v7, %v578_v33 }
 0x47b   :  { %10732 = vmatprep.subr.bf16.mxu0 %v14586_v44  ;;  %v14617_v44 = vcombine.low %v797_v17, %v801_v24  ;;  %v582_v17 = vld [vmem:[#allocation2 + $0xed8] sm:$0xff] }
 0x47c   :  { %11143 = vmatpush1.bf16.msra.mxu1 %v14331_v49  ;;  %v813_v49 = vld [vmem:[#allocation2 + $0x1610] sm:$0xff]  ;;  %v586_v24 = vld [vmem:[#allocation2 + $0xef8] sm:$0xff] }
 0x47d   :  { %11144 = vmatprep.subr.bf16.mxu1 %v14340_v55  ;;  %v14371_v55 = vcombine.low %v550_v56, %v554_v63  ;;  %v14404_v56 = vcombine.high %v582_v17, %v586_v24 }
 0x47e   :  { %10733 = vmatpush1.bf16.msra.mxu0 %v14585_v62  ;;  %v817_v62 = vld [vmem:[#allocation2 + $0x1630] sm:$0xff] }
 0x47f   :  { %10734 = vmatprep.subr.bf16.mxu0 %v14594_v57  ;;  %v14625_v57 = vcombine.low %v805_v36, %v809_v39  ;;  %v14634_v18 = vcombine.high %v813_v49, %v817_v62  ;;  %v590_v36 = vld [vmem:[#allocation2 + $0xf18] sm:$0xff] }
 0x480   :  { %11145 = vmatpush1.bf16.msra.mxu1 %v14339_v0  ;;  %v821_v0 = vld [vmem:[#allocation2 + $0x1650] sm:$0xff]  ;;  %v594_v39 = vld [vmem:[#allocation2 + $0xf38] sm:$0xff] }
 0x481   :  { %11146 = vmatprep.subr.bf16.mxu1 %v14348_v2  ;;  %v14379_v2 = vcombine.low %v558_v52, %v562_v54  ;;  %v598_v52 = vld [vmem:[#allocation2 + $0xf58] sm:$0xff] }
 0x482   :  { %10735 = vmatpush1.bf16.msra.mxu0 %v14593_v1  ;;  %v825_v1 = vld [vmem:[#allocation2 + $0x1670] sm:$0xff]  ;;  %v602_v54 = vld [vmem:[#allocation2 + $0xf78] sm:$0xff] }
 0x483   :  { %10736 = vmatprep.subr.bf16.mxu0 %v14602_v58  ;;  %v14633_v58 = vcombine.low %v813_v49, %v817_v62  ;;  %v14642_v6 = vcombine.high %v821_v0, %v825_v1  ;;  %v853_v49 = vld [vmem:[#allocation2 + $0x1750] sm:$0xff] }
 0x484   :  { %11147 = vmatpush1.bf16.msra.mxu1 %v14347_v53  ;;  %v829_v53 = vld [vmem:[#allocation2 + $0x1690] sm:$0xff] }
 0x485   :  { %11148 = vmatprep.subr.bf16.mxu1 %v14356_v10  ;;  %v14387_v10 = vcombine.low %v566_v60, %v570_v9  ;;  %v857_v62 = vld [vmem:[#allocation2 + $0x1770] sm:$0xff]  ;;  %v606_v60 = vld [vmem:[#allocation2 + $0xf98] sm:$0xff] }
 0x486   :  { %10737 = vmatpush1.bf16.msra.mxu0 %v14601_v51  ;;  %v17022_v29 = vpop.f32.mrb[4].mxu1  ;;  %v833_v51 = vld [vmem:[#allocation2 + $0x16b0] sm:$0xff]  ;;  %v610_v9 = vld [vmem:[#allocation2 + $0xfb8] sm:$0xff] }
 0x487   :  { %10738 = vmatprep.subr.bf16.mxu0 %v14610_v37  ;;  %v17024_v32 = vpop.f32.mrb[5].mxu1  ;;  %v14641_v37 = vcombine.low %v821_v0, %v825_v1  ;;  %v14650_v15 = vcombine.high %v829_v53, %v833_v51  ;;  %v861_v0 = vld [vmem:[#allocation2 + $0x1790] sm:$0xff] }
 0x488   :  { %v10520_v31 = vpop.f32.mrb[6].mxu1  ;;  %11149 = vmatpush1.bf16.msra.mxu1 %v14355_v46  ;;  %v837_v46 = vld [vmem:[#allocation2 + $0x16d0] sm:$0xff] }
 0x489   :  { %v10521_v41 = vpop.f32.mrb[7].mxu1  ;;  %11150 = vmatprep.subr.bf16.mxu1 %v14364_v26  ;;  %v14395_v26 = vcombine.low %v574_v7, %v578_v33  ;;  %v845_v31 = vld [vmem:[#allocation2 + $0x1710] sm:$0xff]  ;;  %v614_v7 = vld [vmem:[#allocation2 + $0xfd8] sm:$0xff] }
 0x48a   :  { %10739 = vmatpush1.bf16.msra.mxu0 %v14609_v25  ;;  %v841_v25 = vld [vmem:[#allocation2 + $0x16f0] sm:$0xff]  ;;  %v14403_v41 = vcombine.low %v582_v17, %v586_v24  ;;  %v618_v33 = vld [vmem:[#allocation2 + $0xff8] sm:$0xff] }
 0x48b   :  { %10740 = vmatprep.subr.bf16.mxu0 %v14618_v30  ;;  %v14649_v30 = vcombine.low %v829_v53, %v833_v51  ;;  %v14658_v63 = vcombine.high %v837_v46, %v841_v25  ;;  %v865_v1 = vld [vmem:[#allocation2 + $0x17b0] sm:$0xff]  ;;  %v622_v17 = vld [vmem:[#allocation2 + $0x1018] sm:$0xff] }
 0x48c   :  { %11151 = vmatpush1.bf16.msra.mxu1 %v14363_v40  ;;  %v849_v40 = vld [vmem:[#allocation2 + $0x1730] sm:$0xff]  ;;  %v626_v24 = vld [vmem:[#allocation2 + $0x1038] sm:$0xff] }
 0x48d   :  { %11152 = vmatprep.subr.bf16.mxu1 %v14372_v47  ;;  %v14412_v47 = vcombine.high %v590_v36, %v594_v39  ;;  %v869_v53 = vld [vmem:[#allocation2 + $0x17d0] sm:$0xff] }
 0x48e   :  { %10741 = vmatpush1.bf16.msra.mxu0 %v14617_v44  ;;  %v14657_v44 = vcombine.low %v837_v46, %v841_v25  ;;  %v873_v51 = vld [vmem:[#allocation2 + $0x17f0] sm:$0xff] }
 0x48f   :  { %10742 = vmatprep.subr.bf16.mxu0 %v14626_v48  ;;  %v14666_v48 = vcombine.high %v845_v31, %v849_v40  ;;  %v877_v46 = vld [vmem:[#allocation2 + $0x1810] sm:$0xff] }
 0x490   :  { %11153 = vmatpush1.bf16.msra.mxu1 %v14371_v55  ;;  %v14411_v55 = vcombine.low %v590_v36, %v594_v39  ;;  %v881_v25 = vld [vmem:[#allocation2 + $0x1830] sm:$0xff]  ;;  %v630_v36 = vld [vmem:[#allocation2 + $0x1058] sm:$0xff] }
 0x491   :  { %11154 = vmatprep.subr.bf16.mxu1 %v14380_v38  ;;  %v14420_v38 = vcombine.high %v598_v52, %v602_v54  ;;  %v634_v39 = vld [vmem:[#allocation2 + $0x1078] sm:$0xff] }
 0x492   :  { %10743 = vmatpush1.bf16.msra.mxu0 %v14625_v57  ;;  %v14665_v57 = vcombine.low %v845_v31, %v849_v40  ;;  %v885_v31 = vld [vmem:[#allocation2 + $0x1850] sm:$0xff] }
 0x493   :  { %10744 = vmatprep.subr.bf16.mxu0 %v14634_v18  ;;  %v14674_v18 = vcombine.high %v853_v49, %v857_v62  ;;  %v889_v40 = vld [vmem:[#allocation2 + $0x1870] sm:$0xff] }
 0x494   :  { %11155 = vmatpush1.bf16.msra.mxu1 %v14379_v2  ;;  %v14419_v2 = vcombine.low %v598_v52, %v602_v54  ;;  %v638_v52 = vld [vmem:[#allocation2 + $0x1098] sm:$0xff] }
 0x495   :  { %11156 = vmatprep.subr.bf16.mxu1 %v14388_v3  ;;  %v14428_v3 = vcombine.high %v606_v60, %v610_v9  ;;  %v642_v54 = vld [vmem:[#allocation2 + $0x10b8] sm:$0xff] }
 0x496   :  { %10745 = vmatpush1.bf16.msra.mxu0 %v14633_v58  ;;  %v14673_v58 = vcombine.low %v853_v49, %v857_v62  ;;  %v893_v49 = vld [vmem:[#allocation2 + $0x1890] sm:$0xff] }
 0x497   :  { %10746 = vmatprep.subr.bf16.mxu0 %v14642_v6  ;;  %v14682_v6 = vcombine.high %v861_v0, %v865_v1  ;;  %v897_v62 = vld [vmem:[#allocation2 + $0x18b0] sm:$0xff] }
 0x498   :  { %11157 = vmatpush1.bf16.msra.mxu1 %v14387_v10  ;;  %v14427_v10 = vcombine.low %v606_v60, %v610_v9  ;;  %v646_v60 = vld [vmem:[#allocation2 + $0x10d8] sm:$0xff] }
 0x499   :  { %11158 = vmatprep.subr.bf16.mxu1 %v14396_v14  ;;  %v14436_v14 = vcombine.high %v614_v7, %v618_v33  ;;  %v650_v9 = vld [vmem:[#allocation2 + $0x10f8] sm:$0xff] }
 0x49a   :  { %10747 = vmatpush1.bf16.msra.mxu0 %v14641_v37  ;;  %v14681_v37 = vcombine.low %v861_v0, %v865_v1  ;;  %v901_v0 = vld [vmem:[#allocation2 + $0x18d0] sm:$0xff] }
 0x49b   :  { %10748 = vmatprep.subr.bf16.mxu0 %v14650_v15  ;;  %v14690_v15 = vcombine.high %v869_v53, %v873_v51  ;;  %v905_v1 = vld [vmem:[#allocation2 + $0x18f0] sm:$0xff] }
 0x49c   :  { %11159 = vmatpush1.bf16.msra.mxu1 %v14395_v26  ;;  %v14435_v26 = vcombine.low %v614_v7, %v618_v33  ;;  %v658_v7 = vld [vmem:[#allocation2 + $0x1138] sm:$0xff]  ;;  %v909_v33 = vld [vmem:[#allocation2 + $0x1910] sm:$0xff] }
 0x49d   :  { %11160 = vmatprep.subr.bf16.mxu1 %v14404_v56  ;;  %v14444_v56 = vcombine.high %v622_v17, %v626_v24 }
 0x49e   :  { %10749 = vmatpush1.bf16.msra.mxu0 %v14649_v30  ;;  %v14689_v30 = vcombine.low %v869_v53, %v873_v51  ;;  %v913_v53 = vld [vmem:[#allocation2 + $0x1930] sm:$0xff]  ;;  %v14467_v51 = vcombine.low %v646_v60, %v650_v9 }
 0x49f   :  { %10750 = vmatprep.subr.bf16.mxu0 %v14658_v63  ;;  %v14698_v63 = vcombine.high %v877_v46, %v881_v25 }
 0x4a0   :  { %11161 = vmatpush1.bf16.msra.mxu1 %v14403_v41  ;;  %v14443_v41 = vcombine.low %v622_v17, %v626_v24  ;;  %v917_v17 = vld [vmem:[#allocation2 + $0x1950] sm:$0xff] }
 0x4a1   :  { %11162 = vmatprep.subr.bf16.mxu1 %v14412_v47  ;;  %v14452_v47 = vcombine.high %v630_v36, %v634_v39  ;;  %v921_v24 = vld [vmem:[#allocation2 + $0x1970] sm:$0xff] }
 0x4a2   :  { %10751 = vmatpush1.bf16.msra.mxu0 %v14657_v44  ;;  %v14697_v44 = vcombine.low %v877_v46, %v881_v25  ;;  %v14729_v25 = vcombine.low %v909_v33, %v913_v53 }
 0x4a3   :  { %10752 = vmatprep.subr.bf16.mxu0 %v14666_v48  ;;  %v14706_v48 = vcombine.high %v885_v31, %v889_v40 }
 0x4a4   :  { %11163 = vmatpush1.bf16.msra.mxu1 %v14411_v55  ;;  %v14451_v55 = vcombine.low %v630_v36, %v634_v39  ;;  %v925_v36 = vld [vmem:[#allocation2 + $0x1990] sm:$0xff] }
 0x4a5   :  { %11164 = vmatprep.subr.bf16.mxu1 %v14420_v38  ;;  %v14460_v38 = vcombine.high %v638_v52, %v642_v54  ;;  %v929_v39 = vld [vmem:[#allocation2 + $0x19b0] sm:$0xff] }
 0x4a6   :  { %10753 = vmatpush1.bf16.msra.mxu0 %v14665_v57  ;;  %v14705_v57 = vcombine.low %v885_v31, %v889_v40  ;;  %v14737_v40 = vcombine.low %v917_v17, %v921_v24 }
 0x4a7   :  { %10754 = vmatprep.subr.bf16.mxu0 %v14674_v18  ;;  %v14714_v18 = vcombine.high %v893_v49, %v897_v62 }
 0x4a8   :  { %11165 = vmatpush1.bf16.msra.mxu1 %v14419_v2  ;;  %v14713_v2 = vcombine.low %v893_v49, %v897_v62  ;;  %v14745_v62 = vcombine.low %v925_v36, %v929_v39 }
 0x4a9   :  { %11166 = vmatprep.subr.bf16.mxu1 %v14428_v3  ;;  %v14722_v3 = vcombine.high %v901_v0, %v905_v1 }
 0x4aa   :  { %10755 = vmatpush1.bf16.msra.mxu0 %v14673_v58  ;;  %v14468_v58 = vcombine.high %v646_v60, %v650_v9  ;;  %v941_v60 = vld [vmem:[#allocation2 + $0x1a10] sm:$0xff] }
 0x4ab   :  { %10756 = vmatprep.subr.bf16.mxu0 %v14682_v6  ;;  %v654_v6 = vld [vmem:[#allocation2 + $0x1118] sm:$0xff]  ;;  %v945_v9 = vld [vmem:[#allocation2 + $0x1a30] sm:$0xff] }
 0x4ac   :  { %11167 = vmatpush1.bf16.msra.mxu1 %v14427_v10  ;;  %v14721_v10 = vcombine.low %v901_v0, %v905_v1  ;;  %v14475_v46 = vcombine.low %v654_v6, %v658_v7 }
 0x4ad   :  { %11168 = vmatprep.subr.bf16.mxu1 %v14436_v14  ;;  %v662_v14 = vld [vmem:[#allocation2 + $0x1158] sm:$0xff] }
 0x4ae   :  { %10757 = vmatpush1.bf16.msra.mxu0 %v14681_v37  ;;  %v14476_v37 = vcombine.high %v654_v6, %v658_v7  ;;  %v949_v6 = vld [vmem:[#allocation2 + $0x1a50] sm:$0xff] }
 0x4af   :  { %10758 = vmatprep.subr.bf16.mxu0 %v14690_v15  ;;  %v666_v15 = vld [vmem:[#allocation2 + $0x1178] sm:$0xff]  ;;  %v953_v7 = vld [vmem:[#allocation2 + $0x1a70] sm:$0xff] }
 0x4b0   :  { %11169 = vmatpush1.bf16.msra.mxu1 %v14435_v26  ;;  %v14484_v26 = vcombine.high %v662_v14, %v666_v15  ;;  %v14483_v31 = vcombine.low %v662_v14, %v666_v15  ;;  %v957_v14 = vld [vmem:[#allocation2 + $0x1a90] sm:$0xff] }
 0x4b1   :  { %11179 = vmatprep.subr.bf16.mxu1 %v14444_v56  ;;  %v670_v56 = vld [vmem:[#allocation2 + $0x1198] sm:$0xff]  ;;  %v961_v15 = vld [vmem:[#allocation2 + $0x1ab0] sm:$0xff] }
 0x4b2   :  { %10759 = vmatpush1.bf16.msra.mxu0 %v14689_v30  ;;  %v14738_v30 = vcombine.high %v917_v17, %v921_v24  ;;  %v14769_v24 = vcombine.low %v949_v6, %v953_v7 }
 0x4b3   :  { %10769 = vmatprep.subr.bf16.mxu0 %v14698_v63  ;;  %11171 = vmatmul.mubr.bf16.vlgmr.msra.gmra.mrb[8].mxu1 %v16861_v11  ;;  %v14459_v11 = vcombine.low %v638_v52, %v642_v54  ;;  %v674_v63 = vld [vmem:[#allocation2 + $0x11b8] sm:$0xff]  ;;  %v933_v52 = vld [vmem:[#allocation2 + $0x19d0] sm:$0xff] }
 0x4b4   :  { %11180 = vmatpush1.bf16.msra.mxu1 %v14443_v41  ;;  %11211 = vmatprep.mubr.bf16.mxu1 %v16864_v21  ;;  %v14730_v21 = vcombine.high %v909_v33, %v913_v53  ;;  %v14492_v41 = vcombine.high %v670_v56, %v674_v63  ;;  %v937_v54 = vld [vmem:[#allocation2 + $0x19f0] sm:$0xff]  ;;  %v14491_v49 = vcombine.low %v670_v56, %v674_v63 }
 0x4b5   :  { %10761 = vmatmul.mubr.bf16.vlgmr.msra.gmra.mrb[4].mxu0 %v16895_v27  ;;  %11181 = vmatprep.subr.bf16.mxu1 %v14452_v47  ;;  %v678_v47 = vld [vmem:[#allocation2 + $0x11d8] sm:$0xff]  ;;  %v14753_v1 = vcombine.low %v933_v52, %v937_v54  ;;  %v14761_v53 = vcombine.low %v941_v60, %v945_v9  ;;  %v965_v56 = vld [vmem:[#allocation2 + $0x1ad0] sm:$0xff] }
 0x4b6   :  { %10770 = vmatpush1.bf16.msra.mxu0 %v14697_v44  ;;  %10801 = vmatprep.mubr.bf16.mxu0 %v16898_v34  ;;  %v14746_v44 = vcombine.high %v925_v36, %v929_v39  ;;  %v969_v63 = vld [vmem:[#allocation2 + $0x1af0] sm:$0xff]  ;;  %v14777_v39 = vcombine.low %v957_v14, %v961_v15 }
 0x4b7   :  { %10771 = vmatprep.subr.bf16.mxu0 %v14706_v48  ;;  %v682_v48 = vld [vmem:[#allocation2 + $0x11f8] sm:$0xff] }
 0x4b8   :  { %11182 = vmatpush1.bf16.msra.mxu1 %v14451_v55  ;;  %v14500_v55 = vcombine.high %v678_v47, %v682_v48  ;;  %v14499_v0 = vcombine.low %v678_v47, %v682_v48  ;;  %v973_v47 = vld [vmem:[#allocation2 + $0x1b10] sm:$0xff] }
 0x4b9   :  { %11183 = vmatprep.subr.bf16.mxu1 %v14460_v38  ;;  %v686_v38 = vld [vmem:[#allocation2 + $0x1218] sm:$0xff]  ;;  %v977_v48 = vld [vmem:[#allocation2 + $0x1b30] sm:$0xff] }
 0x4ba   :  { %10772 = vmatpush1.bf16.msra.mxu0 %v14705_v57  ;;  %v14754_v57 = vcombine.high %v933_v52, %v937_v54  ;;  %v14785_v54 = vcombine.low %v965_v56, %v969_v63 }
 0x4bb   :  { %10773 = vmatprep.subr.bf16.mxu0 %v14714_v18  ;;  %v690_v18 = vld [vmem:[#allocation2 + $0x1238] sm:$0xff] }
 0x4bc   :  { %11184 = vmatpush1.bf16.msra.mxu1 %v14459_v11  ;;  %v14508_v11 = vcombine.high %v686_v38, %v690_v18  ;;  %v14507_v33 = vcombine.low %v686_v38, %v690_v18  ;;  %v981_v38 = vld [vmem:[#allocation2 + $0x1b50] sm:$0xff] }
 0x4bd   :  { %11185 = vmatprep.subr.bf16.mxu1 %v14468_v58  ;;  %v694_v58 = vld [vmem:[#allocation2 + $0x1258] sm:$0xff]  ;;  %v985_v18 = vld [vmem:[#allocation2 + $0x1b70] sm:$0xff] }
 0x4be   :  { %10774 = vmatpush1.bf16.msra.mxu0 %v14713_v2  ;;  %v14762_v2 = vcombine.high %v941_v60, %v945_v9  ;;  %v14793_v9 = vcombine.low %v973_v47, %v977_v48 }
 0x4bf   :  { %10775 = vmatprep.subr.bf16.mxu0 %v14722_v3  ;;  %v698_v3 = vld [vmem:[#allocation2 + $0x1278] sm:$0xff] }
 0x4c0   :  { %11186 = vmatpush1.bf16.msra.mxu1 %v14467_v51  ;;  %v14516_v51 = vcombine.high %v694_v58, %v698_v3  ;;  %v14515_v17 = vcombine.low %v694_v58, %v698_v3  ;;  %v989_v58 = vld [vmem:[#allocation2 + $0x1b90] sm:$0xff] }
 0x4c1   :  { %11187 = vmatprep.subr.bf16.mxu1 %v14476_v37  ;;  %v702_v37 = vld [vmem:[#allocation2 + $0x1298] sm:$0xff]  ;;  %v993_v3 = vld [vmem:[#allocation2 + $0x1bb0] sm:$0xff] }
 0x4c2   :  { %10776 = vmatpush1.bf16.msra.mxu0 %v14721_v10  ;;  %v14770_v10 = vcombine.high %v949_v6, %v953_v7  ;;  %v14801_v7 = vcombine.low %v981_v38, %v985_v18 }
 0x4c3   :  { %10777 = vmatprep.subr.bf16.mxu0 %v14730_v21  ;;  %v706_v21 = vld [vmem:[#allocation2 + $0x12b8] sm:$0xff] }
 0x4c4   :  { %11188 = vmatpush1.bf16.msra.mxu1 %v14475_v46  ;;  %v14524_v46 = vcombine.high %v702_v37, %v706_v21  ;;  %v14523_v36 = vcombine.low %v702_v37, %v706_v21  ;;  %v997_v37 = vld [vmem:[#allocation2 + $0x1bd0] sm:$0xff] }
 0x4c5   :  { %11189 = vmatprep.subr.bf16.mxu1 %v14484_v26  ;;  %v710_v26 = vld [vmem:[#allocation2 + $0x12d8] sm:$0xff]  ;;  %v1001_v21 = vld [vmem:[#allocation2 + $0x1bf0] sm:$0xff] }
 0x4c6   :  { %10778 = vmatpush1.bf16.msra.mxu0 %v14729_v25  ;;  %v14778_v25 = vcombine.high %v957_v14, %v961_v15  ;;  %v14809_v15 = vcombine.low %v989_v58, %v993_v3 }
 0x4c7   :  { %10779 = vmatprep.subr.bf16.mxu0 %v14738_v30  ;;  %v714_v30 = vld [vmem:[#allocation2 + $0x12f8] sm:$0xff] }
 0x4c8   :  { %11190 = vmatpush1.bf16.msra.mxu1 %v14483_v31  ;;  %v14532_v31 = vcombine.high %v710_v26, %v714_v30  ;;  %v14531_v52 = vcombine.low %v710_v26, %v714_v30  ;;  %v1005_v26 = vld [vmem:[#allocation2 + $0x1c10] sm:$0xff] }
 0x4c9   :  { %11191 = vmatprep.subr.bf16.mxu1 %v14492_v41  ;;  %v718_v41 = vld [vmem:[#allocation2 + $0x1318] sm:$0xff]  ;;  %v1009_v30 = vld [vmem:[#allocation2 + $0x1c30] sm:$0xff] }
 0x4ca   :  { %10780 = vmatpush1.bf16.msra.mxu0 %v14737_v40  ;;  %v14786_v40 = vcombine.high %v965_v56, %v969_v63  ;;  %v14817_v63 = vcombine.low %v997_v37, %v1001_v21 }
 0x4cb   :  { %10781 = vmatprep.subr.bf16.mxu0 %v14746_v44  ;;  %v722_v44 = vld [vmem:[#allocation2 + $0x1338] sm:$0xff] }
 0x4cc   :  { %11192 = vmatpush1.bf16.msra.mxu1 %v14491_v49  ;;  %v14540_v49 = vcombine.high %v718_v41, %v722_v44  ;;  %v14539_v60 = vcombine.low %v718_v41, %v722_v44  ;;  %v1013_v41 = vld [vmem:[#allocation2 + $0x1c50] sm:$0xff] }
 0x4cd   :  { %11193 = vmatprep.subr.bf16.mxu1 %v14500_v55  ;;  %v726_v55 = vld [vmem:[#allocation2 + $0x1358] sm:$0xff]  ;;  %v1017_v44 = vld [vmem:[#allocation2 + $0x1c70] sm:$0xff] }
 0x4ce   :  { %10782 = vmatpush1.bf16.msra.mxu0 %v14745_v62  ;;  %v14794_v62 = vcombine.high %v973_v47, %v977_v48  ;;  %v14825_v48 = vcombine.low %v1005_v26, %v1009_v30 }
 0x4cf   :  { %10783 = vmatprep.subr.bf16.mxu0 %v14754_v57  ;;  %v730_v57 = vld [vmem:[#allocation2 + $0x1378] sm:$0xff] }
 0x4d0   :  { %11194 = vmatpush1.bf16.msra.mxu1 %v14499_v0  ;;  %v14548_v0 = vcombine.high %v726_v55, %v730_v57  ;;  %v14547_v6 = vcombine.low %v726_v55, %v730_v57  ;;  %v1021_v55 = vld [vmem:[#allocation2 + $0x1c90] sm:$0xff] }
 0x4d1   :  { %11195 = vmatprep.subr.bf16.mxu1 %v14508_v11  ;;  %v734_v11 = vld [vmem:[#allocation2 + $0x1398] sm:$0xff]  ;;  %v1025_v57 = vld [vmem:[#allocation2 + $0x1cb0] sm:$0xff] }
 0x4d2   :  { %10784 = vmatpush1.bf16.msra.mxu0 %v14753_v1  ;;  %v14802_v1 = vcombine.high %v981_v38, %v985_v18  ;;  %v14833_v18 = vcombine.low %v1013_v41, %v1017_v44 }
 0x4d3   :  { %10785 = vmatprep.subr.bf16.mxu0 %v14762_v2  ;;  %v738_v2 = vld [vmem:[#allocation2 + $0x13b8] sm:$0xff] }
 0x4d4   :  { %11196 = vmatpush1.bf16.msra.mxu1 %v14507_v33  ;;  %v14556_v33 = vcombine.high %v734_v11, %v738_v2  ;;  %v14555_v14 = vcombine.low %v734_v11, %v738_v2  ;;  %v1029_v11 = vld [vmem:[#allocation2 + $0x1cd0] sm:$0xff] }
 0x4d5   :  { %11197 = vmatprep.subr.bf16.mxu1 %v14516_v51  ;;  %v742_v51 = vld [vmem:[#allocation2 + $0x13d8] sm:$0xff]  ;;  %v1033_v2 = vld [vmem:[#allocation2 + $0x1cf0] sm:$0xff] }
 0x4d6   :  { %10786 = vmatpush1.bf16.msra.mxu0 %v14761_v53  ;;  %v14810_v53 = vcombine.high %v989_v58, %v993_v3  ;;  %v14841_v58 = vcombine.low %v1021_v55, %v1025_v57 }
 0x4d7   :  { %10787 = vmatprep.subr.bf16.mxu0 %v14770_v10  ;;  %v746_v10 = vld [vmem:[#allocation2 + $0x13f8] sm:$0xff] }
 0x4d8   :  { %11198 = vmatpush1.bf16.msra.mxu1 %v14515_v17  ;;  %v14564_v17 = vcombine.high %v742_v51, %v746_v10  ;;  %v14563_v56 = vcombine.low %v742_v51, %v746_v10  ;;  %v1041_v51 = vld [vmem:[#allocation2 + $0x1d30] sm:$0xff] }
 0x4d9   :  { %11199 = vmatprep.subr.bf16.mxu1 %v14524_v46  ;;  %v750_v46 = vld [vmem:[#allocation2 + $0x1418] sm:$0xff] }
 0x4da   :  { %10788 = vmatpush1.bf16.msra.mxu0 %v14769_v24  ;;  %v14818_v24 = vcombine.high %v997_v37, %v1001_v21  ;;  %v14849_v37 = vcombine.low %v1029_v11, %v1033_v2 }
 0x4db   :  { %10789 = vmatprep.subr.bf16.mxu0 %v14778_v25  ;;  %v754_v25 = vld [vmem:[#allocation2 + $0x1438] sm:$0xff] }
 0x4dc   :  { %11200 = vmatpush1.bf16.msra.mxu1 %v14523_v36  ;;  %v14572_v36 = vcombine.high %v750_v46, %v754_v25  ;;  %v14571_v47 = vcombine.low %v750_v46, %v754_v25 }
 0x4dd   :  { %11201 = vmatprep.subr.bf16.mxu1 %v14532_v31  ;;  %v758_v31 = vld [vmem:[#allocation2 + $0x1458] sm:$0xff] }
 0x4de   :  { %10790 = vmatpush1.bf16.msra.mxu0 %v14777_v39  ;;  %v14826_v39 = vcombine.high %v1005_v26, %v1009_v30 }
 0x4df   :  { %10791 = vmatprep.subr.bf16.mxu0 %v14786_v40  ;;  %v762_v40 = vld [vmem:[#allocation2 + $0x1478] sm:$0xff] }
 0x4e0   :  { %11202 = vmatpush1.bf16.msra.mxu1 %v14531_v52  ;;  %v14580_v52 = vcombine.high %v758_v31, %v762_v40  ;;  %v14579_v38 = vcombine.low %v758_v31, %v762_v40 }
 0x4e1   :  { %11203 = vmatprep.subr.bf16.mxu1 %v14540_v49  ;;  %v766_v49 = vld [vmem:[#allocation2 + $0x1498] sm:$0xff] }
 0x4e2   :  { %10792 = vmatpush1.bf16.msra.mxu0 %v14785_v54  ;;  %v14834_v54 = vcombine.high %v1013_v41, %v1017_v44 }
 0x4e3   :  { %10793 = vmatprep.subr.bf16.mxu0 %v14794_v62  ;;  %v770_v62 = vld [vmem:[#allocation2 + $0x14b8] sm:$0xff] }
 0x4e4   :  { %11204 = vmatpush1.bf16.msra.mxu1 %v14539_v60  ;;  %v14588_v60 = vcombine.high %v766_v49, %v770_v62 }
 0x4e5   :  { %11205 = vmatprep.subr.bf16.mxu1 %v14548_v0  ;;  %v774_v0 = vld [vmem:[#allocation2 + $0x14d8] sm:$0xff] }
 0x4e6   :  { %10794 = vmatpush1.bf16.msra.mxu0 %v14793_v9  ;;  %v14842_v9 = vcombine.high %v1021_v55, %v1025_v57 }
 0x4e7   :  { %10795 = vmatprep.subr.bf16.mxu0 %v14802_v1  ;;  %v778_v1 = vld [vmem:[#allocation2 + $0x14f8] sm:$0xff] }
 0x4e8   :  { %11206 = vmatpush1.bf16.msra.mxu1 %v14547_v6  ;;  %v14596_v3 = vcombine.high %v774_v0, %v778_v1  ;;  %v14850_v6 = vcombine.high %v1029_v11, %v1033_v2  ;;  %v14595_v10 = vcombine.low %v774_v0, %v778_v1 }
 0x4e9   :  { %11207 = vmatprep.subr.bf16.mxu1 %v14556_v33  ;;  %v786_v33 = vld [vmem:[#allocation2 + $0x1538] sm:$0xff] }
 0x4ea   :  { %10796 = vmatpush1.bf16.msra.mxu0 %v14801_v7  ;;  %v782_v7 = vld [vmem:[#allocation2 + $0x1518] sm:$0xff] }
 0x4eb   :  { %10797 = vmatprep.subr.bf16.mxu0 %v14810_v53  ;;  %v1037_v53 = vld [vmem:[#allocation2 + $0x1d10] sm:$0xff]  ;;  %v14604_v21 = vcombine.high %v782_v7, %v786_v33  ;;  %v14603_v46 = vcombine.low %v782_v7, %v786_v33 }
 0x4ec   :  { %11208 = vmatpush1.bf16.msra.mxu1 %v14555_v14  ;;  %v790_v14 = vld [vmem:[#allocation2 + $0x1558] sm:$0xff]  ;;  %v14857_v25 = vcombine.low %v1037_v53, %v1041_v51 }
 0x4ed   :  { %11209 = vmatprep.subr.bf16.mxu1 %v14564_v17  ;;  %v1045_v17 = vld [vmem:[#allocation2 + $0x1d50] sm:$0xff] }
 0x4ee   :  { %10798 = vmatpush1.bf16.msra.mxu0 %v14809_v15  ;;  %v794_v15 = vld [vmem:[#allocation2 + $0x1578] sm:$0xff] }
 0x4ef   :  { %10799 = vmatprep.subr.bf16.mxu0 %v14818_v24  ;;  %v1049_v24 = vld [vmem:[#allocation2 + $0x1d70] sm:$0xff]  ;;  %v14612_v26 = vcombine.high %v790_v14, %v794_v15  ;;  %v14611_v31 = vcombine.low %v790_v14, %v794_v15 }
 0x4f0   :  { %11210 = vmatpush1.bf16.msra.mxu1 %v14563_v56  ;;  %v14866_v30 = vcombine.high %v1045_v17, %v1049_v24  ;;  %v798_v56 = vld [vmem:[#allocation2 + $0x1598] sm:$0xff]  ;;  %v14865_v40 = vcombine.low %v1045_v17, %v1049_v24 }
 0x4f1   :  { %11220 = vmatprep.subr.bf16.mxu1 %v14572_v36  ;;  %v1053_v36 = vld [vmem:[#allocation2 + $0x1d90] sm:$0xff] }
 0x4f2   :  { %10800 = vmatpush1.bf16.msra.mxu0 %v14817_v63  ;;  %v802_v63 = vld [vmem:[#allocation2 + $0x15b8] sm:$0xff] }
 0x4f3   :  { %10810 = vmatprep.subr.bf16.mxu0 %v14826_v39  ;;  %11212 = vmatmul.mubr.bf16.vlgmr.msra.gmra.mrb[8].mxu1 %v16872_v42  ;;  %v14587_v42 = vcombine.low %v766_v49, %v770_v62  ;;  %v1057_v39 = vld [vmem:[#allocation2 + $0x1db0] sm:$0xff]  ;;  %v14620_v41 = vcombine.high %v798_v56, %v802_v63  ;;  %v14619_v49 = vcombine.low %v798_v56, %v802_v63 }
 0x4f4   :  { %11221 = vmatpush1.bf16.msra.mxu1 %v14571_v47  ;;  %11252 = vmatprep.mubr.bf16.mxu1 %v16876_v50  ;;  %v14858_v50 = vcombine.high %v1037_v53, %v1041_v51  ;;  %v14874_v44 = vcombine.high %v1053_v36, %v1057_v39  ;;  %v806_v47 = vld [vmem:[#allocation2 + $0x15d8] sm:$0xff]  ;;  %v14873_v62 = vcombine.low %v1053_v36, %v1057_v39 }
 0x4f5   :  { %10802 = vmatmul.mubr.bf16.vlgmr.msra.gmra.mrb[4].mxu0 %v16906_v16  ;;  %11222 = vmatprep.subr.bf16.mxu1 %v14580_v52  ;;  %v1061_v52 = vld [vmem:[#allocation2 + $0x1dd0] sm:$0xff] }
 0x4f6   :  { %10811 = vmatpush1.bf16.msra.mxu0 %v14825_v48  ;;  %10842 = vmatprep.mubr.bf16.mxu0 %v16910_v23  ;;  %v810_v48 = vld [vmem:[#allocation2 + $0x15f8] sm:$0xff] }
 0x4f7   :  { %10812 = vmatprep.subr.bf16.mxu0 %v14834_v54  ;;  %v1065_v54 = vld [vmem:[#allocation2 + $0x1df0] sm:$0xff]  ;;  %v14628_v55 = vcombine.high %v806_v47, %v810_v48  ;;  %v14627_v0 = vcombine.low %v806_v47, %v810_v48 }
 0x4f8   :  { %11223 = vmatpush1.bf16.msra.mxu1 %v14579_v38  ;;  %v14882_v57 = vcombine.high %v1061_v52, %v1065_v54  ;;  %v814_v38 = vld [vmem:[#allocation2 + $0x1618] sm:$0xff]  ;;  %v14881_v1 = vcombine.low %v1061_v52, %v1065_v54 }
 0x4f9   :  { %11224 = vmatprep.subr.bf16.mxu1 %v14588_v60  ;;  %v1069_v60 = vld [vmem:[#allocation2 + $0x1e10] sm:$0xff] }
 0x4fa   :  { %10813 = vmatpush1.bf16.msra.mxu0 %v14833_v18  ;;  %v818_v18 = vld [vmem:[#allocation2 + $0x1638] sm:$0xff] }
 0x4fb   :  { %10814 = vmatprep.subr.bf16.mxu0 %v14842_v9  ;;  %v1073_v9 = vld [vmem:[#allocation2 + $0x1e30] sm:$0xff]  ;;  %v14636_v11 = vcombine.high %v814_v38, %v818_v18  ;;  %v14635_v7 = vcombine.low %v814_v38, %v818_v18 }
 0x4fc   :  { %11225 = vmatpush1.bf16.msra.mxu1 %v14587_v42  ;;  %v14890_v2 = vcombine.high %v1069_v60, %v1073_v9  ;;  %v822_v42 = vld [vmem:[#allocation2 + $0x1658] sm:$0xff]  ;;  %v14889_v33 = vcombine.low %v1069_v60, %v1073_v9 }
 0x4fd   :  { %11226 = vmatprep.subr.bf16.mxu1 %v14596_v3  ;;  %v1077_v3 = vld [vmem:[#allocation2 + $0x1e50] sm:$0xff] }
 0x4fe   :  { %10815 = vmatpush1.bf16.msra.mxu0 %v14841_v58  ;;  %v826_v58 = vld [vmem:[#allocation2 + $0x1678] sm:$0xff] }
 0x4ff   :  { %10816 = vmatprep.subr.bf16.mxu0 %v14850_v6  ;;  %v1081_v6 = vld [vmem:[#allocation2 + $0x1e70] sm:$0xff]  ;;  %v14644_v53 = vcombine.high %v822_v42, %v826_v58  ;;  %v14643_v14 = vcombine.low %v822_v42, %v826_v58 }
 0x500   :  { %11227 = vmatpush1.bf16.msra.mxu1 %v14595_v10  ;;  %v14898_v51 = vcombine.high %v1077_v3, %v1081_v6  ;;  %v830_v10 = vld [vmem:[#allocation2 + $0x1698] sm:$0xff]  ;;  %v14897_v15 = vcombine.low %v1077_v3, %v1081_v6 }
 0x501   :  { %11228 = vmatprep.subr.bf16.mxu1 %v14604_v21  ;;  %v1085_v21 = vld [vmem:[#allocation2 + $0x1e90] sm:$0xff] }
 0x502   :  { %10817 = vmatpush1.bf16.msra.mxu0 %v14849_v37  ;;  %v834_v37 = vld [vmem:[#allocation2 + $0x16b8] sm:$0xff] }
 0x503   :  { %10818 = vmatprep.subr.bf16.mxu0 %v14858_v50  ;;  %v1089_v50 = vld [vmem:[#allocation2 + $0x1eb0] sm:$0xff]  ;;  %v14652_v17 = vcombine.high %v830_v10, %v834_v37  ;;  %v14651_v56 = vcombine.low %v830_v10, %v834_v37 }
 0x504   :  { %11229 = vmatpush1.bf16.msra.mxu1 %v14603_v46  ;;  %v14906_v24 = vcombine.high %v1085_v21, %v1089_v50  ;;  %v838_v46 = vld [vmem:[#allocation2 + $0x16d8] sm:$0xff]  ;;  %v14905_v63 = vcombine.low %v1085_v21, %v1089_v50 }
 0x505   :  { %11230 = vmatprep.subr.bf16.mxu1 %v14612_v26  ;;  %v1093_v26 = vld [vmem:[#allocation2 + $0x1ed0] sm:$0xff] }
 0x506   :  { %10819 = vmatpush1.bf16.msra.mxu0 %v14857_v25  ;;  %v842_v25 = vld [vmem:[#allocation2 + $0x16f8] sm:$0xff] }
 0x507   :  { %10820 = vmatprep.subr.bf16.mxu0 %v14866_v30  ;;  %v1097_v30 = vld [vmem:[#allocation2 + $0x1ef0] sm:$0xff]  ;;  %v14660_v36 = vcombine.high %v838_v46, %v842_v25  ;;  %v14659_v47 = vcombine.low %v838_v46, %v842_v25 }
 0x508   :  { %11231 = vmatpush1.bf16.msra.mxu1 %v14611_v31  ;;  %v14914_v39 = vcombine.high %v1093_v26, %v1097_v30  ;;  %v846_v31 = vld [vmem:[#allocation2 + $0x1718] sm:$0xff]  ;;  %v14913_v48 = vcombine.low %v1093_v26, %v1097_v30 }
 0x509   :  { %11232 = vmatprep.subr.bf16.mxu1 %v14620_v41  ;;  %v1101_v41 = vld [vmem:[#allocation2 + $0x1f10] sm:$0xff] }
 0x50a   :  { %10821 = vmatpush1.bf16.msra.mxu0 %v14865_v40  ;;  %v850_v40 = vld [vmem:[#allocation2 + $0x1738] sm:$0xff] }
 0x50b   :  { %10822 = vmatprep.subr.bf16.mxu0 %v14874_v44  ;;  %v1105_v44 = vld [vmem:[#allocation2 + $0x1f30] sm:$0xff]  ;;  %v14668_v52 = vcombine.high %v846_v31, %v850_v40  ;;  %v14667_v38 = vcombine.low %v846_v31, %v850_v40 }
 0x50c   :  { %11233 = vmatpush1.bf16.msra.mxu1 %v14619_v49  ;;  %v14922_v54 = vcombine.high %v1101_v41, %v1105_v44  ;;  %v854_v49 = vld [vmem:[#allocation2 + $0x1758] sm:$0xff]  ;;  %v14921_v18 = vcombine.low %v1101_v41, %v1105_v44 }
 0x50d   :  { %11234 = vmatprep.subr.bf16.mxu1 %v14628_v55  ;;  %v1109_v55 = vld [vmem:[#allocation2 + $0x1f50] sm:$0xff] }
 0x50e   :  { %10823 = vmatpush1.bf16.msra.mxu0 %v14873_v62  ;;  %v858_v62 = vld [vmem:[#allocation2 + $0x1778] sm:$0xff] }
 0x50f   :  { %10824 = vmatprep.subr.bf16.mxu0 %v14882_v57  ;;  %v1113_v57 = vld [vmem:[#allocation2 + $0x1f70] sm:$0xff]  ;;  %v14676_v60 = vcombine.high %v854_v49, %v858_v62  ;;  %v14675_v42 = vcombine.low %v854_v49, %v858_v62 }
 0x510   :  { %11235 = vmatpush1.bf16.msra.mxu1 %v14627_v0  ;;  %v14930_v9 = vcombine.high %v1109_v55, %v1113_v57  ;;  %v862_v0 = vld [vmem:[#allocation2 + $0x1798] sm:$0xff]  ;;  %v14929_v58 = vcombine.low %v1109_v55, %v1113_v57 }
 0x511   :  { %11236 = vmatprep.subr.bf16.mxu1 %v14636_v11  ;;  %v1117_v11 = vld [vmem:[#allocation2 + $0x1f90] sm:$0xff] }
 0x512   :  { %10825 = vmatpush1.bf16.msra.mxu0 %v14881_v1  ;;  %v866_v1 = vld [vmem:[#allocation2 + $0x17b8] sm:$0xff] }
 0x513   :  { %10826 = vmatprep.subr.bf16.mxu0 %v14890_v2  ;;  %v1121_v2 = vld [vmem:[#allocation2 + $0x1fb0] sm:$0xff]  ;;  %v14684_v3 = vcombine.high %v862_v0, %v866_v1  ;;  %v14683_v10 = vcombine.low %v862_v0, %v866_v1 }
 0x514   :  { %11237 = vmatpush1.bf16.msra.mxu1 %v14635_v7  ;;  %v14938_v6 = vcombine.high %v1117_v11, %v1121_v2  ;;  %v870_v7 = vld [vmem:[#allocation2 + $0x17d8] sm:$0xff]  ;;  %v14937_v37 = vcombine.low %v1117_v11, %v1121_v2 }
 0x515   :  { %11238 = vmatprep.subr.bf16.mxu1 %v14644_v53  ;;  %v1125_v53 = vld [vmem:[#allocation2 + $0x1fd0] sm:$0xff]  ;;  %v910_v2 = vld [vmem:[#allocation2 + $0x1918] sm:$0xff] }
 0x516   :  { %10827 = vmatpush1.bf16.msra.mxu0 %v14889_v33  ;;  %v874_v33 = vld [vmem:[#allocation2 + $0x17f8] sm:$0xff] }
 0x517   :  { %10828 = vmatprep.subr.bf16.mxu0 %v14898_v51  ;;  %v1129_v51 = vld [vmem:[#allocation2 + $0x1ff0] sm:$0xff]  ;;  %v14692_v21 = vcombine.high %v870_v7, %v874_v33  ;;  %v14691_v46 = vcombine.low %v870_v7, %v874_v33 }
 0x518   :  { %11239 = vmatpush1.bf16.msra.mxu1 %v14643_v14  ;;  %v14946_v50 = vcombine.high %v1125_v53, %v1129_v51  ;;  %v878_v14 = vld [vmem:[#allocation2 + $0x1818] sm:$0xff]  ;;  %v14945_v25 = vcombine.low %v1125_v53, %v1129_v51 }
 0x519   :  { %11240 = vmatprep.subr.bf16.mxu1 %v14652_v17  ;;  %v1133_v17 = vld [vmem:[#allocation2 + $0x2010] sm:$0xff]  ;;  %v918_v53 = vld [vmem:[#allocation2 + $0x1958] sm:$0xff] }
 0x51a   :  { %10829 = vmatpush1.bf16.msra.mxu0 %v14897_v15  ;;  %v882_v15 = vld [vmem:[#allocation2 + $0x1838] sm:$0xff] }
 0x51b   :  { %10830 = vmatprep.subr.bf16.mxu0 %v14906_v24  ;;  %v1137_v24 = vld [vmem:[#allocation2 + $0x2030] sm:$0xff]  ;;  %v14700_v26 = vcombine.high %v878_v14, %v882_v15  ;;  %v14699_v31 = vcombine.low %v878_v14, %v882_v15  ;;  %v922_v51 = vld [vmem:[#allocation2 + $0x1978] sm:$0xff] }
 0x51c   :  { %11241 = vmatpush1.bf16.msra.mxu1 %v14651_v56  ;;  %v14954_v30 = vcombine.high %v1133_v17, %v1137_v24  ;;  %v886_v56 = vld [vmem:[#allocation2 + $0x1858] sm:$0xff]  ;;  %v14953_v40 = vcombine.low %v1133_v17, %v1137_v24  ;;  %v14740_v14 = vcombine.high %v918_v53, %v922_v51 }
 0x51d   :  { %11242 = vmatprep.subr.bf16.mxu1 %v14660_v36  ;;  %v1141_v36 = vld [vmem:[#allocation2 + $0x2050] sm:$0xff]  ;;  %v926_v17 = vld [vmem:[#allocation2 + $0x1998] sm:$0xff] }
 0x51e   :  { %10831 = vmatpush1.bf16.msra.mxu0 %v14905_v63  ;;  %v890_v63 = vld [vmem:[#allocation2 + $0x1878] sm:$0xff] }
 0x51f   :  { %10832 = vmatprep.subr.bf16.mxu0 %v14914_v39  ;;  %v1145_v39 = vld [vmem:[#allocation2 + $0x2070] sm:$0xff]  ;;  %v14708_v41 = vcombine.high %v886_v56, %v890_v63  ;;  %v14707_v49 = vcombine.low %v886_v56, %v890_v63  ;;  %v930_v24 = vld [vmem:[#allocation2 + $0x19b8] sm:$0xff] }
 0x520   :  { %11243 = vmatpush1.bf16.msra.mxu1 %v14659_v47  ;;  %v14962_v44 = vcombine.high %v1141_v36, %v1145_v39  ;;  %v894_v47 = vld [vmem:[#allocation2 + $0x1898] sm:$0xff]  ;;  %v14961_v62 = vcombine.low %v1141_v36, %v1145_v39  ;;  %v14748_v56 = vcombine.high %v926_v17, %v930_v24 }
 0x521   :  { %11244 = vmatprep.subr.bf16.mxu1 %v14668_v52  ;;  %v1149_v52 = vld [vmem:[#allocation2 + $0x2090] sm:$0xff]  ;;  %v934_v36 = vld [vmem:[#allocation2 + $0x19d8] sm:$0xff] }
 0x522   :  { %10833 = vmatpush1.bf16.msra.mxu0 %v14913_v48  ;;  %v898_v48 = vld [vmem:[#allocation2 + $0x18b8] sm:$0xff] }
 0x523   :  { %10834 = vmatprep.subr.bf16.mxu0 %v14922_v54  ;;  %v1153_v54 = vld [vmem:[#allocation2 + $0x20b0] sm:$0xff]  ;;  %v14716_v55 = vcombine.high %v894_v47, %v898_v48  ;;  %v938_v39 = vld [vmem:[#allocation2 + $0x19f8] sm:$0xff] }
 0x524   :  { %11245 = vmatpush1.bf16.msra.mxu1 %v14667_v38  ;;  %v14970_v57 = vcombine.high %v1149_v52, %v1153_v54  ;;  %v902_v38 = vld [vmem:[#allocation2 + $0x18d8] sm:$0xff]  ;;  %v14969_v0 = vcombine.low %v1149_v52, %v1153_v54 }
 0x525   :  { %11246 = vmatprep.subr.bf16.mxu1 %v14676_v60  ;;  %v1157_v60 = vld [vmem:[#allocation2 + $0x20d0] sm:$0xff]  ;;  %v942_v52 = vld [vmem:[#allocation2 + $0x1a18] sm:$0xff] }
 0x526   :  { %10835 = vmatpush1.bf16.msra.mxu0 %v14921_v18  ;;  %v906_v18 = vld [vmem:[#allocation2 + $0x18f8] sm:$0xff] }
 0x527   :  { %10836 = vmatprep.subr.bf16.mxu0 %v14930_v9  ;;  %v1161_v9 = vld [vmem:[#allocation2 + $0x20f0] sm:$0xff]  ;;  %v14724_v1 = vcombine.high %v902_v38, %v906_v18  ;;  %v946_v54 = vld [vmem:[#allocation2 + $0x1a38] sm:$0xff] }
 0x528   :  { %11247 = vmatpush1.bf16.msra.mxu1 %v14675_v42  ;;  %v14978_v11 = vcombine.high %v1157_v60, %v1161_v9  ;;  %v914_v42 = vld [vmem:[#allocation2 + $0x1938] sm:$0xff]  ;;  %v14977_v7 = vcombine.low %v1157_v60, %v1161_v9 }
 0x529   :  { %11248 = vmatprep.subr.bf16.mxu1 %v14684_v3  ;;  %v1169_v3 = vld [vmem:[#allocation2 + $0x2130] sm:$0xff]  ;;  %v14732_v33 = vcombine.high %v910_v2, %v914_v42  ;;  %v950_v60 = vld [vmem:[#allocation2 + $0x1a58] sm:$0xff] }
 0x52a   :  { %10837 = vmatpush1.bf16.msra.mxu0 %v14929_v58  ;;  %v1165_v58 = vld [vmem:[#allocation2 + $0x2110] sm:$0xff]  ;;  %v954_v9 = vld [vmem:[#allocation2 + $0x1a78] sm:$0xff] }
 0x52b   :  { %10838 = vmatprep.subr.bf16.mxu0 %v14938_v6  ;;  %v14723_v6 = vcombine.low %v902_v38, %v906_v18  ;;  %v14764_v38 = vcombine.high %v942_v52, %v946_v54 }
 0x52c   :  { %11249 = vmatpush1.bf16.msra.mxu1 %v14683_v10  ;;  %v1173_v10 = vld [vmem:[#allocation2 + $0x2150] sm:$0xff] }
 0x52d   :  { %11250 = vmatprep.subr.bf16.mxu1 %v14692_v21  ;;  %v14731_v21 = vcombine.low %v910_v2, %v914_v42  ;;  %v14772_v2 = vcombine.high %v950_v60, %v954_v9 }
 0x52e   :  { %10839 = vmatpush1.bf16.msra.mxu0 %v14937_v37  ;;  %v1177_v37 = vld [vmem:[#allocation2 + $0x2170] sm:$0xff] }
 0x52f   :  { %10840 = vmatprep.subr.bf16.mxu0 %v14946_v50  ;;  %v14985_v50 = vcombine.low %v1165_v58, %v1169_v3  ;;  %v14994_v15 = vcombine.high %v1173_v10, %v1177_v37 }
 0x530   :  { %11251 = vmatpush1.bf16.msra.mxu1 %v14691_v46  ;;  %v1181_v46 = vld [vmem:[#allocation2 + $0x2190] sm:$0xff] }
 0x531   :  { %11261 = vmatprep.subr.bf16.mxu1 %v14700_v26  ;;  %v14739_v26 = vcombine.low %v918_v53, %v922_v51 }
 0x532   :  { %10841 = vmatpush1.bf16.msra.mxu0 %v14945_v25  ;;  %v1185_v25 = vld [vmem:[#allocation2 + $0x21b0] sm:$0xff] }
 0x533   :  { %10851 = vmatprep.subr.bf16.mxu0 %v14954_v30  ;;  %11253 = vmatmul.mubr.bf16.vlgmr.msra.gmra.mrb[8].mxu1 %v16895_v27  ;;  %v14715_v27 = vcombine.low %v894_v47, %v898_v48  ;;  %v14993_v30 = vcombine.low %v1173_v10, %v1177_v37  ;;  %v15002_v63 = vcombine.high %v1181_v46, %v1185_v25  ;;  %v966_v10 = vld [vmem:[#allocation2 + $0x1ad8] sm:$0xff] }
 0x534   :  { %11262 = vmatpush1.bf16.msra.mxu1 %v14699_v31  ;;  %11293 = vmatprep.mubr.bf16.mxu1 %v16898_v34  ;;  %v14986_v34 = vcombine.high %v1165_v58, %v1169_v3  ;;  %v1189_v31 = vld [vmem:[#allocation2 + $0x21d0] sm:$0xff]  ;;  %v14756_v47 = vcombine.high %v934_v36, %v938_v39  ;;  %v958_v58 = vld [vmem:[#allocation2 + $0x1a98] sm:$0xff] }
 0x535   :  { %10843 = vmatmul.mubr.bf16.vlgmr.msra.gmra.mrb[4].mxu0 %v16929_v8  ;;  %11263 = vmatprep.subr.bf16.mxu1 %v14708_v41  ;;  %v14747_v41 = vcombine.low %v926_v17, %v930_v24  ;;  %v962_v3 = vld [vmem:[#allocation2 + $0x1ab8] sm:$0xff] }
 0x536   :  { %10852 = vmatpush1.bf16.msra.mxu0 %v14953_v40  ;;  %10883 = vmatprep.mubr.bf16.mxu0 %v16932_v19  ;;  %v1193_v40 = vld [vmem:[#allocation2 + $0x21f0] sm:$0xff]  ;;  %v14780_v53 = vcombine.high %v958_v58, %v962_v3  ;;  %v970_v37 = vld [vmem:[#allocation2 + $0x1af8] sm:$0xff] }
 0x537   :  { %10853 = vmatprep.subr.bf16.mxu0 %v14962_v44  ;;  %v15001_v44 = vcombine.low %v1181_v46, %v1185_v25  ;;  %v15010_v48 = vcombine.high %v1189_v31, %v1193_v40  ;;  %v14788_v17 = vcombine.high %v966_v10, %v970_v37  ;;  %v974_v46 = vld [vmem:[#allocation2 + $0x1b18] sm:$0xff] }
 0x538   :  { %11264 = vmatpush1.bf16.msra.mxu1 %v14707_v49  ;;  %v1197_v49 = vld [vmem:[#allocation2 + $0x2210] sm:$0xff]  ;;  %v978_v25 = vld [vmem:[#allocation2 + $0x1b38] sm:$0xff] }
 0x539   :  { %11265 = vmatprep.subr.bf16.mxu1 %v14716_v55  ;;  %v14755_v55 = vcombine.low %v934_v36, %v938_v39  ;;  %v14796_v36 = vcombine.high %v974_v46, %v978_v25 }
 0x53a   :  { %10854 = vmatpush1.bf16.msra.mxu0 %v14961_v62  ;;  %v1201_v62 = vld [vmem:[#allocation2 + $0x2230] sm:$0xff] }
 0x53b   :  { %10855 = vmatprep.subr.bf16.mxu0 %v14970_v57  ;;  %v15009_v57 = vcombine.low %v1189_v31, %v1193_v40  ;;  %v15018_v18 = vcombine.high %v1197_v49, %v1201_v62  ;;  %v982_v31 = vld [vmem:[#allocation2 + $0x1b58] sm:$0xff] }
 0x53c   :  { %11266 = vmatpush1.bf16.msra.mxu1 %v14715_v27  ;;  %v1205_v27 = vld [vmem:[#allocation2 + $0x2250] sm:$0xff]  ;;  %v986_v40 = vld [vmem:[#allocation2 + $0x1b78] sm:$0xff] }
 0x53d   :  { %11267 = vmatprep.subr.bf16.mxu1 %v14724_v1  ;;  %v14763_v1 = vcombine.low %v942_v52, %v946_v54  ;;  %v14804_v52 = vcombine.high %v982_v31, %v986_v40 }
 0x53e   :  { %10856 = vmatpush1.bf16.msra.mxu0 %v14969_v0  ;;  %v1209_v0 = vld [vmem:[#allocation2 + $0x2270] sm:$0xff] }
 0x53f   :  { %10857 = vmatprep.subr.bf16.mxu0 %v14978_v11  ;;  %v15017_v11 = vcombine.low %v1197_v49, %v1201_v62  ;;  %v15026_v42 = vcombine.high %v1205_v27, %v1209_v0  ;;  %v990_v49 = vld [vmem:[#allocation2 + $0x1b98] sm:$0xff] }
 0x540   :  { %11268 = vmatpush1.bf16.msra.mxu1 %v14723_v6  ;;  %v1213_v6 = vld [vmem:[#allocation2 + $0x2290] sm:$0xff]  ;;  %v994_v62 = vld [vmem:[#allocation2 + $0x1bb8] sm:$0xff] }
 0x541   :  { %11269 = vmatprep.subr.bf16.mxu1 %v14732_v33  ;;  %v14771_v33 = vcombine.low %v950_v60, %v954_v9  ;;  %v14812_v60 = vcombine.high %v990_v49, %v994_v62 }
 0x542   :  { %10858 = vmatpush1.bf16.msra.mxu0 %v14977_v7  ;;  %v1217_v7 = vld [vmem:[#allocation2 + $0x22b0] sm:$0xff] }
 0x543   :  { %10859 = vmatprep.subr.bf16.mxu0 %v14986_v34  ;;  %v15025_v34 = vcombine.low %v1205_v27, %v1209_v0  ;;  %v15034_v51 = vcombine.high %v1213_v6, %v1217_v7  ;;  %v998_v27 = vld [vmem:[#allocation2 + $0x1bd8] sm:$0xff] }
 0x544   :  { %11270 = vmatpush1.bf16.msra.mxu1 %v14731_v21  ;;  %v1221_v21 = vld [vmem:[#allocation2 + $0x22d0] sm:$0xff]  ;;  %v1002_v0 = vld [vmem:[#allocation2 + $0x1bf8] sm:$0xff] }
 0x545   :  { %11271 = vmatprep.subr.bf16.mxu1 %v14740_v14  ;;  %v14779_v14 = vcombine.low %v958_v58, %v962_v3  ;;  %v14820_v58 = vcombine.high %v998_v27, %v1002_v0 }
 0x546   :  { %10860 = vmatpush1.bf16.msra.mxu0 %v14985_v50  ;;  %v1225_v50 = vld [vmem:[#allocation2 + $0x22f0] sm:$0xff] }
 0x547   :  { %10861 = vmatprep.subr.bf16.mxu0 %v14994_v15  ;;  %v15033_v15 = vcombine.low %v1213_v6, %v1217_v7  ;;  %v15042_v24 = vcombine.high %v1221_v21, %v1225_v50  ;;  %v1006_v6 = vld [vmem:[#allocation2 + $0x1c18] sm:$0xff] }
 0x548   :  { %11272 = vmatpush1.bf16.msra.mxu1 %v14739_v26  ;;  %v1229_v26 = vld [vmem:[#allocation2 + $0x2310] sm:$0xff]  ;;  %v1010_v7 = vld [vmem:[#allocation2 + $0x1c38] sm:$0xff] }
 0x549   :  { %11273 = vmatprep.subr.bf16.mxu1 %v14748_v56  ;;  %v14787_v56 = vcombine.low %v966_v10, %v970_v37  ;;  %v14828_v10 = vcombine.high %v1006_v6, %v1010_v7 }
 0x54a   :  { %10862 = vmatpush1.bf16.msra.mxu0 %v14993_v30  ;;  %v1233_v30 = vld [vmem:[#allocation2 + $0x2330] sm:$0xff] }
 0x54b   :  { %10863 = vmatprep.subr.bf16.mxu0 %v15002_v63  ;;  %v15041_v63 = vcombine.low %v1221_v21, %v1225_v50  ;;  %v15050_v39 = vcombine.high %v1229_v26, %v1233_v30  ;;  %v1014_v21 = vld [vmem:[#allocation2 + $0x1c58] sm:$0xff] }
 0x54c   :  { %11274 = vmatpush1.bf16.msra.mxu1 %v14747_v41  ;;  %v1237_v41 = vld [vmem:[#allocation2 + $0x2350] sm:$0xff]  ;;  %v1018_v50 = vld [vmem:[#allocation2 + $0x1c78] sm:$0xff] }
 0x54d   :  { %11275 = vmatprep.subr.bf16.mxu1 %v14756_v47  ;;  %v14795_v47 = vcombine.low %v974_v46, %v978_v25  ;;  %v14836_v46 = vcombine.high %v1014_v21, %v1018_v50 }
 0x54e   :  { %10864 = vmatpush1.bf16.msra.mxu0 %v15001_v44  ;;  %v1241_v44 = vld [vmem:[#allocation2 + $0x2370] sm:$0xff] }
 0x54f   :  { %10865 = vmatprep.subr.bf16.mxu0 %v15010_v48  ;;  %v15049_v48 = vcombine.low %v1229_v26, %v1233_v30  ;;  %v15058_v54 = vcombine.high %v1237_v41, %v1241_v44  ;;  %v1022_v26 = vld [vmem:[#allocation2 + $0x1c98] sm:$0xff] }
 0x550   :  { %11276 = vmatpush1.bf16.msra.mxu1 %v14755_v55  ;;  %v1245_v55 = vld [vmem:[#allocation2 + $0x2390] sm:$0xff]  ;;  %v1026_v30 = vld [vmem:[#allocation2 + $0x1cb8] sm:$0xff] }
 0x551   :  { %11277 = vmatprep.subr.bf16.mxu1 %v14764_v38  ;;  %v14803_v38 = vcombine.low %v982_v31, %v986_v40  ;;  %v14844_v31 = vcombine.high %v1022_v26, %v1026_v30 }
 0x552   :  { %10866 = vmatpush1.bf16.msra.mxu0 %v15009_v57  ;;  %v1249_v57 = vld [vmem:[#allocation2 + $0x23b0] sm:$0xff] }
 0x553   :  { %10867 = vmatprep.subr.bf16.mxu0 %v15018_v18  ;;  %v15057_v18 = vcombine.low %v1237_v41, %v1241_v44  ;;  %v15066_v9 = vcombine.high %v1245_v55, %v1249_v57  ;;  %v1030_v41 = vld [vmem:[#allocation2 + $0x1cd8] sm:$0xff] }
 0x554   :  { %11278 = vmatpush1.bf16.msra.mxu1 %v14763_v1  ;;  %v1253_v1 = vld [vmem:[#allocation2 + $0x23d0] sm:$0xff]  ;;  %v1034_v44 = vld [vmem:[#allocation2 + $0x1cf8] sm:$0xff] }
 0x555   :  { %11279 = vmatprep.subr.bf16.mxu1 %v14772_v2  ;;  %v14811_v2 = vcombine.low %v990_v49, %v994_v62  ;;  %v1038_v62 = vld [vmem:[#allocation2 + $0x1d18] sm:$0xff] }
 0x556   :  { %10868 = vmatpush1.bf16.msra.mxu0 %v15017_v11  ;;  %v1257_v11 = vld [vmem:[#allocation2 + $0x23f0] sm:$0xff] }
 0x557   :  { %10869 = vmatprep.subr.bf16.mxu0 %v15026_v42  ;;  %v15065_v42 = vcombine.low %v1245_v55, %v1249_v57  ;;  %v15074_v3 = vcombine.high %v1253_v1, %v1257_v11  ;;  %v1042_v55 = vld [vmem:[#allocation2 + $0x1d38] sm:$0xff]  ;;  %v1293_v57 = vld [vmem:[#allocation2 + $0x2510] sm:$0xff] }
 0x558   :  { %11280 = vmatpush1.bf16.msra.mxu1 %v14771_v33  ;;  %v1261_v33 = vld [vmem:[#allocation2 + $0x2410] sm:$0xff] }
 0x559   :  { %11281 = vmatprep.subr.bf16.mxu1 %v14780_v53  ;;  %v14819_v53 = vcombine.low %v998_v27, %v1002_v0  ;;  %v1046_v27 = vld [vmem:[#allocation2 + $0x1d58] sm:$0xff] }
 0x55a   :  { %10870 = vmatpush1.bf16.msra.mxu0 %v15025_v34  ;;  %v1265_v34 = vld [vmem:[#allocation2 + $0x2430] sm:$0xff]  ;;  %v1050_v0 = vld [vmem:[#allocation2 + $0x1d78] sm:$0xff] }
 0x55b   :  { %10871 = vmatprep.subr.bf16.mxu0 %v15034_v51  ;;  %v15073_v51 = vcombine.low %v1253_v1, %v1257_v11  ;;  %v15082_v37 = vcombine.high %v1261_v33, %v1265_v34  ;;  %v1301_v1 = vld [vmem:[#allocation2 + $0x2550] sm:$0xff] }
 0x55c   :  { %11282 = vmatpush1.bf16.msra.mxu1 %v14779_v14  ;;  %v1269_v14 = vld [vmem:[#allocation2 + $0x2450] sm:$0xff] }
 0x55d   :  { %11283 = vmatprep.subr.bf16.mxu1 %v14788_v17  ;;  %v14827_v17 = vcombine.low %v1006_v6, %v1010_v7  ;;  %v1305_v11 = vld [vmem:[#allocation2 + $0x2570] sm:$0xff]  ;;  %v1054_v6 = vld [vmem:[#allocation2 + $0x1d98] sm:$0xff] }
 0x55e   :  { %10872 = vmatpush1.bf16.msra.mxu0 %v15033_v15  ;;  %v1273_v15 = vld [vmem:[#allocation2 + $0x2470] sm:$0xff]  ;;  %v1058_v7 = vld [vmem:[#allocation2 + $0x1db8] sm:$0xff] }
 0x55f   :  { %10873 = vmatprep.subr.bf16.mxu0 %v15042_v24  ;;  %v15081_v24 = vcombine.low %v1261_v33, %v1265_v34  ;;  %v15090_v25 = vcombine.high %v1269_v14, %v1273_v15  ;;  %v1309_v33 = vld [vmem:[#allocation2 + $0x2590] sm:$0xff] }
 0x560   :  { %11284 = vmatpush1.bf16.msra.mxu1 %v14787_v56  ;;  %v1277_v56 = vld [vmem:[#allocation2 + $0x2490] sm:$0xff] }
 0x561   :  { %11285 = vmatprep.subr.bf16.mxu1 %v14796_v36  ;;  %v14835_v36 = vcombine.low %v1014_v21, %v1018_v50  ;;  %v1313_v34 = vld [vmem:[#allocation2 + $0x25b0] sm:$0xff]  ;;  %v1062_v21 = vld [vmem:[#allocation2 + $0x1dd8] sm:$0xff] }
 0x562   :  { %10874 = vmatpush1.bf16.msra.mxu0 %v15041_v63  ;;  %v1281_v63 = vld [vmem:[#allocation2 + $0x24b0] sm:$0xff]  ;;  %v1066_v50 = vld [vmem:[#allocation2 + $0x1df8] sm:$0xff] }
 0x563   :  { %10875 = vmatprep.subr.bf16.mxu0 %v15050_v39  ;;  %v15089_v39 = vcombine.low %v1269_v14, %v1273_v15  ;;  %v15098_v40 = vcombine.high %v1277_v56, %v1281_v63  ;;  %v1317_v14 = vld [vmem:[#allocation2 + $0x25d0] sm:$0xff] }
 0x564   :  { %11286 = vmatpush1.bf16.msra.mxu1 %v14795_v47  ;;  %v1285_v47 = vld [vmem:[#allocation2 + $0x24d0] sm:$0xff] }
 0x565   :  { %11287 = vmatprep.subr.bf16.mxu1 %v14804_v52  ;;  %v15097_v52 = vcombine.low %v1277_v56, %v1281_v63  ;;  %v1321_v15 = vld [vmem:[#allocation2 + $0x25f0] sm:$0xff] }
 0x566   :  { %10876 = vmatpush1.bf16.msra.mxu0 %v15049_v48  ;;  %v1289_v48 = vld [vmem:[#allocation2 + $0x24f0] sm:$0xff] }
 0x567   :  { %10877 = vmatprep.subr.bf16.mxu0 %v15058_v54  ;;  %v14852_v54 = vcombine.high %v1030_v41, %v1034_v44  ;;  %v15106_v49 = vcombine.high %v1285_v47, %v1289_v48  ;;  %v1325_v56 = vld [vmem:[#allocation2 + $0x2610] sm:$0xff] }
 0x568   :  { %11288 = vmatpush1.bf16.msra.mxu1 %v14803_v38  ;;  %v1297_v38 = vld [vmem:[#allocation2 + $0x2530] sm:$0xff] }
 0x569   :  { %11289 = vmatprep.subr.bf16.mxu1 %v14812_v60  ;;  %v15105_v60 = vcombine.low %v1285_v47, %v1289_v48  ;;  %v1329_v63 = vld [vmem:[#allocation2 + $0x2630] sm:$0xff] }
 0x56a   :  { %10878 = vmatpush1.bf16.msra.mxu0 %v15057_v18  ;;  %v14851_v18 = vcombine.low %v1030_v41, %v1034_v44  ;;  %v1078_v41 = vld [vmem:[#allocation2 + $0x1e58] sm:$0xff]  ;;  %v1333_v47 = vld [vmem:[#allocation2 + $0x2650] sm:$0xff] }
 0x56b   :  { %10879 = vmatprep.subr.bf16.mxu0 %v15066_v9  ;;  %v14860_v9 = vcombine.high %v1038_v62, %v1042_v55  ;;  %v1082_v44 = vld [vmem:[#allocation2 + $0x1e78] sm:$0xff]  ;;  %v1337_v48 = vld [vmem:[#allocation2 + $0x2670] sm:$0xff] }
 0x56c   :  { %11290 = vmatpush1.bf16.msra.mxu1 %v14811_v2  ;;  %v14859_v2 = vcombine.low %v1038_v62, %v1042_v55  ;;  %v1086_v62 = vld [vmem:[#allocation2 + $0x1e98] sm:$0xff] }
 0x56d   :  { %11291 = vmatprep.subr.bf16.mxu1 %v14820_v58  ;;  %v14868_v58 = vcombine.high %v1046_v27, %v1050_v0  ;;  %v1090_v55 = vld [vmem:[#allocation2 + $0x1eb8] sm:$0xff] }
 0x56e   :  { %10880 = vmatpush1.bf16.msra.mxu0 %v15065_v42  ;;  %v15113_v42 = vcombine.low %v1293_v57, %v1297_v38 }
 0x56f   :  { %10881 = vmatprep.subr.bf16.mxu0 %v15074_v3  ;;  %v15122_v3 = vcombine.high %v1301_v1, %v1305_v11 }
 0x570   :  { %11292 = vmatpush1.bf16.msra.mxu1 %v14819_v53  ;;  %v14867_v53 = vcombine.low %v1046_v27, %v1050_v0  ;;  %v1094_v27 = vld [vmem:[#allocation2 + $0x1ed8] sm:$0xff] }
 0x571   :  { %11302 = vmatprep.subr.bf16.mxu1 %v14828_v10  ;;  %v14876_v10 = vcombine.high %v1054_v6, %v1058_v7  ;;  %v1098_v0 = vld [vmem:[#allocation2 + $0x1ef8] sm:$0xff] }
 0x572   :  { %10882 = vmatpush1.bf16.msra.mxu0 %v15073_v51  ;;  %v15121_v51 = vcombine.low %v1301_v1, %v1305_v11  ;;  %v1349_v1 = vld [vmem:[#allocation2 + $0x26d0] sm:$0xff] }
 0x573   :  { %10892 = vmatprep.subr.bf16.mxu0 %v15082_v37  ;;  %11294 = vmatmul.mubr.bf16.vlgmr.msra.gmra.mrb[8].mxu1 %v16906_v16  ;;  %v14843_v16 = vcombine.low %v1022_v26, %v1026_v30  ;;  %v15130_v37 = vcombine.high %v1309_v33, %v1313_v34  ;;  %v1070_v26 = vld [vmem:[#allocation2 + $0x1e18] sm:$0xff]  ;;  %v1353_v11 = vld [vmem:[#allocation2 + $0x26f0] sm:$0xff] }
 0x574   :  { %11303 = vmatpush1.bf16.msra.mxu1 %v14827_v17  ;;  %11334 = vmatprep.mubr.bf16.mxu1 %v16910_v23  ;;  %v15114_v23 = vcombine.high %v1293_v57, %v1297_v38  ;;  %v14875_v17 = vcombine.low %v1054_v6, %v1058_v7  ;;  %v1074_v30 = vld [vmem:[#allocation2 + $0x1e38] sm:$0xff]  ;;  %v1341_v57 = vld [vmem:[#allocation2 + $0x2690] sm:$0xff] }
 0x575   :  { %10884 = vmatmul.mubr.bf16.vlgmr.msra.gmra.mrb[4].mxu0 %v16940_v20  ;;  %11304 = vmatprep.subr.bf16.mxu1 %v14836_v46  ;;  %v14884_v46 = vcombine.high %v1062_v21, %v1066_v50  ;;  %v1345_v38 = vld [vmem:[#allocation2 + $0x26b0] sm:$0xff]  ;;  %v1102_v6 = vld [vmem:[#allocation2 + $0x1f18] sm:$0xff] }
 0x576   :  { %10893 = vmatpush1.bf16.msra.mxu0 %v15081_v24  ;;  %10924 = vmatprep.mubr.bf16.mxu0 %v16944_v28  ;;  %v15129_v24 = vcombine.low %v1309_v33, %v1313_v34  ;;  %v1106_v7 = vld [vmem:[#allocation2 + $0x1f38] sm:$0xff]  ;;  %v1357_v33 = vld [vmem:[#allocation2 + $0x2710] sm:$0xff] }
 0x577   :  { %10894 = vmatprep.subr.bf16.mxu0 %v15090_v25  ;;  %v15138_v25 = vcombine.high %v1317_v14, %v1321_v15  ;;  %v1361_v34 = vld [vmem:[#allocation2 + $0x2730] sm:$0xff] }
 0x578   :  { %11305 = vmatpush1.bf16.msra.mxu1 %v14835_v36  ;;  %v14883_v36 = vcombine.low %v1062_v21, %v1066_v50  ;;  %v1110_v21 = vld [vmem:[#allocation2 + $0x1f58] sm:$0xff] }
 0x579   :  { %11306 = vmatprep.subr.bf16.mxu1 %v14844_v31  ;;  %v14892_v31 = vcombine.high %v1070_v26, %v1074_v30  ;;  %v1114_v50 = vld [vmem:[#allocation2 + $0x1f78] sm:$0xff] }
 0x57a   :  { %10895 = vmatpush1.bf16.msra.mxu0 %v15089_v39  ;;  %v15137_v39 = vcombine.low %v1317_v14, %v1321_v15  ;;  %v1365_v14 = vld [vmem:[#allocation2 + $0x2750] sm:$0xff] }
 0x57b   :  { %10896 = vmatprep.subr.bf16.mxu0 %v15098_v40  ;;  %v15146_v40 = vcombine.high %v1325_v56, %v1329_v63  ;;  %v1369_v15 = vld [vmem:[#allocation2 + $0x2770] sm:$0xff] }
 0x57c   :  { %11307 = vmatpush1.bf16.msra.mxu1 %v14843_v16  ;;  %v14891_v16 = vcombine.low %v1070_v26, %v1074_v30  ;;  %v1118_v26 = vld [vmem:[#allocation2 + $0x1f98] sm:$0xff] }
 0x57d   :  { %11308 = vmatprep.subr.bf16.mxu1 %v14852_v54  ;;  %v14900_v54 = vcombine.high %v1078_v41, %v1082_v44  ;;  %v1122_v30 = vld [vmem:[#allocation2 + $0x1fb8] sm:$0xff] }
 0x57e   :  { %10897 = vmatpush1.bf16.msra.mxu0 %v15097_v52  ;;  %v15145_v52 = vcombine.low %v1325_v56, %v1329_v63  ;;  %v1373_v56 = vld [vmem:[#allocation2 + $0x2790] sm:$0xff] }
 0x57f   :  { %10898 = vmatprep.subr.bf16.mxu0 %v15106_v49  ;;  %v15154_v49 = vcombine.high %v1333_v47, %v1337_v48  ;;  %v1377_v63 = vld [vmem:[#allocation2 + $0x27b0] sm:$0xff] }
 0x580   :  { %11309 = vmatpush1.bf16.msra.mxu1 %v14851_v18  ;;  %v14899_v18 = vcombine.low %v1078_v41, %v1082_v44  ;;  %v1126_v41 = vld [vmem:[#allocation2 + $0x1fd8] sm:$0xff] }
 0x581   :  { %11310 = vmatprep.subr.bf16.mxu1 %v14860_v9  ;;  %v14908_v9 = vcombine.high %v1086_v62, %v1090_v55  ;;  %v1130_v44 = vld [vmem:[#allocation2 + $0x1ff8] sm:$0xff] }
 0x582   :  { %10899 = vmatpush1.bf16.msra.mxu0 %v15105_v60  ;;  %v15153_v60 = vcombine.low %v1333_v47, %v1337_v48  ;;  %v1381_v47 = vld [vmem:[#allocation2 + $0x27d0] sm:$0xff] }
 0x583   :  { %10900 = vmatprep.subr.bf16.mxu0 %v15114_v23  ;;  %v15162_v23 = vcombine.high %v1341_v57, %v1345_v38  ;;  %v1385_v48 = vld [vmem:[#allocation2 + $0x27f0] sm:$0xff] }
 0x584   :  { %11311 = vmatpush1.bf16.msra.mxu1 %v14859_v2  ;;  %v14907_v2 = vcombine.low %v1086_v62, %v1090_v55  ;;  %v1134_v62 = vld [vmem:[#allocation2 + $0x2018] sm:$0xff] }
 0x585   :  { %11312 = vmatprep.subr.bf16.mxu1 %v14868_v58  ;;  %v14916_v58 = vcombine.high %v1094_v27, %v1098_v0  ;;  %v1138_v55 = vld [vmem:[#allocation2 + $0x2038] sm:$0xff] }
 0x586   :  { %10901 = vmatpush1.bf16.msra.mxu0 %v15113_v42  ;;  %v15161_v42 = vcombine.low %v1341_v57, %v1345_v38  ;;  %v1389_v57 = vld [vmem:[#allocation2 + $0x2810] sm:$0xff] }
 0x587   :  { %10902 = vmatprep.subr.bf16.mxu0 %v15122_v3  ;;  %v15170_v3 = vcombine.high %v1349_v1, %v1353_v11  ;;  %v1393_v38 = vld [vmem:[#allocation2 + $0x2830] sm:$0xff] }
 0x588   :  { %11313 = vmatpush1.bf16.msra.mxu1 %v14867_v53  ;;  %v14915_v53 = vcombine.low %v1094_v27, %v1098_v0  ;;  %v1142_v27 = vld [vmem:[#allocation2 + $0x2058] sm:$0xff] }
 0x589   :  { %11314 = vmatprep.subr.bf16.mxu1 %v14876_v10  ;;  %v14924_v10 = vcombine.high %v1102_v6, %v1106_v7  ;;  %v1146_v0 = vld [vmem:[#allocation2 + $0x2078] sm:$0xff] }
 0x58a   :  { %10903 = vmatpush1.bf16.msra.mxu0 %v15121_v51  ;;  %v15169_v51 = vcombine.low %v1349_v1, %v1353_v11  ;;  %v1397_v1 = vld [vmem:[#allocation2 + $0x2850] sm:$0xff] }
 0x58b   :  { %10904 = vmatprep.subr.bf16.mxu0 %v15130_v37  ;;  %v15178_v37 = vcombine.high %v1357_v33, %v1361_v34  ;;  %v1401_v11 = vld [vmem:[#allocation2 + $0x2870] sm:$0xff] }
 0x58c   :  { %11315 = vmatpush1.bf16.msra.mxu1 %v14875_v17  ;;  %v14923_v17 = vcombine.low %v1102_v6, %v1106_v7  ;;  %v1150_v6 = vld [vmem:[#allocation2 + $0x2098] sm:$0xff] }
 0x58d   :  { %11316 = vmatprep.subr.bf16.mxu1 %v14884_v46  ;;  %v14932_v46 = vcombine.high %v1110_v21, %v1114_v50  ;;  %v1154_v7 = vld [vmem:[#allocation2 + $0x20b8] sm:$0xff] }
 0x58e   :  { %10905 = vmatpush1.bf16.msra.mxu0 %v15129_v24  ;;  %v15177_v24 = vcombine.low %v1357_v33, %v1361_v34  ;;  %v1405_v33 = vld [vmem:[#allocation2 + $0x2890] sm:$0xff] }
 0x58f   :  { %10906 = vmatprep.subr.bf16.mxu0 %v15138_v25  ;;  %v15186_v25 = vcombine.high %v1365_v14, %v1369_v15  ;;  %v1409_v34 = vld [vmem:[#allocation2 + $0x28b0] sm:$0xff] }
 0x590   :  { %11317 = vmatpush1.bf16.msra.mxu1 %v14883_v36  ;;  %v14931_v36 = vcombine.low %v1110_v21, %v1114_v50  ;;  %v1158_v21 = vld [vmem:[#allocation2 + $0x20d8] sm:$0xff] }
 0x591   :  { %11318 = vmatprep.subr.bf16.mxu1 %v14892_v31  ;;  %v14940_v31 = vcombine.high %v1118_v26, %v1122_v30  ;;  %v1162_v50 = vld [vmem:[#allocation2 + $0x20f8] sm:$0xff] }
 0x592   :  { %10907 = vmatpush1.bf16.msra.mxu0 %v15137_v39  ;;  %v15185_v39 = vcombine.low %v1365_v14, %v1369_v15  ;;  %v1413_v14 = vld [vmem:[#allocation2 + $0x28d0] sm:$0xff] }
 0x593   :  { %10908 = vmatprep.subr.bf16.mxu0 %v15146_v40  ;;  %v15194_v40 = vcombine.high %v1373_v56, %v1377_v63  ;;  %v1417_v15 = vld [vmem:[#allocation2 + $0x28f0] sm:$0xff] }
 0x594   :  { %11319 = vmatpush1.bf16.msra.mxu1 %v14891_v16  ;;  %v14939_v16 = vcombine.low %v1118_v26, %v1122_v30  ;;  %v1170_v26 = vld [vmem:[#allocation2 + $0x2138] sm:$0xff]  ;;  %v1421_v30 = vld [vmem:[#allocation2 + $0x2910] sm:$0xff] }
 0x595   :  { %11320 = vmatprep.subr.bf16.mxu1 %v14900_v54  ;;  %v14948_v54 = vcombine.high %v1126_v41, %v1130_v44 }
 0x596   :  { %10909 = vmatpush1.bf16.msra.mxu0 %v15145_v52  ;;  %v15193_v52 = vcombine.low %v1373_v56, %v1377_v63  ;;  %v1425_v56 = vld [vmem:[#allocation2 + $0x2930] sm:$0xff]  ;;  %v14979_v63 = vcombine.low %v1158_v21, %v1162_v50 }
 0x597   :  { %10910 = vmatprep.subr.bf16.mxu0 %v15154_v49  ;;  %v15202_v49 = vcombine.high %v1381_v47, %v1385_v48 }
 0x598   :  { %11321 = vmatpush1.bf16.msra.mxu1 %v14899_v18  ;;  %v14947_v18 = vcombine.low %v1126_v41, %v1130_v44  ;;  %v1429_v41 = vld [vmem:[#allocation2 + $0x2950] sm:$0xff] }
 0x599   :  { %11322 = vmatprep.subr.bf16.mxu1 %v14908_v9  ;;  %v14956_v9 = vcombine.high %v1134_v62, %v1138_v55  ;;  %v1433_v44 = vld [vmem:[#allocation2 + $0x2970] sm:$0xff] }
 0x59a   :  { %10911 = vmatpush1.bf16.msra.mxu0 %v15153_v60  ;;  %v15201_v60 = vcombine.low %v1381_v47, %v1385_v48  ;;  %v15241_v48 = vcombine.low %v1421_v30, %v1425_v56 }
 0x59b   :  { %10912 = vmatprep.subr.bf16.mxu0 %v15162_v23  ;;  %v15210_v23 = vcombine.high %v1389_v57, %v1393_v38 }
 0x59c   :  { %11323 = vmatpush1.bf16.msra.mxu1 %v14907_v2  ;;  %v14955_v2 = vcombine.low %v1134_v62, %v1138_v55  ;;  %v1437_v62 = vld [vmem:[#allocation2 + $0x2990] sm:$0xff] }
 0x59d   :  { %11324 = vmatprep.subr.bf16.mxu1 %v14916_v58  ;;  %v14964_v58 = vcombine.high %v1142_v27, %v1146_v0  ;;  %v1441_v55 = vld [vmem:[#allocation2 + $0x29b0] sm:$0xff] }
 0x59e   :  { %10913 = vmatpush1.bf16.msra.mxu0 %v15161_v42  ;;  %v15209_v42 = vcombine.low %v1389_v57, %v1393_v38  ;;  %v15249_v38 = vcombine.low %v1429_v41, %v1433_v44 }
 0x59f   :  { %10914 = vmatprep.subr.bf16.mxu0 %v15170_v3  ;;  %v15218_v3 = vcombine.high %v1397_v1, %v1401_v11 }
 0x5a0   :  { %11325 = vmatpush1.bf16.msra.mxu1 %v14915_v53  ;;  %v14963_v53 = vcombine.low %v1142_v27, %v1146_v0  ;;  %v1445_v27 = vld [vmem:[#allocation2 + $0x29d0] sm:$0xff] }
 0x5a1   :  { %11326 = vmatprep.subr.bf16.mxu1 %v14924_v10  ;;  %v14972_v10 = vcombine.high %v1150_v6, %v1154_v7  ;;  %v1449_v0 = vld [vmem:[#allocation2 + $0x29f0] sm:$0xff] }
 0x5a2   :  { %10915 = vmatpush1.bf16.msra.mxu0 %v15169_v51  ;;  %v15217_v51 = vcombine.low %v1397_v1, %v1401_v11  ;;  %v15257_v11 = vcombine.low %v1437_v62, %v1441_v55 }
 0x5a3   :  { %10916 = vmatprep.subr.bf16.mxu0 %v15178_v37  ;;  %v15226_v37 = vcombine.high %v1405_v33, %v1409_v34 }
 0x5a4   :  { %11327 = vmatpush1.bf16.msra.mxu1 %v14923_v17  ;;  %v15225_v17 = vcombine.low %v1405_v33, %v1409_v34  ;;  %v15265_v34 = vcombine.low %v1445_v27, %v1449_v0 }
 0x5a5   :  { %11328 = vmatprep.subr.bf16.mxu1 %v14932_v46  ;;  %v15234_v46 = vcombine.high %v1413_v14, %v1417_v15 }
 0x5a6   :  { %10917 = vmatpush1.bf16.msra.mxu0 %v15177_v24  ;;  %v14980_v24 = vcombine.high %v1158_v21, %v1162_v50  ;;  %v1461_v21 = vld [vmem:[#allocation2 + $0x2a50] sm:$0xff] }
 0x5a7   :  { %10918 = vmatprep.subr.bf16.mxu0 %v15186_v25  ;;  %v1166_v25 = vld [vmem:[#allocation2 + $0x2118] sm:$0xff]  ;;  %v1465_v50 = vld [vmem:[#allocation2 + $0x2a70] sm:$0xff] }
 0x5a8   :  { %11329 = vmatpush1.bf16.msra.mxu1 %v14931_v36  ;;  %v15233_v36 = vcombine.low %v1413_v14, %v1417_v15  ;;  %v14987_v47 = vcombine.low %v1166_v25, %v1170_v26 }
 0x5a9   :  { %11330 = vmatprep.subr.bf16.mxu1 %v14940_v31  ;;  %v1174_v31 = vld [vmem:[#allocation2 + $0x2158] sm:$0xff] }
 0x5aa   :  { %10919 = vmatpush1.bf16.msra.mxu0 %v15185_v39  ;;  %v14988_v39 = vcombine.high %v1166_v25, %v1170_v26  ;;  %v1469_v25 = vld [vmem:[#allocation2 + $0x2a90] sm:$0xff] }
 0x5ab   :  { %10920 = vmatprep.subr.bf16.mxu0 %v15194_v40  ;;  %v1178_v40 = vld [vmem:[#allocation2 + $0x2178] sm:$0xff]  ;;  %v1473_v26 = vld [vmem:[#allocation2 + $0x2ab0] sm:$0xff] }
 0x5ac   :  { %11331 = vmatpush1.bf16.msra.mxu1 %v14939_v16  ;;  %v14996_v16 = vcombine.high %v1174_v31, %v1178_v40  ;;  %v14995_v57 = vcombine.low %v1174_v31, %v1178_v40  ;;  %v1477_v31 = vld [vmem:[#allocation2 + $0x2ad0] sm:$0xff] }
 0x5ad   :  { %11332 = vmatprep.subr.bf16.mxu1 %v14948_v54  ;;  %v1182_v54 = vld [vmem:[#allocation2 + $0x2198] sm:$0xff]  ;;  %v1481_v40 = vld [vmem:[#allocation2 + $0x2af0] sm:$0xff] }
 0x5ae   :  { %10921 = vmatpush1.bf16.msra.mxu0 %v15193_v52  ;;  %v15250_v52 = vcombine.high %v1429_v41, %v1433_v44  ;;  %v15289_v44 = vcombine.low %v1469_v25, %v1473_v26 }
 0x5af   :  { %10922 = vmatprep.subr.bf16.mxu0 %v15202_v49  ;;  %v1186_v49 = vld [vmem:[#allocation2 + $0x21b8] sm:$0xff] }
 0x5b0   :  { %11333 = vmatpush1.bf16.msra.mxu1 %v14947_v18  ;;  %v15004_v18 = vcombine.high %v1182_v54, %v1186_v49  ;;  %v15003_v1 = vcombine.low %v1182_v54, %v1186_v49  ;;  %v1485_v54 = vld [vmem:[#allocation2 + $0x2b10] sm:$0xff] }
 0x5b1   :  { %11343 = vmatprep.subr.bf16.mxu1 %v14956_v9  ;;  %v1190_v9 = vld [vmem:[#allocation2 + $0x21d8] sm:$0xff]  ;;  %v1489_v49 = vld [vmem:[#allocation2 + $0x2b30] sm:$0xff] }
 0x5b2   :  { %10923 = vmatpush1.bf16.msra.mxu0 %v15201_v60  ;;  %v15258_v60 = vcombine.high %v1437_v62, %v1441_v55  ;;  %v15297_v55 = vcombine.low %v1477_v31, %v1481_v40 }
 0x5b3   :  { %10933 = vmatprep.subr.bf16.mxu0 %v15210_v23  ;;  %11335 = vmatmul.mubr.bf16.vlgmr.msra.gmra.mrb[8].mxu1 %v16929_v8  ;;  %v14971_v8 = vcombine.low %v1150_v6, %v1154_v7  ;;  %v1194_v23 = vld [vmem:[#allocation2 + $0x21f8] sm:$0xff]  ;;  %v1453_v6 = vld [vmem:[#allocation2 + $0x2a10] sm:$0xff] }
 0x5b4   :  { %11344 = vmatpush1.bf16.msra.mxu1 %v14955_v2  ;;  %11375 = vmatprep.mubr.bf16.mxu1 %v16932_v19  ;;  %v15242_v19 = vcombine.high %v1421_v30, %v1425_v56  ;;  %v15012_v2 = vcombine.high %v1190_v9, %v1194_v23  ;;  %v1457_v7 = vld [vmem:[#allocation2 + $0x2a30] sm:$0xff]  ;;  %v15011_v33 = vcombine.low %v1190_v9, %v1194_v23 }
 0x5b5   :  { %10925 = vmatmul.mubr.bf16.vlgmr.msra.gmra.mrb[4].mxu0 %v16959_v35  ;;  %11345 = vmatprep.subr.bf16.mxu1 %v14964_v58  ;;  %v1198_v58 = vld [vmem:[#allocation2 + $0x2218] sm:$0xff]  ;;  %v15273_v15 = vcombine.low %v1453_v6, %v1457_v7  ;;  %v15281_v56 = vcombine.low %v1461_v21, %v1465_v50  ;;  %v1493_v9 = vld [vmem:[#allocation2 + $0x2b50] sm:$0xff] }
 0x5b6   :  { %10934 = vmatpush1.bf16.msra.mxu0 %v15209_v42  ;;  %10965 = vmatprep.mubr.bf16.mxu0 %v16962_v45  ;;  %v15266_v42 = vcombine.high %v1445_v27, %v1449_v0  ;;  %v1497_v23 = vld [vmem:[#allocation2 + $0x2b70] sm:$0xff]  ;;  %v15305_v0 = vcombine.low %v1485_v54, %v1489_v49 }
 0x5b7   :  { %10935 = vmatprep.subr.bf16.mxu0 %v15218_v3  ;;  %v1202_v3 = vld [vmem:[#allocation2 + $0x2238] sm:$0xff] }
 0x5b8   :  { %11346 = vmatpush1.bf16.msra.mxu1 %v14963_v53  ;;  %v15020_v53 = vcombine.high %v1198_v58, %v1202_v3  ;;  %v15019_v14 = vcombine.low %v1198_v58, %v1202_v3  ;;  %v1501_v58 = vld [vmem:[#allocation2 + $0x2b90] sm:$0xff] }
 0x5b9   :  { %11347 = vmatprep.subr.bf16.mxu1 %v14972_v10  ;;  %v1206_v10 = vld [vmem:[#allocation2 + $0x2258] sm:$0xff]  ;;  %v1505_v3 = vld [vmem:[#allocation2 + $0x2bb0] sm:$0xff] }
 0x5ba   :  { %10936 = vmatpush1.bf16.msra.mxu0 %v15217_v51  ;;  %v15274_v51 = vcombine.high %v1453_v6, %v1457_v7  ;;  %v15313_v7 = vcombine.low %v1493_v9, %v1497_v23 }
 0x5bb   :  { %10937 = vmatprep.subr.bf16.mxu0 %v15226_v37  ;;  %v1210_v37 = vld [vmem:[#allocation2 + $0x2278] sm:$0xff] }
 0x5bc   :  { %11348 = vmatpush1.bf16.msra.mxu1 %v14971_v8  ;;  %v15028_v8 = vcombine.high %v1206_v10, %v1210_v37  ;;  %v15027_v30 = vcombine.low %v1206_v10, %v1210_v37  ;;  %v1509_v10 = vld [vmem:[#allocation2 + $0x2bd0] sm:$0xff] }
 0x5bd   :  { %11349 = vmatprep.subr.bf16.mxu1 %v14980_v24  ;;  %v1214_v24 = vld [vmem:[#allocation2 + $0x2298] sm:$0xff]  ;;  %v1513_v37 = vld [vmem:[#allocation2 + $0x2bf0] sm:$0xff] }
 0x5be   :  { %10938 = vmatpush1.bf16.msra.mxu0 %v15225_v17  ;;  %v15282_v17 = vcombine.high %v1461_v21, %v1465_v50  ;;  %v15321_v50 = vcombine.low %v1501_v58, %v1505_v3 }
 0x5bf   :  { %10939 = vmatprep.subr.bf16.mxu0 %v15234_v46  ;;  %v1218_v46 = vld [vmem:[#allocation2 + $0x22b8] sm:$0xff] }
 0x5c0   :  { %11350 = vmatpush1.bf16.msra.mxu1 %v14979_v63  ;;  %v15036_v63 = vcombine.high %v1214_v24, %v1218_v46  ;;  %v15035_v41 = vcombine.low %v1214_v24, %v1218_v46  ;;  %v1517_v24 = vld [vmem:[#allocation2 + $0x2c10] sm:$0xff] }
 0x5c1   :  { %11351 = vmatprep.subr.bf16.mxu1 %v14988_v39  ;;  %v1222_v39 = vld [vmem:[#allocation2 + $0x22d8] sm:$0xff]  ;;  %v1521_v46 = vld [vmem:[#allocation2 + $0x2c30] sm:$0xff] }
 0x5c2   :  { %10940 = vmatpush1.bf16.msra.mxu0 %v15233_v36  ;;  %v15290_v36 = vcombine.high %v1469_v25, %v1473_v26  ;;  %v15329_v26 = vcombine.low %v1509_v10, %v1513_v37 }
 0x5c3   :  { %10941 = vmatprep.subr.bf16.mxu0 %v15242_v19  ;;  %v1226_v19 = vld [vmem:[#allocation2 + $0x22f8] sm:$0xff] }
 0x5c4   :  { %11352 = vmatpush1.bf16.msra.mxu1 %v14987_v47  ;;  %v15044_v47 = vcombine.high %v1222_v39, %v1226_v19  ;;  %v15043_v62 = vcombine.low %v1222_v39, %v1226_v19  ;;  %v1525_v39 = vld [vmem:[#allocation2 + $0x2c50] sm:$0xff] }
 0x5c5   :  { %11353 = vmatprep.subr.bf16.mxu1 %v14996_v16  ;;  %v1230_v16 = vld [vmem:[#allocation2 + $0x2318] sm:$0xff]  ;;  %v1529_v19 = vld [vmem:[#allocation2 + $0x2c70] sm:$0xff] }
 0x5c6   :  { %10942 = vmatpush1.bf16.msra.mxu0 %v15241_v48  ;;  %v15298_v48 = vcombine.high %v1477_v31, %v1481_v40  ;;  %v15337_v40 = vcombine.low %v1517_v24, %v1521_v46 }
 0x5c7   :  { %10943 = vmatprep.subr.bf16.mxu0 %v15250_v52  ;;  %v1234_v52 = vld [vmem:[#allocation2 + $0x2338] sm:$0xff] }
 0x5c8   :  { %11354 = vmatpush1.bf16.msra.mxu1 %v14995_v57  ;;  %v15052_v57 = vcombine.high %v1230_v16, %v1234_v52  ;;  %v15051_v27 = vcombine.low %v1230_v16, %v1234_v52  ;;  %v1533_v16 = vld [vmem:[#allocation2 + $0x2c90] sm:$0xff] }
 0x5c9   :  { %11355 = vmatprep.subr.bf16.mxu1 %v15004_v18  ;;  %v1238_v18 = vld [vmem:[#allocation2 + $0x2358] sm:$0xff]  ;;  %v1537_v52 = vld [vmem:[#allocation2 + $0x2cb0] sm:$0xff] }
 0x5ca   :  { %10944 = vmatpush1.bf16.msra.mxu0 %v15249_v38  ;;  %v15306_v38 = vcombine.high %v1485_v54, %v1489_v49  ;;  %v15345_v49 = vcombine.low %v1525_v39, %v1529_v19 }
 0x5cb   :  { %10945 = vmatprep.subr.bf16.mxu0 %v15258_v60  ;;  %v1242_v60 = vld [vmem:[#allocation2 + $0x2378] sm:$0xff] }
 0x5cc   :  { %11356 = vmatpush1.bf16.msra.mxu1 %v15003_v1  ;;  %v15060_v1 = vcombine.high %v1238_v18, %v1242_v60  ;;  %v15059_v6 = vcombine.low %v1238_v18, %v1242_v60  ;;  %v1541_v18 = vld [vmem:[#allocation2 + $0x2cd0] sm:$0xff] }
 0x5cd   :  { %11357 = vmatprep.subr.bf16.mxu1 %v15012_v2  ;;  %v1246_v2 = vld [vmem:[#allocation2 + $0x2398] sm:$0xff]  ;;  %v1545_v60 = vld [vmem:[#allocation2 + $0x2cf0] sm:$0xff] }
 0x5ce   :  { %10946 = vmatpush1.bf16.msra.mxu0 %v15257_v11  ;;  %v15314_v11 = vcombine.high %v1493_v9, %v1497_v23  ;;  %v15353_v9 = vcombine.low %v1533_v16, %v1537_v52 }
 0x5cf   :  { %10947 = vmatprep.subr.bf16.mxu0 %v15266_v42  ;;  %v1250_v42 = vld [vmem:[#allocation2 + $0x23b8] sm:$0xff] }
 0x5d0   :  { %11358 = vmatpush1.bf16.msra.mxu1 %v15011_v33  ;;  %v15068_v33 = vcombine.high %v1246_v2, %v1250_v42  ;;  %v15067_v21 = vcombine.low %v1246_v2, %v1250_v42  ;;  %v1553_v2 = vld [vmem:[#allocation2 + $0x2d30] sm:$0xff] }
 0x5d1   :  { %11359 = vmatprep.subr.bf16.mxu1 %v15020_v53  ;;  %v1254_v53 = vld [vmem:[#allocation2 + $0x23d8] sm:$0xff] }
 0x5d2   :  { %10948 = vmatpush1.bf16.msra.mxu0 %v15265_v34  ;;  %v15322_v34 = vcombine.high %v1501_v58, %v1505_v3  ;;  %v15361_v58 = vcombine.low %v1541_v18, %v1545_v60 }
 0x5d3   :  { %10949 = vmatprep.subr.bf16.mxu0 %v15274_v51  ;;  %v1258_v51 = vld [vmem:[#allocation2 + $0x23f8] sm:$0xff] }
 0x5d4   :  { %11360 = vmatpush1.bf16.msra.mxu1 %v15019_v14  ;;  %v15076_v14 = vcombine.high %v1254_v53, %v1258_v51  ;;  %v15075_v25 = vcombine.low %v1254_v53, %v1258_v51 }
 0x5d5   :  { %11361 = vmatprep.subr.bf16.mxu1 %v15028_v8  ;;  %v1262_v8 = vld [vmem:[#allocation2 + $0x2418] sm:$0xff] }
 0x5d6   :  { %10950 = vmatpush1.bf16.msra.mxu0 %v15273_v15  ;;  %v15330_v15 = vcombine.high %v1509_v10, %v1513_v37 }
 0x5d7   :  { %10951 = vmatprep.subr.bf16.mxu0 %v15282_v17  ;;  %v1266_v17 = vld [vmem:[#allocation2 + $0x2438] sm:$0xff] }
 0x5d8   :  { %11362 = vmatpush1.bf16.msra.mxu1 %v15027_v30  ;;  %v15084_v30 = vcombine.high %v1262_v8, %v1266_v17  ;;  %v15083_v31 = vcombine.low %v1262_v8, %v1266_v17 }
 0x5d9   :  { %11363 = vmatprep.subr.bf16.mxu1 %v15036_v63  ;;  %v1270_v63 = vld [vmem:[#allocation2 + $0x2458] sm:$0xff] }
 0x5da   :  { %10952 = vmatpush1.bf16.msra.mxu0 %v15281_v56  ;;  %v15338_v56 = vcombine.high %v1517_v24, %v1521_v46 }
 0x5db   :  { %10953 = vmatprep.subr.bf16.mxu0 %v15290_v36  ;;  %v1274_v36 = vld [vmem:[#allocation2 + $0x2478] sm:$0xff] }
 0x5dc   :  { %11364 = vmatpush1.bf16.msra.mxu1 %v15035_v41  ;;  %v15092_v41 = vcombine.high %v1270_v63, %v1274_v36  ;;  %v15091_v54 = vcombine.low %v1270_v63, %v1274_v36 }
 0x5dd   :  { %11365 = vmatprep.subr.bf16.mxu1 %v15044_v47  ;;  %v1278_v47 = vld [vmem:[#allocation2 + $0x2498] sm:$0xff] }
 0x5de   :  { %10954 = vmatpush1.bf16.msra.mxu0 %v15289_v44  ;;  %v15346_v44 = vcombine.high %v1525_v39, %v1529_v19 }
 0x5df   :  { %10955 = vmatprep.subr.bf16.mxu0 %v15298_v48  ;;  %v1282_v48 = vld [vmem:[#allocation2 + $0x24b8] sm:$0xff] }
 0x5e0   :  { %11366 = vmatpush1.bf16.msra.mxu1 %v15043_v62  ;;  %v15100_v62 = vcombine.high %v1278_v47, %v1282_v48 }
 0x5e1   :  { %11367 = vmatprep.subr.bf16.mxu1 %v15052_v57  ;;  %v1286_v57 = vld [vmem:[#allocation2 + $0x24d8] sm:$0xff] }
 0x5e2   :  { %10956 = vmatpush1.bf16.msra.mxu0 %v15297_v55  ;;  %v15354_v55 = vcombine.high %v1533_v16, %v1537_v52 }
 0x5e3   :  { %10957 = vmatprep.subr.bf16.mxu0 %v15306_v38  ;;  %v1290_v38 = vld [vmem:[#allocation2 + $0x24f8] sm:$0xff] }
 0x5e4   :  { %11368 = vmatpush1.bf16.msra.mxu1 %v15051_v27  ;;  %v15108_v23 = vcombine.high %v1286_v57, %v1290_v38  ;;  %v15362_v27 = vcombine.high %v1541_v18, %v1545_v60  ;;  %v15107_v42 = vcombine.low %v1286_v57, %v1290_v38 }
 0x5e5   :  { %11369 = vmatprep.subr.bf16.mxu1 %v15060_v1  ;;  %v1298_v1 = vld [vmem:[#allocation2 + $0x2538] sm:$0xff] }
 0x5e6   :  { %10958 = vmatpush1.bf16.msra.mxu0 %v15305_v0  ;;  %v1294_v0 = vld [vmem:[#allocation2 + $0x2518] sm:$0xff] }
 0x5e7   :  { %10959 = vmatprep.subr.bf16.mxu0 %v15314_v11  ;;  %v1549_v11 = vld [vmem:[#allocation2 + $0x2d10] sm:$0xff]  ;;  %v15116_v3 = vcombine.high %v1294_v0, %v1298_v1  ;;  %v15115_v53 = vcombine.low %v1294_v0, %v1298_v1 }
 0x5e8   :  { %11370 = vmatpush1.bf16.msra.mxu1 %v15059_v6  ;;  %v1302_v6 = vld [vmem:[#allocation2 + $0x2558] sm:$0xff]  ;;  %v15369_v51 = vcombine.low %v1549_v11, %v1553_v2 }
 0x5e9   :  { %11371 = vmatprep.subr.bf16.mxu1 %v15068_v33  ;;  %v1557_v33 = vld [vmem:[#allocation2 + $0x2d50] sm:$0xff] }
 0x5ea   :  { %10960 = vmatpush1.bf16.msra.mxu0 %v15313_v7  ;;  %v1306_v7 = vld [vmem:[#allocation2 + $0x2578] sm:$0xff] }
 0x5eb   :  { %10961 = vmatprep.subr.bf16.mxu0 %v15322_v34  ;;  %v1561_v34 = vld [vmem:[#allocation2 + $0x2d70] sm:$0xff]  ;;  %v15124_v10 = vcombine.high %v1302_v6, %v1306_v7  ;;  %v15123_v8 = vcombine.low %v1302_v6, %v1306_v7 }
 0x5ec   :  { %11372 = vmatpush1.bf16.msra.mxu1 %v15067_v21  ;;  %v15378_v37 = vcombine.high %v1557_v33, %v1561_v34  ;;  %v1310_v21 = vld [vmem:[#allocation2 + $0x2598] sm:$0xff]  ;;  %v15377_v17 = vcombine.low %v1557_v33, %v1561_v34 }
 0x5ed   :  { %11373 = vmatprep.subr.bf16.mxu1 %v15076_v14  ;;  %v1565_v14 = vld [vmem:[#allocation2 + $0x2d90] sm:$0xff] }
 0x5ee   :  { %10962 = vmatpush1.bf16.msra.mxu0 %v15321_v50  ;;  %v1314_v50 = vld [vmem:[#allocation2 + $0x25b8] sm:$0xff] }
 0x5ef   :  { %10963 = vmatprep.subr.bf16.mxu0 %v15330_v15  ;;  %v1569_v15 = vld [vmem:[#allocation2 + $0x2db0] sm:$0xff]  ;;  %v15132_v24 = vcombine.high %v1310_v21, %v1314_v50  ;;  %v15131_v63 = vcombine.low %v1310_v21, %v1314_v50 }
 0x5f0   :  { %11374 = vmatpush1.bf16.msra.mxu1 %v15075_v25  ;;  %v15386_v46 = vcombine.high %v1565_v14, %v1569_v15  ;;  %v1318_v25 = vld [vmem:[#allocation2 + $0x25d8] sm:$0xff]  ;;  %v15385_v36 = vcombine.low %v1565_v14, %v1569_v15 }
 0x5f1   :  { %11384 = vmatprep.subr.bf16.mxu1 %v15084_v30  ;;  %v1573_v30 = vld [vmem:[#allocation2 + $0x2dd0] sm:$0xff] }
 0x5f2   :  { %10964 = vmatpush1.bf16.msra.mxu0 %v15329_v26  ;;  %v1322_v26 = vld [vmem:[#allocation2 + $0x25f8] sm:$0xff] }
 0x5f3   :  { %10974 = vmatprep.subr.bf16.mxu0 %v15338_v56  ;;  %11376 = vmatmul.mubr.bf16.vlgmr.msra.gmra.mrb[8].mxu1 %v16940_v20  ;;  %v15099_v20 = vcombine.low %v1278_v47, %v1282_v48  ;;  %v1577_v56 = vld [vmem:[#allocation2 + $0x2df0] sm:$0xff]  ;;  %v15140_v39 = vcombine.high %v1318_v25, %v1322_v26  ;;  %v15139_v47 = vcombine.low %v1318_v25, %v1322_v26 }
 0x5f4   :  { %11385 = vmatpush1.bf16.msra.mxu1 %v15083_v31  ;;  %11416 = vmatprep.mubr.bf16.mxu1 %v16944_v28  ;;  %v15370_v28 = vcombine.high %v1549_v11, %v1553_v2  ;;  %v15394_v19 = vcombine.high %v1573_v30, %v1577_v56  ;;  %v1326_v31 = vld [vmem:[#allocation2 + $0x2618] sm:$0xff]  ;;  %v15393_v48 = vcombine.low %v1573_v30, %v1577_v56 }
 0x5f5   :  { %10966 = vmatmul.mubr.bf16.vlgmr.msra.gmra.mrb[4].mxu0 %v16970_v61  ;;  %11386 = vmatprep.subr.bf16.mxu1 %v15092_v41  ;;  %v1581_v41 = vld [vmem:[#allocation2 + $0x2e10] sm:$0xff] }
 0x5f6   :  { %10975 = vmatpush1.bf16.msra.mxu0 %v15337_v40  ;;  %11006 = vmatprep.mubr.bf16.mxu0 %v16974_v5  ;;  %v1330_v40 = vld [vmem:[#allocation2 + $0x2638] sm:$0xff] }
 0x5f7   :  { %10976 = vmatprep.subr.bf16.mxu0 %v15346_v44  ;;  %v1585_v44 = vld [vmem:[#allocation2 + $0x2e30] sm:$0xff]  ;;  %v15148_v16 = vcombine.high %v1326_v31, %v1330_v40  ;;  %v15147_v57 = vcombine.low %v1326_v31, %v1330_v40 }
 0x5f8   :  { %11387 = vmatpush1.bf16.msra.mxu1 %v15091_v54  ;;  %v15402_v52 = vcombine.high %v1581_v41, %v1585_v44  ;;  %v1334_v54 = vld [vmem:[#allocation2 + $0x2658] sm:$0xff]  ;;  %v15401_v38 = vcombine.low %v1581_v41, %v1585_v44 }
 0x5f9   :  { %11388 = vmatprep.subr.bf16.mxu1 %v15100_v62  ;;  %v1589_v62 = vld [vmem:[#allocation2 + $0x2e50] sm:$0xff] }
 0x5fa   :  { %10977 = vmatpush1.bf16.msra.mxu0 %v15345_v49  ;;  %v1338_v49 = vld [vmem:[#allocation2 + $0x2678] sm:$0xff] }
 0x5fb   :  { %10978 = vmatprep.subr.bf16.mxu0 %v15354_v55  ;;  %v1593_v55 = vld [vmem:[#allocation2 + $0x2e70] sm:$0xff]  ;;  %v15156_v18 = vcombine.high %v1334_v54, %v1338_v49  ;;  %v15155_v0 = vcombine.low %v1334_v54, %v1338_v49 }
 0x5fc   :  { %11389 = vmatpush1.bf16.msra.mxu1 %v15099_v20  ;;  %v15410_v60 = vcombine.high %v1589_v62, %v1593_v55  ;;  %v1342_v20 = vld [vmem:[#allocation2 + $0x2698] sm:$0xff]  ;;  %v15409_v1 = vcombine.low %v1589_v62, %v1593_v55 }
 0x5fd   :  { %11390 = vmatprep.subr.bf16.mxu1 %v15108_v23  ;;  %v1597_v23 = vld [vmem:[#allocation2 + $0x2e90] sm:$0xff] }
 0x5fe   :  { %10979 = vmatpush1.bf16.msra.mxu0 %v15353_v9  ;;  %v1346_v9 = vld [vmem:[#allocation2 + $0x26b8] sm:$0xff] }
 0x5ff   :  { %10980 = vmatprep.subr.bf16.mxu0 %v15362_v27  ;;  %v1601_v27 = vld [vmem:[#allocation2 + $0x2eb0] sm:$0xff]  ;;  %v15164_v11 = vcombine.high %v1342_v20, %v1346_v9  ;;  %v15163_v6 = vcombine.low %v1342_v20, %v1346_v9  ;;  %v16018_v9 = vld [vmem:[#allocation7 + $0x4] ss:$16 sps:$4 sm:$0xff]  }
 0x600   :  { %11391 = vmatpush1.bf16.msra.mxu1 %v15107_v42  ;;  %v15418_v2 = vcombine.high %v1597_v23, %v1601_v27  ;;  %v1350_v42 = vld [vmem:[#allocation2 + $0x26d8] sm:$0xff]  ;;  %v15417_v7 = vcombine.low %v1597_v23, %v1601_v27  ;;  %v11508_v23 = vpack.c.bf16 %v17012_v4, %v17012_v4 }
 0x601   :  { %11392 = vmatprep.subr.bf16.mxu1 %v15116_v3  ;;  %v1605_v3 = vld [vmem:[#allocation2 + $0x2ed0] sm:$0xff]  ;;  %v1398_v27 = vld [vmem:[#allocation2 + $0x2858] sm:$0xff] }
 0x602   :  { %10981 = vmatpush1.bf16.msra.mxu0 %v15361_v58  ;;  %v1354_v58 = vld [vmem:[#allocation2 + $0x26f8] sm:$0xff] }
 0x603   :  { %10982 = vmatprep.subr.bf16.mxu0 %v15370_v28  ;;  %v1609_v28 = vld [vmem:[#allocation2 + $0x2ef0] sm:$0xff]  ;;  %v15172_v33 = vcombine.high %v1350_v42, %v1354_v58  ;;  %v15171_v21 = vcombine.low %v1350_v42, %v1354_v58  ;;  %v16021_v42 = vld [vmem:[#allocation7 + $0x24] ss:$16 sps:$4 sm:$0xff]  }
 0x604   :  { %11393 = vmatpush1.bf16.msra.mxu1 %v15115_v53  ;;  %v15426_v34 = vcombine.high %v1605_v3, %v1609_v28  ;;  %v1358_v53 = vld [vmem:[#allocation2 + $0x2718] sm:$0xff]  ;;  %v15425_v50 = vcombine.low %v1605_v3, %v1609_v28  ;;  %v16675_v28 = vmov 0  }
 0x605   :  { %11394 = vmatprep.subr.bf16.mxu1 %v15124_v10  ;;  %v1613_v10 = vld [vmem:[#allocation2 + $0x2f10] sm:$0xff]  ;;  %v1406_v58 = vld [vmem:[#allocation2 + $0x2898] sm:$0xff] }
 0x606   :  { %10983 = vmatpush1.bf16.msra.mxu0 %v15369_v51  ;;  %v1362_v51 = vld [vmem:[#allocation2 + $0x2738] sm:$0xff] }
 0x607   :  { %10984 = vmatprep.subr.bf16.mxu0 %v15378_v37  ;;  %v1617_v37 = vld [vmem:[#allocation2 + $0x2f30] sm:$0xff]  ;;  %v15180_v14 = vcombine.high %v1358_v53, %v1362_v51  ;;  %v15179_v25 = vcombine.low %v1358_v53, %v1362_v51  ;;  %v1410_v3 = vld [vmem:[#allocation2 + $0x28b8] sm:$0xff] }
 0x608   :  { %11395 = vmatpush1.bf16.msra.mxu1 %v15123_v8  ;;  %v15434_v15 = vcombine.high %v1613_v10, %v1617_v37  ;;  %v1366_v8 = vld [vmem:[#allocation2 + $0x2758] sm:$0xff]  ;;  %v15433_v26 = vcombine.low %v1613_v10, %v1617_v37  ;;  %v15227_v10 = vcombine.low %v1406_v58, %v1410_v3 }
 0x609   :  { %11396 = vmatprep.subr.bf16.mxu1 %v15132_v24  ;;  %v1621_v24 = vld [vmem:[#allocation2 + $0x2f50] sm:$0xff]  ;;  %v1414_v53 = vld [vmem:[#allocation2 + $0x28d8] sm:$0xff] }
 0x60a   :  { %10985 = vmatpush1.bf16.msra.mxu0 %v15377_v17  ;;  %v1370_v17 = vld [vmem:[#allocation2 + $0x2778] sm:$0xff] }
 0x60b   :  { %10986 = vmatprep.subr.bf16.mxu0 %v15386_v46  ;;  %v1625_v46 = vld [vmem:[#allocation2 + $0x2f70] sm:$0xff]  ;;  %v15188_v30 = vcombine.high %v1366_v8, %v1370_v17  ;;  %v15187_v31 = vcombine.low %v1366_v8, %v1370_v17  ;;  %v1418_v51 = vld [vmem:[#allocation2 + $0x28f8] sm:$0xff] }
 0x60c   :  { %11397 = vmatpush1.bf16.msra.mxu1 %v15131_v63  ;;  %v15442_v56 = vcombine.high %v1621_v24, %v1625_v46  ;;  %v1374_v63 = vld [vmem:[#allocation2 + $0x2798] sm:$0xff]  ;;  %v15441_v40 = vcombine.low %v1621_v24, %v1625_v46  ;;  %v15236_v37 = vcombine.high %v1414_v53, %v1418_v51 }
 0x60d   :  { %11398 = vmatprep.subr.bf16.mxu1 %v15140_v39  ;;  %v1629_v39 = vld [vmem:[#allocation2 + $0x2f90] sm:$0xff]  ;;  %v16025_v8 = vld [vmem:[#allocation7 + $0x60] ss:$16 sps:$4 sm:$0xff]   ;;  %v16030_v24 = vld [vmem:[#allocation7 + $0x84] ss:$16 sps:$4 sm:$0xff]  }
 0x60e   :  { %10987 = vmatpush1.bf16.msra.mxu0 %v15385_v36  ;;  %v1378_v36 = vld [vmem:[#allocation2 + $0x27b8] sm:$0xff] }
 0x60f   :  { %10988 = vmatprep.subr.bf16.mxu0 %v15394_v19  ;;  %v1633_v19 = vld [vmem:[#allocation2 + $0x2fb0] sm:$0xff]  ;;  %v15196_v41 = vcombine.high %v1374_v63, %v1378_v36  ;;  %v15195_v54 = vcombine.low %v1374_v63, %v1378_v36  ;;  %v1430_v46 = vld [vmem:[#allocation2 + $0x2958] sm:$0xff] }
 0x610   :  { %11399 = vmatpush1.bf16.msra.mxu1 %v15139_v47  ;;  %v15450_v44 = vcombine.high %v1629_v39, %v1633_v19  ;;  %v1382_v47 = vld [vmem:[#allocation2 + $0x27d8] sm:$0xff]  ;;  %v15449_v49 = vcombine.low %v1629_v39, %v1633_v19 }
 0x611   :  { %11400 = vmatprep.subr.bf16.mxu1 %v15148_v16  ;;  %v1637_v16 = vld [vmem:[#allocation2 + $0x2fd0] sm:$0xff]  ;;  %v1438_v63 = vld [vmem:[#allocation2 + $0x2998] sm:$0xff] }
 0x612   :  { %10989 = vmatpush1.bf16.msra.mxu0 %v15393_v48  ;;  %v1386_v48 = vld [vmem:[#allocation2 + $0x27f8] sm:$0xff] }
 0x613   :  { %10990 = vmatprep.subr.bf16.mxu0 %v15402_v52  ;;  %v1641_v52 = vld [vmem:[#allocation2 + $0x2ff0] sm:$0xff]  ;;  %v15204_v62 = vcombine.high %v1382_v47, %v1386_v48  ;;  %v1442_v36 = vld [vmem:[#allocation2 + $0x29b8] sm:$0xff] }
 0x614   :  { %11401 = vmatpush1.bf16.msra.mxu1 %v15147_v57  ;;  %v15458_v55 = vcombine.high %v1637_v16, %v1641_v52  ;;  %v1390_v57 = vld [vmem:[#allocation2 + $0x2818] sm:$0xff] }
 0x615   :  { %11402 = vmatprep.subr.bf16.mxu1 %v15156_v18  ;;  %v15203_v18 = vcombine.low %v1382_v47, %v1386_v48  ;;  %v16031_v19 = vld [vmem:[#allocation7 + $0xa0] ss:$16 sps:$4 sm:$0xff]   ;;  %v15259_v47 = vcombine.low %v1438_v63, %v1442_v36 }
 0x616   :  { %10991 = vmatpush1.bf16.msra.mxu0 %v15401_v38  ;;  %v1394_v38 = vld [vmem:[#allocation2 + $0x2838] sm:$0xff] }
 0x617   :  { %10992 = vmatprep.subr.bf16.mxu0 %v15410_v60  ;;  %v15457_v60 = vcombine.low %v1637_v16, %v1641_v52  ;;  %v15212_v20 = vcombine.high %v1390_v57, %v1394_v38  ;;  %v16034_v48 = vld [vmem:[#allocation7 + $0xc0] ss:$16 sps:$4 sm:$0xff]   ;;  %v16039_v52 = vld [vmem:[#allocation7 + $0xe4] ss:$16 sps:$4 sm:$0xff]  }
 0x618   :  { %11403 = vmatpush1.bf16.msra.mxu1 %v15155_v0  ;;  %v1402_v0 = vld [vmem:[#allocation2 + $0x2878] sm:$0xff] }
 0x619   :  { %11404 = vmatprep.subr.bf16.mxu1 %v15164_v11  ;;  %v16016_v11 = vld [vmem:[#allocation7] ss:$16 sps:$4 sm:$0xff]   ;;  %v15219_v4 = vcombine.low %v1398_v27, %v1402_v0 }
 0x61a   :  { %10993 = vmatpush1.bf16.msra.mxu0 %v15409_v1  ;;  %v15211_v1 = vcombine.low %v1390_v57, %v1394_v38  ;;  %v16042_v38 = vld [vmem:[#allocation7 + $0x104] ss:$16 sps:$4 sm:$0xff]  }
 0x61b   :  { %10994 = vmatprep.subr.bf16.mxu0 %v15418_v2  ;;  %v15220_v2 = vcombine.high %v1398_v27, %v1402_v0  ;;  %v16045_v27 = vld [vmem:[#allocation7 + $0x124] ss:$16 sps:$4 sm:$0xff]  }
 0x61c   :  { %11405 = vmatpush1.bf16.msra.mxu1 %v15163_v6  ;;  %v17053_v6 = vmax.bf16 %v16675_v28, %v11508_v23  ;;  %v1470_v0 = vld [vmem:[#allocation2 + $0x2a98] sm:$0xff] }
 0x61d   :  { %11406 = vmatprep.subr.bf16.mxu1 %v15172_v33  ;;  %v15228_v33 = vcombine.high %v1406_v58, %v1410_v3  ;;  %v16048_v58 = vld [vmem:[#allocation7 + $0x144] ss:$16 sps:$4 sm:$0xff]  }
 0x61e   :  { %10995 = vmatpush1.bf16.msra.mxu0 %v15417_v7  ;;  %v16019_v7 = vld [vmem:[#allocation7 + $0x20] ss:$16 sps:$4 sm:$0xff]  }
 0x61f   :  { %10996 = vmatprep.subr.bf16.mxu0 %v15426_v34  ;;  %v16024_v34 = vld [vmem:[#allocation7 + $0x44] ss:$16 sps:$4 sm:$0xff]  }
 0x620   :  { %11407 = vmatpush1.bf16.msra.mxu1 %v15171_v21  ;;  %v16027_v21 = vld [vmem:[#allocation7 + $0x64] ss:$16 sps:$4 sm:$0xff]  }
 0x621   :  { %11408 = vmatprep.subr.bf16.mxu1 %v15180_v14  ;;  %v1426_v14 = vld [vmem:[#allocation2 + $0x2938] sm:$0xff] }
 0x622   :  { %10997 = vmatpush1.bf16.msra.mxu0 %v15425_v50  ;;  %v1422_v50 = vld [vmem:[#allocation2 + $0x2918] sm:$0xff] }
 0x623   :  { %10998 = vmatprep.subr.bf16.mxu0 %v15434_v15  ;;  %v15235_v15 = vcombine.low %v1414_v53, %v1418_v51  ;;  %v15244_v17 = vcombine.high %v1422_v50, %v1426_v14  ;;  %v1478_v3 = vld [vmem:[#allocation2 + $0x2ad8] sm:$0xff] }
 0x624   :  { %11409 = vmatpush1.bf16.msra.mxu1 %v15179_v25  ;;  %v15243_v25 = vcombine.low %v1422_v50, %v1426_v14  ;;  %v16051_v53 = vld [vmem:[#allocation7 + $0x164] ss:$16 sps:$4 sm:$0xff]  }
 0x625   :  { %11410 = vmatprep.subr.bf16.mxu1 %v15188_v30  ;;  %v1486_v51 = vld [vmem:[#allocation2 + $0x2b18] sm:$0xff] }
 0x626   :  { %10999 = vmatpush1.bf16.msra.mxu0 %v15433_v26  ;;  %v16028_v26 = vld [vmem:[#allocation7 + $0x80] ss:$16 sps:$4 sm:$0xff]   ;;  %v16054_v50 = vld [vmem:[#allocation7 + $0x184] ss:$16 sps:$4 sm:$0xff]  }
 0x627   :  { %11000 = vmatprep.subr.bf16.mxu0 %v15442_v56  ;;  %v16033_v56 = vld [vmem:[#allocation7 + $0xa4] ss:$16 sps:$4 sm:$0xff]  }
 0x628   :  { %11411 = vmatpush1.bf16.msra.mxu1 %v15187_v31  ;;  %v15260_v31 = vcombine.high %v1438_v63, %v1442_v36  ;;  %v1494_v14 = vld [vmem:[#allocation2 + $0x2b58] sm:$0xff] }
 0x629   :  { %11412 = vmatprep.subr.bf16.mxu1 %v15196_v41  ;;  %v1446_v41 = vld [vmem:[#allocation2 + $0x29d8] sm:$0xff] }
 0x62a   :  { %11001 = vmatpush1.bf16.msra.mxu0 %v15441_v40  ;;  %v16036_v40 = vld [vmem:[#allocation7 + $0xc4] ss:$16 sps:$4 sm:$0xff]  }
 0x62b   :  { %11002 = vmatprep.subr.bf16.mxu0 %v15450_v44  ;;  %v1450_v44 = vld [vmem:[#allocation2 + $0x29f8] sm:$0xff] }
 0x62c   :  { %11413 = vmatpush1.bf16.msra.mxu1 %v15195_v54  ;;  %v15268_v16 = vcombine.high %v1446_v41, %v1450_v44  ;;  %v1454_v54 = vld [vmem:[#allocation2 + $0x2a18] sm:$0xff] }
 0x62d   :  { %11414 = vmatprep.subr.bf16.mxu1 %v15204_v62  ;;  %v15267_v62 = vcombine.low %v1446_v41, %v1450_v44  ;;  %v16060_v36 = vld [vmem:[#allocation7 + $0x1c4] ss:$16 sps:$4 sm:$0xff]   ;;  %v16058_v44 = vld [vmem:[#allocation7 + $0x1c0] ss:$16 sps:$4 sm:$0xff]  }
 0x62e   :  { %11003 = vmatpush1.bf16.msra.mxu0 %v15449_v49  ;;  %v1458_v49 = vld [vmem:[#allocation2 + $0x2a38] sm:$0xff] }
 0x62f   :  { %11004 = vmatprep.subr.bf16.mxu0 %v15458_v55  ;;  %v16037_v55 = vld [vmem:[#allocation7 + $0xe0] ss:$16 sps:$4 sm:$0xff]   ;;  %v15276_v57 = vcombine.high %v1454_v54, %v1458_v49 }
 0x630   :  { %11415 = vmatpush1.bf16.msra.mxu1 %v15203_v18  ;;  %v1462_v18 = vld [vmem:[#allocation2 + $0x2a58] sm:$0xff] }
 0x631   :  { %11425 = vmatprep.subr.bf16.mxu1 %v15212_v20  ;;  %v15275_v20 = vcombine.low %v1454_v54, %v1458_v49 }
 0x632   :  { %11005 = vmatpush1.bf16.msra.mxu0 %v15457_v60  ;;  %v1466_v60 = vld [vmem:[#allocation2 + $0x2a78] sm:$0xff] }
 0x633   :  { %13081 = vmatprep.subr.bf16.mxu0 %v16018_v9  ;;  %11417 = vmatmul.mubr.bf16.vlgmr.msra.gmra.mrb[8].mxu1 %v16959_v35  ;;  %v16022_v35 = vld [vmem:[#allocation7 + $0x40] ss:$16 sps:$4 sm:$0xff]   ;;  %v15284_v23 = vcombine.high %v1462_v18, %v1466_v60 }
 0x634   :  { %11426 = vmatpush1.bf16.msra.mxu1 %v15211_v1  ;;  %11457 = vmatprep.mubr.bf16.mxu1 %v16962_v45  ;;  %v1434_v45 = vld [vmem:[#allocation2 + $0x2978] sm:$0xff] }
 0x635   :  { %11007 = vmatmul.mubr.bf16.vlgmr.msra.gmra.mrb[4].mxu0 %v16982_v22  ;;  %11427 = vmatprep.subr.bf16.mxu1 %v15220_v2  ;;  %v15252_v30 = vcombine.high %v1430_v46, %v1434_v45  ;;  %v15251_v39 = vcombine.low %v1430_v46, %v1434_v45  ;;  %v16040_v9 = vld [vmem:[#allocation7 + $0x100] ss:$16 sps:$4 sm:$0xff]   ;;  %v16057_v46 = vld [vmem:[#allocation7 + $0x1a4] ss:$16 sps:$4 sm:$0xff]  }
 0x636   :  { %13082 = vmatpush1.bf16.msra.mxu0 %v16016_v11  ;;  %13113 = vmatprep.mubr.bf16.mxu0 %v17053_v6  ;;  %v1474_v1 = vld [vmem:[#allocation2 + $0x2ab8] sm:$0xff]  ;;  %v15283_v11 = vcombine.low %v1462_v18, %v1466_v60 }
 0x637   :  { %13083 = vmatprep.subr.bf16.mxu0 %v16021_v42  ;;  %v16043_v2 = vld [vmem:[#allocation7 + $0x120] ss:$16 sps:$4 sm:$0xff]   ;;  %v15292_v42 = vcombine.high %v1470_v0, %v1474_v1 }
 0x638   :  { %11428 = vmatpush1.bf16.msra.mxu1 %v15219_v4  ;;  %v1482_v4 = vld [vmem:[#allocation2 + $0x2af8] sm:$0xff] }
 0x639   :  { %11429 = vmatprep.subr.bf16.mxu1 %v15228_v33  ;;  %v16046_v33 = vld [vmem:[#allocation7 + $0x140] ss:$16 sps:$4 sm:$0xff]  }
 0x63a   :  { %13084 = vmatpush1.bf16.msra.mxu0 %v16019_v7  ;;  %v15291_v7 = vcombine.low %v1470_v0, %v1474_v1  ;;  %v1502_v45 = vld [vmem:[#allocation2 + $0x2b98] sm:$0xff] }
 0x63b   :  { %13085 = vmatprep.subr.bf16.mxu0 %v16024_v34  ;;  %v15300_v34 = vcombine.high %v1478_v3, %v1482_v4  ;;  %v1526_v60 = vld [vmem:[#allocation2 + $0x2c58] sm:$0xff] }
 0x63c   :  { %11430 = vmatpush1.bf16.msra.mxu1 %v15227_v10  ;;  %v1490_v10 = vld [vmem:[#allocation2 + $0x2b38] sm:$0xff] }
 0x63d   :  { %11431 = vmatprep.subr.bf16.mxu1 %v15236_v37  ;;  %v16049_v37 = vld [vmem:[#allocation7 + $0x160] ss:$16 sps:$4 sm:$0xff]   ;;  %v16069_v0 = vld [vmem:[#allocation7 + $0x224] ss:$16 sps:$4 sm:$0xff]  }
 0x63e   :  { %13086 = vmatpush1.bf16.msra.mxu0 %v16022_v35  ;;  %v15299_v35 = vcombine.low %v1478_v3, %v1482_v4  ;;  %v1534_v1 = vld [vmem:[#allocation2 + $0x2c98] sm:$0xff] }
 0x63f   :  { %13087 = vmatprep.subr.bf16.mxu0 %v16027_v21  ;;  %v15308_v21 = vcombine.high %v1486_v51, %v1490_v10  ;;  %v16072_v3 = vld [vmem:[#allocation7 + $0x244] ss:$16 sps:$4 sm:$0xff]  }
 0x640   :  { %11432 = vmatpush1.bf16.msra.mxu1 %v15235_v15  ;;  %v1498_v15 = vld [vmem:[#allocation2 + $0x2b78] sm:$0xff] }
 0x641   :  { %11433 = vmatprep.subr.bf16.mxu1 %v15244_v17  ;;  %v16052_v17 = vld [vmem:[#allocation7 + $0x180] ss:$16 sps:$4 sm:$0xff]  }
 0x642   :  { %13088 = vmatpush1.bf16.msra.mxu0 %v16025_v8  ;;  %v15307_v8 = vcombine.low %v1486_v51, %v1490_v10  ;;  %v1542_v4 = vld [vmem:[#allocation2 + $0x2cd8] sm:$0xff] }
 0x643   :  { %13089 = vmatprep.subr.bf16.mxu0 %v16030_v24  ;;  %v15316_v24 = vcombine.high %v1494_v14, %v1498_v15  ;;  %v1550_v51 = vld [vmem:[#allocation2 + $0x2d18] sm:$0xff] }
 0x644   :  { %11434 = vmatpush1.bf16.msra.mxu1 %v15243_v25  ;;  %v1506_v25 = vld [vmem:[#allocation2 + $0x2bb8] sm:$0xff] }
 0x645   :  { %11435 = vmatprep.subr.bf16.mxu1 %v15252_v30  ;;  %v15315_v30 = vcombine.low %v1494_v14, %v1498_v15  ;;  %v15324_v63 = vcombine.high %v1502_v45, %v1506_v25  ;;  %v15323_v41 = vcombine.low %v1502_v45, %v1506_v25  ;;  %v1554_v10 = vld [vmem:[#allocation2 + $0x2d38] sm:$0xff] }
 0x646   :  { %13090 = vmatpush1.bf16.msra.mxu0 %v16028_v26  ;;  %v1659_v26 = vsub.s32 3, %v16789_v43  ;;  %v1558_v14 = vld [vmem:[#allocation2 + $0x2d58] sm:$0xff]  ;;  %v15371_v15 = vcombine.low %v1550_v51, %v1554_v10 }
 0x647   :  { %13091 = vmatprep.subr.bf16.mxu0 %v16033_v56  ;;  %v16055_v56 = vld [vmem:[#allocation7 + $0x1a0] ss:$16 sps:$4 sm:$0xff]  }
 0x648   :  { %11436 = vmatpush1.bf16.msra.mxu1 %v15251_v39  ;;  %v1510_v39 = vld [vmem:[#allocation2 + $0x2bd8] sm:$0xff] }
 0x649   :  { %11437 = vmatprep.subr.bf16.mxu1 %v15260_v31  ;;  %v17060_v31 = vld [vmem:[#allocation5] sm:$0xff]  ;;  %v1570_v45 = vld [vmem:[#allocation2 + $0x2db8] sm:$0xff] }
 0x64a   :  { %13092 = vmatpush1.bf16.msra.mxu0 %v16031_v19  ;;  %v1514_v19 = vld [vmem:[#allocation2 + $0x2bf8] sm:$0xff] }
 0x64b   :  { %13093 = vmatprep.subr.bf16.mxu0 %v16036_v40  ;;  %v1660_v40 = vrot.slane %v17060_v31, %v1659_v26  ;;  %v15331_v49 = vcombine.low %v1510_v39, %v1514_v19 }
 0x64c   :  { %11438 = vmatpush1.bf16.msra.mxu1 %v15259_v47  ;;  %v15332_v47 = vcombine.high %v1510_v39, %v1514_v19  ;;  %v1578_v39 = vld [vmem:[#allocation2 + $0x2df8] sm:$0xff] }
 0x64d   :  { %11439 = vmatprep.subr.bf16.mxu1 %v15268_v16  ;;  %v1518_v16 = vld [vmem:[#allocation2 + $0x2c18] sm:$0xff]  ;;  %v15787_v54 = vadd.f32 %v17024_v32, %v1660_v40 }
 0x64e   :  { %13094 = vmatpush1.bf16.msra.mxu0 %v16034_v48  ;;  %v16063_v48 = vld [vmem:[#allocation7 + $0x1e4] ss:$16 sps:$4 sm:$0xff]   ;;  %v16082_v40 = vld [vmem:[#allocation7 + $0x2c0] ss:$16 sps:$4 sm:$0xff]  }
 0x64f   :  { %13095 = vmatprep.subr.bf16.mxu0 %v16039_v52  ;;  %v1522_v52 = vld [vmem:[#allocation2 + $0x2c38] sm:$0xff]  ;;  %v11510_v18 = vpack.c.bf16 %v15787_v54, %v15787_v54 }
 0x650   :  { %11440 = vmatpush1.bf16.msra.mxu1 %v15267_v62  ;;  %v16061_v62 = vld [vmem:[#allocation7 + $0x1e0] ss:$16 sps:$4 sm:$0xff]  }
 0x651   :  { %11441 = vmatprep.subr.bf16.mxu1 %v15276_v57  ;;  %v11507_v57 = vpack.c.bf16 %v17010_v59, %v17010_v59  ;;  %v17072_v59 = vmax.bf16 %v16675_v28, %v11510_v18 }
 0x652   :  { %13096 = vmatpush1.bf16.msra.mxu0 %v16037_v55  ;;  %v15340_v55 = vcombine.high %v1518_v16, %v1522_v52 }
 0x653   :  { %13097 = vmatprep.subr.bf16.mxu0 %v16042_v38  ;;  %v16066_v38 = vld [vmem:[#allocation7 + $0x204] ss:$16 sps:$4 sm:$0xff]   ;;  %v17069_v32 = vmax.bf16 %v16675_v28, %v11507_v57 }
 0x654   :  { %11442 = vmatpush1.bf16.msra.mxu1 %v15275_v20  ;;  %v1530_v20 = vld [vmem:[#allocation2 + $0x2c78] sm:$0xff] }
 0x655   :  { %11443 = vmatprep.subr.bf16.mxu1 %v15284_v23  ;;  %v16064_v23 = vld [vmem:[#allocation7 + $0x200] ss:$16 sps:$4 sm:$0xff]  }
 0x656   :  { %13098 = vmatpush1.bf16.msra.mxu0 %v16040_v9  ;;  %v15339_v9 = vcombine.low %v1518_v16, %v1522_v52  ;;  %v16085_v52 = vld [vmem:[#allocation7 + $0x2e0] ss:$16 sps:$4 sm:$0xff]  }
 0x657   :  { %13099 = vmatprep.subr.bf16.mxu0 %v16045_v27  ;;  %v15348_v27 = vcombine.high %v1526_v60, %v1530_v20 }
 0x658   :  { %11444 = vmatpush1.bf16.msra.mxu1 %v15283_v11  ;;  %v1538_v11 = vld [vmem:[#allocation2 + $0x2cb8] sm:$0xff] }
 0x659   :  { %11445 = vmatprep.subr.bf16.mxu1 %v15292_v42  ;;  %v16067_v42 = vld [vmem:[#allocation7 + $0x220] ss:$16 sps:$4 sm:$0xff]  }
 0x65a   :  { %13100 = vmatpush1.bf16.msra.mxu0 %v16043_v2  ;;  %v15347_v2 = vcombine.low %v1526_v60, %v1530_v20  ;;  %v16093_v60 = vld [vmem:[#allocation7 + $0x324] ss:$16 sps:$4 sm:$0xff]  }
 0x65b   :  { %13101 = vmatprep.subr.bf16.mxu0 %v16048_v58  ;;  %v15356_v58 = vcombine.high %v1534_v1, %v1538_v11  ;;  %v1598_v20 = vld [vmem:[#allocation2 + $0x2e98] sm:$0xff] }
 0x65c   :  { %11446 = vmatpush1.bf16.msra.mxu1 %v15291_v7  ;;  %v1546_v7 = vld [vmem:[#allocation2 + $0x2cf8] sm:$0xff] }
 0x65d   :  { %11447 = vmatprep.subr.bf16.mxu1 %v15300_v34  ;;  %v15364_v34 = vcombine.high %v1542_v4, %v1546_v7 }
 0x65e   :  { %13102 = vmatpush1.bf16.msra.mxu0 %v16046_v33  ;;  %v15355_v33 = vcombine.low %v1534_v1, %v1538_v11  ;;  %v16096_v1 = vld [vmem:[#allocation7 + $0x344] ss:$16 sps:$4 sm:$0xff]  }
 0x65f   :  { %13103 = vmatprep.subr.bf16.mxu0 %v16051_v53  ;;  %v16075_v53 = vld [vmem:[#allocation7 + $0x264] ss:$16 sps:$4 sm:$0xff]  }
 0x660   :  { %11448 = vmatpush1.bf16.msra.mxu1 %v15299_v35  ;;  %v15363_v35 = vcombine.low %v1542_v4, %v1546_v7  ;;  %v1606_v11 = vld [vmem:[#allocation2 + $0x2ed8] sm:$0xff] }
 0x661   :  { %11449 = vmatprep.subr.bf16.mxu1 %v15308_v21  ;;  %v15372_v21 = vcombine.high %v1550_v51, %v1554_v10  ;;  %v16099_v4 = vld [vmem:[#allocation7 + $0x364] ss:$16 sps:$4 sm:$0xff]  }
 0x662   :  { %13104 = vmatpush1.bf16.msra.mxu0 %v16049_v37  ;;  %v16073_v37 = vld [vmem:[#allocation7 + $0x260] ss:$16 sps:$4 sm:$0xff]   ;;  %v16102_v51 = vld [vmem:[#allocation7 + $0x384] ss:$16 sps:$4 sm:$0xff]  }
 0x663   :  { %13105 = vmatprep.subr.bf16.mxu0 %v16054_v50  ;;  %v16078_v50 = vld [vmem:[#allocation7 + $0x284] ss:$16 sps:$4 sm:$0xff]  }
 0x664   :  { %11450 = vmatpush1.bf16.msra.mxu1 %v15307_v8  ;;  %v16076_v8 = vld [vmem:[#allocation7 + $0x280] ss:$16 sps:$4 sm:$0xff]  }
 0x665   :  { %11451 = vmatprep.subr.bf16.mxu1 %v15316_v24  ;;  %v16081_v24 = vld [vmem:[#allocation7 + $0x2a4] ss:$16 sps:$4 sm:$0xff]  }
 0x666   :  { %13106 = vmatpush1.bf16.msra.mxu0 %v16052_v17  ;;  %v1614_v7 = vld [vmem:[#allocation2 + $0x2f18] sm:$0xff] }
 0x667   :  { %13107 = vmatprep.subr.bf16.mxu0 %v16057_v46  ;;  %v1566_v46 = vld [vmem:[#allocation2 + $0x2d98] sm:$0xff] }
 0x668   :  { %11452 = vmatpush1.bf16.msra.mxu1 %v15315_v30  ;;  %v16079_v30 = vld [vmem:[#allocation7 + $0x2a0] ss:$16 sps:$4 sm:$0xff]   ;;  %v15387_v19 = vcombine.low %v1566_v46, %v1570_v45 }
 0x669   :  { %11453 = vmatprep.subr.bf16.mxu1 %v15324_v63  ;;  %v16084_v63 = vld [vmem:[#allocation7 + $0x2c4] ss:$16 sps:$4 sm:$0xff]  }
 0x66a   :  { %13108 = vmatpush1.bf16.msra.mxu0 %v16055_v56  ;;  %v15388_v56 = vcombine.high %v1566_v46, %v1570_v45  ;;  %v1622_v10 = vld [vmem:[#allocation2 + $0x2f58] sm:$0xff] }
 0x66b   :  { %13109 = vmatprep.subr.bf16.mxu0 %v16060_v36  ;;  %v1574_v36 = vld [vmem:[#allocation2 + $0x2dd8] sm:$0xff] }
 0x66c   :  { %11454 = vmatpush1.bf16.msra.mxu1 %v15323_v41  ;;  %v15396_v41 = vcombine.high %v1574_v36, %v1578_v39  ;;  %v15395_v16 = vcombine.low %v1574_v36, %v1578_v39  ;;  %v16106_v36 = vld [vmem:[#allocation7 + $0x3c0] ss:$16 sps:$4 sm:$0xff]  }
 0x66d   :  { %11455 = vmatprep.subr.bf16.mxu1 %v15332_v47  ;;  %v1582_v47 = vld [vmem:[#allocation2 + $0x2e18] sm:$0xff] }
 0x66e   :  { %13110 = vmatpush1.bf16.msra.mxu0 %v16058_v44  ;;  %v16087_v44 = vld [vmem:[#allocation7 + $0x2e4] ss:$16 sps:$4 sm:$0xff]  }
 0x66f   :  { %13111 = vmatprep.subr.bf16.mxu0 %v16063_v48  ;;  %v1586_v48 = vld [vmem:[#allocation2 + $0x2e38] sm:$0xff] }
 0x670   :  { %11456 = vmatpush1.bf16.msra.mxu1 %v15331_v49  ;;  %v15404_v54 = vcombine.high %v1582_v47, %v1586_v48  ;;  %v16090_v49 = vld [vmem:[#allocation7 + $0x304] ss:$16 sps:$4 sm:$0xff]   ;;  %v15403_v57 = vcombine.low %v1582_v47, %v1586_v48  ;;  %v16114_v47 = vld [vmem:[#allocation7 + $0xc] ss:$16 sps:$4 sm:$0xff]  }
 0x671   :  { %11466 = vmatprep.subr.bf16.mxu1 %v15340_v55  ;;  %v1594_v55 = vld [vmem:[#allocation2 + $0x2e78] sm:$0xff] }
 0x672   :  { %13112 = vmatpush1.bf16.msra.mxu0 %v16061_v62  ;;  %v1590_v62 = vld [vmem:[#allocation2 + $0x2e58] sm:$0xff] }
 0x673   :  { %13122 = vmatprep.subr.bf16.mxu0 %v16066_v38  ;;  %11458 = vmatmul.mubr.bf16.vlgmr.msra.gmra.mrb[8].mxu1 %v16970_v61  ;;  %v16070_v61 = vld [vmem:[#allocation7 + $0x240] ss:$16 sps:$4 sm:$0xff]   ;;  %v15412_v18 = vcombine.high %v1590_v62, %v1594_v55 }
 0x674   :  { %11467 = vmatpush1.bf16.msra.mxu1 %v15339_v9  ;;  %11498 = vmatprep.mubr.bf16.mxu1 %v16974_v5  ;;  %v1562_v5 = vld [vmem:[#allocation2 + $0x2d78] sm:$0xff] }
 0x675   :  { %13114 = vmatmul.mubr.bf16.vlgmr.msra.gmra.mrb[8].mxu0 %v17069_v32  ;;  %11468 = vmatprep.subr.bf16.mxu1 %v15348_v27  ;;  %v15380_v17 = vcombine.high %v1558_v14, %v1562_v5  ;;  %v15379_v25 = vcombine.low %v1558_v14, %v1562_v5  ;;  %v16088_v38 = vld [vmem:[#allocation7 + $0x300] ss:$16 sps:$4 sm:$0xff]   ;;  %v1655_v14 = vsub.s32 2, %v16789_v43  ;;  %v16105_v5 = vld [vmem:[#allocation7 + $0x3a4] ss:$16 sps:$4 sm:$0xff]  }
 0x676   :  { %13123 = vmatpush1.bf16.msra.mxu0 %v16064_v23  ;;  %13154 = vmatprep.mubr.bf16.mxu0 %v17072_v59  ;;  %v1602_v9 = vld [vmem:[#allocation2 + $0x2eb8] sm:$0xff]  ;;  %v15411_v23 = vcombine.low %v1590_v62, %v1594_v55  ;;  %v16115_v55 = vld [vmem:[#allocation7 + $0x28] ss:$16 sps:$4 sm:$0xff]  }
 0x677   :  { %13124 = vmatprep.subr.bf16.mxu0 %v16069_v0  ;;  %v16091_v27 = vld [vmem:[#allocation7 + $0x320] ss:$16 sps:$4 sm:$0xff]   ;;  %v15420_v0 = vcombine.high %v1598_v20, %v1602_v9  ;;  %v1656_v45 = vrot.slane %v17060_v31, %v1655_v14  ;;  %v16141_v62 = vld [vmem:[#allocation7 + $0x424] ss:$16 sps:$4 sm:$0xff]  }
 0x678   :  { %11469 = vmatpush1.bf16.msra.mxu1 %v15347_v2  ;;  %v1610_v2 = vld [vmem:[#allocation2 + $0x2ef8] sm:$0xff] }
 0x679   :  { %11470 = vmatprep.subr.bf16.mxu1 %v15356_v58  ;;  %v16094_v58 = vld [vmem:[#allocation7 + $0x340] ss:$16 sps:$4 sm:$0xff]  }
 0x67a   :  { %13125 = vmatpush1.bf16.msra.mxu0 %v16067_v42  ;;  %v15419_v42 = vcombine.low %v1598_v20, %v1602_v9  ;;  %v16123_v20 = vld [vmem:[#allocation7 + $0x6c] ss:$16 sps:$4 sm:$0xff]   ;;  %v16145_v9 = vld [vmem:[#allocation7 + $0x440] ss:$16 sps:$4 sm:$0xff]  }
 0x67b   :  { %13126 = vmatprep.subr.bf16.mxu0 %v16072_v3  ;;  %v15428_v3 = vcombine.high %v1606_v11, %v1610_v2 }
 0x67c   :  { %11471 = vmatpush1.bf16.msra.mxu1 %v15355_v33  ;;  %v1618_v33 = vld [vmem:[#allocation2 + $0x2f38] sm:$0xff] }
 0x67d   :  { %11472 = vmatprep.subr.bf16.mxu1 %v15364_v34  ;;  %v16097_v34 = vld [vmem:[#allocation7 + $0x360] ss:$16 sps:$4 sm:$0xff]  }
 0x67e   :  { %13127 = vmatpush1.bf16.msra.mxu0 %v16070_v61  ;;  %v15427_v61 = vcombine.low %v1606_v11, %v1610_v2  ;;  %v16129_v11 = vld [vmem:[#allocation7 + $0xac] ss:$16 sps:$4 sm:$0xff]   ;;  %v16157_v2 = vld [vmem:[#allocation7 + $0x480] ss:$16 sps:$4 sm:$0xff]  }
 0x67f   :  { %13128 = vmatprep.subr.bf16.mxu0 %v16075_v53  ;;  %v15436_v53 = vcombine.high %v1614_v7, %v1618_v33 }
 0x680   :  { %11473 = vmatpush1.bf16.msra.mxu1 %v15363_v35  ;;  %v1626_v35 = vld [vmem:[#allocation2 + $0x2f78] sm:$0xff] }
 0x681   :  { %11474 = vmatprep.subr.bf16.mxu1 %v15372_v21  ;;  %v16100_v21 = vld [vmem:[#allocation7 + $0x380] ss:$16 sps:$4 sm:$0xff]  }
 0x682   :  { %13129 = vmatpush1.bf16.msra.mxu0 %v16073_v37  ;;  %v15435_v37 = vcombine.low %v1614_v7, %v1618_v33  ;;  %v16171_v7 = vld [vmem:[#allocation7 + $0x4c4] ss:$16 sps:$4 sm:$0xff]   ;;  %v16130_v33 = vld [vmem:[#allocation7 + $0xc8] ss:$16 sps:$4 sm:$0xff]  }
 0x683   :  { %13130 = vmatprep.subr.bf16.mxu0 %v16078_v50  ;;  %v15444_v50 = vcombine.high %v1622_v10, %v1626_v35 }
 0x684   :  { %11475 = vmatpush1.bf16.msra.mxu1 %v15371_v15  ;;  %v1630_v15 = vld [vmem:[#allocation2 + $0x2f98] sm:$0xff] }
 0x685   :  { %11476 = vmatprep.subr.bf16.mxu1 %v15380_v17  ;;  %v15443_v17 = vcombine.low %v1622_v10, %v1626_v35  ;;  %v16144_v10 = vld [vmem:[#allocation7 + $0x10c] ss:$16 sps:$4 sm:$0xff]   ;;  %v16175_v35 = vld [vmem:[#allocation7 + $0x4e0] ss:$16 sps:$4 sm:$0xff]  }
 0x686   :  { %13131 = vmatpush1.bf16.msra.mxu0 %v16076_v8  ;;  %v1634_v8 = vld [vmem:[#allocation2 + $0x2fb8] sm:$0xff] }
 0x687   :  { %13132 = vmatprep.subr.bf16.mxu0 %v16081_v24  ;;  %v16103_v24 = vld [vmem:[#allocation7 + $0x3a0] ss:$16 sps:$4 sm:$0xff]   ;;  %v15452_v46 = vcombine.high %v1630_v15, %v1634_v8 }
 0x688   :  { %11477 = vmatpush1.bf16.msra.mxu1 %v15379_v25  ;;  %v16108_v25 = vld [vmem:[#allocation7 + $0x3c4] ss:$16 sps:$4 sm:$0xff]  }
 0x689   :  { %11478 = vmatprep.subr.bf16.mxu1 %v15388_v56  ;;  %v1642_v56 = vld [vmem:[#allocation2 + $0x2ff8] sm:$0xff] }
 0x68a   :  { %13133 = vmatpush1.bf16.msra.mxu0 %v16079_v30  ;;  %v1638_v30 = vld [vmem:[#allocation2 + $0x2fd8] sm:$0xff] }
 0x68b   :  { %13134 = vmatprep.subr.bf16.mxu0 %v16084_v63  ;;  %v15451_v63 = vcombine.low %v1630_v15, %v1634_v8  ;;  %v15460_v39 = vcombine.high %v1638_v30, %v1642_v56  ;;  %v16189_v15 = vld [vmem:[#allocation7 + $0x524] ss:$16 sps:$4 sm:$0xff]   ;;  %v16148_v8 = vld [vmem:[#allocation7 + $0x128] ss:$16 sps:$4 sm:$0xff]  }
 0x68c   :  { %11479 = vmatpush1.bf16.msra.mxu1 %v15387_v19  ;;  %v15786_v19 = vadd.f32 %v17022_v29, %v1656_v45  ;;  %v16133_v29 = vld [vmem:[#allocation7 + $0x400] ss:$16 sps:$4 sm:$0xff]   ;;  %v16154_v45 = vld [vmem:[#allocation7 + $0x148] ss:$16 sps:$4 sm:$0xff]  }
 0x68d   :  { %11480 = vmatprep.subr.bf16.mxu1 %v15396_v41  ;;  %v15459_v41 = vcombine.low %v1638_v30, %v1642_v56  ;;  %v16193_v30 = vld [vmem:[#allocation7 + $0x540] ss:$16 sps:$4 sm:$0xff]   ;;  %v16201_v56 = vld [vmem:[#allocation7 + $0x564] ss:$16 sps:$4 sm:$0xff]  }
 0x68e   :  { %13135 = vmatpush1.bf16.msra.mxu0 %v16082_v40  ;;  %v16111_v40 = vld [vmem:[#allocation7 + $0x3e4] ss:$16 sps:$4 sm:$0xff]   ;;  %v11509_v48 = vpack.c.bf16 %v15786_v19, %v15786_v19 }
 0x68f   :  { %13136 = vmatprep.subr.bf16.mxu0 %v16087_v44  ;;  %v16109_v44 = vld [vmem:[#allocation7 + $0x3e0] ss:$16 sps:$4 sm:$0xff]   ;;  %v16207_v19 = vld [vmem:[#allocation7 + $0x584] ss:$16 sps:$4 sm:$0xff]  }
 0x690   :  { %11481 = vmatpush1.bf16.msra.mxu1 %v15395_v16  ;;  %v16135_v16 = vld [vmem:[#allocation7 + $0x404] ss:$16 sps:$4 sm:$0xff]  }
 0x691   :  { %11482 = vmatprep.subr.bf16.mxu1 %v15404_v54  ;;  %v16117_v54 = vld [vmem:[#allocation7 + $0x2c] ss:$16 sps:$4 sm:$0xff]  }
 0x692   :  { %13137 = vmatpush1.bf16.msra.mxu0 %v16085_v52  ;;  %v16112_v52 = vld [vmem:[#allocation7 + $0x8] ss:$16 sps:$4 sm:$0xff]  }
 0x693   :  { %13138 = vmatprep.subr.bf16.mxu0 %v16090_v49  ;;  %v17084_v49 = vmax.bf16 %v16675_v28, %v11509_v48  ;;  %v16172_v48 = vld [vmem:[#allocation7 + $0x1a8] ss:$16 sps:$4 sm:$0xff]  }
 0x694   :  { %11483 = vmatpush1.bf16.msra.mxu1 %v15403_v57  ;;  %v16120_v57 = vld [vmem:[#allocation7 + $0x4c] ss:$16 sps:$4 sm:$0xff]  }
 0x695   :  { %11484 = vmatprep.subr.bf16.mxu1 %v15412_v18  ;;  %v16147_v18 = vld [vmem:[#allocation7 + $0x444] ss:$16 sps:$4 sm:$0xff]  }
 0x696   :  { %13139 = vmatpush1.bf16.msra.mxu0 %v16088_v38  ;;  %v16139_v38 = vld [vmem:[#allocation7 + $0x420] ss:$16 sps:$4 sm:$0xff]  }
 0x697   :  { %13140 = vmatprep.subr.bf16.mxu0 %v16093_v60  ;;  %v16118_v60 = vld [vmem:[#allocation7 + $0x48] ss:$16 sps:$4 sm:$0xff]  }
 0x698   :  { %11485 = vmatpush1.bf16.msra.mxu1 %v15411_v23  ;;  %v16121_v23 = vld [vmem:[#allocation7 + $0x68] ss:$16 sps:$4 sm:$0xff]  }
 0x699   :  { %11486 = vmatprep.subr.bf16.mxu1 %v15420_v0  ;;  %v16159_v0 = vld [vmem:[#allocation7 + $0x484] ss:$16 sps:$4 sm:$0xff]  }
 0x69a   :  { %13141 = vmatpush1.bf16.msra.mxu0 %v16091_v27  ;;  %v16126_v27 = vld [vmem:[#allocation7 + $0x8c] ss:$16 sps:$4 sm:$0xff]  }
 0x69b   :  { %13142 = vmatprep.subr.bf16.mxu0 %v16096_v1  ;;  %v16124_v1 = vld [vmem:[#allocation7 + $0x88] ss:$16 sps:$4 sm:$0xff]  }
 0x69c   :  { %11487 = vmatpush1.bf16.msra.mxu1 %v15419_v42  ;;  %v16165_v42 = vld [vmem:[#allocation7 + $0x4a4] ss:$16 sps:$4 sm:$0xff]  }
 0x69d   :  { %11488 = vmatprep.subr.bf16.mxu1 %v15428_v3  ;;  %v16132_v3 = vld [vmem:[#allocation7 + $0xcc] ss:$16 sps:$4 sm:$0xff]  }
 0x69e   :  { %13143 = vmatpush1.bf16.msra.mxu0 %v16094_v58  ;;  %v16127_v58 = vld [vmem:[#allocation7 + $0xa8] ss:$16 sps:$4 sm:$0xff]  }
 0x69f   :  { %13144 = vmatprep.subr.bf16.mxu0 %v16099_v4  ;;  %v16163_v4 = vld [vmem:[#allocation7 + $0x4a0] ss:$16 sps:$4 sm:$0xff]  }
 0x6a0   :  { %11489 = vmatpush1.bf16.msra.mxu1 %v15427_v61  ;;  %v16138_v61 = vld [vmem:[#allocation7 + $0xec] ss:$16 sps:$4 sm:$0xff]  }
 0x6a1   :  { %11490 = vmatprep.subr.bf16.mxu1 %v15436_v53  ;;  %v16177_v53 = vld [vmem:[#allocation7 + $0x4e4] ss:$16 sps:$4 sm:$0xff]  }
 0x6a2   :  { %13145 = vmatpush1.bf16.msra.mxu0 %v16097_v34  ;;  %v16169_v34 = vld [vmem:[#allocation7 + $0x4c0] ss:$16 sps:$4 sm:$0xff]  }
 0x6a3   :  { %13146 = vmatprep.subr.bf16.mxu0 %v16102_v51  ;;  %v16136_v51 = vld [vmem:[#allocation7 + $0xe8] ss:$16 sps:$4 sm:$0xff]  }
 0x6a4   :  { %11491 = vmatpush1.bf16.msra.mxu1 %v15435_v37  ;;  %v16183_v37 = vld [vmem:[#allocation7 + $0x504] ss:$16 sps:$4 sm:$0xff]  }
 0x6a5   :  { %11492 = vmatprep.subr.bf16.mxu1 %v15444_v50  ;;  %v16150_v50 = vld [vmem:[#allocation7 + $0x12c] ss:$16 sps:$4 sm:$0xff]  }
 0x6a6   :  { %13147 = vmatpush1.bf16.msra.mxu0 %v16100_v21  ;;  %v16142_v21 = vld [vmem:[#allocation7 + $0x108] ss:$16 sps:$4 sm:$0xff]  }
 0x6a7   :  { %13148 = vmatprep.subr.bf16.mxu0 %v16105_v5  ;;  %v16181_v5 = vld [vmem:[#allocation7 + $0x500] ss:$16 sps:$4 sm:$0xff]  }
 0x6a8   :  { %11493 = vmatpush1.bf16.msra.mxu1 %v15443_v17  ;;  %v16156_v17 = vld [vmem:[#allocation7 + $0x14c] ss:$16 sps:$4 sm:$0xff]  }
 0x6a9   :  { %11494 = vmatprep.subr.bf16.mxu1 %v15452_v46  ;;  %v16195_v46 = vld [vmem:[#allocation7 + $0x544] ss:$16 sps:$4 sm:$0xff]  }
 0x6aa   :  { %13149 = vmatpush1.bf16.msra.mxu0 %v16103_v24  ;;  %v16187_v24 = vld [vmem:[#allocation7 + $0x520] ss:$16 sps:$4 sm:$0xff]  }
 0x6ab   :  { %13150 = vmatprep.subr.bf16.mxu0 %v16108_v25  ;;  %v16162_v25 = vld [vmem:[#allocation7 + $0x16c] ss:$16 sps:$4 sm:$0xff]  }
 0x6ac   :  { %11495 = vmatpush1.bf16.msra.mxu1 %v15451_v63  ;;  %v16160_v63 = vld [vmem:[#allocation7 + $0x168] ss:$16 sps:$4 sm:$0xff]  }
 0x6ad   :  { %11496 = vmatprep.subr.bf16.mxu1 %v15460_v39  ;;  %v16199_v39 = vld [vmem:[#allocation7 + $0x560] ss:$16 sps:$4 sm:$0xff]  }
 0x6ae   :  { %13151 = vmatpush1.bf16.msra.mxu0 %v16106_v36  ;;  %v16168_v36 = vld [vmem:[#allocation7 + $0x18c] ss:$16 sps:$4 sm:$0xff]  }
 0x6af   :  { %13152 = vmatprep.subr.bf16.mxu0 %v16111_v40  ;;  %v16166_v40 = vld [vmem:[#allocation7 + $0x188] ss:$16 sps:$4 sm:$0xff]  }
 0x6b0   :  { %11497 = vmatpush1.bf16.msra.mxu1 %v15459_v41  ;;  %v16174_v41 = vld [vmem:[#allocation7 + $0x1ac] ss:$16 sps:$4 sm:$0xff]  }
 0x6b1   :  { %13245 = vmatprep.subr.bf16.mxu1 %v16114_v47  ;;  %v16213_v47 = vld [vmem:[#allocation7 + $0x5a4] ss:$16 sps:$4 sm:$0xff]  }
 0x6b2   :  { %13153 = vmatpush1.bf16.msra.mxu0 %v16109_v44  ;;  %v16205_v44 = vld [vmem:[#allocation7 + $0x580] ss:$16 sps:$4 sm:$0xff]  }
 0x6b3   :  { %13163 = vmatprep.subr.bf16.mxu0 %v16135_v16  ;;  %11499 = vmatmul.mubr.bf16.vlgmr.msra.gmra.mrb[8].mxu1 %v16982_v22  ;;  %v16153_v22 = vld [vmem:[#allocation7 + $0x464] ss:$16 sps:$4 sm:$0xff]   ;;  %v16180_v16 = vld [vmem:[#allocation7 + $0x1cc] ss:$16 sps:$4 sm:$0xff]  }
 0x6b4   :  { %13246 = vmatpush1.bf16.msra.mxu1 %v16112_v52  ;;  %13277 = vmatprep.mubr.bf16.mxu1 %v17053_v6  ;;  %v16151_v6 = vld [vmem:[#allocation7 + $0x460] ss:$16 sps:$4 sm:$0xff]  }
 0x6b5   :  { %13155 = vmatmul.mubr.bf16.vlgmr.msra.gmra.mrb[8].mxu0 %v17084_v49  ;;  %13247 = vmatprep.subr.bf16.mxu1 %v16117_v54  ;;  %v16211_v52 = vld [vmem:[#allocation7 + $0x5a0] ss:$16 sps:$4 sm:$0xff]   ;;  %v16219_v54 = vld [vmem:[#allocation7 + $0x5c4] ss:$16 sps:$4 sm:$0xff]  }
 0x6b6   :  { %13164 = vmatpush1.bf16.msra.mxu0 %v16133_v29  ;;  %v16178_v29 = vld [vmem:[#allocation7 + $0x1c8] ss:$16 sps:$4 sm:$0xff]  }
 0x6b7   :  { %13165 = vmatprep.subr.bf16.mxu0 %v16141_v62  ;;  %v16186_v62 = vld [vmem:[#allocation7 + $0x1ec] ss:$16 sps:$4 sm:$0xff]  }
 0x6b8   :  { %13248 = vmatpush1.bf16.msra.mxu1 %v16115_v55  ;;  %v16217_v55 = vld [vmem:[#allocation7 + $0x5c0] ss:$16 sps:$4 sm:$0xff]  }
 0x6b9   :  { %13249 = vmatprep.subr.bf16.mxu1 %v16120_v57  ;;  %v16225_v57 = vld [vmem:[#allocation7 + $0x5e4] ss:$16 sps:$4 sm:$0xff]  }
 0x6ba   :  { %13166 = vmatpush1.bf16.msra.mxu0 %v16139_v38  ;;  %v16184_v38 = vld [vmem:[#allocation7 + $0x1e8] ss:$16 sps:$4 sm:$0xff]  }
 0x6bb   :  { %13167 = vmatprep.subr.bf16.mxu0 %v16147_v18  ;;  %v16192_v18 = vld [vmem:[#allocation7 + $0x20c] ss:$16 sps:$4 sm:$0xff]  }
 0x6bc   :  { %13250 = vmatpush1.bf16.msra.mxu1 %v16118_v60  ;;  %v16223_v60 = vld [vmem:[#allocation7 + $0x5e0] ss:$16 sps:$4 sm:$0xff]  }
 0x6bd   :  { %13251 = vmatprep.subr.bf16.mxu1 %v16123_v20  ;;  %v16279_v20 = vld [vmem:[#allocation7 + $0x604] ss:$16 sps:$4 sm:$0xff]  }
 0x6be   :  { %13168 = vmatpush1.bf16.msra.mxu0 %v16145_v9  ;;  %v16190_v9 = vld [vmem:[#allocation7 + $0x208] ss:$16 sps:$4 sm:$0xff]  }
 0x6bf   :  { %13169 = vmatprep.subr.bf16.mxu0 %v16153_v22  ;;  %v16198_v22 = vld [vmem:[#allocation7 + $0x22c] ss:$16 sps:$4 sm:$0xff]  }
 0x6c0   :  { %13252 = vmatpush1.bf16.msra.mxu1 %v16121_v23  ;;  %v16196_v23 = vld [vmem:[#allocation7 + $0x228] ss:$16 sps:$4 sm:$0xff]  }
 0x6c1   :  { %13253 = vmatprep.subr.bf16.mxu1 %v16126_v27  ;;  %v16204_v27 = vld [vmem:[#allocation7 + $0x24c] ss:$16 sps:$4 sm:$0xff]  }
 0x6c2   :  { %13170 = vmatpush1.bf16.msra.mxu0 %v16151_v6  ;;  %v16202_v6 = vld [vmem:[#allocation7 + $0x248] ss:$16 sps:$4 sm:$0xff]  }
 0x6c3   :  { %13171 = vmatprep.subr.bf16.mxu0 %v16159_v0  ;;  %v16210_v0 = vld [vmem:[#allocation7 + $0x26c] ss:$16 sps:$4 sm:$0xff]  }
 0x6c4   :  { %13254 = vmatpush1.bf16.msra.mxu1 %v16124_v1  ;;  %v16208_v1 = vld [vmem:[#allocation7 + $0x268] ss:$16 sps:$4 sm:$0xff]  }
 0x6c5   :  { %13255 = vmatprep.subr.bf16.mxu1 %v16129_v11  ;;  %v16216_v11 = vld [vmem:[#allocation7 + $0x28c] ss:$16 sps:$4 sm:$0xff]  }
 0x6c6   :  { %13172 = vmatpush1.bf16.msra.mxu0 %v16157_v2  ;;  %v16214_v2 = vld [vmem:[#allocation7 + $0x288] ss:$16 sps:$4 sm:$0xff]  }
 0x6c7   :  { %13173 = vmatprep.subr.bf16.mxu0 %v16165_v42  ;;  %v1663_v42 = vsub.s32 4, %v16789_v43 }
 0x6c8   :  { %13256 = vmatpush1.bf16.msra.mxu1 %v16127_v58  ;;  %v16222_v58 = vld [vmem:[#allocation7 + $0x2ac] ss:$16 sps:$4 sm:$0xff]  }
 0x6c9   :  { %13257 = vmatprep.subr.bf16.mxu1 %v16132_v3  ;;  %v16220_v3 = vld [vmem:[#allocation7 + $0x2a8] ss:$16 sps:$4 sm:$0xff]  }
 0x6ca   :  { %13174 = vmatpush1.bf16.msra.mxu0 %v16163_v4 }
 0x6cb   :  { %13175 = vmatprep.subr.bf16.mxu0 %v16171_v7  ;;  %v16228_v7 = vld [vmem:[#allocation7 + $0x2cc] ss:$16 sps:$4 sm:$0xff]  }
 0x6cc   :  { %13258 = vmatpush1.bf16.msra.mxu1 %v16130_v33 }
 0x6cd   :  { %13259 = vmatprep.subr.bf16.mxu1 %v16138_v61 }
 0x6ce   :  { %13176 = vmatpush1.bf16.msra.mxu0 %v16169_v34 }
 0x6cf   :  { %13177 = vmatprep.subr.bf16.mxu0 %v16177_v53  ;;  %v16226_v53 = vld [vmem:[#allocation7 + $0x2c8] ss:$16 sps:$4 sm:$0xff]  }
 0x6d0   :  { %13260 = vmatpush1.bf16.msra.mxu1 %v16136_v51 }
 0x6d1   :  { %13261 = vmatprep.subr.bf16.mxu1 %v16144_v10 }
 0x6d2   :  { %13178 = vmatpush1.bf16.msra.mxu0 %v16175_v35  ;;  %v16231_v35 = vld [vmem:[#allocation7 + $0x2ec] ss:$16 sps:$4 sm:$0xff]  }
 0x6d3   :  { %13179 = vmatprep.subr.bf16.mxu0 %v16183_v37 }
 0x6d4   :  { %13262 = vmatpush1.bf16.msra.mxu1 %v16142_v21 }
 0x6d5   :  { %13263 = vmatprep.subr.bf16.mxu1 %v16150_v50 }
 0x6d6   :  { %13180 = vmatpush1.bf16.msra.mxu0 %v16181_v5  ;;  %v16229_v5 = vld [vmem:[#allocation7 + $0x2e8] ss:$16 sps:$4 sm:$0xff]  }
 0x6d7   :  { %13181 = vmatprep.subr.bf16.mxu0 %v16189_v15 }
 0x6d8   :  { %13264 = vmatpush1.bf16.msra.mxu1 %v16148_v8  ;;  %v16277_v8 = vld [vmem:[#allocation7 + $0x600] ss:$16 sps:$4 sm:$0xff]  }
 0x6d9   :  { %13265 = vmatprep.subr.bf16.mxu1 %v16156_v17 }
 0x6da   :  { %13182 = vmatpush1.bf16.msra.mxu0 %v16187_v24  ;;  %v16285_v24 = vld [vmem:[#allocation7 + $0x624] ss:$16 sps:$4 sm:$0xff]  }
 0x6db   :  { %13183 = vmatprep.subr.bf16.mxu0 %v16195_v46  ;;  %v16232_v46 = vld [vmem:[#allocation7 + $0x308] ss:$16 sps:$4 sm:$0xff]  }
 0x6dc   :  { %13266 = vmatpush1.bf16.msra.mxu1 %v16154_v45  ;;  %v16237_v45 = vld [vmem:[#allocation7 + $0x32c] ss:$16 sps:$4 sm:$0xff]  }
 0x6dd   :  { %13267 = vmatprep.subr.bf16.mxu1 %v16162_v25  ;;  %v16283_v25 = vld [vmem:[#allocation7 + $0x620] ss:$16 sps:$4 sm:$0xff]  }
 0x6de   :  { %13184 = vmatpush1.bf16.msra.mxu0 %v16193_v30  ;;  %v16291_v30 = vld [vmem:[#allocation7 + $0x644] ss:$16 sps:$4 sm:$0xff]  }
 0x6df   :  { %13185 = vmatprep.subr.bf16.mxu0 %v16201_v56  ;;  %v16235_v56 = vld [vmem:[#allocation7 + $0x328] ss:$16 sps:$4 sm:$0xff]  }
 0x6e0   :  { %13268 = vmatpush1.bf16.msra.mxu1 %v16160_v63  ;;  %v16240_v63 = vld [vmem:[#allocation7 + $0x34c] ss:$16 sps:$4 sm:$0xff]  }
 0x6e1   :  { %13269 = vmatprep.subr.bf16.mxu1 %v16168_v36  ;;  %v16289_v36 = vld [vmem:[#allocation7 + $0x640] ss:$16 sps:$4 sm:$0xff]  }
 0x6e2   :  { %13186 = vmatpush1.bf16.msra.mxu0 %v16199_v39  ;;  %v16297_v39 = vld [vmem:[#allocation7 + $0x664] ss:$16 sps:$4 sm:$0xff]  }
 0x6e3   :  { %13187 = vmatprep.subr.bf16.mxu0 %v16207_v19  ;;  %v16238_v19 = vld [vmem:[#allocation7 + $0x348] ss:$16 sps:$4 sm:$0xff]  }
 0x6e4   :  { %13270 = vmatpush1.bf16.msra.mxu1 %v16166_v40  ;;  %v16243_v40 = vld [vmem:[#allocation7 + $0x36c] ss:$16 sps:$4 sm:$0xff]  }
 0x6e5   :  { %13271 = vmatprep.subr.bf16.mxu1 %v16174_v41  ;;  %v16295_v41 = vld [vmem:[#allocation7 + $0x660] ss:$16 sps:$4 sm:$0xff]  }
 0x6e6   :  { %13188 = vmatpush1.bf16.msra.mxu0 %v16205_v44  ;;  %v16303_v44 = vld [vmem:[#allocation7 + $0x684] ss:$16 sps:$4 sm:$0xff]  }
 0x6e7   :  { %13189 = vmatprep.subr.bf16.mxu0 %v16213_v47  ;;  %v16241_v47 = vld [vmem:[#allocation7 + $0x368] ss:$16 sps:$4 sm:$0xff]  }
 0x6e8   :  { %13272 = vmatpush1.bf16.msra.mxu1 %v16172_v48  ;;  %v16246_v48 = vld [vmem:[#allocation7 + $0x38c] ss:$16 sps:$4 sm:$0xff]  }
 0x6e9   :  { %13273 = vmatprep.subr.bf16.mxu1 %v16180_v16  ;;  %v16301_v16 = vld [vmem:[#allocation7 + $0x680] ss:$16 sps:$4 sm:$0xff]  }
 0x6ea   :  { %13190 = vmatpush1.bf16.msra.mxu0 %v16211_v52  ;;  %v16309_v52 = vld [vmem:[#allocation7 + $0x6a4] ss:$16 sps:$4 sm:$0xff]  }
 0x6eb   :  { %13191 = vmatprep.subr.bf16.mxu0 %v16219_v54  ;;  %v16244_v54 = vld [vmem:[#allocation7 + $0x388] ss:$16 sps:$4 sm:$0xff]  }
 0x6ec   :  { %13274 = vmatpush1.bf16.msra.mxu1 %v16178_v29  ;;  %v16249_v29 = vld [vmem:[#allocation7 + $0x3ac] ss:$16 sps:$4 sm:$0xff]  }
 0x6ed   :  { %13275 = vmatprep.subr.bf16.mxu1 %v16186_v62  ;;  %v16307_v62 = vld [vmem:[#allocation7 + $0x6a0] ss:$16 sps:$4 sm:$0xff]  }
 0x6ee   :  { %13192 = vmatpush1.bf16.msra.mxu0 %v16217_v55  ;;  %v16315_v55 = vld [vmem:[#allocation7 + $0x6c4] ss:$16 sps:$4 sm:$0xff]  }
 0x6ef   :  { %13193 = vmatprep.subr.bf16.mxu0 %v16225_v57  ;;  %v16247_v57 = vld [vmem:[#allocation7 + $0x3a8] ss:$16 sps:$4 sm:$0xff]  }
 0x6f0   :  { %13276 = vmatpush1.bf16.msra.mxu1 %v16184_v38  ;;  %v16252_v38 = vld [vmem:[#allocation7 + $0x3cc] ss:$16 sps:$4 sm:$0xff]  }
 0x6f1   :  { %13286 = vmatprep.subr.bf16.mxu1 %v16192_v18  ;;  %v16313_v18 = vld [vmem:[#allocation7 + $0x6c0] ss:$16 sps:$4 sm:$0xff]  }
 0x6f2   :  { %13194 = vmatpush1.bf16.msra.mxu0 %v16223_v60  ;;  %v16321_v60 = vld [vmem:[#allocation7 + $0x6e4] ss:$16 sps:$4 sm:$0xff]  }
 0x6f3   :  { %13278 = vmatmul.mubr.bf16.vlgmr.msra.gmra.mrb[12].mxu1 %v17069_v32  ;;  %13204 = vmatprep.subr.bf16.mxu0 %v16279_v20  ;;  %v1667_v32 = vsub.s32 5, %v16789_v43  ;;  %v16250_v20 = vld [vmem:[#allocation7 + $0x3c8] ss:$16 sps:$4 sm:$0xff]  }
 0x6f4   :  { %13287 = vmatpush1.bf16.msra.mxu1 %v16190_v9  ;;  %13318 = vmatprep.mubr.bf16.mxu1 %v17072_v59  ;;  %v1664_v59 = vrot.slane %v17060_v31, %v1663_v42  ;;  %v16255_v9 = vld [vmem:[#allocation7 + $0x3ec] ss:$16 sps:$4 sm:$0xff]   ;;  %v16331_v42 = vld [vmem:[#allocation7 + $0x720] ss:$16 sps:$4 sm:$0xff]  }
 0x6f5   :  { %13288 = vmatprep.subr.bf16.mxu1 %v16198_v22  ;;  %v1668_v4 = vrot.slane %v17060_v31, %v1667_v32  ;;  %v16234_v31 = vld [vmem:[#allocation7 + $0x30c] ss:$16 sps:$4 sm:$0xff]   ;;  %v16319_v22 = vld [vmem:[#allocation7 + $0x6e0] ss:$16 sps:$4 sm:$0xff]   ;;  %v16339_v32 = vld [vmem:[#allocation7 + $0x744] ss:$16 sps:$4 sm:$0xff]  }
 0x6f8   :  { %13289 = vmatpush1.bf16.msra.mxu1 %v16196_v23  ;;  %v16327_v23 = vld [vmem:[#allocation7 + $0x704] ss:$16 sps:$4 sm:$0xff]  }
 0x6f9   :  { %13290 = vmatprep.subr.bf16.mxu1 %v16204_v27  ;;  %v16253_v27 = vld [vmem:[#allocation7 + $0x3e8] ss:$16 sps:$4 sm:$0xff]  }
 0x6fc   :  { %13291 = vmatpush1.bf16.msra.mxu1 %v16202_v6  ;;  %v16258_v6 = vld [vmem:[#allocation7 + $0x40c] ss:$16 sps:$4 sm:$0xff]  }
 0x6fd   :  { %13292 = vmatprep.subr.bf16.mxu1 %v16210_v0  ;;  %v16325_v0 = vld [vmem:[#allocation7 + $0x700] ss:$16 sps:$4 sm:$0xff]  }
 0x700   :  { %13293 = vmatpush1.bf16.msra.mxu1 %v16208_v1  ;;  %v16333_v1 = vld [vmem:[#allocation7 + $0x724] ss:$16 sps:$4 sm:$0xff]  }
 0x701   :  { %13294 = vmatprep.subr.bf16.mxu1 %v16216_v11  ;;  %v16256_v11 = vld [vmem:[#allocation7 + $0x408] ss:$16 sps:$4 sm:$0xff]  }
 0x704   :  { %13295 = vmatpush1.bf16.msra.mxu1 %v16214_v2  ;;  %v16261_v2 = vld [vmem:[#allocation7 + $0x42c] ss:$16 sps:$4 sm:$0xff]  }
 0x705   :  { %13296 = vmatprep.subr.bf16.mxu1 %v16222_v58  ;;  %v16259_v58 = vld [vmem:[#allocation7 + $0x428] ss:$16 sps:$4 sm:$0xff]  }
 0x708   :  { %v11008_v33 = vpop.f32.mrb[4].mxu0  ;;  %13297 = vmatpush1.bf16.msra.mxu1 %v16220_v3  ;;  %v16337_v3 = vld [vmem:[#allocation7 + $0x740] ss:$16 sps:$4 sm:$0xff]  }
 0x709   :  { %v15788_v61 = vadd.f32 %v11008_v33, %v1664_v59  ;;  %v11010_v34 = vpop.f32.mrb[5].mxu0  ;;  %13298 = vmatprep.subr.bf16.mxu1 %v16228_v7  ;;  %v16264_v59 = vld [vmem:[#allocation7 + $0x44c] ss:$16 sps:$4 sm:$0xff]   ;;  %v16262_v7 = vld [vmem:[#allocation7 + $0x448] ss:$16 sps:$4 sm:$0xff]  }
 0x70a   :  { %v15789_v51 = vadd.f32 %v11010_v34, %v1668_v4  ;;  %v11012_v10 = vpop.f32.mrb[6].mxu0  ;;  %v16345_v4 = vld [vmem:[#allocation7 + $0x764] ss:$16 sps:$4 sm:$0xff]   ;;  %v16267_v33 = vld [vmem:[#allocation7 + $0x46c] ss:$16 sps:$4 sm:$0xff]  }
 0x70b   :  { %v11511_v37 = vpack.c.bf16 %v15788_v61, %v15788_v61  ;;  %v11013_v21 = vpop.f32.mrb[7].mxu0  ;;  %v16343_v61 = vld [vmem:[#allocation7 + $0x760] ss:$16 sps:$4 sm:$0xff]   ;;  %v16351_v34 = vld [vmem:[#allocation7 + $0x784] ss:$16 sps:$4 sm:$0xff]  }
 0x70c   :  { %v11512_v50 = vpack.c.bf16 %v15789_v51, %v15789_v51  ;;  %13299 = vmatpush1.bf16.msra.mxu1 %v16226_v53  ;;  %v16270_v53 = vld [vmem:[#allocation7 + $0x48c] ss:$16 sps:$4 sm:$0xff]   ;;  %v16349_v51 = vld [vmem:[#allocation7 + $0x780] ss:$16 sps:$4 sm:$0xff]   ;;  %v16357_v10 = vld [vmem:[#allocation7 + $0x7a4] ss:$16 sps:$4 sm:$0xff]  }
 0x70d   :  { %13300 = vmatprep.subr.bf16.mxu1 %v16231_v35  ;;  %v17099_v17 = vmax.bf16 %v16675_v28, %v11511_v37  ;;  %v16268_v35 = vld [vmem:[#allocation7 + $0x488] ss:$16 sps:$4 sm:$0xff]   ;;  %v16273_v37 = vld [vmem:[#allocation7 + $0x4ac] ss:$16 sps:$4 sm:$0xff]   ;;  %v16355_v21 = vld [vmem:[#allocation7 + $0x7a0] ss:$16 sps:$4 sm:$0xff]  }
 0x70e   :  { %v17096_v15 = vmax.bf16 %v16675_v28, %v11512_v50  ;;  %v16363_v50 = vld [vmem:[#allocation7 + $0x7c4] ss:$16 sps:$4 sm:$0xff]  }
 0x710   :  { %13195 = vmatprep.mubr.bf16.mxu0 %v17096_v15  ;;  %13301 = vmatpush1.bf16.msra.mxu1 %v16229_v5  ;;  %v16271_v5 = vld [vmem:[#allocation7 + $0x4a8] ss:$16 sps:$4 sm:$0xff]  }
 0x711   :  { %13196 = vmatmul.mubr.bf16.vlgmr.msra.gmra.mrb[8].mxu0 %v17099_v17  ;;  %13302 = vmatprep.subr.bf16.mxu1 %v16234_v31  ;;  %v16361_v31 = vld [vmem:[#allocation7 + $0x7c0] ss:$16 sps:$4 sm:$0xff]  }
 0x712   :  { %13205 = vmatpush1.bf16.msra.mxu0 %v16277_v8  ;;  %v16369_v8 = vld [vmem:[#allocation7 + $0x7e4] ss:$16 sps:$4 sm:$0xff]  }
 0x713   :  { %13206 = vmatprep.subr.bf16.mxu0 %v16285_v24  ;;  %v16274_v24 = vld [vmem:[#allocation7 + $0x4c8] ss:$16 sps:$4 sm:$0xff]  }
 0x714   :  { %13303 = vmatpush1.bf16.msra.mxu1 %v16232_v46  ;;  %v16282_v46 = vld [vmem:[#allocation7 + $0x4ec] ss:$16 sps:$4 sm:$0xff]  }
 0x715   :  { %13304 = vmatprep.subr.bf16.mxu1 %v16237_v45  ;;  %v16367_v45 = vld [vmem:[#allocation7 + $0x7e0] ss:$16 sps:$4 sm:$0xff]  }
 0x716   :  { %13207 = vmatpush1.bf16.msra.mxu0 %v16283_v25  ;;  %v16402_v25 = vld [vmem:[#allocation10 + $0x4] ss:$8 sps:$4 sm:$0xff]  }
 0x717   :  { %13208 = vmatprep.subr.bf16.mxu0 %v16291_v30  ;;  %v16280_v30 = vld [vmem:[#allocation7 + $0x4e8] ss:$16 sps:$4 sm:$0xff]  }
 0x718   :  { %13305 = vmatpush1.bf16.msra.mxu1 %v16235_v56  ;;  %v16288_v56 = vld [vmem:[#allocation7 + $0x50c] ss:$16 sps:$4 sm:$0xff]  }
 0x719   :  { %13306 = vmatprep.subr.bf16.mxu1 %v16240_v63  ;;  %v16286_v63 = vld [vmem:[#allocation7 + $0x508] ss:$16 sps:$4 sm:$0xff]  }
 0x71a   :  { %13209 = vmatpush1.bf16.msra.mxu0 %v16289_v36  ;;  %v16294_v36 = vld [vmem:[#allocation7 + $0x52c] ss:$16 sps:$4 sm:$0xff]  }
 0x71b   :  { %13210 = vmatprep.subr.bf16.mxu0 %v16297_v39  ;;  %v16292_v39 = vld [vmem:[#allocation7 + $0x528] ss:$16 sps:$4 sm:$0xff]  }
 0x71c   :  { %13307 = vmatpush1.bf16.msra.mxu1 %v16238_v19  ;;  %v16300_v19 = vld [vmem:[#allocation7 + $0x54c] ss:$16 sps:$4 sm:$0xff]  }
 0x71d   :  { %13308 = vmatprep.subr.bf16.mxu1 %v16243_v40  ;;  %v16298_v40 = vld [vmem:[#allocation7 + $0x548] ss:$16 sps:$4 sm:$0xff]  }
 0x71e   :  { %13211 = vmatpush1.bf16.msra.mxu0 %v16295_v41  ;;  %v16306_v41 = vld [vmem:[#allocation7 + $0x56c] ss:$16 sps:$4 sm:$0xff]  }
 0x71f   :  { %13212 = vmatprep.subr.bf16.mxu0 %v16303_v44  ;;  %v16304_v44 = vld [vmem:[#allocation7 + $0x568] ss:$16 sps:$4 sm:$0xff]  }
 0x720   :  { %13309 = vmatpush1.bf16.msra.mxu1 %v16241_v47  ;;  %v16312_v47 = vld [vmem:[#allocation7 + $0x58c] ss:$16 sps:$4 sm:$0xff]  }
 0x721   :  { %13310 = vmatprep.subr.bf16.mxu1 %v16246_v48  ;;  %v16310_v48 = vld [vmem:[#allocation7 + $0x588] ss:$16 sps:$4 sm:$0xff]  }
 0x722   :  { %13213 = vmatpush1.bf16.msra.mxu0 %v16301_v16  ;;  %v16318_v16 = vld [vmem:[#allocation7 + $0x5ac] ss:$16 sps:$4 sm:$0xff]  }
 0x723   :  { %13214 = vmatprep.subr.bf16.mxu0 %v16309_v52  ;;  %v16316_v52 = vld [vmem:[#allocation7 + $0x5a8] ss:$16 sps:$4 sm:$0xff]  }
 0x724   :  { %13311 = vmatpush1.bf16.msra.mxu1 %v16244_v54  ;;  %v16324_v54 = vld [vmem:[#allocation7 + $0x5cc] ss:$16 sps:$4 sm:$0xff]  }
 0x725   :  { %13312 = vmatprep.subr.bf16.mxu1 %v16249_v29  ;;  %v16322_v29 = vld [vmem:[#allocation7 + $0x5c8] ss:$16 sps:$4 sm:$0xff]  }
 0x726   :  { %13215 = vmatpush1.bf16.msra.mxu0 %v16307_v62  ;;  %v16330_v62 = vld [vmem:[#allocation7 + $0x5ec] ss:$16 sps:$4 sm:$0xff]  }
 0x727   :  { %13216 = vmatprep.subr.bf16.mxu0 %v16315_v55  ;;  %v16328_v55 = vld [vmem:[#allocation7 + $0x5e8] ss:$16 sps:$4 sm:$0xff]  }
 0x728   :  { %13313 = vmatpush1.bf16.msra.mxu1 %v16247_v57  ;;  %v16336_v57 = vld [vmem:[#allocation7 + $0x60c] ss:$16 sps:$4 sm:$0xff]  }
 0x729   :  { %13314 = vmatprep.subr.bf16.mxu1 %v16252_v38  ;;  %v16334_v38 = vld [vmem:[#allocation7 + $0x608] ss:$16 sps:$4 sm:$0xff]  }
 0x72a   :  { %13217 = vmatpush1.bf16.msra.mxu0 %v16313_v18  ;;  %v16342_v18 = vld [vmem:[#allocation7 + $0x62c] ss:$16 sps:$4 sm:$0xff]  }
 0x72b   :  { %13218 = vmatprep.subr.bf16.mxu0 %v16321_v60  ;;  %v16340_v60 = vld [vmem:[#allocation7 + $0x628] ss:$16 sps:$4 sm:$0xff]  }
 0x72c   :  { %13315 = vmatpush1.bf16.msra.mxu1 %v16250_v20  ;;  %v16348_v20 = vld [vmem:[#allocation7 + $0x64c] ss:$16 sps:$4 sm:$0xff]  }
 0x72d   :  { %13316 = vmatprep.subr.bf16.mxu1 %v16255_v9  ;;  %v16346_v9 = vld [vmem:[#allocation7 + $0x648] ss:$16 sps:$4 sm:$0xff]  }
 0x72e   :  { %13219 = vmatpush1.bf16.msra.mxu0 %v16319_v22  ;;  %v16354_v22 = vld [vmem:[#allocation7 + $0x66c] ss:$16 sps:$4 sm:$0xff]  }
 0x72f   :  { %13220 = vmatprep.subr.bf16.mxu0 %v16327_v23  ;;  %v16352_v23 = vld [vmem:[#allocation7 + $0x668] ss:$16 sps:$4 sm:$0xff]  }
 0x730   :  { %13317 = vmatpush1.bf16.msra.mxu1 %v16253_v27  ;;  %v16360_v27 = vld [vmem:[#allocation7 + $0x68c] ss:$16 sps:$4 sm:$0xff]  }
 0x731   :  { %13327 = vmatprep.subr.bf16.mxu1 %v16258_v6  ;;  %v1671_v6 = vsub.s32 6, %v16789_v43 }
 0x732   :  { %13221 = vmatpush1.bf16.msra.mxu0 %v16325_v0  ;;  %v16358_v0 = vld [vmem:[#allocation7 + $0x688] ss:$16 sps:$4 sm:$0xff]  }
 0x733   :  { %13222 = vmatprep.subr.bf16.mxu0 %v16333_v1  ;;  %13319 = vmatmul.mubr.bf16.vlgmr.msra.gmra.mrb[12].mxu1 %v17084_v49  ;;  %v16265_v49 = vld [vmem:[#allocation7 + $0x468] ss:$16 sps:$4 sm:$0xff]   ;;  %v1675_v1 = vsub.s32 7, %v16789_v43 }
 0x734   :  { %13328 = vmatpush1.bf16.msra.mxu1 %v16256_v11  ;;  %13359 = vmatprep.mubr.bf16.mxu1 %v17096_v15  ;;  %v16276_v15 = vld [vmem:[#allocation7 + $0x4cc] ss:$16 sps:$4 sm:$0xff]  }
 0x735   :  { %13329 = vmatprep.subr.bf16.mxu1 %v16261_v2  ;;  %v16497_v11 = vld [vmem:[#allocation5] sm:$0xff] }
 0x736   :  { %13223 = vmatpush1.bf16.msra.mxu0 %v16331_v42  ;;  %v1672_v2 = vrot.slane %v16497_v11, %v1671_v6  ;;  %v1676_v42 = vrot.slane %v16497_v11, %v1675_v1  ;;  %v16430_v6 = vld [vmem:[#allocation10 + $0xa0] ss:$8 sps:$4 sm:$0xff]   ;;  %v16433_v1 = vld [vmem:[#allocation10 + $0xb0] ss:$8 sps:$4 sm:$0xff]  }
 0x737   :  { %13224 = vmatprep.subr.bf16.mxu0 %v16339_v32  ;;  %v16364_v32 = vld [vmem:[#allocation7 + $0x6a8] ss:$16 sps:$4 sm:$0xff]   ;;  %v16436_v11 = vld [vmem:[#allocation10 + $0xc0] ss:$8 sps:$4 sm:$0xff]  }
 0x738   :  { %13330 = vmatpush1.bf16.msra.mxu1 %v16259_v58  ;;  %v16372_v58 = vld [vmem:[#allocation7 + $0x6cc] ss:$16 sps:$4 sm:$0xff]  }
 0x739   :  { %13331 = vmatprep.subr.bf16.mxu1 %v16264_v59 }
 0x73a   :  { %13225 = vmatpush1.bf16.msra.mxu0 %v16337_v3 }
 0x73b   :  { %13226 = vmatprep.subr.bf16.mxu0 %v16345_v4 }
 0x73c   :  { %13332 = vmatpush1.bf16.msra.mxu1 %v16262_v7 }
 0x73d   :  { %13333 = vmatprep.subr.bf16.mxu1 %v16267_v33 }
 0x73e   :  { %13227 = vmatpush1.bf16.msra.mxu0 %v16343_v61  ;;  %v16370_v61 = vld [vmem:[#allocation7 + $0x6c8] ss:$16 sps:$4 sm:$0xff]  }
 0x73f   :  { %13228 = vmatprep.subr.bf16.mxu0 %v16351_v34 }
 0x740   :  { %13334 = vmatpush1.bf16.msra.mxu1 %v16265_v49 }
 0x741   :  { %13335 = vmatprep.subr.bf16.mxu1 %v16270_v53  ;;  %v16375_v53 = vld [vmem:[#allocation7 + $0x6ec] ss:$16 sps:$4 sm:$0xff]  }
 0x742   :  { %13229 = vmatpush1.bf16.msra.mxu0 %v16349_v51 }
 0x743   :  { %13230 = vmatprep.subr.bf16.mxu0 %v16357_v10 }
 0x744   :  { %13336 = vmatpush1.bf16.msra.mxu1 %v16268_v35  ;;  %v16373_v35 = vld [vmem:[#allocation7 + $0x6e8] ss:$16 sps:$4 sm:$0xff]  }
 0x745   :  { %13337 = vmatprep.subr.bf16.mxu1 %v16273_v37  ;;  %v16400_v37 = vld [vmem:[#allocation10] ss:$8 sps:$4 sm:$0xff]  }
 0x746   :  { %13231 = vmatpush1.bf16.msra.mxu0 %v16355_v21 }
 0x747   :  { %13232 = vmatprep.subr.bf16.mxu0 %v16363_v50  ;;  %v16378_v50 = vld [vmem:[#allocation7 + $0x70c] ss:$16 sps:$4 sm:$0xff]  }
 0x748   :  { %13338 = vmatpush1.bf16.msra.mxu1 %v16271_v5  ;;  %v16405_v5 = vld [vmem:[#allocation10 + $0x14] ss:$8 sps:$4 sm:$0xff]  }
 0x749   :  { %13339 = vmatprep.subr.bf16.mxu1 %v16276_v15  ;;  %v16376_v15 = vld [vmem:[#allocation7 + $0x708] ss:$16 sps:$4 sm:$0xff]  }
 0x74a   :  { %13233 = vmatpush1.bf16.msra.mxu0 %v16361_v31  ;;  %v16403_v31 = vld [vmem:[#allocation10 + $0x10] ss:$8 sps:$4 sm:$0xff]  }
 0x74b   :  { %13234 = vmatprep.subr.bf16.mxu0 %v16369_v8  ;;  %v16381_v8 = vld [vmem:[#allocation7 + $0x72c] ss:$16 sps:$4 sm:$0xff]  }
 0x74c   :  { %13340 = vmatpush1.bf16.msra.mxu1 %v16274_v24  ;;  %v16408_v24 = vld [vmem:[#allocation10 + $0x24] ss:$8 sps:$4 sm:$0xff]  }
 0x74d   :  { %13341 = vmatprep.subr.bf16.mxu1 %v16282_v46  ;;  %v16379_v46 = vld [vmem:[#allocation7 + $0x728] ss:$16 sps:$4 sm:$0xff]  }
 0x74e   :  { %13235 = vmatpush1.bf16.msra.mxu0 %v16367_v45  ;;  %v16406_v45 = vld [vmem:[#allocation10 + $0x20] ss:$8 sps:$4 sm:$0xff]  }
 0x74f   :  { %13813 = vmatprep.subr.bf16.mxu0 %v16402_v25  ;;  %v16384_v25 = vld [vmem:[#allocation7 + $0x74c] ss:$16 sps:$4 sm:$0xff]  }
 0x750   :  { %13342 = vmatpush1.bf16.msra.mxu1 %v16280_v30  ;;  %v16411_v30 = vld [vmem:[#allocation10 + $0x34] ss:$8 sps:$4 sm:$0xff]  }
 0x751   :  { %13343 = vmatprep.subr.bf16.mxu1 %v16288_v56  ;;  %v16382_v56 = vld [vmem:[#allocation7 + $0x748] ss:$16 sps:$4 sm:$0xff]  }
 0x754   :  { %13344 = vmatpush1.bf16.msra.mxu1 %v16286_v63  ;;  %v16409_v63 = vld [vmem:[#allocation10 + $0x30] ss:$8 sps:$4 sm:$0xff]  }
 0x755   :  { %13345 = vmatprep.subr.bf16.mxu1 %v16294_v36  ;;  %v16387_v36 = vld [vmem:[#allocation7 + $0x76c] ss:$16 sps:$4 sm:$0xff]  }
 0x758   :  { %13346 = vmatpush1.bf16.msra.mxu1 %v16292_v39  ;;  %v16414_v39 = vld [vmem:[#allocation10 + $0x44] ss:$8 sps:$4 sm:$0xff]  }
 0x759   :  { %13347 = vmatprep.subr.bf16.mxu1 %v16300_v19  ;;  %v16385_v19 = vld [vmem:[#allocation7 + $0x768] ss:$16 sps:$4 sm:$0xff]  }
 0x75c   :  { %13348 = vmatpush1.bf16.msra.mxu1 %v16298_v40  ;;  %v16412_v40 = vld [vmem:[#allocation10 + $0x40] ss:$8 sps:$4 sm:$0xff]  }
 0x75d   :  { %13349 = vmatprep.subr.bf16.mxu1 %v16306_v41  ;;  %v16390_v41 = vld [vmem:[#allocation7 + $0x78c] ss:$16 sps:$4 sm:$0xff]  }
 0x760   :  { %13350 = vmatpush1.bf16.msra.mxu1 %v16304_v44  ;;  %v16417_v44 = vld [vmem:[#allocation10 + $0x54] ss:$8 sps:$4 sm:$0xff]  }
 0x761   :  { %13351 = vmatprep.subr.bf16.mxu1 %v16312_v47  ;;  %v16388_v47 = vld [vmem:[#allocation7 + $0x788] ss:$16 sps:$4 sm:$0xff]  }
 0x764   :  { %13352 = vmatpush1.bf16.msra.mxu1 %v16310_v48  ;;  %v16415_v48 = vld [vmem:[#allocation10 + $0x50] ss:$8 sps:$4 sm:$0xff]  }
 0x765   :  { %13353 = vmatprep.subr.bf16.mxu1 %v16318_v16  ;;  %v16393_v16 = vld [vmem:[#allocation7 + $0x7ac] ss:$16 sps:$4 sm:$0xff]  }
 0x768   :  { %13354 = vmatpush1.bf16.msra.mxu1 %v16316_v52  ;;  %v16420_v52 = vld [vmem:[#allocation10 + $0x64] ss:$8 sps:$4 sm:$0xff]  }
 0x769   :  { %13355 = vmatprep.subr.bf16.mxu1 %v16324_v54  ;;  %v16391_v54 = vld [vmem:[#allocation7 + $0x7a8] ss:$16 sps:$4 sm:$0xff]  }
 0x76c   :  { %13356 = vmatpush1.bf16.msra.mxu1 %v16322_v29  ;;  %v16418_v29 = vld [vmem:[#allocation10 + $0x60] ss:$8 sps:$4 sm:$0xff]  }
 0x76d   :  { %13357 = vmatprep.subr.bf16.mxu1 %v16330_v62  ;;  %v16396_v62 = vld [vmem:[#allocation7 + $0x7cc] ss:$16 sps:$4 sm:$0xff]  }
 0x770   :  { %13358 = vmatpush1.bf16.msra.mxu1 %v16328_v55  ;;  %v16423_v55 = vld [vmem:[#allocation10 + $0x74] ss:$8 sps:$4 sm:$0xff]  }
 0x771   :  { %13368 = vmatprep.subr.bf16.mxu1 %v16336_v57  ;;  %v16394_v57 = vld [vmem:[#allocation7 + $0x7c8] ss:$16 sps:$4 sm:$0xff]  }
 0x773   :  { %13360 = vmatmul.mubr.bf16.vlgmr.msra.gmra.mrb[12].mxu1 %v17099_v17  ;;  %v16366_v17 = vld [vmem:[#allocation7 + $0x6ac] ss:$16 sps:$4 sm:$0xff]  }
 0x774   :  { %13369 = vmatpush1.bf16.msra.mxu1 %v16334_v38  ;;  %v16421_v38 = vld [vmem:[#allocation10 + $0x70] ss:$8 sps:$4 sm:$0xff]  }
 0x775   :  { %13370 = vmatprep.subr.bf16.mxu1 %v16342_v18  ;;  %v16399_v18 = vld [vmem:[#allocation7 + $0x7ec] ss:$16 sps:$4 sm:$0xff]  }
 0x778   :  { %13371 = vmatpush1.bf16.msra.mxu1 %v16340_v60  ;;  %v16426_v60 = vld [vmem:[#allocation10 + $0x84] ss:$8 sps:$4 sm:$0xff]  }
 0x779   :  { %13372 = vmatprep.subr.bf16.mxu1 %v16348_v20  ;;  %v16397_v20 = vld [vmem:[#allocation7 + $0x7e8] ss:$16 sps:$4 sm:$0xff]  }
 0x77c   :  { %13373 = vmatpush1.bf16.msra.mxu1 %v16346_v9  ;;  %v16424_v9 = vld [vmem:[#allocation10 + $0x80] ss:$8 sps:$4 sm:$0xff]  }
 0x77d   :  { %13374 = vmatprep.subr.bf16.mxu1 %v16354_v22  ;;  %v16429_v22 = vld [vmem:[#allocation10 + $0x94] ss:$8 sps:$4 sm:$0xff]  }
 0x780   :  { %13375 = vmatpush1.bf16.msra.mxu1 %v16352_v23  ;;  %v16427_v23 = vld [vmem:[#allocation10 + $0x90] ss:$8 sps:$4 sm:$0xff]  }
 0x781   :  { %13376 = vmatprep.subr.bf16.mxu1 %v16360_v27  ;;  %v16432_v27 = vld [vmem:[#allocation10 + $0xa4] ss:$8 sps:$4 sm:$0xff]  }
 0x784   :  { %13377 = vmatpush1.bf16.msra.mxu1 %v16358_v0  ;;  %v16435_v0 = vld [vmem:[#allocation10 + $0xb4] ss:$8 sps:$4 sm:$0xff]  }
 0x785   :  { %13378 = vmatprep.subr.bf16.mxu1 %v16366_v17  ;;  %v16438_v17 = vld [vmem:[#allocation10 + $0xc4] ss:$8 sps:$4 sm:$0xff]  }
 0x786   :  { %v11500_v59 = vpop.f32.mrb[8].mxu1 }
 0x787   :  { %v15790_v3 = vadd.f32 %v11500_v59, %v1672_v2  ;;  %v11502_v4 = vpop.f32.mrb[9].mxu1  ;;  %v16441_v2 = vld [vmem:[#allocation10 + $0xd4] ss:$8 sps:$4 sm:$0xff]  }
 0x788   :  { %v15791_v7 = vadd.f32 %v11502_v4, %v1676_v42  ;;  %v11504_v33 = vpop.f32.mrb[10].mxu1  ;;  %13379 = vmatpush1.bf16.msra.mxu1 %v16364_v32  ;;  %v16439_v42 = vld [vmem:[#allocation10 + $0xd0] ss:$8 sps:$4 sm:$0xff]   ;;  %v16444_v32 = vld [vmem:[#allocation10 + $0xe4] ss:$8 sps:$4 sm:$0xff]  }
 0x789   :  { %v11513_v34 = vpack.c.bf16 %v15790_v3, %v15790_v3  ;;  %v11505_v49 = vpop.f32.mrb[11].mxu1  ;;  %13380 = vmatprep.subr.bf16.mxu1 %v16372_v58  ;;  %v16442_v58 = vld [vmem:[#allocation10 + $0xe0] ss:$8 sps:$4 sm:$0xff]   ;;  %v16447_v59 = vld [vmem:[#allocation10 + $0xf4] ss:$8 sps:$4 sm:$0xff]  }
 0x78a   :  { %v11514_v51 = vpack.c.bf16 %v15791_v7, %v15791_v7  ;;  %v16445_v3 = vld [vmem:[#allocation10 + $0xf0] ss:$8 sps:$4 sm:$0xff]   ;;  %v16450_v4 = vld [vmem:[#allocation10 + $0x104] ss:$8 sps:$4 sm:$0xff]   ;;  %v17114_v7 = vld [vmem:[#allocation8] sm:$0xf] }
 0x78b   :  { %v17110_v21 = vmax.bf16 %v16675_v28, %v11513_v34  ;;  %v11784_v33 = vrot.slane %v17114_v7, %v17001_v13 }
 0x78c   :  { %v11522_v10 = vmax.bf16 %v16675_v28, %v11514_v51  ;;  %13381 = vmatpush1.bf16.msra.mxu1 %v16370_v61  ;;  %v11788_v61 = vrot.slane %v17114_v7, %v17004_v12 }
 0x78d   :  { %13382 = vmatprep.subr.bf16.mxu1 %v16375_v53 }
 0x78e   :  { %13236 = vmatprep.mubr.bf16.mxu0 %v11522_v10  ;;  %13400 = vmatprep.mubr.bf16.mxu1 %v11522_v10 }
 0x78f   :  { %13237 = vmatmul.mubr.bf16.vlgmr.msra.gmra.mrb[8].mxu0 %v17110_v21 }
 0x790   :  { %13383 = vmatpush1.bf16.msra.mxu1 %v16373_v35  ;;  %13814 = vmatpush1.bf16.msra.mxu0 %v16400_v37 }
 0x791   :  { %13384 = vmatprep.subr.bf16.mxu1 %v16378_v50  ;;  %13815 = vmatprep.subr.bf16.mxu0 %v16405_v5  ;;  %v16448_v5 = vld [vmem:[#allocation10 + $0x100] ss:$8 sps:$4 sm:$0xff]  }
 0x794   :  { %13385 = vmatpush1.bf16.msra.mxu1 %v16376_v15  ;;  %13816 = vmatpush1.bf16.msra.mxu0 %v16403_v31  ;;  %v16453_v31 = vld [vmem:[#allocation10 + $0x114] ss:$8 sps:$4 sm:$0xff]  }
 0x795   :  { %13386 = vmatprep.subr.bf16.mxu1 %v16381_v8  ;;  %13817 = vmatprep.subr.bf16.mxu0 %v16408_v24  ;;  %v16451_v8 = vld [vmem:[#allocation10 + $0x110] ss:$8 sps:$4 sm:$0xff]   ;;  %v16456_v24 = vld [vmem:[#allocation10 + $0x124] ss:$8 sps:$4 sm:$0xff]  }
 0x798   :  { %13387 = vmatpush1.bf16.msra.mxu1 %v16379_v46  ;;  %13818 = vmatpush1.bf16.msra.mxu0 %v16406_v45  ;;  %v16454_v46 = vld [vmem:[#allocation10 + $0x120] ss:$8 sps:$4 sm:$0xff]   ;;  %v16459_v45 = vld [vmem:[#allocation10 + $0x134] ss:$8 sps:$4 sm:$0xff]  }
 0x799   :  { %13388 = vmatprep.subr.bf16.mxu1 %v16384_v25  ;;  %13819 = vmatprep.subr.bf16.mxu0 %v16411_v30  ;;  %v16457_v25 = vld [vmem:[#allocation10 + $0x130] ss:$8 sps:$4 sm:$0xff]   ;;  %v16462_v30 = vld [vmem:[#allocation10 + $0x144] ss:$8 sps:$4 sm:$0xff]  }
 0x79c   :  { %13389 = vmatpush1.bf16.msra.mxu1 %v16382_v56  ;;  %13820 = vmatpush1.bf16.msra.mxu0 %v16409_v63  ;;  %v16460_v56 = vld [vmem:[#allocation10 + $0x140] ss:$8 sps:$4 sm:$0xff]   ;;  %v16465_v63 = vld [vmem:[#allocation10 + $0x154] ss:$8 sps:$4 sm:$0xff]  }
 0x79d   :  { %13390 = vmatprep.subr.bf16.mxu1 %v16387_v36  ;;  %13821 = vmatprep.subr.bf16.mxu0 %v16414_v39  ;;  %v16463_v36 = vld [vmem:[#allocation10 + $0x150] ss:$8 sps:$4 sm:$0xff]   ;;  %v16468_v39 = vld [vmem:[#allocation10 + $0x164] ss:$8 sps:$4 sm:$0xff]  }
 0x7a0   :  { %13391 = vmatpush1.bf16.msra.mxu1 %v16385_v19  ;;  %13822 = vmatpush1.bf16.msra.mxu0 %v16412_v40  ;;  %v16466_v19 = vld [vmem:[#allocation10 + $0x160] ss:$8 sps:$4 sm:$0xff]   ;;  %v16471_v40 = vld [vmem:[#allocation10 + $0x174] ss:$8 sps:$4 sm:$0xff]  }
 0x7a1   :  { %13392 = vmatprep.subr.bf16.mxu1 %v16390_v41  ;;  %13823 = vmatprep.subr.bf16.mxu0 %v16417_v44  ;;  %v16469_v41 = vld [vmem:[#allocation10 + $0x170] ss:$8 sps:$4 sm:$0xff]   ;;  %v11796_v44 = vrot.slane %v17114_v7, %v1659_v26  ;;  %v16478_v26 = vld [vmem:[#allocation10 + $0x1a0] ss:$8 sps:$4 sm:$0xff]  }
 0x7a4   :  { %13393 = vmatpush1.bf16.msra.mxu1 %v16388_v47  ;;  %13824 = vmatpush1.bf16.msra.mxu0 %v16415_v48  ;;  %v16474_v47 = vld [vmem:[#allocation10 + $0x184] ss:$8 sps:$4 sm:$0xff]  }
 0x7a5   :  { %13394 = vmatprep.subr.bf16.mxu1 %v16393_v16  ;;  %13825 = vmatprep.subr.bf16.mxu0 %v16420_v52 }
 0x7a8   :  { %13395 = vmatpush1.bf16.msra.mxu1 %v16391_v54  ;;  %13826 = vmatpush1.bf16.msra.mxu0 %v16418_v29  ;;  %v16472_v29 = vld [vmem:[#allocation10 + $0x180] ss:$8 sps:$4 sm:$0xff]  }
 0x7a9   :  { %13396 = vmatprep.subr.bf16.mxu1 %v16396_v62  ;;  %13827 = vmatprep.subr.bf16.mxu0 %v16423_v55  ;;  %v16477_v55 = vld [vmem:[#allocation10 + $0x194] ss:$8 sps:$4 sm:$0xff]  }
 0x7ac   :  { %13397 = vmatpush1.bf16.msra.mxu1 %v16394_v57  ;;  %13828 = vmatpush1.bf16.msra.mxu0 %v16421_v38 }
 0x7ad   :  { %13398 = vmatprep.subr.bf16.mxu1 %v16399_v18  ;;  %13829 = vmatprep.subr.bf16.mxu0 %v16426_v60  ;;  %v16475_v18 = vld [vmem:[#allocation10 + $0x190] ss:$8 sps:$4 sm:$0xff]   ;;  %v16480_v60 = vld [vmem:[#allocation10 + $0x1a4] ss:$8 sps:$4 sm:$0xff]  }
 0x7b0   :  { %13399 = vmatpush1.bf16.msra.mxu1 %v16397_v20  ;;  %13830 = vmatpush1.bf16.msra.mxu0 %v16424_v9  ;;  %v16483_v20 = vld [vmem:[#allocation10 + $0x1b4] ss:$8 sps:$4 sm:$0xff]   ;;  %v16481_v9 = vld [vmem:[#allocation10 + $0x1b0] ss:$8 sps:$4 sm:$0xff]  }
 0x7b1   :  { %13831 = vmatprep.subr.bf16.mxu0 %v16429_v22  ;;  %v16486_v22 = vld [vmem:[#allocation10 + $0x1c4] ss:$8 sps:$4 sm:$0xff]  }
 0x7b3   :  { %13401 = vmatmul.mubr.bf16.vlgmr.msra.gmra.mrb[12].mxu1 %v17110_v21 }
 0x7b4   :  { %13832 = vmatpush1.bf16.msra.mxu0 %v16427_v23  ;;  %v16484_v23 = vld [vmem:[#allocation10 + $0x1c0] ss:$8 sps:$4 sm:$0xff]  }
 0x7b5   :  { %13833 = vmatprep.subr.bf16.mxu0 %v16432_v27  ;;  %v16489_v27 = vld [vmem:[#allocation10 + $0x1d4] ss:$8 sps:$4 sm:$0xff]  }
 0x7b8   :  { %13834 = vmatpush1.bf16.msra.mxu0 %v16430_v6  ;;  %v16487_v6 = vld [vmem:[#allocation10 + $0x1d0] ss:$8 sps:$4 sm:$0xff]  }
 0x7b9   :  { %13835 = vmatprep.subr.bf16.mxu0 %v16435_v0  ;;  %v11792_v0 = vrot.slane %v17114_v7, %v1655_v14 }
 0x7bc   :  { %13836 = vmatpush1.bf16.msra.mxu0 %v16433_v1  ;;  %v16492_v1 = vld [vmem:[#allocation10 + $0x1e4] ss:$8 sps:$4 sm:$0xff]  }
 0x7bd   :  { %13837 = vmatprep.subr.bf16.mxu0 %v16438_v17  ;;  %v16490_v17 = vld [vmem:[#allocation10 + $0x1e0] ss:$8 sps:$4 sm:$0xff]  }
 0x7c0   :  { %13838 = vmatpush1.bf16.msra.mxu0 %v16436_v11 }
 0x7c1   :  { %13839 = vmatprep.subr.bf16.mxu0 %v16441_v2  ;;  %v16495_v2 = vld [vmem:[#allocation10 + $0x1f4] ss:$8 sps:$4 sm:$0xff]  }
 0x7c4   :  { %13840 = vmatpush1.bf16.msra.mxu0 %v16439_v42  ;;  %v16493_v42 = vld [vmem:[#allocation10 + $0x1f0] ss:$8 sps:$4 sm:$0xff]  }
 0x7c5   :  { %13841 = vmatprep.subr.bf16.mxu0 %v16444_v32 }
 0x7c8   :  { %13842 = vmatpush1.bf16.msra.mxu0 %v16442_v58 }
 0x7c9   :  { %13843 = vmatprep.subr.bf16.mxu0 %v16447_v59  ;;  %v13481_v59 = vld [vmem:[#allocation11] sm:$0x3] }
 0x7ca   :  { %v13486_v43 = vrot.slane %v13481_v59, %v17001_v13  ;;  %v13490_v14 = vrot.slane %v13481_v59, %v17004_v12 }
 0x7cc   :  { %13844 = vmatpush1.bf16.msra.mxu0 %v16445_v3 }
 0x7cd   :  { %13854 = vmatprep.subr.bf16.mxu0 %v16450_v4 }
 0x862   :  { %v13238_v34 = vpop.f32.mrb[8].mxu0 }
 0x863   :  { %v15792_v49 = vadd.f32 %v13238_v34, %v11784_v33  ;;  %v13240_v53 = vpop.f32.mrb[9].mxu0 }
 0x864   :  { %v15793_v51 = vadd.f32 %v13240_v53, %v11788_v61  ;;  %v13242_v10 = vpop.f32.mrb[10].mxu0 }
 0x865   :  { %v13409_v35 = vpack.c.bf16 %v15792_v49, %v15792_v49  ;;  %v13243_v37 = vpop.f32.mrb[11].mxu0 }
 0x866   :  { %v13410_v21 = vpack.c.bf16 %v15793_v51, %v15793_v51 }
 0x867   :  { %v13413_v15 = vmax.bf16 %v16675_v28, %v13409_v35 }
 0x868   :  { %v13414_v50 = vmax.bf16 %v16675_v28, %v13410_v21 }
 0x86a   :  { %13845 = vmatprep.mubr.bf16.mxu0 %v13414_v50 }
 0x86b   :  { %13846 = vmatmul.mubr.bf16.vlgmr.msra.gmra.mrb[12].mxu0 %v13413_v15 }
 0x86c   :  { %13855 = vmatpush1.bf16.msra.mxu0 %v16448_v5 }
 0x86d   :  { %13856 = vmatprep.subr.bf16.mxu0 %v16453_v31 }
 0x870   :  { %13857 = vmatpush1.bf16.msra.mxu0 %v16451_v8 }
 0x871   :  { %13858 = vmatprep.subr.bf16.mxu0 %v16456_v24 }
 0x874   :  { %13859 = vmatpush1.bf16.msra.mxu0 %v16454_v46 }
 0x875   :  { %13860 = vmatprep.subr.bf16.mxu0 %v16459_v45 }
 0x878   :  { %13861 = vmatpush1.bf16.msra.mxu0 %v16457_v25 }
 0x879   :  { %13862 = vmatprep.subr.bf16.mxu0 %v16462_v30 }
 0x87c   :  { %13863 = vmatpush1.bf16.msra.mxu0 %v16460_v56 }
 0x87d   :  { %13864 = vmatprep.subr.bf16.mxu0 %v16465_v63 }
 0x880   :  { %13865 = vmatpush1.bf16.msra.mxu0 %v16463_v36 }
 0x881   :  { %13866 = vmatprep.subr.bf16.mxu0 %v16468_v39 }
 0x884   :  { %13867 = vmatpush1.bf16.msra.mxu0 %v16466_v19 }
 0x885   :  { %13868 = vmatprep.subr.bf16.mxu0 %v16471_v40 }
 0x886   :  { %v13402_v48 = vpop.f32.mrb[12].mxu1 }
 0x887   :  { %v13404_v16 = vpop.f32.mrb[13].mxu1  ;;  %v15794_v11 = vadd.f32 %v13402_v48, %v11792_v0 }
 0x888   :  { %v15795_v52 = vadd.f32 %v13404_v16, %v11796_v44  ;;  %13869 = vmatpush1.bf16.msra.mxu0 %v16469_v41  ;;  %v13406_v54 = vpop.f32.mrb[14].mxu1 }
 0x889   :  { %v13407_v62 = vpop.f32.mrb[15].mxu1  ;;  %13870 = vmatprep.subr.bf16.mxu0 %v16474_v47  ;;  %v13411_v32 = vpack.c.bf16 %v15794_v11, %v15794_v11 }
 0x88a   :  { %v13412_v57 = vpack.c.bf16 %v15795_v52, %v15795_v52 }
 0x88b   :  { %v13415_v58 = vmax.bf16 %v16675_v28, %v13411_v32 }
 0x88c   :  { %v13416_v38 = vmax.bf16 %v16675_v28, %v13412_v57  ;;  %13871 = vmatpush1.bf16.msra.mxu0 %v16472_v29 }
 0x88d   :  { %13872 = vmatprep.subr.bf16.mxu0 %v16477_v55 }
 0x88e   :  { %13886 = vmatprep.mubr.bf16.mxu0 %v13416_v38 }
 0x890   :  { %13873 = vmatpush1.bf16.msra.mxu0 %v16475_v18 }
 0x891   :  { %13874 = vmatprep.subr.bf16.mxu0 %v16480_v60 }
 0x894   :  { %13875 = vmatpush1.bf16.msra.mxu0 %v16478_v26 }
 0x895   :  { %13876 = vmatprep.subr.bf16.mxu0 %v16483_v20 }
 0x898   :  { %13877 = vmatpush1.bf16.msra.mxu0 %v16481_v9 }
 0x899   :  { %13878 = vmatprep.subr.bf16.mxu0 %v16486_v22 }
 0x89c   :  { %13879 = vmatpush1.bf16.msra.mxu0 %v16484_v23 }
 0x89d   :  { %13880 = vmatprep.subr.bf16.mxu0 %v16489_v27 }
 0x8a0   :  { %13881 = vmatpush1.bf16.msra.mxu0 %v16487_v6 }
 0x8a1   :  { %13882 = vmatprep.subr.bf16.mxu0 %v16492_v1 }
 0x8a4   :  { %13883 = vmatpush1.bf16.msra.mxu0 %v16490_v17 }
 0x8a5   :  { %13884 = vmatprep.subr.bf16.mxu0 %v16495_v2 }
 0x8a8   :  { %13885 = vmatpush1.bf16.msra.mxu0 %v16493_v42 }
 0x8ab   :  { %13887 = vmatmul.mubr.bf16.vlgmr.msra.gmra.mrb[12].mxu0 %v13415_v58 }
 0x97e   :  { %v13888_v3 = vpop.f32.mrb[12].mxu0 }
 0x97f   :  { %v15796_v4 = vadd.f32 %v13888_v3, %v13486_v43  ;;  %v13890_v7 = vpop.f32.mrb[13].mxu0 }
 0x980   :  { %v15797_v33 = vadd.f32 %v13890_v7, %v13490_v14  ;;  %v13892_v61 = vpop.f32.mrb[14].mxu0 }
 0x981   :  { %v13893_v34 = vpop.f32.mrb[15].mxu0 }
 0x982   :  { %v13897_v49 = vcombine.low %v15796_v4, %v15797_v33 }
 0x984   :  { %15781 = vst.sshfl [vmem:[#allocation13] sm:$0x33 pattern:$0x76325410] %v13897_v49 }
 0x985   :  { %16641 = shalt.err (!%p16638_p10)
}
 0x986   :  { %s16642_s11 = scalar_lea.hbm %s17151_s7, 64 }
 0x987   :  { %p16643_p11 = scmp.ne.s32.totalorder %s17151_s7, %s16642_s11  ;;  %p16646_p12 = scmp.lt.u32.totalorder %s16642_s11, %s17151_s7 }
 0x989   :  { %p16648_p13 = pnand %p16646_p12, %p16643_p11 }
 0x98b   :  { %16651 = shalt.err (!%p16648_p13)
}
 0x98c   :  { %13916 = dma.vmem_to_hbm [thread:$0]  %s13914_s30, 64, %s17151_s7, [#allocation4]  }
 0x98d   :  { %16660 = dma.done.wait [#allocation4], 64  }
 0x98e   :  { %16661 = vsyncadd [#allocation4], 4294967232 }
 0x98f   :  { %13920 = vsyncpa [#allocation3], 1 }
 0x990   :  { %13921 = vsyncpa [#allocation6], 1 }
 0x991   :  { %13922 = vsyncpa [#allocation9], 1 }
 0x992   :  { %13923 = vsyncpa [#allocation12], 1 }
 0x993   :  { %13924 = vsyncpa [#allocation4], 1 }

</bundles_post_ra>
